<compile_context>
chip_gen: v6e
topology: v6e:2x2x1
jax: 0.10.0
libtpu: 0.0.40
codegen_flags: <defaults>
</compile_context>

<pallas_src>
import jax
import jax.numpy as jnp
from jax import lax
from jax.experimental import pallas as pl
from jax.experimental.pallas import tpu as pltpu


def _round_up(x, m):
    return (x + m - 1) // m * m


# -----------------------------------------------------------------------------
# Fused kernel factory (W, H*W, channel sizes and the scratch offset are static)
# -----------------------------------------------------------------------------
def _make_block_kernel(W, HW, Cin, Cmid, Cout, off):

    def conv3x3(src_pad, w_ref, cin, cout, edge_l, edge_r):
        """3x3/pad1 conv as 9 shifted (HW,cin)x(cin,cout) bf16 MXU matmuls."""
        acc = jnp.zeros((HW, cout), jnp.float32)
        for kh in range(3):
            for kw in range(3):
                dj = kw - 1
                start = off + (kh - 1) * W + dj          # static Python int
                tap = src_pad[pl.ds(start, HW), :]       # (HW, cin) f32
                if dj == -1:                             # column j-1 must exist
                    tap = tap * edge_l
                elif dj == 1:                            # column j+1 must exist
                    tap = tap * edge_r
                wk = w_ref[pl.ds((kh * 3 + kw) * cin, cin), :]   # (cin, cout) bf16
                acc += jnp.dot(tap.astype(jnp.bfloat16), wk,
                               preferred_element_type=jnp.float32)
        return acc

    def kernel(x_ref, ml_ref, mr_ref, s1_ref, b1_ref, w1_ref,
               s2_ref, b2_ref, w2_ref, o_ref, a_pad, b_pad):
        x = x_ref[0]                         # (HW, Cin)  f32  (also the residual)
        edge_l = ml_ref[...]                 # (HW, 1)    f32  0 where j == 0
        edge_r = mr_ref[...]                 # (HW, 1)    f32  0 where j == W-1

        # ---- bn1 * channel_selection + relu (f32 VPU) -----------------------
        a = jnp.maximum(x * s1_ref[...] + b1_ref[...], 0.0)

        # Zero border of the scratch supplies the vertical conv padding.
        a_pad[...] = jnp.zeros_like(a_pad)
        a_pad[pl.ds(off, HW), :] = a

        # ---- conv1 -> bn2 -> relu -------------------------------------------
        y1 = conv3x3(a_pad, w1_ref, Cin, Cmid, edge_l, edge_r)
        b = jnp.maximum(y1 * s2_ref[...] + b2_ref[...], 0.0)

        b_pad[...] = jnp.zeros_like(b_pad)
        b_pad[pl.ds(off, HW), :] = b

        # ---- conv2 + residual add -------------------------------------------
        y2 = conv3x3(b_pad, w2_ref, Cmid, Cout, edge_l, edge_r)
        o_ref[0] = y2 + x

    return kernel


def _fused_block(x_flat, edge_l, edge_r, s1, b1, w1f, s2, b2, w2f, W):
    N, HW, Cin = x_flat.shape
    Cmid = w1f.shape[1]
    Cout = w2f.shape[1]
    # Scratch interior starts at a sublane-aligned offset; the zero strips of
    # size `off` (>= W+1) above/below the image provide the vertical padding.
    off = _round_up(W + 1, 8)
    pad_rows = HW + 2 * off

    kernel = _make_block_kernel(W, HW, Cin, Cmid, Cout, off)

    return pl.pallas_call(
        kernel,
        out_shape=jax.ShapeDtypeStruct((N, HW, Cout), jnp.float32),
        grid=(N,),
        in_specs=[
            pl.BlockSpec((1, HW, Cin), lambda n: (n, 0, 0)),   # x (residual)
            pl.BlockSpec((HW, 1), lambda n: (0, 0)),           # edge_l
            pl.BlockSpec((HW, 1), lambda n: (0, 0)),           # edge_r
            pl.BlockSpec((1, Cin), lambda n: (0, 0)),          # bn1 scale*sel
            pl.BlockSpec((1, Cin), lambda n: (0, 0)),          # bn1 bias*sel
            pl.BlockSpec((9 * Cin, Cmid), lambda n: (0, 0)),   # conv1 weights
            pl.BlockSpec((1, Cmid), lambda n: (0, 0)),         # bn2 scale
            pl.BlockSpec((1, Cmid), lambda n: (0, 0)),         # bn2 bias
            pl.BlockSpec((9 * Cmid, Cout), lambda n: (0, 0)),  # conv2 weights
        ],
        out_specs=pl.BlockSpec((1, HW, Cout), lambda n: (n, 0, 0)),
        scratch_shapes=[
            pltpu.VMEM((pad_rows, Cin), jnp.float32),   # padded pre-act
            pltpu.VMEM((pad_rows, Cmid), jnp.float32),  # padded conv1 output
        ],
        input_output_aliases={0: 0},        # output reuses the residual buffer
        compiler_params=pltpu.CompilerParams(
            dimension_semantics=("parallel",)),
    )(x_flat, edge_l, edge_r, s1, b1, w1f, s2, b2, w2f)


# ------------------------------- glue ----------------------------------------
def _fold_bn(gamma, beta, mean, var, eps=1e-5):
    inv = gamma / jnp.sqrt(var + eps)
    return inv, beta - mean * inv


def basic_block_forward(x_nchw, p, stride=1):
    """Pallas implementation of BasicBlock.forward (stride=1, downsample=None)."""
    n, cin, h, w = x_nchw.shape
    assert stride == 1, "TODO(synk): stride>1 / downsample path not implemented"
    cmid = p["w1"].shape[0]
    cout = p["w2"].shape[0]
    assert p["w1"].shape[1] == cin, "cfg[0] must equal inplanes here"
    assert cout == cin, "residual add requires matching channels (downsample=None)"

    x = jnp.transpose(x_nchw, (0, 2, 3, 1)).astype(jnp.float32)   # NCHW -> NHWC
    x_flat = x.reshape(n, h * w, cin)

    # Horizontal-padding edge masks (per flattened pixel row).
    col = jnp.arange(h * w, dtype=jnp.int32) % w
    edge_l = (col != 0).astype(jnp.float32).reshape(h * w, 1)
    edge_r = (col != w - 1).astype(jnp.float32).reshape(h * w, 1)

    # Folded BN1 (* channel_selection mask) and BN2 affine params (f32).
    s1, b1 = _fold_bn(p["gamma1"], p["beta1"], p["mean1"], p["var1"])
    s1 = (s1 * p["sel"]).reshape(1, cin)
    b1 = (b1 * p["sel"]).reshape(1, cin)
    s2, b2 = _fold_bn(p["gamma2"], p["beta2"], p["mean2"], p["var2"])
    s2 = s2.reshape(1, cmid)
    b2 = b2.reshape(1, cmid)

    # Conv weights (O, I, kh, kw) -> (kh, kw, I, O) -> (9*I, O), bf16 for MXU.
    w1f = jnp.transpose(p["w1"], (2, 3, 1, 0)).reshape(9 * cin, cmid)
    w2f = jnp.transpose(p["w2"], (2, 3, 1, 0)).reshape(9 * cmid, cout)
    w1f = w1f.astype(jnp.bfloat16)
    w2f = w2f.astype(jnp.bfloat16)

    out_flat = _fused_block(x_flat, edge_l, edge_r, s1, b1, w1f, s2, b2, w2f, w)
    out = out_flat.reshape(n, h, w, cout)
    return jnp.transpose(out, (0, 3, 1, 2))                        # NHWC -> NCHW


# ----------------------- pure-JAX reference (for checking) -------------------
def reference_forward(x, p, stride=1, eps=1e-5):
    def bn(v, g, b, m, var):
        return (v - m[None, :, None, None]) / jnp.sqrt(
            var[None, :, None, None] + eps) * g[None, :, None, None] \
            + b[None, :, None, None]

    def conv(v, w, s):
        return lax.conv_general_dilated(
            v, w, (s, s), ((1, 1), (1, 1)),
            dimension_numbers=("NCHW", "OIHW", "NCHW"))

    residual = x
    out = bn(x, p["gamma1"], p["beta1"], p["mean1"], p["var1"])
    out = out * p["sel"][None, :, None, None]          # channel_selection
    out = jnp.maximum(out, 0.0)
    out = conv(out, p["w1"], stride)
    out = bn(out, p["gamma2"], p["beta2"], p["mean2"], p["var2"])
    out = jnp.maximum(out, 0.0)
    out = conv(out, p["w2"], 1)
    return out + residual


if __name__ == "__main__":
    key = jax.random.PRNGKey(0)
    ks = jax.random.split(key, 12)

    N, Cin, H, W = 2, 32, 16, 16
    planes = Cin
    cfg = (Cin, 16)                      # cfg[0] == inplanes, cfg[1] = 16

    x = jax.random.normal(ks[0], (N, Cin, H, W), jnp.float32)

    params = dict(
        gamma1=jax.random.uniform(ks[1], (Cin,), jnp.float32, 0.5, 1.5),
        beta1=0.1 * jax.random.normal(ks[2], (Cin,), jnp.float32),
        mean1=0.1 * jax.random.normal(ks[3], (Cin,), jnp.float32),
        var1=jax.random.uniform(ks[4], (Cin,), jnp.float32, 0.5, 1.5),
        sel=jnp.ones((Cin,), jnp.float32),               # channel_selection
        w1=0.1 * jax.random.normal(ks[5], (cfg[1], cfg[0], 3, 3), jnp.float32),
        gamma2=jax.random.uniform(ks[6], (cfg[1],), jnp.float32, 0.5, 1.5),
        beta2=0.1 * jax.random.normal(ks[7], (cfg[1],), jnp.float32),
        mean2=0.1 * jax.random.normal(ks[8], (cfg[1],), jnp.float32),
        var2=jax.random.uniform(ks[9], (cfg[1],), jnp.float32, 0.5, 1.5),
        w2=0.1 * jax.random.normal(ks[10], (planes, cfg[1], 3, 3), jnp.float32),
    )

    fwd = jax.jit(basic_block_forward)
    out = jax.block_until_ready(fwd(x, params))
    assert out.shape == (N, planes, H, W), out.shape

    ref = reference_forward(x, params, stride=1)
    # bf16 matmul operands (f32 accumulation) => loosen vs the f32 reference.
    rel_err = float(jnp.max(jnp.abs(out - ref)) / jnp.max(jnp.abs(ref)))
    assert rel_err < 2e-2, f"relative error vs reference: {rel_err}"

    print("KERNEL_OK")
</pallas_src>

<mosaic_0001>
module attributes {stable_mosaic.version = 11 : i64} {
  func.func @kernel(%arg0: i32, %arg1: memref<1x256x32xf32, #tpu.memory_space<vmem>>, %arg2: memref<256x1xf32, #tpu.memory_space<vmem>>, %arg3: memref<256x1xf32, #tpu.memory_space<vmem>>, %arg4: memref<1x32xf32, #tpu.memory_space<vmem>>, %arg5: memref<1x32xf32, #tpu.memory_space<vmem>>, %arg6: memref<288x16xbf16, #tpu.memory_space<vmem>>, %arg7: memref<1x16xf32, #tpu.memory_space<vmem>>, %arg8: memref<1x16xf32, #tpu.memory_space<vmem>>, %arg9: memref<144x32xbf16, #tpu.memory_space<vmem>>, %arg10: memref<1x256x32xf32, #tpu.memory_space<vmem>>, %arg11: memref<304x32xf32, #tpu.memory_space<vmem>>, %arg12: memref<304x16xf32, #tpu.memory_space<vmem>>) attributes {dimension_semantics = [#tpu.dimension_semantics<parallel>], iteration_bounds = array<i64: 2>, scalar_prefetch = 0 : i64, scratch_operands = 2 : i64, tpu.core_type = #tpu.core_type<tc>, window_params = [{transform_indices = @transform_0, window_bounds = array<i64: 1, 256, 32>}, {pipeline_mode = #tpu.pipeline_mode<synchronous>, transform_indices = @transform_1, window_bounds = array<i64: 256, 1>}, {pipeline_mode = #tpu.pipeline_mode<synchronous>, transform_indices = @transform_2, window_bounds = array<i64: 256, 1>}, {pipeline_mode = #tpu.pipeline_mode<synchronous>, transform_indices = @transform_3, window_bounds = array<i64: 1, 32>}, {pipeline_mode = #tpu.pipeline_mode<synchronous>, transform_indices = @transform_4, window_bounds = array<i64: 1, 32>}, {pipeline_mode = #tpu.pipeline_mode<synchronous>, transform_indices = @transform_5, window_bounds = array<i64: 288, 16>}, {pipeline_mode = #tpu.pipeline_mode<synchronous>, transform_indices = @transform_6, window_bounds = array<i64: 1, 16>}, {pipeline_mode = #tpu.pipeline_mode<synchronous>, transform_indices = @transform_7, window_bounds = array<i64: 1, 16>}, {pipeline_mode = #tpu.pipeline_mode<synchronous>, transform_indices = @transform_8, window_bounds = array<i64: 144, 32>}, {transform_indices = @transform_9, window_bounds = array<i64: 1, 256, 32>}]} {
    %c0 = arith.constant 0 : index
    %c0_0 = arith.constant 0 : index
    %c0_1 = arith.constant 0 : index
    %0 = vector.load %arg1[%c0, %c0_0, %c0_1] : memref<1x256x32xf32, #tpu.memory_space<vmem>>, vector<1x256x32xf32>
    %1 = vector.shape_cast %0 : vector<1x256x32xf32> to vector<256x32xf32>
    %c0_2 = arith.constant 0 : index
    %c0_3 = arith.constant 0 : index
    %2 = vector.load %arg2[%c0_2, %c0_3] : memref<256x1xf32, #tpu.memory_space<vmem>>, vector<256x1xf32>
    %c0_4 = arith.constant 0 : index
    %c0_5 = arith.constant 0 : index
    %3 = vector.load %arg3[%c0_4, %c0_5] : memref<256x1xf32, #tpu.memory_space<vmem>>, vector<256x1xf32>
    %c0_6 = arith.constant 0 : index
    %c0_7 = arith.constant 0 : index
    %4 = vector.load %arg4[%c0_6, %c0_7] : memref<1x32xf32, #tpu.memory_space<vmem>>, vector<1x32xf32>
    %5 = vector.broadcast %4 : vector<1x32xf32> to vector<256x32xf32>
    %6 = arith.mulf %1, %5 : vector<256x32xf32>
    %c0_8 = arith.constant 0 : index
    %c0_9 = arith.constant 0 : index
    %7 = vector.load %arg5[%c0_8, %c0_9] : memref<1x32xf32, #tpu.memory_space<vmem>>, vector<1x32xf32>
    %8 = vector.broadcast %7 : vector<1x32xf32> to vector<256x32xf32>
    %9 = arith.addf %6, %8 : vector<256x32xf32>
    %cst = arith.constant 0.000000e+00 : f32
    %10 = vector.broadcast %cst : f32 to vector<256x32xf32>
    %11 = arith.maximumf %9, %10 : vector<256x32xf32>
    %cst_10 = arith.constant 0.000000e+00 : f32
    %12 = vector.broadcast %cst_10 : f32 to vector<304x32xf32>
    %c0_11 = arith.constant 0 : index
    %c0_12 = arith.constant 0 : index
    %13 = vector.load %arg11[%c0_11, %c0_12] : memref<304x32xf32, #tpu.memory_space<vmem>>, vector<304x32xf32>
    tpu.vector_store %arg11[%c0_11, %c0_12], %12 {strides = array<i32>} : memref<304x32xf32, #tpu.memory_space<vmem>>, vector<304x32xf32>,
    %c24 = arith.constant 24 : index
    %c0_13 = arith.constant 0 : index
    %14 = vector.load %arg11[%c24, %c0_13] : memref<304x32xf32, #tpu.memory_space<vmem>>, vector<256x32xf32>
    tpu.vector_store %arg11[%c24, %c0_13], %11 {strides = array<i32>} : memref<304x32xf32, #tpu.memory_space<vmem>>, vector<256x32xf32>,
    %cst_14 = arith.constant 0.000000e+00 : f32
    %15 = vector.broadcast %cst_14 : f32 to vector<256x16xf32>
    %c7 = arith.constant 7 : index
    %c0_15 = arith.constant 0 : index
    %16 = vector.load %arg11[%c7, %c0_15] : memref<304x32xf32, #tpu.memory_space<vmem>>, vector<256x32xf32>
    %17 = vector.broadcast %2 : vector<256x1xf32> to vector<256x32xf32>
    %18 = arith.mulf %16, %17 : vector<256x32xf32>
    %c0_16 = arith.constant 0 : index
    %c0_17 = arith.constant 0 : index
    %19 = vector.load %arg6[%c0_16, %c0_17] : memref<288x16xbf16, #tpu.memory_space<vmem>>, vector<32x16xbf16>
    %20 = arith.truncf %18 : vector<256x32xf32> to vector<256x32xbf16>
    %cst_18 = arith.constant dense<0.000000e+00> : vector<256x16xf32>
    %21 = tpu.matmul %20, %19, %cst_18 {dimension_numbers = #tpu.dot_dimension_numbers<[1], [0], [0], [1], [0, 0, 1, 1], [], []>} : vector<256x32xbf16>, vector<32x16xbf16>, vector<256x16xf32> -> vector<256x16xf32>
    %22 = arith.addf %15, %21 : vector<256x16xf32>
    %c8 = arith.constant 8 : index
    %c0_19 = arith.constant 0 : index
    %23 = vector.load %arg11[%c8, %c0_19] : memref<304x32xf32, #tpu.memory_space<vmem>>, vector<256x32xf32>
    %c32 = arith.constant 32 : index
    %c0_20 = arith.constant 0 : index
    %24 = vector.load %arg6[%c32, %c0_20] : memref<288x16xbf16, #tpu.memory_space<vmem>>, vector<32x16xbf16>
    %25 = arith.truncf %23 : vector<256x32xf32> to vector<256x32xbf16>
    %cst_21 = arith.constant dense<0.000000e+00> : vector<256x16xf32>
    %26 = tpu.matmul %25, %24, %cst_21 {dimension_numbers = #tpu.dot_dimension_numbers<[1], [0], [0], [1], [0, 0, 1, 1], [], []>} : vector<256x32xbf16>, vector<32x16xbf16>, vector<256x16xf32> -> vector<256x16xf32>
    %27 = arith.addf %22, %26 : vector<256x16xf32>
    %c9 = arith.constant 9 : index
    %c0_22 = arith.constant 0 : index
    %28 = vector.load %arg11[%c9, %c0_22] : memref<304x32xf32, #tpu.memory_space<vmem>>, vector<256x32xf32>
    %29 = vector.broadcast %3 : vector<256x1xf32> to vector<256x32xf32>
    %30 = arith.mulf %28, %29 : vector<256x32xf32>
    %c64 = arith.constant 64 : index
    %c0_23 = arith.constant 0 : index
    %31 = vector.load %arg6[%c64, %c0_23] : memref<288x16xbf16, #tpu.memory_space<vmem>>, vector<32x16xbf16>
    %32 = arith.truncf %30 : vector<256x32xf32> to vector<256x32xbf16>
    %cst_24 = arith.constant dense<0.000000e+00> : vector<256x16xf32>
    %33 = tpu.matmul %32, %31, %cst_24 {dimension_numbers = #tpu.dot_dimension_numbers<[1], [0], [0], [1], [0, 0, 1, 1], [], []>} : vector<256x32xbf16>, vector<32x16xbf16>, vector<256x16xf32> -> vector<256x16xf32>
    %34 = arith.addf %27, %33 : vector<256x16xf32>
    %c23 = arith.constant 23 : index
    %c0_25 = arith.constant 0 : index
    %35 = vector.load %arg11[%c23, %c0_25] : memref<304x32xf32, #tpu.memory_space<vmem>>, vector<256x32xf32>
    %36 = vector.broadcast %2 : vector<256x1xf32> to vector<256x32xf32>
    %37 = arith.mulf %35, %36 : vector<256x32xf32>
    %c96 = arith.constant 96 : index
    %c0_26 = arith.constant 0 : index
    %38 = vector.load %arg6[%c96, %c0_26] : memref<288x16xbf16, #tpu.memory_space<vmem>>, vector<32x16xbf16>
    %39 = arith.truncf %37 : vector<256x32xf32> to vector<256x32xbf16>
    %cst_27 = arith.constant dense<0.000000e+00> : vector<256x16xf32>
    %40 = tpu.matmul %39, %38, %cst_27 {dimension_numbers = #tpu.dot_dimension_numbers<[1], [0], [0], [1], [0, 0, 1, 1], [], []>} : vector<256x32xbf16>, vector<32x16xbf16>, vector<256x16xf32> -> vector<256x16xf32>
    %41 = arith.addf %34, %40 : vector<256x16xf32>
    %c24_28 = arith.constant 24 : index
    %c0_29 = arith.constant 0 : index
    %42 = vector.load %arg11[%c24_28, %c0_29] : memref<304x32xf32, #tpu.memory_space<vmem>>, vector<256x32xf32>
    %c128 = arith.constant 128 : index
    %c0_30 = arith.constant 0 : index
    %43 = vector.load %arg6[%c128, %c0_30] : memref<288x16xbf16, #tpu.memory_space<vmem>>, vector<32x16xbf16>
    %44 = arith.truncf %42 : vector<256x32xf32> to vector<256x32xbf16>
    %cst_31 = arith.constant dense<0.000000e+00> : vector<256x16xf32>
    %45 = tpu.matmul %44, %43, %cst_31 {dimension_numbers = #tpu.dot_dimension_numbers<[1], [0], [0], [1], [0, 0, 1, 1], [], []>} : vector<256x32xbf16>, vector<32x16xbf16>, vector<256x16xf32> -> vector<256x16xf32>
    %46 = arith.addf %41, %45 : vector<256x16xf32>
    %c25 = arith.constant 25 : index
    %c0_32 = arith.constant 0 : index
    %47 = vector.load %arg11[%c25, %c0_32] : memref<304x32xf32, #tpu.memory_space<vmem>>, vector<256x32xf32>
    %48 = vector.broadcast %3 : vector<256x1xf32> to vector<256x32xf32>
    %49 = arith.mulf %47, %48 : vector<256x32xf32>
    %c160 = arith.constant 160 : index
    %c0_33 = arith.constant 0 : index
    %50 = vector.load %arg6[%c160, %c0_33] : memref<288x16xbf16, #tpu.memory_space<vmem>>, vector<32x16xbf16>
    %51 = arith.truncf %49 : vector<256x32xf32> to vector<256x32xbf16>
    %cst_34 = arith.constant dense<0.000000e+00> : vector<256x16xf32>
    %52 = tpu.matmul %51, %50, %cst_34 {dimension_numbers = #tpu.dot_dimension_numbers<[1], [0], [0], [1], [0, 0, 1, 1], [], []>} : vector<256x32xbf16>, vector<32x16xbf16>, vector<256x16xf32> -> vector<256x16xf32>
    %53 = arith.addf %46, %52 : vector<256x16xf32>
    %c39 = arith.constant 39 : index
    %c0_35 = arith.constant 0 : index
    %54 = vector.load %arg11[%c39, %c0_35] : memref<304x32xf32, #tpu.memory_space<vmem>>, vector<256x32xf32>
    %55 = vector.broadcast %2 : vector<256x1xf32> to vector<256x32xf32>
    %56 = arith.mulf %54, %55 : vector<256x32xf32>
    %c192 = arith.constant 192 : index
    %c0_36 = arith.constant 0 : index
    %57 = vector.load %arg6[%c192, %c0_36] : memref<288x16xbf16, #tpu.memory_space<vmem>>, vector<32x16xbf16>
    %58 = arith.truncf %56 : vector<256x32xf32> to vector<256x32xbf16>
    %cst_37 = arith.constant dense<0.000000e+00> : vector<256x16xf32>
    %59 = tpu.matmul %58, %57, %cst_37 {dimension_numbers = #tpu.dot_dimension_numbers<[1], [0], [0], [1], [0, 0, 1, 1], [], []>} : vector<256x32xbf16>, vector<32x16xbf16>, vector<256x16xf32> -> vector<256x16xf32>
    %60 = arith.addf %53, %59 : vector<256x16xf32>
    %c40 = arith.constant 40 : index
    %c0_38 = arith.constant 0 : index
    %61 = vector.load %arg11[%c40, %c0_38] : memref<304x32xf32, #tpu.memory_space<vmem>>, vector<256x32xf32>
    %c224 = arith.constant 224 : index
    %c0_39 = arith.constant 0 : index
    %62 = vector.load %arg6[%c224, %c0_39] : memref<288x16xbf16, #tpu.memory_space<vmem>>, vector<32x16xbf16>
    %63 = arith.truncf %61 : vector<256x32xf32> to vector<256x32xbf16>
    %cst_40 = arith.constant dense<0.000000e+00> : vector<256x16xf32>
    %64 = tpu.matmul %63, %62, %cst_40 {dimension_numbers = #tpu.dot_dimension_numbers<[1], [0], [0], [1], [0, 0, 1, 1], [], []>} : vector<256x32xbf16>, vector<32x16xbf16>, vector<256x16xf32> -> vector<256x16xf32>
    %65 = arith.addf %60, %64 : vector<256x16xf32>
    %c41 = arith.constant 41 : index
    %c0_41 = arith.constant 0 : index
    %66 = vector.load %arg11[%c41, %c0_41] : memref<304x32xf32, #tpu.memory_space<vmem>>, vector<256x32xf32>
    %67 = vector.broadcast %3 : vector<256x1xf32> to vector<256x32xf32>
    %68 = arith.mulf %66, %67 : vector<256x32xf32>
    %c256 = arith.constant 256 : index
    %c0_42 = arith.constant 0 : index
    %69 = vector.load %arg6[%c256, %c0_42] : memref<288x16xbf16, #tpu.memory_space<vmem>>, vector<32x16xbf16>
    %70 = arith.truncf %68 : vector<256x32xf32> to vector<256x32xbf16>
    %cst_43 = arith.constant dense<0.000000e+00> : vector<256x16xf32>
    %71 = tpu.matmul %70, %69, %cst_43 {dimension_numbers = #tpu.dot_dimension_numbers<[1], [0], [0], [1], [0, 0, 1, 1], [], []>} : vector<256x32xbf16>, vector<32x16xbf16>, vector<256x16xf32> -> vector<256x16xf32>
    %72 = arith.addf %65, %71 : vector<256x16xf32>
    %c0_44 = arith.constant 0 : index
    %c0_45 = arith.constant 0 : index
    %73 = vector.load %arg7[%c0_44, %c0_45] : memref<1x16xf32, #tpu.memory_space<vmem>>, vector<1x16xf32>
    %74 = vector.broadcast %73 : vector<1x16xf32> to vector<256x16xf32>
    %75 = arith.mulf %72, %74 : vector<256x16xf32>
    %c0_46 = arith.constant 0 : index
    %c0_47 = arith.constant 0 : index
    %76 = vector.load %arg8[%c0_46, %c0_47] : memref<1x16xf32, #tpu.memory_space<vmem>>, vector<1x16xf32>
    %77 = vector.broadcast %76 : vector<1x16xf32> to vector<256x16xf32>
    %78 = arith.addf %75, %77 : vector<256x16xf32>
    %cst_48 = arith.constant 0.000000e+00 : f32
    %79 = vector.broadcast %cst_48 : f32 to vector<256x16xf32>
    %80 = arith.maximumf %78, %79 : vector<256x16xf32>
    %cst_49 = arith.constant 0.000000e+00 : f32
    %81 = vector.broadcast %cst_49 : f32 to vector<304x16xf32>
    %c0_50 = arith.constant 0 : index
    %c0_51 = arith.constant 0 : index
    %82 = vector.load %arg12[%c0_50, %c0_51] : memref<304x16xf32, #tpu.memory_space<vmem>>, vector<304x16xf32>
    tpu.vector_store %arg12[%c0_50, %c0_51], %81 {strides = array<i32>} : memref<304x16xf32, #tpu.memory_space<vmem>>, vector<304x16xf32>,
    %c24_52 = arith.constant 24 : index
    %c0_53 = arith.constant 0 : index
    %83 = vector.load %arg12[%c24_52, %c0_53] : memref<304x16xf32, #tpu.memory_space<vmem>>, vector<256x16xf32>
    tpu.vector_store %arg12[%c24_52, %c0_53], %80 {strides = array<i32>} : memref<304x16xf32, #tpu.memory_space<vmem>>, vector<256x16xf32>,
    %cst_54 = arith.constant 0.000000e+00 : f32
    %84 = vector.broadcast %cst_54 : f32 to vector<256x32xf32>
    %c7_55 = arith.constant 7 : index
    %c0_56 = arith.constant 0 : index
    %85 = vector.load %arg12[%c7_55, %c0_56] : memref<304x16xf32, #tpu.memory_space<vmem>>, vector<256x16xf32>
    %86 = vector.broadcast %2 : vector<256x1xf32> to vector<256x16xf32>
    %87 = arith.mulf %85, %86 : vector<256x16xf32>
    %c0_57 = arith.constant 0 : index
    %c0_58 = arith.constant 0 : index
    %88 = vector.load %arg9[%c0_57, %c0_58] : memref<144x32xbf16, #tpu.memory_space<vmem>>, vector<16x32xbf16>
    %89 = arith.truncf %87 : vector<256x16xf32> to vector<256x16xbf16>
    %cst_59 = arith.constant dense<0.000000e+00> : vector<256x32xf32>
    %90 = tpu.matmul %89, %88, %cst_59 {dimension_numbers = #tpu.dot_dimension_numbers<[1], [0], [0], [1], [0, 0, 1, 1], [], []>} : vector<256x16xbf16>, vector<16x32xbf16>, vector<256x32xf32> -> vector<256x32xf32>
    %91 = arith.addf %84, %90 : vector<256x32xf32>
    %c8_60 = arith.constant 8 : index
    %c0_61 = arith.constant 0 : index
    %92 = vector.load %arg12[%c8_60, %c0_61] : memref<304x16xf32, #tpu.memory_space<vmem>>, vector<256x16xf32>
    %c16 = arith.constant 16 : index
    %c0_62 = arith.constant 0 : index
    %93 = vector.load %arg9[%c16, %c0_62] : memref<144x32xbf16, #tpu.memory_space<vmem>>, vector<16x32xbf16>
    %94 = arith.truncf %92 : vector<256x16xf32> to vector<256x16xbf16>
    %cst_63 = arith.constant dense<0.000000e+00> : vector<256x32xf32>
    %95 = tpu.matmul %94, %93, %cst_63 {dimension_numbers = #tpu.dot_dimension_numbers<[1], [0], [0], [1], [0, 0, 1, 1], [], []>} : vector<256x16xbf16>, vector<16x32xbf16>, vector<256x32xf32> -> vector<256x32xf32>
    %96 = arith.addf %91, %95 : vector<256x32xf32>
    %c9_64 = arith.constant 9 : index
    %c0_65 = arith.constant 0 : index
    %97 = vector.load %arg12[%c9_64, %c0_65] : memref<304x16xf32, #tpu.memory_space<vmem>>, vector<256x16xf32>
    %98 = vector.broadcast %3 : vector<256x1xf32> to vector<256x16xf32>
    %99 = arith.mulf %97, %98 : vector<256x16xf32>
    %c32_66 = arith.constant 32 : index
    %c0_67 = arith.constant 0 : index
    %100 = vector.load %arg9[%c32_66, %c0_67] : memref<144x32xbf16, #tpu.memory_space<vmem>>, vector<16x32xbf16>
    %101 = arith.truncf %99 : vector<256x16xf32> to vector<256x16xbf16>
    %cst_68 = arith.constant dense<0.000000e+00> : vector<256x32xf32>
    %102 = tpu.matmul %101, %100, %cst_68 {dimension_numbers = #tpu.dot_dimension_numbers<[1], [0], [0], [1], [0, 0, 1, 1], [], []>} : vector<256x16xbf16>, vector<16x32xbf16>, vector<256x32xf32> -> vector<256x32xf32>
    %103 = arith.addf %96, %102 : vector<256x32xf32>
    %c23_69 = arith.constant 23 : index
    %c0_70 = arith.constant 0 : index
    %104 = vector.load %arg12[%c23_69, %c0_70] : memref<304x16xf32, #tpu.memory_space<vmem>>, vector<256x16xf32>
    %105 = vector.broadcast %2 : vector<256x1xf32> to vector<256x16xf32>
    %106 = arith.mulf %104, %105 : vector<256x16xf32>
    %c48 = arith.constant 48 : index
    %c0_71 = arith.constant 0 : index
    %107 = vector.load %arg9[%c48, %c0_71] : memref<144x32xbf16, #tpu.memory_space<vmem>>, vector<16x32xbf16>
    %108 = arith.truncf %106 : vector<256x16xf32> to vector<256x16xbf16>
    %cst_72 = arith.constant dense<0.000000e+00> : vector<256x32xf32>
    %109 = tpu.matmul %108, %107, %cst_72 {dimension_numbers = #tpu.dot_dimension_numbers<[1], [0], [0], [1], [0, 0, 1, 1], [], []>} : vector<256x16xbf16>, vector<16x32xbf16>, vector<256x32xf32> -> vector<256x32xf32>
    %110 = arith.addf %103, %109 : vector<256x32xf32>
    %c24_73 = arith.constant 24 : index
    %c0_74 = arith.constant 0 : index
    %111 = vector.load %arg12[%c24_73, %c0_74] : memref<304x16xf32, #tpu.memory_space<vmem>>, vector<256x16xf32>
    %c64_75 = arith.constant 64 : index
    %c0_76 = arith.constant 0 : index
    %112 = vector.load %arg9[%c64_75, %c0_76] : memref<144x32xbf16, #tpu.memory_space<vmem>>, vector<16x32xbf16>
    %113 = arith.truncf %111 : vector<256x16xf32> to vector<256x16xbf16>
    %cst_77 = arith.constant dense<0.000000e+00> : vector<256x32xf32>
    %114 = tpu.matmul %113, %112, %cst_77 {dimension_numbers = #tpu.dot_dimension_numbers<[1], [0], [0], [1], [0, 0, 1, 1], [], []>} : vector<256x16xbf16>, vector<16x32xbf16>, vector<256x32xf32> -> vector<256x32xf32>
    %115 = arith.addf %110, %114 : vector<256x32xf32>
    %c25_78 = arith.constant 25 : index
    %c0_79 = arith.constant 0 : index
    %116 = vector.load %arg12[%c25_78, %c0_79] : memref<304x16xf32, #tpu.memory_space<vmem>>, vector<256x16xf32>
    %117 = vector.broadcast %3 : vector<256x1xf32> to vector<256x16xf32>
    %118 = arith.mulf %116, %117 : vector<256x16xf32>
    %c80 = arith.constant 80 : index
    %c0_80 = arith.constant 0 : index
    %119 = vector.load %arg9[%c80, %c0_80] : memref<144x32xbf16, #tpu.memory_space<vmem>>, vector<16x32xbf16>
    %120 = arith.truncf %118 : vector<256x16xf32> to vector<256x16xbf16>
    %cst_81 = arith.constant dense<0.000000e+00> : vector<256x32xf32>
    %121 = tpu.matmul %120, %119, %cst_81 {dimension_numbers = #tpu.dot_dimension_numbers<[1], [0], [0], [1], [0, 0, 1, 1], [], []>} : vector<256x16xbf16>, vector<16x32xbf16>, vector<256x32xf32> -> vector<256x32xf32>
    %122 = arith.addf %115, %121 : vector<256x32xf32>
    %c39_82 = arith.constant 39 : index
    %c0_83 = arith.constant 0 : index
    %123 = vector.load %arg12[%c39_82, %c0_83] : memref<304x16xf32, #tpu.memory_space<vmem>>, vector<256x16xf32>
    %124 = vector.broadcast %2 : vector<256x1xf32> to vector<256x16xf32>
    %125 = arith.mulf %123, %124 : vector<256x16xf32>
    %c96_84 = arith.constant 96 : index
    %c0_85 = arith.constant 0 : index
    %126 = vector.load %arg9[%c96_84, %c0_85] : memref<144x32xbf16, #tpu.memory_space<vmem>>, vector<16x32xbf16>
    %127 = arith.truncf %125 : vector<256x16xf32> to vector<256x16xbf16>
    %cst_86 = arith.constant dense<0.000000e+00> : vector<256x32xf32>
    %128 = tpu.matmul %127, %126, %cst_86 {dimension_numbers = #tpu.dot_dimension_numbers<[1], [0], [0], [1], [0, 0, 1, 1], [], []>} : vector<256x16xbf16>, vector<16x32xbf16>, vector<256x32xf32> -> vector<256x32xf32>
    %129 = arith.addf %122, %128 : vector<256x32xf32>
    %c40_87 = arith.constant 40 : index
    %c0_88 = arith.constant 0 : index
    %130 = vector.load %arg12[%c40_87, %c0_88] : memref<304x16xf32, #tpu.memory_space<vmem>>, vector<256x16xf32>
    %c112 = arith.constant 112 : index
    %c0_89 = arith.constant 0 : index
    %131 = vector.load %arg9[%c112, %c0_89] : memref<144x32xbf16, #tpu.memory_space<vmem>>, vector<16x32xbf16>
    %132 = arith.truncf %130 : vector<256x16xf32> to vector<256x16xbf16>
    %cst_90 = arith.constant dense<0.000000e+00> : vector<256x32xf32>
    %133 = tpu.matmul %132, %131, %cst_90 {dimension_numbers = #tpu.dot_dimension_numbers<[1], [0], [0], [1], [0, 0, 1, 1], [], []>} : vector<256x16xbf16>, vector<16x32xbf16>, vector<256x32xf32> -> vector<256x32xf32>
    %134 = arith.addf %129, %133 : vector<256x32xf32>
    %c41_91 = arith.constant 41 : index
    %c0_92 = arith.constant 0 : index
    %135 = vector.load %arg12[%c41_91, %c0_92] : memref<304x16xf32, #tpu.memory_space<vmem>>, vector<256x16xf32>
    %136 = vector.broadcast %3 : vector<256x1xf32> to vector<256x16xf32>
    %137 = arith.mulf %135, %136 : vector<256x16xf32>
    %c128_93 = arith.constant 128 : index
    %c0_94 = arith.constant 0 : index
    %138 = vector.load %arg9[%c128_93, %c0_94] : memref<144x32xbf16, #tpu.memory_space<vmem>>, vector<16x32xbf16>
    %139 = arith.truncf %137 : vector<256x16xf32> to vector<256x16xbf16>
    %cst_95 = arith.constant dense<0.000000e+00> : vector<256x32xf32>
    %140 = tpu.matmul %139, %138, %cst_95 {dimension_numbers = #tpu.dot_dimension_numbers<[1], [0], [0], [1], [0, 0, 1, 1], [], []>} : vector<256x16xbf16>, vector<16x32xbf16>, vector<256x32xf32> -> vector<256x32xf32>
    %141 = arith.addf %134, %140 : vector<256x32xf32>
    %142 = arith.addf %141, %1 : vector<256x32xf32>
    %c0_96 = arith.constant 0 : index
    %c0_97 = arith.constant 0 : index
    %c0_98 = arith.constant 0 : index
    %143 = vector.load %arg10[%c0_96, %c0_97, %c0_98] : memref<1x256x32xf32, #tpu.memory_space<vmem>>, vector<1x256x32xf32>
    %144 = vector.shape_cast %143 : vector<1x256x32xf32> to vector<256x32xf32>
    %145 = vector.shape_cast %142 : vector<256x32xf32> to vector<1x256x32xf32>
    tpu.vector_store %arg10[%c0_96, %c0_97, %c0_98], %145 {strides = array<i32>} : memref<1x256x32xf32, #tpu.memory_space<vmem>>, vector<1x256x32xf32>,
    return
  }
  func.func @transform_0(%arg0: i32) -> (i32, i32, i32) {
    %c0_i32 = arith.constant 0 : i32
    %c0_i32_0 = arith.constant 0 : i32
    %c0_i32_1 = arith.constant 0 : i32
    return %arg0, %c0_i32, %c0_i32_0 : i32, i32, i32
  }
  func.func @transform_1(%arg0: i32) -> (i32, i32) {
    %c0_i32 = arith.constant 0 : i32
    %c0_i32_0 = arith.constant 0 : i32
    %c0_i32_1 = arith.constant 0 : i32
    return %c0_i32, %c0_i32_0 : i32, i32
  }
  func.func @transform_2(%arg0: i32) -> (i32, i32) {
    %c0_i32 = arith.constant 0 : i32
    %c0_i32_0 = arith.constant 0 : i32
    %c0_i32_1 = arith.constant 0 : i32
    return %c0_i32, %c0_i32_0 : i32, i32
  }
  func.func @transform_3(%arg0: i32) -> (i32, i32) {
    %c0_i32 = arith.constant 0 : i32
    %c0_i32_0 = arith.constant 0 : i32
    %c0_i32_1 = arith.constant 0 : i32
    return %c0_i32, %c0_i32_0 : i32, i32
  }
  func.func @transform_4(%arg0: i32) -> (i32, i32) {
    %c0_i32 = arith.constant 0 : i32
    %c0_i32_0 = arith.constant 0 : i32
    %c0_i32_1 = arith.constant 0 : i32
    return %c0_i32, %c0_i32_0 : i32, i32
  }
  func.func @transform_5(%arg0: i32) -> (i32, i32) {
    %c0_i32 = arith.constant 0 : i32
    %c0_i32_0 = arith.constant 0 : i32
    %c0_i32_1 = arith.constant 0 : i32
    return %c0_i32, %c0_i32_0 : i32, i32
  }
  func.func @transform_6(%arg0: i32) -> (i32, i32) {
    %c0_i32 = arith.constant 0 : i32
    %c0_i32_0 = arith.constant 0 : i32
    %c0_i32_1 = arith.constant 0 : i32
    return %c0_i32, %c0_i32_0 : i32, i32
  }
  func.func @transform_7(%arg0: i32) -> (i32, i32) {
    %c0_i32 = arith.constant 0 : i32
    %c0_i32_0 = arith.constant 0 : i32
    %c0_i32_1 = arith.constant 0 : i32
    return %c0_i32, %c0_i32_0 : i32, i32
  }
  func.func @transform_8(%arg0: i32) -> (i32, i32) {
    %c0_i32 = arith.constant 0 : i32
    %c0_i32_0 = arith.constant 0 : i32
    %c0_i32_1 = arith.constant 0 : i32
    return %c0_i32, %c0_i32_0 : i32, i32
  }
  func.func @transform_9(%arg0: i32) -> (i32, i32, i32) {
    %c0_i32 = arith.constant 0 : i32
    %c0_i32_0 = arith.constant 0 : i32
    %c0_i32_1 = arith.constant 0 : i32
    return %arg0, %c0_i32, %c0_i32_0 : i32, i32, i32
  }
}

</mosaic_0001>

<bundles_post_ra>
// kernel: basic_block_forward.1
= control target key start
LH: loop header
LB: loop body
LE: loop exit
PB: predicated region body
PF: predicated region fallthrough
CT: control target
= control target key end

     0   :  { %s8282_s30 = smov 0   ;;  %s11978_s0 = inlined_call_operand.vmem [shape: f32[2,256,32], index: 0, kind: input, shape index: {}, may-alias: {0,9}]   ;;  %s11979_s1 = inlined_call_operand.vmem [shape: f32[256,1], index: 1, kind: input, shape index: {}]   ;;  %s11980_s2 = inlined_call_operand.vmem [shape: f32[256,1], index: 2, kind: input, shape index: {}]   ;;  %s11981_s3 = inlined_call_operand.vmem [shape: f32[1,32], index: 3, kind: input, shape index: {}]   ;;  %s11982_s4 = inlined_call_operand.vmem [shape: f32[1,32], index: 4, kind: input, shape index: {}]   ;;  %s11983_s5 = inlined_call_operand.vmem [shape: bf16[288,16], index: 5, kind: input, shape index: {}]   ;;  %s11984_s6 = inlined_call_operand.vmem [shape: f32[1,16], index: 6, kind: input, shape index: {}]   ;;  %s11985_s7 = inlined_call_operand.vmem [shape: f32[1,16], index: 7, kind: input, shape index: {}]   ;;  %s11986_s8 = inlined_call_operand.vmem [shape: bf16[144,32], index: 8, kind: input, shape index: {}]   ;;  %s11987_s9 = inlined_call_operand.vmem [shape: f32[2,256,32], index: 9, kind: output, shape index: {}, may-alias: {0,9}]  }
   0x1 LB: > { %s6905_s10 = sadd.s32 4294967295, %s8228_s30   ;;  %p6909_p0 = scmp.ge.s32.totalorder %s8228_s30, 1  ;;  %s8228_s30 = sphi %s8282_s30, %s19_s30  }
   0x2   : > { %p287_p1 = scmp.lt.s32.totalorder %s8228_s30, 3 }
   0x4   : > { %p288_p2 = pnand %p6909_p0, %p287_p1 }
   0x6   : > { %291 = sbr.rel (%p288_p2) target bundleno = 1153 (0x481), region = 56 }
   0xb   : > { %v368_v0 = vld [vmem:[%s11979_s1 + $0x10] sm:$0xff]  ;;  %v366_v1 = vld [vmem:[%s11979_s1] sm:$0xff]  ;;  %vm540_vm0 = vcmask 261120   ;;  %v8230_v2 = vmov 0   ;;  %v8231_v3 = vmov 0.0   ;;  %vm3914_vm1 = vcmask 130048  }
   0xc   : > { %8193 = vset.pattern.permute.xlu1 %v8230_v2  ;;  %8192 = vset.pattern.permute.xlu0 %v8230_v2  ;;  %542 = vst.msk [vmem:[#allocation2 + $0x8] sm:$0xff] %vm540_vm0, %v8231_v3  ;;  %543 = vst.msk [vmem:[#allocation2 + $0x10] sm:$0xff] %vm540_vm0, %v8231_v3  ;;  %p8374_p3 = scmp.lt.s32.totalorder %s6905_s10, 1  ;;  %v369_v4 = vld [vmem:[%s11979_s1 + $0x18] sm:$0xff]  ;;  %v367_v5 = vld [vmem:[%s11979_s1 + $0x8] sm:$0xff] }
   0xd   : > { %541 = vst.msk [vmem:[#allocation2] sm:$0xff] %vm540_vm0, %v8231_v3  ;;  %544 = vst.msk [vmem:[#allocation2 + $0x18] sm:$0xff] %vm540_vm0, %v8231_v3  ;;  %655 = vperm.xlu1 %8193, %v368_v0   ;;  %645 = vperm.xlu0 %8192, %v366_v1   ;;  %v399_v6 = vld [vmem:[%s11980_s2 + $0x8] sm:$0xff]  ;;  %v398_v7 = vld [vmem:[%s11980_s2] sm:$0xff] }
   0xe   : > { %545 = vst.msk [vmem:[#allocation2 + $0x20] sm:$0xff] %vm540_vm0, %v8231_v3  ;;  %546 = vst.msk [vmem:[#allocation2 + $0x28] sm:$0xff] %vm540_vm0, %v8231_v3  ;;  %s13057_s10 = smov (!%p8374_p3, %s6905_s10), 1  ;;  %v401_v8 = vld [vmem:[%s11980_s2 + $0x18] sm:$0xff]  ;;  %v400_v9 = vld [vmem:[%s11980_s2 + $0x10] sm:$0xff] }
   0xf   : > { %547 = vst.msk [vmem:[#allocation2 + $0x30] sm:$0xff] %vm540_vm0, %v8231_v3  ;;  %548 = vst.msk [vmem:[#allocation2 + $0x38] sm:$0xff] %vm540_vm0, %v8231_v3  ;;  %s7235_s26 = sshll.u32 %s13057_s10, 8  ;;  %v8194_v10 = vld [vmem:[%s11983_s5 + $0x18] sm:$0xff]   ;;  %v8195_v11 = vld [vmem:[%s11983_s5 + $0x10] sm:$0xff]  }
  0x10   : > { %549 = vst.msk [vmem:[#allocation2 + $0x40] sm:$0xff] %vm540_vm0, %v8231_v3  ;;  %550 = vst.msk [vmem:[#allocation2 + $0x48] sm:$0xff] %vm540_vm0, %v8231_v3  ;;  %s8490_s16 = scalar_lea.vmem %s11978_s0, %s7235_s26  ;;  %v371_v13 = vld [vmem:[%s11979_s1 + $0x28] sm:$0xff]  ;;  %v370_v14 = vld [vmem:[%s11979_s1 + $0x20] sm:$0xff]  ;;  %7552 = vmatprep.subr.bf16.mxu0 %v8194_v10  ;;  %s11761_s19 = scalar_lea.vmem %s11987_s9, %s7235_s26 }
  0x11   : > { %551 = vst.msk [vmem:[#allocation2 + $0x50] sm:$0xff] %vm540_vm0, %v8231_v3  ;;  %552 = vst.msk [vmem:[#allocation2 + $0x58] sm:$0xff] %vm540_vm0, %v8231_v3  ;;  %660 = vperm.xlu1 %8193, %v369_v4   ;;  %650 = vperm.xlu0 %8192, %v367_v5   ;;  %v8499_v17 = vld [vmem:[%s8490_s16] sm:$0xff]  ;;  %v8502_v18 = vld [vmem:[%s8490_s16 + $0x8] sm:$0xff] }
  0x12   : > { %553 = vst.msk [vmem:[#allocation2 + $0x60] sm:$0xff] %vm540_vm0, %v8231_v3  ;;  %554 = vst.msk [vmem:[#allocation2 + $0x68] sm:$0xff] %vm540_vm0, %v8231_v3  ;;  %7553 = vmatpush3.bf16.msra.mxu0 %v8194_v10  ;;  %v8507_v19 = vld [vmem:[%s11981_s3] ss:$0 sm:$0xff]  ;;  %v373_v23 = vld [vmem:[%s11979_s1 + $0x38] sm:$0xff] }
  0x13   : > { %555 = vst.msk [vmem:[#allocation2 + $0x70] sm:$0xff] %vm540_vm0, %v8231_v3  ;;  %556 = vst.msk [vmem:[#allocation2 + $0x78] sm:$0xff] %vm540_vm0, %v8231_v3  ;;  %v855_v12 = vld [vmem:[#allocation2 + $0x8] sm:$0xff]  ;;  %v856_v15 = vld [vmem:[#allocation2 + $0x10] sm:$0xff]  ;;  %7554 = vmatprep.subr.bf16.mxu0 %v8195_v11  ;;  %v437_v20 = vmul.f32 %v8507_v19, %v8499_v17  ;;  %v438_v21 = vmul.f32 %v8507_v19, %v8502_v18 }
  0x14   : > { %557 = vst.msk [vmem:[#allocation2 + $0x80] sm:$0xff] %vm540_vm0, %v8231_v3  ;;  %558 = vst.msk [vmem:[#allocation2 + $0x88] sm:$0xff] %vm540_vm0, %v8231_v3  ;;  %v891_v16 = vpack.c.bf16 %v856_v15, %v855_v12  ;;  %v8516_v22 = vld [vmem:[%s11982_s4] ss:$0 sm:$0xff]  ;;  %v336_v24 = vld [vmem:[%s8490_s16 + $0x10] sm:$0xff] }
  0x15   : > { %559 = vst.msk [vmem:[#allocation2 + $0x90] sm:$0xff] %vm540_vm0, %v8231_v3  ;;  %560 = vst.msk [vmem:[#allocation2 + $0x98] sm:$0xff] %vm540_vm0, %v8231_v3  ;;  %1388 = vperm.xlu1 %8193, %v399_v6   ;;  %1383 = vperm.xlu0 %8192, %v398_v7   ;;  %v8523_v25 = vld [vmem:[%s8490_s16 + $0x18] sm:$0xff]  ;;  %v372_v26 = vld [vmem:[%s11979_s1 + $0x30] sm:$0xff]  ;;  %v476_v27 = vadd.f32 %v8516_v22, %v437_v20  ;;  %v477_v28 = vadd.f32 %v8516_v22, %v438_v21 }
  0x16   : > { %561 = vst.msk [vmem:[#allocation2 + $0xa0] sm:$0xff] %vm540_vm0, %v8231_v3  ;;  %562 = vst.msk [vmem:[#allocation2 + $0xa8] sm:$0xff] %vm540_vm0, %v8231_v3  ;;  %7556 = vmatprep.mubr.msk.bf16.mxu0 %vm540_vm0, %v891_v16  ;;  %v439_v29 = vmul.f32 %v8507_v19, %v336_v24  ;;  %v440_v30 = vmul.f32 %v8507_v19, %v8523_v25  ;;  %v8535_v31 = vld [vmem:[%s8490_s16 + $0x20] sm:$0xff]  ;;  %v8538_v32 = vld [vmem:[%s8490_s16 + $0x28] sm:$0xff]  ;;  %7555 = vmatpush3.bf16.msra.mxu0 %v8195_v11 }
  0x17   : > { %563 = vst.msk [vmem:[#allocation2 + $0xb0] sm:$0xff] %vm540_vm0, %v8231_v3  ;;  %564 = vst.msk [vmem:[#allocation2 + $0xb8] sm:$0xff] %vm540_vm0, %v8231_v3  ;;  %v441_v33 = vmul.f32 %v8507_v19, %v8535_v31  ;;  %v442_v34 = vmul.f32 %v8507_v19, %v8538_v32  ;;  %v8545_v35 = vld [vmem:[%s8490_s16 + $0x30] sm:$0xff]  ;;  %v508_v36 = vmax.f32 %v476_v27, 0.0  ;;  %v509_v37 = vmax.f32 %v477_v28, 0.0  ;;  %v8550_v40 = vld [vmem:[%s8490_s16 + $0x38] sm:$0xff] }
  0x18   : > { %565 = vst.msk [vmem:[#allocation2 + $0xc0] sm:$0xff] %vm540_vm0, %v8231_v3  ;;  %566 = vst.msk [vmem:[#allocation2 + $0xc8] sm:$0xff] %vm540_vm0, %v8231_v3  ;;  %v478_v38 = vadd.f32 %v8516_v22, %v439_v29  ;;  %v479_v39 = vadd.f32 %v8516_v22, %v440_v30  ;;  %v403_v41 = vld [vmem:[%s11980_s2 + $0x28] sm:$0xff]  ;;  %v443_v44 = vmul.f32 %v8507_v19, %v8545_v35  ;;  %v8560_v45 = vld [vmem:[%s8490_s16 + $0x40] sm:$0xff] }
  0x19   : > { %567 = vst.msk [vmem:[#allocation2 + $0xd0] sm:$0xff] %vm540_vm0, %v8231_v3  ;;  %568 = vst.msk [vmem:[#allocation2 + $0xd8] sm:$0xff] %vm540_vm0, %v8231_v3  ;;  %1398 = vperm.xlu1 %8193, %v401_v8   ;;  %1393 = vperm.xlu0 %8192, %v400_v9   ;;  %v480_v42 = vadd.f32 %v8516_v22, %v441_v33  ;;  %v481_v43 = vadd.f32 %v8516_v22, %v442_v34  ;;  %v8563_v46 = vld [vmem:[%s8490_s16 + $0x48] sm:$0xff]  ;;  %v402_v47 = vld [vmem:[%s11980_s2 + $0x20] sm:$0xff] }
  0x1a   : > { %569 = vst.msk [vmem:[#allocation2 + $0xe0] sm:$0xff] %vm540_vm0, %v8231_v3  ;;  %570 = vst.msk [vmem:[#allocation2 + $0xe8] sm:$0xff] %vm540_vm0, %v8231_v3  ;;  %v510_v48 = vmax.f32 %v478_v38, 0.0  ;;  %v511_v49 = vmax.f32 %v479_v39, 0.0  ;;  %v444_v50 = vmul.f32 %v8507_v19, %v8550_v40  ;;  %v445_v51 = vmul.f32 %v8507_v19, %v8560_v45  ;;  %v8575_v52 = vld [vmem:[%s8490_s16 + $0x50] sm:$0xff]  ;;  %v8578_v53 = vld [vmem:[%s8490_s16 + $0x58] sm:$0xff] }
  0x1b   : > { %571 = vst.msk [vmem:[#allocation2 + $0xf0] sm:$0xff] %vm540_vm0, %v8231_v3  ;;  %572 = vst.msk [vmem:[#allocation2 + $0xf8] sm:$0xff] %vm540_vm0, %v8231_v3  ;;  %v512_v54 = vmax.f32 %v480_v42, 0.0  ;;  %v513_v55 = vmax.f32 %v481_v43, 0.0  ;;  %v482_v56 = vadd.f32 %v8516_v22, %v443_v44  ;;  %v446_v57 = vmul.f32 %v8507_v19, %v8563_v46  ;;  %v8584_v58 = vld [vmem:[%s8490_s16 + $0x60] sm:$0xff]  ;;  %v8595_v63 = vld [vmem:[%s8490_s16 + $0x68] sm:$0xff] }
  0x1c   : > { %573 = vst.msk [vmem:[#allocation2 + $0x100] sm:$0xff] %vm540_vm0, %v8231_v3  ;;  %574 = vst.msk [vmem:[#allocation2 + $0x108] sm:$0xff] %vm540_vm0, %v8231_v3  ;;  %v483_v59 = vadd.f32 %v8516_v22, %v444_v50  ;;  %v484_v60 = vadd.f32 %v8516_v22, %v445_v51  ;;  %v447_v61 = vmul.f32 %v8507_v19, %v8575_v52  ;;  %v405_v0 = vld [vmem:[%s11980_s2 + $0x38] sm:$0xff]  ;;  %v8608_v5 = vld [vmem:[%s8490_s16 + $0x70] sm:$0xff] }
  0x1d   : > { %575 = vst.msk [vmem:[#allocation2 + $0x110] sm:$0xff] %vm540_vm0, %v8231_v3  ;;  %576 = vst.msk [vmem:[#allocation2 + $0x118] sm:$0xff] %vm540_vm0, %v8231_v3  ;;  %670 = vperm.xlu1 %8193, %v371_v13   ;;  %665 = vperm.xlu0 %8192, %v370_v14   ;;  %v448_v62 = vmul.f32 %v8507_v19, %v8578_v53  ;;  %v514_v1 = vmax.f32 %v482_v56, 0.0  ;;  %v485_v2 = vadd.f32 %v8516_v22, %v446_v57  ;;  %v8611_v6 = vld [vmem:[%s8490_s16 + $0x78] sm:$0xff]  ;;  %v404_v7 = vld [vmem:[%s11980_s2 + $0x30] sm:$0xff] }
  0x1e   : > { %577 = vst.msk [vmem:[#allocation2 + $0x120] sm:$0xff] %vm540_vm0, %v8231_v3  ;;  %578 = vst.msk [vmem:[#allocation2 + $0x128] sm:$0xff] %vm540_vm0, %v8231_v3  ;;  %v450_v4 = vmul.f32 %v8507_v19, %v8595_v63  ;;  %v515_v8 = vmax.f32 %v483_v59, 0.0  ;;  %v516_v9 = vmax.f32 %v484_v60, 0.0  ;;  %v486_v10 = vadd.f32 %v8516_v22, %v447_v61  ;;  %v8619_v12 = vld [vmem:[%s8490_s16 + $0x80] sm:$0xff]  ;;  %v8622_v13 = vld [vmem:[%s8490_s16 + $0x88] sm:$0xff] }
  0x1f   : > { %3950 = vst.msk [vmem:[#allocation3 + $0x118] sm:$0xff] %vm3914_vm1, %v8231_v3  ;;  %3951 = vst.msk [vmem:[#allocation3 + $0x120] sm:$0xff] %vm3914_vm1, %v8231_v3  ;;  %v487_v11 = vadd.f32 %v8516_v22, %v448_v62  ;;  %v517_v14 = vmax.f32 %v485_v2, 0.0  ;;  %v451_v20 = vmul.f32 %v8507_v19, %v8608_v5  ;;  %v8630_v21 = vld [vmem:[%s8490_s16 + $0x90] sm:$0xff]  ;;  %v453_v27 = vmul.f32 %v8507_v19, %v8619_v12  ;;  %v8639_v28 = vld [vmem:[%s8490_s16 + $0x98] sm:$0xff] }
  0x20   : > { %3915 = vst.msk [vmem:[#allocation3] sm:$0xff] %vm3914_vm1, %v8231_v3  ;;  %3916 = vst.msk [vmem:[#allocation3 + $0x8] sm:$0xff] %vm3914_vm1, %v8231_v3  ;;  %v489_v16 = vadd.f32 %v8516_v22, %v450_v4  ;;  %v8646_v38 = vld [vmem:[%s8490_s16 + $0xa0] sm:$0xff]  ;;  %v375_v39 = vld [vmem:[%s11979_s1 + $0x48] sm:$0xff] }
  0x21   : > { %3917 = vst.msk [vmem:[#allocation3 + $0x10] sm:$0xff] %vm3914_vm1, %v8231_v3  ;;  %3918 = vst.msk [vmem:[#allocation3 + $0x18] sm:$0xff] %vm3914_vm1, %v8231_v3  ;;  %680 = vperm.xlu1 %8193, %v373_v23   ;;  %675 = vperm.xlu0 %8192, %v372_v26   ;;  %v518_v23 = vmax.f32 %v486_v10, 0.0  ;;  %v519_v24 = vmax.f32 %v487_v11, 0.0  ;;  %v452_v26 = vmul.f32 %v8507_v19, %v8611_v6  ;;  %v8677_v4 = vld [vmem:[%s8490_s16 + $0xb0] sm:$0xff] }
  0x22   : > { %3919 = vst.msk [vmem:[#allocation3 + $0x20] sm:$0xff] %vm3914_vm1, %v8231_v3  ;;  %3920 = vst.msk [vmem:[#allocation3 + $0x28] sm:$0xff] %vm3914_vm1, %v8231_v3  ;;  %v521_v34 = vmax.f32 %v489_v16, 0.0  ;;  %v492_v44 = vadd.f32 %v8516_v22, %v453_v27  ;;  %v457_v56 = vmul.f32 %v8507_v19, %v8646_v38  ;;  %v8697_v16 = vld [vmem:[%s8490_s16 + $0xc0] sm:$0xff]  ;;  %v8702_v27 = vld [vmem:[%s8490_s16 + $0xc8] sm:$0xff] }
  0x23   : > { %3921 = vst.msk [vmem:[#allocation3 + $0x30] sm:$0xff] %vm3914_vm1, %v8231_v3  ;;  %3922 = vst.msk [vmem:[#allocation3 + $0x38] sm:$0xff] %vm3914_vm1, %v8231_v3  ;;  %v491_v43 = vadd.f32 %v8516_v22, %v452_v26 }
  0x24   : > { %3923 = vst.msk [vmem:[#allocation3 + $0x40] sm:$0xff] %vm3914_vm1, %v8231_v3  ;;  %3924 = vst.msk [vmem:[#allocation3 + $0x48] sm:$0xff] %vm3914_vm1, %v8231_v3  ;;  %v524_v61 = vmax.f32 %v492_v44, 0.0  ;;  %v496_v11 = vadd.f32 %v8516_v22, %v457_v56  ;;  %v406_v44 = vld [vmem:[%s11980_s2 + $0x40] sm:$0xff]  ;;  %v408_v56 = vld [vmem:[%s11980_s2 + $0x50] sm:$0xff] }
  0x25   : > { %3925 = vst.msk [vmem:[#allocation3 + $0x50] sm:$0xff] %vm3914_vm1, %v8231_v3  ;;  %3926 = vst.msk [vmem:[#allocation3 + $0x58] sm:$0xff] %vm3914_vm1, %v8231_v3  ;;  %1408 = vperm.xlu1 %8193, %v403_v41   ;;  %1403 = vperm.xlu0 %8192, %v402_v47   ;;  %v374_v41 = vld [vmem:[%s11979_s1 + $0x40] sm:$0xff]  ;;  %v455_v47 = vmul.f32 %v8507_v19, %v8630_v21  ;;  %v523_v60 = vmax.f32 %v491_v43, 0.0  ;;  %v407_v43 = vld [vmem:[%s11980_s2 + $0x48] sm:$0xff] }
  0x26   : > { %3927 = vst.msk [vmem:[#allocation3 + $0x60] sm:$0xff] %vm3914_vm1, %v8231_v3  ;;  %3928 = vst.msk [vmem:[#allocation3 + $0x68] sm:$0xff] %vm3914_vm1, %v8231_v3 }
  0x27   : > { %3929 = vst.msk [vmem:[#allocation3 + $0x70] sm:$0xff] %vm3914_vm1, %v8231_v3  ;;  %3930 = vst.msk [vmem:[#allocation3 + $0x78] sm:$0xff] %vm3914_vm1, %v8231_v3  ;;  %v494_v62 = vadd.f32 %v8516_v22, %v455_v47 }
  0x28   : > { %3931 = vst.msk [vmem:[#allocation3 + $0x80] sm:$0xff] %vm3914_vm1, %v8231_v3  ;;  %3932 = vst.msk [vmem:[#allocation3 + $0x88] sm:$0xff] %vm3914_vm1, %v8231_v3 }
  0x29   : > { %3933 = vst.msk [vmem:[#allocation3 + $0x90] sm:$0xff] %vm3914_vm1, %v8231_v3  ;;  %3934 = vst.msk [vmem:[#allocation3 + $0x98] sm:$0xff] %vm3914_vm1, %v8231_v3  ;;  %1418 = vperm.xlu1 %8193, %v405_v0   ;;  %1413 = vperm.xlu0 %8192, %v404_v7   ;;  %v8680_v7 = vld [vmem:[%s8490_s16 + $0xb8] sm:$0xff]  ;;  %v526_v10 = vmax.f32 %v494_v62, 0.0 }
  0x2a   : > { %3935 = vst.msk [vmem:[#allocation3 + $0xa0] sm:$0xff] %vm3914_vm1, %v8231_v3  ;;  %3936 = vst.msk [vmem:[#allocation3 + $0xa8] sm:$0xff] %vm3914_vm1, %v8231_v3 }
  0x2b   : > { %3937 = vst.msk [vmem:[#allocation3 + $0xb0] sm:$0xff] %vm3914_vm1, %v8231_v3  ;;  %3938 = vst.msk [vmem:[#allocation3 + $0xb8] sm:$0xff] %vm3914_vm1, %v8231_v3 }
  0x2c   : > { %3939 = vst.msk [vmem:[#allocation3 + $0xc0] sm:$0xff] %vm3914_vm1, %v8231_v3  ;;  %3940 = vst.msk [vmem:[#allocation3 + $0xc8] sm:$0xff] %vm3914_vm1, %v8231_v3 }
  0x2d   : > { %3941 = vst.msk [vmem:[#allocation3 + $0xd0] sm:$0xff] %vm3914_vm1, %v8231_v3  ;;  %3942 = vst.msk [vmem:[#allocation3 + $0xd8] sm:$0xff] %vm3914_vm1, %v8231_v3  ;;  %690 = vperm.xlu1 %8193, %v375_v39   ;;  %685 = vperm.xlu0 %8192, %v374_v41   ;;  %v462_v39 = vmul.f32 %v8507_v19, %v8702_v27 }
  0x2e   : > { %3943 = vst.msk [vmem:[#allocation3 + $0xe0] sm:$0xff] %vm3914_vm1, %v8231_v3  ;;  %3944 = vst.msk [vmem:[#allocation3 + $0xe8] sm:$0xff] %vm3914_vm1, %v8231_v3 }
  0x2f   : > { %3945 = vst.msk [vmem:[#allocation3 + $0xf0] sm:$0xff] %vm3914_vm1, %v8231_v3  ;;  %3946 = vst.msk [vmem:[#allocation3 + $0xf8] sm:$0xff] %vm3914_vm1, %v8231_v3 }
  0x30   : > { %3947 = vst.msk [vmem:[#allocation3 + $0x100] sm:$0xff] %vm3914_vm1, %v8231_v3  ;;  %3948 = vst.msk [vmem:[#allocation3 + $0x108] sm:$0xff] %vm3914_vm1, %v8231_v3 }
  0x31   : > { %3949 = vst.msk [vmem:[#allocation3 + $0x110] sm:$0xff] %vm3914_vm1, %v8231_v3  ;;  %3952 = vst.msk [vmem:[#allocation3 + $0x128] sm:$0xff] %vm3914_vm1, %v8231_v3  ;;  %v449_v3 = vmul.f32 %v8507_v19, %v8584_v58 }
  0x32   : > { %12270 = vst [vmem:[#allocation4_spill] sm:$0xff] %v8499_v17  ;;  %12271 = vst [vmem:[#allocation5_spill] sm:$0xff] %v8502_v18 }
  0x33   : > { %12272 = vst [vmem:[#allocation6_spill] sm:$0xff] %v8523_v25  ;;  %12273 = vst [vmem:[#allocation7_spill] sm:$0xff] %v8535_v31  ;;  %v488_v15 = vadd.f32 %v8516_v22, %v449_v3 }
  0x34   : > { %12274 = vst [vmem:[#allocation8_spill] sm:$0xff] %v8538_v32  ;;  %12275 = vst [vmem:[#allocation9_spill] sm:$0xff] %v8545_v35 }
  0x35   : > { %12276 = vst [vmem:[#allocation10_spill] sm:$0xff] %v8550_v40  ;;  %12277 = vst [vmem:[#allocation11_spill] sm:$0xff] %v8560_v45  ;;  %v520_v33 = vmax.f32 %v488_v15, 0.0  ;;  %v460_v15 = vmul.f32 %v8507_v19, %v8680_v7 }
  0x36   : > { %12278 = vst [vmem:[#allocation12_spill] sm:$0xff] %v8563_v46  ;;  %579 = vst.msk [vmem:[#allocation2 + $0x18] sm:$0xff] %vm540_vm0, %v508_v36  ;;  %v490_v36 = vadd.f32 %v8516_v22, %v451_v20 }
  0x37   : > { %580 = vst.msk [vmem:[#allocation2 + $0x20] sm:$0xff] %vm540_vm0, %v509_v37  ;;  %12279 = vst [vmem:[#allocation13_spill] sm:$0xff] %v8575_v52  ;;  %v454_v37 = vmul.f32 %v8507_v19, %v8622_v13 }
  0x38   : > { %12280 = vst [vmem:[#allocation14_spill] sm:$0xff] %v8578_v53  ;;  %12281 = vst [vmem:[#allocation15_spill] sm:$0xff] %v8584_v58  ;;  %v522_v51 = vmax.f32 %v490_v36, 0.0  ;;  %v499_v36 = vadd.f32 %v8516_v22, %v460_v15 }
  0x39   : > { %581 = vst.msk [vmem:[#allocation2 + $0x28] sm:$0xff] %vm540_vm0, %v510_v48  ;;  %582 = vst.msk [vmem:[#allocation2 + $0x30] sm:$0xff] %vm540_vm0, %v511_v49  ;;  %v8661_v48 = vld [vmem:[%s8490_s16 + $0xa8] sm:$0xff] }
  0x3a   : > { %12282 = vst [vmem:[#allocation16_spill] sm:$0xff] %v8595_v63  ;;  %583 = vst.msk [vmem:[#allocation2 + $0x38] sm:$0xff] %vm540_vm0, %v512_v54  ;;  %v493_v54 = vadd.f32 %v8516_v22, %v454_v37  ;;  %v458_v3 = vmul.f32 %v8507_v19, %v8661_v48 }
  0x3b   : > { %584 = vst.msk [vmem:[#allocation2 + $0x40] sm:$0xff] %vm540_vm0, %v513_v55  ;;  %12283 = vst [vmem:[#allocation17_spill] sm:$0xff] %v8608_v5  ;;  %v456_v55 = vmul.f32 %v8507_v19, %v8639_v28 }
  0x3c   : > { %12284 = vst [vmem:[#allocation18_spill] sm:$0xff] %v8611_v6  ;;  %12285 = vst [vmem:[#allocation19_spill] sm:$0xff] %v8619_v12  ;;  %v497_v26 = vadd.f32 %v8516_v22, %v458_v3  ;;  %v8747_v3 = vld [vmem:[%s8490_s16 + $0xd8] sm:$0xff] }
  0x3d   : > { %12286 = vst [vmem:[#allocation20_spill] sm:$0xff] %v8622_v13  ;;  %585 = vst.msk [vmem:[#allocation2 + $0x48] sm:$0xff] %vm540_vm0, %v514_v1  ;;  %v857_v29 = vld [vmem:[#allocation2 + $0x18] sm:$0xff]  ;;  %v525_v1 = vmax.f32 %v493_v54, 0.0  ;;  %v495_v2 = vadd.f32 %v8516_v22, %v456_v55 }
  0x3e   : > { %12287 = vst [vmem:[#allocation21_spill] sm:$0xff] %v8630_v21  ;;  %586 = vst.msk [vmem:[#allocation2 + $0x50] sm:$0xff] %vm540_vm0, %v515_v8  ;;  %v858_v30 = vld [vmem:[#allocation2 + $0x20] sm:$0xff]  ;;  %v377_v8 = vld [vmem:[%s11979_s1 + $0x58] sm:$0xff]  ;;  %v529_v37 = vmax.f32 %v497_v26, 0.0 }
  0x3f   : > { %587 = vst.msk [vmem:[#allocation2 + $0x58] sm:$0xff] %vm540_vm0, %v516_v9  ;;  %12288 = vst [vmem:[#allocation22_spill] sm:$0xff] %v8639_v28  ;;  %v892_v42 = vpack.c.bf16 %v858_v30, %v857_v29  ;;  %v376_v9 = vld [vmem:[%s11979_s1 + $0x50] sm:$0xff]  ;;  %v461_v29 = vmul.f32 %v8507_v19, %v8697_v16  ;;  %700 = vperm.xlu1 %8193, %v377_v8   ;;  %v409_v55 = vld [vmem:[%s11980_s2 + $0x58] sm:$0xff] }
  0x40   : > { %588 = vst.msk [vmem:[#allocation2 + $0x60] sm:$0xff] %vm540_vm0, %v517_v14  ;;  %12289 = vst [vmem:[#allocation23_spill] sm:$0xff] %v8646_v38  ;;  %v859_v49 = vld [vmem:[#allocation2 + $0x28] sm:$0xff]  ;;  %v860_v50 = vld [vmem:[#allocation2 + $0x30] sm:$0xff]  ;;  %v459_v14 = vmul.f32 %v8507_v19, %v8677_v4  ;;  %695 = vperm.xlu0 %8192, %v376_v9  }
  0x41   : > { %589 = vst.msk [vmem:[#allocation2 + $0x68] sm:$0xff] %vm540_vm0, %v518_v23  ;;  %590 = vst.msk [vmem:[#allocation2 + $0x70] sm:$0xff] %vm540_vm0, %v519_v24  ;;  %7557 = vmatmul.mubr.msk.bf16.vlgmr.msra.gmra.mxu0 %vm540_vm0, %v892_v42  ;;  %v893_v57 = vpack.c.bf16 %v860_v50, %v859_v49  ;;  %v861_v59 = vld [vmem:[#allocation2 + $0x38] sm:$0xff]  ;;  %v527_v24 = vmax.f32 %v495_v2, 0.0  ;;  %v500_v41 = vadd.f32 %v8516_v22, %v461_v29  ;;  %v8196_v42 = vld [vmem:[%s11983_s5 + $0x8] sm:$0xff]   ;;  %v531_v50 = vmax.f32 %v499_v36, 0.0 }
  0x42   : > { %12290 = vst [vmem:[#allocation24_spill] sm:$0xff] %v8661_v48  ;;  %591 = vst.msk [vmem:[#allocation2 + $0x78] sm:$0xff] %vm540_vm0, %v520_v33  ;;  %v862_v0 = vld [vmem:[#allocation2 + $0x40] sm:$0xff]  ;;  %v528_v33 = vmax.f32 %v496_v11, 0.0  ;;  %7588 = vmatprep.subr.bf16.mxu1 %v8196_v42  ;;  %v464_v11 = vmul.f32 %v8507_v19, %v8747_v3 }
  0x43   : > { %592 = vst.msk [vmem:[#allocation2 + $0x80] sm:$0xff] %vm540_vm0, %v521_v34  ;;  %593 = vst.msk [vmem:[#allocation2 + $0x88] sm:$0xff] %vm540_vm0, %v522_v51  ;;  %7560 = vmatprep.mubr.msk.bf16.mxu0 %vm540_vm0, %v893_v57  ;;  %v894_v30 = vpack.c.bf16 %v862_v0, %v861_v59  ;;  %v498_v34 = vadd.f32 %v8516_v22, %v459_v14  ;;  %v501_v51 = vadd.f32 %v8516_v22, %v462_v39  ;;  %v8197_v57 = vld [vmem:[%s11983_s5] sm:$0xff]   ;;  %v8198_v0 = vld [vmem:[%s11983_s5 + $0x28] sm:$0xff]  }
  0x44   : > { %12291 = vst [vmem:[#allocation25_spill] sm:$0xff] %v8677_v4  ;;  %12292 = vst [vmem:[#allocation26_spill] sm:$0xff] %v8680_v7  ;;  %v863_v20 = vld [vmem:[#allocation2 + $0x48] sm:$0xff]  ;;  %v532_v54 = vmax.f32 %v500_v41, 0.0  ;;  %7589 = vmatpush3.bf16.msra.mxu1 %v8196_v42  ;;  %1428 = vperm.xlu1 %8193, %v407_v43   ;;  %v8752_v9 = vld [vmem:[%s8490_s16 + $0xe0] sm:$0xff] }
  0x45   : > { %594 = vst.msk [vmem:[#allocation2 + $0x90] sm:$0xff] %vm540_vm0, %v523_v60  ;;  %595 = vst.msk [vmem:[#allocation2 + $0x98] sm:$0xff] %vm540_vm0, %v524_v61  ;;  %v864_v23 = vld [vmem:[#allocation2 + $0x50] sm:$0xff]  ;;  %v530_v49 = vmax.f32 %v498_v34, 0.0  ;;  %1423 = vperm.xlu0 %8192, %v406_v44   ;;  %v533_v61 = vmax.f32 %v501_v51, 0.0  ;;  %7590 = vmatprep.subr.bf16.mxu1 %v8197_v57  ;;  %v8757_v14 = vld [vmem:[%s8490_s16 + $0xe8] sm:$0xff]  ;;  %v465_v15 = vmul.f32 %v8507_v19, %v8752_v9 }
  0x46   : > { %12293 = vst [vmem:[#allocation27_spill] sm:$0xff] %v8697_v16  ;;  %596 = vst.msk [vmem:[#allocation2 + $0xa0] sm:$0xff] %vm540_vm0, %v525_v1  ;;  %v895_v47 = vpack.c.bf16 %v864_v23, %v863_v20  ;;  %v865_v59 = vld [vmem:[#allocation2 + $0x58] sm:$0xff]  ;;  %v8743_v1 = vld [vmem:[%s8490_s16 + $0xd0] sm:$0xff]  ;;  %7624 = vmatprep.subr.bf16.mxu0 %v8198_v0  ;;  %v466_v23 = vmul.f32 %v8507_v19, %v8757_v14 }
  0x47   : > { %12294 = vst [vmem:[#allocation28_spill] sm:$0xff] %v8702_v27  ;;  %597 = vst.msk [vmem:[#allocation2 + $0xa8] sm:$0xff] %vm540_vm0, %v526_v10  ;;  %v866_v60 = vld [vmem:[#allocation2 + $0x60] sm:$0xff]  ;;  %v463_v8 = vmul.f32 %v8507_v19, %v8743_v1  ;;  %7625 = vmatpush3.bf16.msra.mxu0 %v8198_v0  ;;  %v620_v27 = vld [vmem:[#allocation2 + $0x4f] sm:$0xff] }
  0x48   : > { %598 = vst.msk [vmem:[#allocation2 + $0xb0] sm:$0xff] %vm540_vm0, %v527_v24  ;;  %599 = vst.msk [vmem:[#allocation2 + $0xb8] sm:$0xff] %vm540_vm0, %v528_v33  ;;  %v867_v62 = vld [vmem:[#allocation2 + $0x68] sm:$0xff]  ;;  %v868_v2 = vld [vmem:[#allocation2 + $0x70] sm:$0xff]  ;;  %v896_v10 = vpack.c.bf16 %v866_v60, %v865_v59  ;;  %7591 = vmatpush3.bf16.msra.mxu1 %v8197_v57  ;;  %1438 = vperm.xlu1 %8193, %v409_v55   ;;  %v504_v33 = vadd.f32 %v8516_v22, %v465_v15 }
  0x49   : > { %600 = vst.msk [vmem:[#allocation2 + $0xc0] sm:$0xff] %vm540_vm0, %v529_v37  ;;  %7561 = vmatmul.mubr.msk.bf16.gmra.mxu0 %vm540_vm0, %v894_v30  ;;  %601 = vst.msk [vmem:[#allocation2 + $0xc8] sm:$0xff] %vm540_vm0, %v530_v49  ;;  %1433 = vperm.xlu0 %8192, %v408_v56   ;;  %v502_v20 = vadd.f32 %v8516_v22, %v463_v8  ;;  %v379_v24 = vld [vmem:[%s11979_s1 + $0x68] sm:$0xff]  ;;  %v378_v26 = vld [vmem:[%s11979_s1 + $0x60] sm:$0xff]  ;;  %v897_v29 = vpack.c.bf16 %v868_v2, %v867_v62 }
  0x4a   : > { %602 = vst.msk [vmem:[#allocation2 + $0xd0] sm:$0xff] %vm540_vm0, %v531_v50  ;;  %603 = vst.msk [vmem:[#allocation2 + $0xd8] sm:$0xff] %vm540_vm0, %v532_v54  ;;  %7564 = vmatprep.mubr.msk.bf16.mxu0 %vm540_vm0, %v895_v47  ;;  %v503_v30 = vadd.f32 %v8516_v22, %v464_v11  ;;  %v505_v36 = vadd.f32 %v8516_v22, %v466_v23  ;;  %v381_v37 = vld [vmem:[%s11979_s1 + $0x78] sm:$0xff]  ;;  %v536_v41 = vmax.f32 %v504_v33, 0.0  ;;  %v870_v43 = vld [vmem:[#allocation2 + $0x80] sm:$0xff] }
  0x4b   : > { %12295 = vst [vmem:[#allocation29_spill] sm:$0xff] %v8743_v1  ;;  %604 = vst.msk [vmem:[#allocation2 + $0xe0] sm:$0xff] %vm540_vm0, %v533_v61  ;;  %v534_v34 = vmax.f32 %v502_v20, 0.0  ;;  %v869_v42 = vld [vmem:[#allocation2 + $0x78] sm:$0xff]  ;;  %v380_v47 = vld [vmem:[%s11979_s1 + $0x70] sm:$0xff] }
  0x4c   : > { %12296 = vst [vmem:[#allocation30_spill] sm:$0xff] %v8747_v3  ;;  %12297 = vst [vmem:[#allocation31_spill] sm:$0xff] %v8752_v9  ;;  %v535_v39 = vmax.f32 %v503_v30, 0.0  ;;  %710 = vperm.xlu1 %8193, %v379_v24   ;;  %v537_v44 = vmax.f32 %v505_v36, 0.0  ;;  %v8199_v49 = vld [vmem:[%s11983_s5 + $0x20] sm:$0xff]   ;;  %v871_v50 = vld [vmem:[#allocation2 + $0x88] sm:$0xff]  ;;  %v898_v54 = vpack.c.bf16 %v870_v43, %v869_v42 }
  0x4d   : > { %12298 = vst [vmem:[#allocation32_spill] sm:$0xff] %v8757_v14  ;;  %705 = vperm.xlu0 %8192, %v378_v26   ;;  %605 = vst.msk [vmem:[#allocation2 + $0xe8] sm:$0xff] %vm540_vm0, %v534_v34  ;;  %v872_v51 = vld [vmem:[#allocation2 + $0x90] sm:$0xff]  ;;  %7626 = vmatprep.subr.bf16.mxu0 %v8199_v49  ;;  %v411_v55 = vld [vmem:[%s11980_s2 + $0x68] sm:$0xff] }
  0x4e   : > { %606 = vst.msk [vmem:[#allocation2 + $0xf0] sm:$0xff] %vm540_vm0, %v535_v39  ;;  %607 = vst.msk [vmem:[#allocation2 + $0xf8] sm:$0xff] %vm540_vm0, %v536_v41  ;;  %v410_v56 = vld [vmem:[%s11980_s2 + $0x60] sm:$0xff]  ;;  %v899_v57 = vpack.c.bf16 %v872_v51, %v871_v50  ;;  %7627 = vmatpush3.bf16.msra.mxu0 %v8199_v49  ;;  %v873_v59 = vld [vmem:[#allocation2 + $0x98] sm:$0xff] }
  0x4f   : > { %608 = vst.msk [vmem:[#allocation2 + $0x100] sm:$0xff] %vm540_vm0, %v537_v44  ;;  %v874_v60 = vld [vmem:[#allocation2 + $0xa0] sm:$0xff]  ;;  %v413_v61 = vld [vmem:[%s11980_s2 + $0x78] sm:$0xff]  ;;  %v412_v62 = vld [vmem:[%s11980_s2 + $0x70] sm:$0xff] }
  0x50   : > { %720 = vperm.xlu1 %8193, %v381_v37   ;;  %v875_v0 = vld [vmem:[#allocation2 + $0xa8] sm:$0xff]  ;;  %v876_v2 = vld [vmem:[#allocation2 + $0xb0] sm:$0xff]  ;;  %v900_v8 = vpack.c.bf16 %v874_v60, %v873_v59  ;;  %v382_v11 = vld [vmem:[%s11979_s1 + $0x80] sm:$0xff] }
  0x51   : > { %7565 = vmatmul.mubr.msk.bf16.gmra.mxu0 %vm540_vm0, %v896_v10  ;;  %715 = vperm.xlu0 %8192, %v380_v47   ;;  %v383_v10 = vld [vmem:[%s11979_s1 + $0x88] sm:$0xff]  ;;  %v901_v15 = vpack.c.bf16 %v876_v2, %v875_v0  ;;  %v385_v20 = vld [vmem:[%s11979_s1 + $0x98] sm:$0xff]  ;;  %v384_v23 = vld [vmem:[%s11979_s1 + $0x90] sm:$0xff] }
  0x52   : > { %7568 = vmatprep.mubr.msk.bf16.mxu0 %vm540_vm0, %v897_v29  ;;  %v877_v24 = vld [vmem:[#allocation2 + $0xb8] sm:$0xff]  ;;  %v878_v26 = vld [vmem:[#allocation2 + $0xc0] sm:$0xff]  ;;  %v879_v29 = vld [vmem:[#allocation2 + $0xc8] sm:$0xff] }
  0x53   : > { %v8818_v30 = vld [vmem:[%s11983_s5 + $0x38] sm:$0xff]   ;;  %v880_v33 = vld [vmem:[#allocation2 + $0xd0] sm:$0xff]  ;;  %v902_v34 = vpack.c.bf16 %v878_v26, %v877_v24  ;;  %v8825_v36 = vld [vmem:[%s11983_s5 + $0x48] sm:$0xff]  }
  0x54   : > { %1448 = vperm.xlu1 %8193, %v411_v55   ;;  %7660 = vmatprep.subr.bf16.mxu1 %v8818_v30  ;;  %v415_v37 = vld [vmem:[%s11980_s2 + $0x88] sm:$0xff]  ;;  %v414_v39 = vld [vmem:[%s11980_s2 + $0x80] sm:$0xff]  ;;  %v903_v41 = vpack.c.bf16 %v880_v33, %v879_v29  ;;  %v881_v42 = vld [vmem:[#allocation2 + $0xd8] sm:$0xff] }
  0x55   : > { %1443 = vperm.xlu0 %8192, %v410_v56   ;;  %7696 = vmatprep.subr.bf16.mxu0 %v8825_v36  ;;  %v882_v43 = vld [vmem:[#allocation2 + $0xe0] sm:$0xff]  ;;  %v417_v44 = vld [vmem:[%s11980_s2 + $0x98] sm:$0xff]  ;;  %v416_v47 = vld [vmem:[%s11980_s2 + $0x90] sm:$0xff] }
  0x56   : > { %v883_v49 = vld [vmem:[#allocation2 + $0xe8] sm:$0xff]  ;;  %v884_v50 = vld [vmem:[#allocation2 + $0xf0] sm:$0xff]  ;;  %v904_v51 = vpack.c.bf16 %v882_v43, %v881_v42  ;;  %v386_v55 = vld [vmem:[%s11979_s1 + $0xa0] sm:$0xff] }
  0x57   : > { %v905_v56 = vpack.c.bf16 %v884_v50, %v883_v49  ;;  %v885_v59 = vld [vmem:[#allocation2 + $0xf8] sm:$0xff]  ;;  %v886_v60 = vld [vmem:[#allocation2 + $0x100] sm:$0xff]  ;;  %v419_v0 = vld [vmem:[%s11980_s2 + $0xa8] sm:$0xff] }
  0x58   : > { %1458 = vperm.xlu1 %8193, %v413_v61   ;;  %v388_v61 = vld [vmem:[%s11979_s1 + $0xb0] sm:$0xff]  ;;  %v418_v2 = vld [vmem:[%s11980_s2 + $0xa0] sm:$0xff]  ;;  %v8882_v26 = vld [vmem:[%s8490_s16 + $0xf8] sm:$0xff] }
  0x59   : > { %7569 = vmatmul.mubr.msk.bf16.gmra.mxu0 %vm540_vm0, %v898_v54  ;;  %1453 = vperm.xlu0 %8192, %v412_v62   ;;  %v387_v54 = vld [vmem:[%s11979_s1 + $0xa8] sm:$0xff]  ;;  %v906_v62 = vpack.c.bf16 %v886_v60, %v885_v59  ;;  %12300 = vst [vmem:[#allocation34_spill] sm:$0xff] %v8882_v26  ;;  %v468_v33 = vmul.f32 %v8507_v19, %v8882_v26  ;;  %v422_v42 = vld [vmem:[%s11980_s2 + $0xc0] sm:$0xff]  ;;  %v425_v43 = vld [vmem:[%s11980_s2 + $0xd8] sm:$0xff] }
  0x5a   : > { %7572 = vmatprep.mubr.msk.bf16.mxu0 %vm540_vm0, %v899_v57  ;;  %v389_v57 = vld [vmem:[%s11979_s1 + $0xb8] sm:$0xff]  ;;  %v396_v50 = vld [vmem:[%s11979_s1 + $0xf0] sm:$0xff]  ;;  %v8933_v59 = vld [vmem:[#allocation2 + $0x27] sm:$0xff] }
  0x5b   : > { %v397_v49 = vld [vmem:[%s11979_s1 + $0xf8] sm:$0xff]  ;;  %v619_v9 = vld [vmem:[#allocation2 + $0x47] sm:$0xff] }
  0x5c   : > { %730 = vperm.xlu1 %8193, %v383_v10   ;;  %v420_v10 = vld [vmem:[%s11980_s2 + $0xb0] sm:$0xff]  ;;  %v622_v63 = vld [vmem:[#allocation2 + $0x5f] sm:$0xff] }
  0x5d   : > { %725 = vperm.xlu0 %8192, %v382_v11   ;;  %v8870_v11 = vld [vmem:[%s8490_s16 + $0xf0] sm:$0xff]  ;;  %v3478_v25 = vld [vmem:[#allocation2 + $0x81] sm:$0xff]  ;;  %v3477_v17 = vld [vmem:[#allocation2 + $0x79] sm:$0xff] }
  0x5e   : > { %12299 = vst [vmem:[#allocation33_spill] sm:$0xff] %v8870_v11  ;;  %v8935_v60 = vld [vmem:[#allocation2 + $0x37] sm:$0xff]  ;;  %v9136_v31 = vld [vmem:[#allocation2 + $0x69] sm:$0xff] }
  0x5f   : > { %v9070_v7 = vld [vmem:[#allocation2 + $0x51] sm:$0xff]  ;;  %12331 = vst [vmem:[#allocation65_spill] sm:$0xff] %v9136_v31 }
  0x60   : > { %740 = vperm.xlu1 %8193, %v385_v20   ;;  %v391_v20 = vld [vmem:[%s11979_s1 + $0xc8] sm:$0xff]  ;;  %12318 = vst [vmem:[#allocation52_spill] sm:$0xff] %v9070_v7  ;;  %v9138_v35 = vld [vmem:[#allocation2 + $0x71] sm:$0xff] }
  0x61   : > { %7573 = vmatmul.mubr.msk.bf16.gmra.mxu0 %vm540_vm0, %v900_v8  ;;  %735 = vperm.xlu0 %8192, %v384_v23   ;;  %v421_v8 = vld [vmem:[%s11980_s2 + $0xb8] sm:$0xff]  ;;  %v390_v23 = vld [vmem:[%s11979_s1 + $0xc0] sm:$0xff]  ;;  %12332 = vst [vmem:[#allocation66_spill] sm:$0xff] %v9138_v35 }
  0x62   : > { %7576 = vmatprep.mubr.msk.bf16.mxu0 %vm540_vm0, %v901_v15  ;;  %v467_v15 = vmul.f32 %v8507_v19, %v8870_v11  ;;  %v423_v19 = vld [vmem:[%s11980_s2 + $0xc8] sm:$0xff] }
  0x64   : > { %1468 = vperm.xlu1 %8193, %v415_v37   ;;  %v506_v24 = vadd.f32 %v8516_v22, %v467_v15  ;;  %v392_v37 = vld [vmem:[%s11979_s1 + $0xd0] sm:$0xff]  ;;  %v614_v15 = vld [vmem:[#allocation2 + $0x1f] sm:$0xff] }
  0x65   : > { %1463 = vperm.xlu0 %8192, %v414_v39   ;;  %v507_v39 = vadd.f32 %v8516_v22, %v468_v33  ;;  %v424_v22 = vld [vmem:[%s11980_s2 + $0xd0] sm:$0xff] }
  0x66   : > { %v538_v29 = vmax.f32 %v506_v24, 0.0 }
  0x68   : > { %1478 = vperm.xlu1 %8193, %v417_v44   ;;  %609 = vst.msk [vmem:[#allocation2 + $0x108] sm:$0xff] %vm540_vm0, %v538_v29  ;;  %v395_v44 = vld [vmem:[%s11979_s1 + $0xe8] sm:$0xff] }
  0x69   : > { %7577 = vmatmul.mubr.msk.bf16.gmra.mxu0 %vm540_vm0, %v902_v34  ;;  %1473 = vperm.xlu0 %8192, %v416_v47   ;;  %v393_v34 = vld [vmem:[%s11979_s1 + $0xd8] sm:$0xff]  ;;  %v394_v47 = vld [vmem:[%s11979_s1 + $0xe0] sm:$0xff] }
  0x6a   : > { %7580 = vmatprep.mubr.msk.bf16.mxu0 %vm540_vm0, %v903_v41  ;;  %v539_v41 = vmax.f32 %v507_v39, 0.0 }
  0x6c   : > { %750 = vperm.xlu1 %8193, %v387_v54   ;;  %610 = vst.msk [vmem:[#allocation2 + $0x110] sm:$0xff] %vm540_vm0, %v539_v41  ;;  %v426_v54 = vld [vmem:[%s11980_s2 + $0xe0] sm:$0xff] }
  0x6d   : > { %745 = vperm.xlu0 %8192, %v386_v55   ;;  %v429_v55 = vld [vmem:[%s11980_s2 + $0xf8] sm:$0xff] }
  0x70   : > { %760 = vperm.xlu1 %8193, %v389_v57  }
  0x71   : > { %7581 = vmatmul.mubr.msk.bf16.gmra.mxu0 %vm540_vm0, %v904_v51  ;;  %755 = vperm.xlu0 %8192, %v388_v61   ;;  %v427_v51 = vld [vmem:[%s11980_s2 + $0xe8] sm:$0xff] }
  0x72   : > { %7584 = vmatprep.mubr.msk.bf16.mxu0 %vm540_vm0, %v905_v56  ;;  %v428_v56 = vld [vmem:[%s11980_s2 + $0xf0] sm:$0xff] }
  0x74   : > { %1488 = vperm.xlu1 %8193, %v419_v0   ;;  %v611_v0 = vld [vmem:[#allocation2 + $0x7] sm:$0xff] }
  0x75   : > { %1483 = vperm.xlu0 %8192, %v418_v2   ;;  %v613_v2 = vld [vmem:[#allocation2 + $0x17] sm:$0xff] }
  0x78   : > { %1498 = vperm.xlu1 %8193, %v421_v8   ;;  %v8939_v8 = vld [vmem:[#allocation2 + $0x3f] sm:$0xff] }
  0x79   : > { %7585 = vmatmul.mubr.msk.bf16.gmra.mxu0 %vm540_vm0, %v906_v62  ;;  %1493 = vperm.xlu0 %8192, %v420_v10   ;;  %v1849_v62 = vld [vmem:[#allocation2 + $0x2f] sm:$0xff] }
  0x7a   : > { %v612_v10 = vld [vmem:[#allocation2 + $0xf] sm:$0xff] }
  0x7c   : > { %770 = vperm.xlu1 %8193, %v391_v20  }
  0x7d   : > { %765 = vperm.xlu0 %8192, %v390_v23  }
  0x80   : > { %780 = vperm.xlu1 %8193, %v393_v34  }
  0x81   : > { %775 = vperm.xlu0 %8192, %v392_v37  }
  0x84   : > { %1508 = vperm.xlu1 %8193, %v423_v19  }
  0x85   : > { %1503 = vperm.xlu0 %8192, %v422_v42   ;;  %v1349_v42 = vld [vmem:[#allocation2 + $0x9] sm:$0xff] }
  0x88   : > { %1518 = vperm.xlu1 %8193, %v425_v43   ;;  %v8931_v57 = vpop.permute.xlu1 %655  ;;  %v8937_v61 = vpop.permute.xlu0 %645  ;;  %v1350_v43 = vld [vmem:[#allocation2 + $0x11] sm:$0xff] }
  0x89   : > { %1513 = vperm.xlu0 %8192, %v424_v22   ;;  %12301 = vst [vmem:[#allocation35_spill] sm:$0xff] %v8931_v57  ;;  %12302 = vst [vmem:[#allocation36_spill] sm:$0xff] %v8937_v61  ;;  %v8943_v20 = vmul.f32 %v8933_v59, %v8931_v57  ;;  %v8947_v23 = vmul.f32 %v8935_v60, %v8931_v57  ;;  %v803_v33 = vmul.f32 %v8937_v61, %v611_v0 }
  0x8a   : > { %v805_v34 = vmul.f32 %v8931_v57, %v613_v2  ;;  %v8965_v22 = vmul.f32 %v8937_v61, %v613_v2  ;;  %v1352_v2 = vld [vmem:[#allocation2 + $0x21] sm:$0xff] }
  0x8b   : > { %12303 = vst [vmem:[#allocation37_spill] sm:$0xff] %v8947_v23 }
  0x8c   : > { %790 = vperm.xlu1 %8193, %v395_v44   ;;  %v8949_v24 = vpop.permute.xlu1 %660  ;;  %v8951_v29 = vpop.permute.xlu0 %650 }
  0x8d   : > { %785 = vperm.xlu0 %8192, %v394_v47   ;;  %12304 = vst [vmem:[#allocation38_spill] sm:$0xff] %v8949_v24  ;;  %12305 = vst [vmem:[#allocation39_spill] sm:$0xff] %v8951_v29  ;;  %v8956_v37 = vmul.f32 %v1849_v62, %v8949_v24  ;;  %v8960_v39 = vmul.f32 %v8939_v8, %v8949_v24  ;;  %v804_v41 = vmul.f32 %v8951_v29, %v612_v10 }
  0x8e   : > { %v806_v19 = vmul.f32 %v8949_v24, %v614_v15  ;;  %v8968_v44 = vmul.f32 %v8951_v29, %v614_v15 }
  0x8f   : > { %12306 = vst [vmem:[#allocation40_spill] sm:$0xff] %v8960_v39 }
  0x90   : > { %800 = vperm.xlu1 %8193, %v397_v49   ;;  %v8989_v49 = vld [vmem:[#allocation2 + $0x39] sm:$0xff] }
  0x91   : > { %795 = vperm.xlu0 %8192, %v396_v50   ;;  %v839_v50 = vpack.c.bf16 %v804_v41, %v803_v33  ;;  %v2491_v33 = vld [vmem:[#allocation2 + $0x31] sm:$0xff]  ;;  %v1351_v41 = vld [vmem:[#allocation2 + $0x19] sm:$0xff] }
  0x93   : > { %7592 = vmatprep.mubr.msk.bf16.mxu1 %vm540_vm0, %v839_v50 }
  0x94   : > { %1528 = vperm.xlu1 %8193, %v427_v51   ;;  %v840_v51 = vpack.c.bf16 %v806_v19, %v805_v34  ;;  %v8987_v34 = vld [vmem:[#allocation2 + $0x41] sm:$0xff]  ;;  %v2490_v19 = vld [vmem:[#allocation2 + $0x29] sm:$0xff] }
  0x95   : > { %1523 = vperm.xlu0 %8192, %v426_v54   ;;  %v8974_v54 = vpop.permute.xlu1 %1388 }
  0x96   : > { %12307 = vst [vmem:[#allocation41_spill] sm:$0xff] %v8974_v54  ;;  %v1542_v15 = vmul.f32 %v8974_v54, %v1350_v43  ;;  %7593 = vmatmul.mubr.msk.bf16.vlgmr.msra.gmra.mxu1 %vm540_vm0, %v840_v51 }
  0x97   : > { %7661 = vmatpush3.bf16.msra.mxu1 %v8818_v30 }
  0x98   : > { %1538 = vperm.xlu1 %8193, %v429_v55   ;;  %v8976_v55 = vpop.permute.xlu0 %1383 }
  0x99   : > { %1533 = vperm.xlu0 %8192, %v428_v56   ;;  %12308 = vst [vmem:[#allocation42_spill] sm:$0xff] %v8976_v55  ;;  %v8202_v56 = vld [vmem:[%s11983_s5 + $0x30] sm:$0xff]   ;;  %v1541_v10 = vmul.f32 %v8976_v55, %v1349_v42  ;;  %v8992_v0 = vpop.permute.xlu1 %1398  ;;  %v8999_v42 = vld [vmem:[%s11983_s5 + $0x58] sm:$0xff]  }
  0x9a   : > { %12309 = vst [vmem:[#allocation43_spill] sm:$0xff] %v8992_v0  ;;  %7662 = vmatprep.subr.bf16.mxu1 %v8202_v56  ;;  %v1544_v43 = vmul.f32 %v8992_v0, %v1352_v2  ;;  %v9003_v51 = vmul.f32 %v2491_v33, %v8992_v0  ;;  %v8203_v2 = vld [vmem:[%s11983_s5 + $0x40] sm:$0xff]  }
  0x9b   : > { %v1577_v47 = vpack.c.bf16 %v1542_v15, %v1541_v10  ;;  %v9007_v10 = vmul.f32 %v8987_v34, %v8992_v0  ;;  %7663 = vmatpush3.bf16.msra.mxu1 %v8202_v56 }
  0x9c   : > { %v8994_v50 = vpop.permute.xlu0 %1393  ;;  %7732 = vmatprep.subr.bf16.mxu1 %v8999_v42 }
  0x9d   : > { %12310 = vst [vmem:[#allocation44_spill] sm:$0xff] %v8994_v50  ;;  %12311 = vst [vmem:[#allocation45_spill] sm:$0xff] %v9007_v10  ;;  %v1543_v30 = vmul.f32 %v8994_v50, %v1351_v41  ;;  %7628 = vmatprep.mubr.msk.bf16.mxu0 %vm540_vm0, %v1577_v47  ;;  %v9012_v15 = vmul.f32 %v2490_v19, %v8994_v50  ;;  %v9016_v14 = vmul.f32 %v8989_v49, %v8994_v50  ;;  %v9025_v47 = vpop.permute.xlu1 %670 }
  0x9e   : > { %12313 = vst [vmem:[#allocation47_spill] sm:$0xff] %v9025_v47  ;;  %v9040_v41 = vmul.f32 %v8939_v8, %v9025_v47 }
  0x9f   : > { %12312 = vst [vmem:[#allocation46_spill] sm:$0xff] %v9016_v14  ;;  %v1578_v26 = vpack.c.bf16 %v1544_v43, %v1543_v30  ;;  %v808_v43 = vmul.f32 %v1849_v62, %v9025_v47 }
  0xa0   : > { %v9027_v11 = vpop.permute.xlu0 %665 }
  0xa1   : > { %12314 = vst [vmem:[#allocation48_spill] sm:$0xff] %v9027_v11  ;;  %7629 = vmatmul.mubr.msk.bf16.vlgmr.msra.gmra.mxu0 %vm540_vm0, %v1578_v26  ;;  %v807_v56 = vmul.f32 %v8933_v59, %v9027_v11  ;;  %v9036_v30 = vmul.f32 %v8935_v60, %v9027_v11  ;;  %v9048_v59 = vld [vmem:[%s11983_s5 + $0x68] sm:$0xff]   ;;  %v9050_v62 = vpop.permute.xlu1 %680 }
  0xa2   : > { %7697 = vmatpush3.bf16.msra.mxu0 %v8825_v36  ;;  %12315 = vst [vmem:[#allocation49_spill] sm:$0xff] %v9050_v62  ;;  %v810_v36 = vmul.f32 %v8939_v8, %v9050_v62 }
  0xa3   : > { %v841_v3 = vpack.c.bf16 %v808_v43, %v807_v56  ;;  %7698 = vmatprep.subr.bf16.mxu0 %v8203_v2  ;;  %v9063_v43 = vmul.f32 %v9050_v62, %v620_v27 }
  0xa4   : > { %v9052_v16 = vpop.permute.xlu0 %675 }
  0xa5   : > { %12316 = vst [vmem:[#allocation50_spill] sm:$0xff] %v9052_v16  ;;  %7596 = vmatprep.mubr.msk.bf16.mxu1 %vm540_vm0, %v841_v3  ;;  %v809_v1 = vmul.f32 %v8935_v60, %v9052_v16  ;;  %v9060_v56 = vmul.f32 %v9052_v16, %v619_v9  ;;  %v9068_v3 = vld [vmem:[#allocation2 + $0x49] sm:$0xff]  ;;  %v9072_v60 = vpop.permute.xlu1 %1408 }
  0xa6   : > { %7699 = vmatpush3.bf16.msra.mxu0 %v8203_v2  ;;  %12317 = vst [vmem:[#allocation51_spill] sm:$0xff] %v9068_v3  ;;  %12319 = vst [vmem:[#allocation53_spill] sm:$0xff] %v9072_v60  ;;  %v1546_v2 = vmul.f32 %v2491_v33, %v9072_v60  ;;  %v9085_v48 = vmul.f32 %v9070_v7, %v9072_v60 }
  0xa7   : > { %v842_v26 = vpack.c.bf16 %v810_v36, %v809_v1  ;;  %7768 = vmatprep.subr.bf16.mxu0 %v9048_v59  ;;  %v3474_v1 = vld [vmem:[#allocation2 + $0x61] sm:$0xff]  ;;  %v3473_v36 = vld [vmem:[#allocation2 + $0x59] sm:$0xff] }
  0xa8   : > { %v9074_v8 = vpop.permute.xlu0 %1403  ;;  %12322 = vst [vmem:[#allocation56_spill] sm:$0xff] %v9085_v48 }
  0xa9   : > { %12320 = vst [vmem:[#allocation54_spill] sm:$0xff] %v9074_v8  ;;  %7597 = vmatmul.mubr.msk.bf16.gmra.mxu1 %vm540_vm0, %v842_v26  ;;  %v1545_v38 = vmul.f32 %v2490_v19, %v9074_v8  ;;  %v9081_v4 = vmul.f32 %v9068_v3, %v9074_v8  ;;  %v9087_v28 = vpop.permute.xlu1 %1418 }
  0xaa   : > { %12323 = vst [vmem:[#allocation57_spill] sm:$0xff] %v9087_v28  ;;  %v9094_v33 = vmul.f32 %v3474_v1, %v9087_v28 }
  0xab   : > { %12321 = vst [vmem:[#allocation55_spill] sm:$0xff] %v9081_v4  ;;  %v1579_v13 = vpack.c.bf16 %v1546_v2, %v1545_v38  ;;  %v1548_v38 = vmul.f32 %v8987_v34, %v9087_v28  ;;  %v621_v2 = vld [vmem:[#allocation2 + $0x57] sm:$0xff]  ;;  %v9458_v28 = vld [vmem:[#allocation2 + $0x10f] sm:$0xff] }
  0xac   : > { %v9089_v12 = vpop.permute.xlu0 %1413  ;;  %12325 = vst [vmem:[#allocation59_spill] sm:$0xff] %v9094_v33 }
  0xad   : > { %12324 = vst [vmem:[#allocation58_spill] sm:$0xff] %v9089_v12  ;;  %v9097_v26 = vmul.f32 %v3473_v36, %v9089_v12  ;;  %7632 = vmatprep.mubr.msk.bf16.mxu0 %vm540_vm0, %v1579_v13  ;;  %v1547_v21 = vmul.f32 %v8989_v49, %v9089_v12  ;;  %v9106_v58 = vpop.permute.xlu1 %690 }
  0xae   : > { %12327 = vst [vmem:[#allocation61_spill] sm:$0xff] %v9106_v58  ;;  %v812_v46 = vmul.f32 %v9106_v58, %v620_v27  ;;  %v9117_v34 = vmul.f32 %v9106_v58, %v622_v63 }
  0xaf   : > { %12326 = vst [vmem:[#allocation60_spill] sm:$0xff] %v9097_v26  ;;  %v1580_v6 = vpack.c.bf16 %v1548_v38, %v1547_v21  ;;  %v623_v21 = vld [vmem:[#allocation2 + $0x67] sm:$0xff]  ;;  %v624_v38 = vld [vmem:[#allocation2 + $0x6f] sm:$0xff] }
  0xb0   : > { %v9108_v5 = vpop.permute.xlu0 %685 }
  0xb1   : > { %12328 = vst [vmem:[#allocation62_spill] sm:$0xff] %v9108_v5  ;;  %7633 = vmatmul.mubr.msk.bf16.gmra.mxu0 %vm540_vm0, %v1580_v6  ;;  %v811_v13 = vmul.f32 %v9108_v5, %v619_v9  ;;  %v9114_v49 = vmul.f32 %v9108_v5, %v621_v2 }
  0xb3   : > { %v843_v53 = vpack.c.bf16 %v812_v46, %v811_v13  ;;  %v1357_v46 = vld [vmem:[#allocation2 + $0x49] sm:$0xff]  ;;  %v1358_v13 = vld [vmem:[#allocation2 + $0x51] sm:$0xff] }
  0xb5   : > { %7600 = vmatprep.mubr.msk.bf16.mxu1 %vm540_vm0, %v843_v53 }
  0xba   : > { %v9121_v45 = vpop.permute.xlu1 %700 }
  0xbb   : > { %12329 = vst [vmem:[#allocation63_spill] sm:$0xff] %v9121_v45  ;;  %v9123_v52 = vpop.permute.xlu0 %695  ;;  %v814_v27 = vmul.f32 %v9121_v45, %v622_v63  ;;  %v9132_v32 = vmul.f32 %v9121_v45, %v624_v38  ;;  %v1366_v45 = vld [vmem:[#allocation2 + $0x91] sm:$0xff] }
  0xbc   : > { %12330 = vst [vmem:[#allocation64_spill] sm:$0xff] %v9123_v52  ;;  %v813_v6 = vmul.f32 %v9123_v52, %v621_v2  ;;  %v9129_v9 = vmul.f32 %v9123_v52, %v623_v21 }
  0xbe   : > { %v844_v40 = vpack.c.bf16 %v814_v27, %v813_v6 }
  0xbf   : > { %v9140_v53 = vpop.permute.xlu1 %1428 }
  0xc0   : > { %12333 = vst [vmem:[#allocation67_spill] sm:$0xff] %v9140_v53  ;;  %v9142_v2 = vpop.permute.xlu0 %1423  ;;  %7601 = vmatmul.mubr.msk.bf16.gmra.mxu1 %vm540_vm0, %v844_v40  ;;  %v1550_v18 = vmul.f32 %v9140_v53, %v1358_v13  ;;  %v9153_v27 = vmul.f32 %v9138_v35, %v9140_v53 }
  0xc1   : > { %12334 = vst [vmem:[#allocation68_spill] sm:$0xff] %v9142_v2  ;;  %v1549_v63 = vmul.f32 %v9142_v2, %v1357_v46  ;;  %v9149_v6 = vmul.f32 %v9136_v31, %v9142_v2 }
  0xc2   : > { %12336 = vst [vmem:[#allocation70_spill] sm:$0xff] %v9153_v27 }
  0xc3   : > { %12335 = vst [vmem:[#allocation69_spill] sm:$0xff] %v9149_v6  ;;  %v1581_v19 = vpack.c.bf16 %v1550_v18, %v1549_v63  ;;  %v9155_v0 = vpop.permute.xlu1 %1438  ;;  %v625_v18 = vld [vmem:[#allocation2 + $0x77] sm:$0xff]  ;;  %v626_v63 = vld [vmem:[#allocation2 + $0x7f] sm:$0xff] }
  0xc4   : > { %12337 = vst [vmem:[#allocation71_spill] sm:$0xff] %v9155_v0  ;;  %v9157_v50 = vpop.permute.xlu0 %1433  ;;  %v9162_v46 = vmul.f32 %v3478_v25, %v9155_v0  ;;  %v1552_v57 = vmul.f32 %v3474_v1, %v9155_v0 }
  0xc5   : > { %12338 = vst [vmem:[#allocation72_spill] sm:$0xff] %v9157_v50  ;;  %v9165_v13 = vmul.f32 %v3477_v17, %v9157_v50  ;;  %7636 = vmatprep.mubr.msk.bf16.mxu0 %vm540_vm0, %v1581_v19  ;;  %v1551_v24 = vmul.f32 %v3473_v36, %v9157_v50 }
  0xc6   : > { %12339 = vst [vmem:[#allocation73_spill] sm:$0xff] %v9162_v46 }
  0xc7   : > { %12340 = vst [vmem:[#allocation74_spill] sm:$0xff] %v9165_v13  ;;  %v1582_v26 = vpack.c.bf16 %v1552_v57, %v1551_v24  ;;  %v9172_v4 = vpop.permute.xlu1 %710  ;;  %v627_v57 = vld [vmem:[#allocation2 + $0x87] sm:$0xff]  ;;  %v628_v24 = vld [vmem:[#allocation2 + $0x8f] sm:$0xff] }
  0xc8   : > { %12341 = vst [vmem:[#allocation75_spill] sm:$0xff] %v9172_v4  ;;  %v9174_v40 = vpop.permute.xlu0 %705  ;;  %v816_v19 = vmul.f32 %v9172_v4, %v624_v38  ;;  %v9183_v1 = vmul.f32 %v9172_v4, %v626_v63 }
  0xc9   : > { %12342 = vst [vmem:[#allocation76_spill] sm:$0xff] %v9174_v40  ;;  %7637 = vmatmul.mubr.msk.bf16.gmra.mxu0 %vm540_vm0, %v1582_v26  ;;  %v815_v6 = vmul.f32 %v9174_v40, %v623_v21  ;;  %v9180_v36 = vmul.f32 %v9174_v40, %v625_v18  ;;  %v1365_v40 = vld [vmem:[#allocation2 + $0x89] sm:$0xff] }
  0xcb   : > { %v845_v27 = vpack.c.bf16 %v816_v19, %v815_v6  ;;  %v9187_v13 = vpop.permute.xlu1 %720  ;;  %v1361_v6 = vld [vmem:[#allocation2 + $0x69] sm:$0xff]  ;;  %v1362_v19 = vld [vmem:[#allocation2 + $0x71] sm:$0xff] }
  0xcc   : > { %12343 = vst [vmem:[#allocation77_spill] sm:$0xff] %v9187_v13  ;;  %v9189_v46 = vpop.permute.xlu0 %715  ;;  %v818_v21 = vmul.f32 %v9187_v13, %v626_v63  ;;  %v9198_v48 = vmul.f32 %v9187_v13, %v628_v24  ;;  %v3482_v63 = vld [vmem:[#allocation2 + $0xa1] sm:$0xff] }
  0xcd   : > { %12344 = vst [vmem:[#allocation78_spill] sm:$0xff] %v9189_v46  ;;  %7604 = vmatprep.mubr.msk.bf16.mxu1 %vm540_vm0, %v845_v27  ;;  %v817_v26 = vmul.f32 %v9189_v46, %v625_v18  ;;  %v9195_v38 = vmul.f32 %v9189_v46, %v627_v57  ;;  %v3481_v46 = vld [vmem:[#allocation2 + $0x99] sm:$0xff] }
  0xcf   : > { %v846_v14 = vpack.c.bf16 %v818_v21, %v817_v26  ;;  %v9202_v10 = vpop.permute.xlu1 %1448 }
  0xd0   : > { %12345 = vst [vmem:[#allocation79_spill] sm:$0xff] %v9202_v10  ;;  %v9204_v4 = vpop.permute.xlu0 %1443  ;;  %v1554_v18 = vmul.f32 %v9202_v10, %v1362_v19  ;;  %v629_v19 = vld [vmem:[#allocation2 + $0x97] sm:$0xff] }
  0xd1   : > { %12346 = vst [vmem:[#allocation80_spill] sm:$0xff] %v9204_v4  ;;  %7605 = vmatmul.mubr.msk.bf16.gmra.mxu1 %vm540_vm0, %v846_v14  ;;  %v1553_v27 = vmul.f32 %v9204_v4, %v1361_v6  ;;  %v2843_v10 = vld [vmem:[#allocation2 + $0xb7] sm:$0xff] }
  0xd3   : > { %v1583_v13 = vpack.c.bf16 %v1554_v18, %v1553_v27  ;;  %v9209_v52 = vpop.permute.xlu1 %1458  ;;  %v630_v27 = vld [vmem:[#allocation2 + $0x9f] sm:$0xff] }
  0xd4   : > { %12347 = vst [vmem:[#allocation81_spill] sm:$0xff] %v9209_v52  ;;  %v9211_v26 = vpop.permute.xlu0 %1453  ;;  %v9214_v21 = vmul.f32 %v3482_v63, %v9209_v52  ;;  %v1556_v6 = vmul.f32 %v3478_v25, %v9209_v52  ;;  %v9226_v58 = vmul.f32 %v9209_v52, %v1366_v45 }
  0xd5   : > { %12348 = vst [vmem:[#allocation82_spill] sm:$0xff] %v9211_v26  ;;  %v9217_v33 = vmul.f32 %v3481_v46, %v9211_v26  ;;  %7640 = vmatprep.mubr.msk.bf16.mxu0 %vm540_vm0, %v1583_v13  ;;  %v1555_v14 = vmul.f32 %v3477_v17, %v9211_v26  ;;  %v9223_v18 = vmul.f32 %v9211_v26, %v1365_v40 }
  0xd6   : > { %12349 = vst [vmem:[#allocation83_spill] sm:$0xff] %v9214_v21  ;;  %12352 = vst [vmem:[#allocation86_spill] sm:$0xff] %v9226_v58  ;;  %v632_v21 = vld [vmem:[#allocation2 + $0xaf] sm:$0xff] }
  0xd7   : > { %12350 = vst [vmem:[#allocation84_spill] sm:$0xff] %v9217_v33  ;;  %12351 = vst [vmem:[#allocation85_spill] sm:$0xff] %v9223_v18  ;;  %v1584_v5 = vpack.c.bf16 %v1556_v6, %v1555_v14  ;;  %v9230_v4 = vpop.permute.xlu1 %730  ;;  %v2844_v6 = vld [vmem:[#allocation2 + $0xbf] sm:$0xff]  ;;  %v631_v33 = vld [vmem:[#allocation2 + $0xa7] sm:$0xff] }
  0xd8   : > { %12353 = vst [vmem:[#allocation87_spill] sm:$0xff] %v9230_v4  ;;  %v9232_v62 = vpop.permute.xlu0 %725  ;;  %v820_v13 = vmul.f32 %v9230_v4, %v628_v24  ;;  %v9243_v14 = vmul.f32 %v9230_v4, %v630_v27 }
  0xd9   : > { %12354 = vst [vmem:[#allocation88_spill] sm:$0xff] %v9232_v62  ;;  %7641 = vmatmul.mubr.msk.bf16.gmra.mxu0 %vm540_vm0, %v1584_v5  ;;  %v819_v25 = vmul.f32 %v9232_v62, %v627_v57  ;;  %v9240_v52 = vmul.f32 %v9232_v62, %v629_v19 }
  0xdb   : > { %v847_v26 = vpack.c.bf16 %v820_v13, %v819_v25  ;;  %v9247_v18 = vpop.permute.xlu1 %740 }
  0xdc   : > { %12355 = vst [vmem:[#allocation89_spill] sm:$0xff] %v9247_v18  ;;  %v9249_v5 = vpop.permute.xlu0 %735  ;;  %v9252_v57 = vmul.f32 %v2844_v6, %v9247_v18  ;;  %v822_v25 = vmul.f32 %v9247_v18, %v630_v27  ;;  %v9264_v17 = vmul.f32 %v9247_v18, %v632_v21  ;;  %v3485_v18 = vld [vmem:[#allocation2 + $0xb9] sm:$0xff] }
  0xdd   : > { %12356 = vst [vmem:[#allocation90_spill] sm:$0xff] %v9249_v5  ;;  %v9255_v24 = vmul.f32 %v2843_v10, %v9249_v5  ;;  %7608 = vmatprep.mubr.msk.bf16.mxu1 %vm540_vm0, %v847_v26  ;;  %v821_v4 = vmul.f32 %v9249_v5, %v629_v19  ;;  %v9261_v13 = vmul.f32 %v9249_v5, %v631_v33  ;;  %v3486_v5 = vld [vmem:[#allocation2 + $0xc1] sm:$0xff] }
  0xde   : > { %12357 = vst [vmem:[#allocation91_spill] sm:$0xff] %v9252_v57  ;;  %v2847_v57 = vld [vmem:[#allocation2 + $0xd7] sm:$0xff] }
  0xdf   : > { %12358 = vst [vmem:[#allocation92_spill] sm:$0xff] %v9255_v24  ;;  %v848_v62 = vpack.c.bf16 %v822_v25, %v821_v4  ;;  %v9268_v35 = vpop.permute.xlu1 %1468  ;;  %v1369_v4 = vld [vmem:[#allocation2 + $0xa9] sm:$0xff]  ;;  %v1370_v25 = vld [vmem:[#allocation2 + $0xb1] sm:$0xff] }
  0xe0   : > { %12359 = vst [vmem:[#allocation93_spill] sm:$0xff] %v9268_v35  ;;  %v9270_v0 = vpop.permute.xlu0 %1463  ;;  %v1558_v27 = vmul.f32 %v9268_v35, %v1366_v45 }
  0xe1   : > { %12360 = vst [vmem:[#allocation94_spill] sm:$0xff] %v9270_v0  ;;  %7609 = vmatmul.mubr.msk.bf16.gmra.mxu1 %vm540_vm0, %v848_v62  ;;  %v1557_v19 = vmul.f32 %v9270_v0, %v1365_v40 }
  0xe3   : > { %v1585_v31 = vpack.c.bf16 %v1558_v27, %v1557_v19  ;;  %v9277_v50 = vpop.permute.xlu1 %1478 }
  0xe4   : > { %12361 = vst [vmem:[#allocation95_spill] sm:$0xff] %v9277_v50  ;;  %v9279_v58 = vpop.permute.xlu0 %1473  ;;  %v9282_v24 = vmul.f32 %v3486_v5, %v9277_v50  ;;  %v1560_v45 = vmul.f32 %v3482_v63, %v9277_v50  ;;  %v9294_v19 = vmul.f32 %v9277_v50, %v1370_v25 }
  0xe5   : > { %12362 = vst [vmem:[#allocation96_spill] sm:$0xff] %v9279_v58  ;;  %v9285_v26 = vmul.f32 %v3485_v18, %v9279_v58  ;;  %7644 = vmatprep.mubr.msk.bf16.mxu0 %vm540_vm0, %v1585_v31  ;;  %v1559_v62 = vmul.f32 %v3481_v46, %v9279_v58  ;;  %v9291_v40 = vmul.f32 %v9279_v58, %v1369_v4 }
  0xe6   : > { %12363 = vst [vmem:[#allocation97_spill] sm:$0xff] %v9282_v24  ;;  %12366 = vst [vmem:[#allocation100_spill] sm:$0xff] %v9294_v19  ;;  %v636_v24 = vld [vmem:[#allocation2 + $0xcf] sm:$0xff] }
  0xe7   : > { %12364 = vst [vmem:[#allocation98_spill] sm:$0xff] %v9285_v26  ;;  %12365 = vst [vmem:[#allocation99_spill] sm:$0xff] %v9291_v40  ;;  %v1586_v27 = vpack.c.bf16 %v1560_v45, %v1559_v62  ;;  %v9298_v35 = vpop.permute.xlu1 %750  ;;  %v2848_v45 = vld [vmem:[#allocation2 + $0xdf] sm:$0xff]  ;;  %v635_v26 = vld [vmem:[#allocation2 + $0xc7] sm:$0xff] }
  0xe8   : > { %12367 = vst [vmem:[#allocation101_spill] sm:$0xff] %v9298_v35  ;;  %v9300_v0 = vpop.permute.xlu0 %745  ;;  %v824_v63 = vmul.f32 %v9298_v35, %v632_v21  ;;  %v9311_v62 = vmul.f32 %v2844_v6, %v9298_v35 }
  0xe9   : > { %12368 = vst [vmem:[#allocation102_spill] sm:$0xff] %v9300_v0  ;;  %7645 = vmatmul.mubr.msk.bf16.gmra.mxu0 %vm540_vm0, %v1586_v27  ;;  %v823_v46 = vmul.f32 %v9300_v0, %v631_v33  ;;  %v9308_v50 = vmul.f32 %v2843_v10, %v9300_v0 }
  0xeb   : > { %v849_v58 = vpack.c.bf16 %v824_v63, %v823_v46  ;;  %v9315_v40 = vpop.permute.xlu1 %760 }
  0xec   : > { %12369 = vst [vmem:[#allocation103_spill] sm:$0xff] %v9315_v40  ;;  %v9317_v27 = vpop.permute.xlu0 %755  ;;  %v9320_v33 = vmul.f32 %v2848_v45, %v9315_v40  ;;  %v826_v46 = vmul.f32 %v2844_v6, %v9315_v40  ;;  %v9332_v31 = vmul.f32 %v9315_v40, %v636_v24  ;;  %v3489_v40 = vld [vmem:[#allocation2 + $0xd9] sm:$0xff] }
  0xed   : > { %12370 = vst [vmem:[#allocation104_spill] sm:$0xff] %v9317_v27  ;;  %v9323_v21 = vmul.f32 %v2847_v57, %v9317_v27  ;;  %7612 = vmatprep.mubr.msk.bf16.mxu1 %vm540_vm0, %v849_v58  ;;  %v825_v35 = vmul.f32 %v2843_v10, %v9317_v27  ;;  %v9329_v63 = vmul.f32 %v9317_v27, %v635_v26  ;;  %v3490_v27 = vld [vmem:[#allocation2 + $0xe1] sm:$0xff] }
  0xee   : > { %12371 = vst [vmem:[#allocation105_spill] sm:$0xff] %v9320_v33  ;;  %v9364_v33 = vld [vmem:[#allocation2 + $0xe7] sm:$0xff] }
  0xef   : > { %12372 = vst [vmem:[#allocation106_spill] sm:$0xff] %v9323_v21  ;;  %v850_v0 = vpack.c.bf16 %v826_v46, %v825_v35  ;;  %v9336_v16 = vpop.permute.xlu1 %1488  ;;  %v1373_v35 = vld [vmem:[#allocation2 + $0xc9] sm:$0xff]  ;;  %v1374_v46 = vld [vmem:[#allocation2 + $0xd1] sm:$0xff] }
  0xf0   : > { %12373 = vst [vmem:[#allocation107_spill] sm:$0xff] %v9336_v16  ;;  %v9338_v23 = vpop.permute.xlu0 %1483  ;;  %v1562_v6 = vmul.f32 %v9336_v16, %v1370_v25  ;;  %v9366_v16 = vld [vmem:[#allocation2 + $0xef] sm:$0xff] }
  0xf1   : > { %12374 = vst [vmem:[#allocation108_spill] sm:$0xff] %v9338_v23  ;;  %7613 = vmatmul.mubr.msk.bf16.gmra.mxu1 %vm540_vm0, %v850_v0  ;;  %v1561_v10 = vmul.f32 %v9338_v23, %v1369_v4  ;;  %v9385_v23 = vld [vmem:[#allocation2 + $0xff] sm:$0xff] }
  0xf3   : > { %v1587_v39 = vpack.c.bf16 %v1562_v6, %v1561_v10  ;;  %v9345_v47 = vpop.permute.xlu1 %1498 }
  0xf4   : > { %12375 = vst [vmem:[#allocation109_spill] sm:$0xff] %v9345_v47  ;;  %v9347_v19 = vpop.permute.xlu0 %1493  ;;  %v9350_v21 = vmul.f32 %v3490_v27, %v9345_v47  ;;  %v1564_v4 = vmul.f32 %v3486_v5, %v9345_v47  ;;  %v9362_v10 = vmul.f32 %v9345_v47, %v1374_v46 }
  0xf5   : > { %12376 = vst [vmem:[#allocation110_spill] sm:$0xff] %v9347_v19  ;;  %v9353_v58 = vmul.f32 %v3489_v40, %v9347_v19  ;;  %7648 = vmatprep.mubr.msk.bf16.mxu0 %vm540_vm0, %v1587_v39  ;;  %v1563_v0 = vmul.f32 %v3485_v18, %v9347_v19  ;;  %v9359_v25 = vmul.f32 %v9347_v19, %v1373_v35  ;;  %v9387_v19 = vld [vmem:[#allocation2 + $0xf7] sm:$0xff] }
  0xf6   : > { %12377 = vst [vmem:[#allocation111_spill] sm:$0xff] %v9350_v21  ;;  %12380 = vst [vmem:[#allocation114_spill] sm:$0xff] %v9362_v10 }
  0xf7   : > { %12378 = vst [vmem:[#allocation112_spill] sm:$0xff] %v9353_v58  ;;  %12379 = vst [vmem:[#allocation113_spill] sm:$0xff] %v9359_v25  ;;  %v1588_v6 = vpack.c.bf16 %v1564_v4, %v1563_v0  ;;  %v9370_v11 = vpop.permute.xlu1 %770 }
  0xf8   : > { %12381 = vst [vmem:[#allocation115_spill] sm:$0xff] %v9370_v11  ;;  %v9372_v39 = vpop.permute.xlu0 %765  ;;  %v828_v0 = vmul.f32 %v9370_v11, %v636_v24  ;;  %v9383_v47 = vmul.f32 %v2848_v45, %v9370_v11 }
  0xf9   : > { %12382 = vst [vmem:[#allocation116_spill] sm:$0xff] %v9372_v39  ;;  %7649 = vmatmul.mubr.msk.bf16.gmra.mxu0 %vm540_vm0, %v1588_v6  ;;  %v827_v5 = vmul.f32 %v9372_v39, %v635_v26  ;;  %v9380_v4 = vmul.f32 %v2847_v57, %v9372_v39  ;;  %v9391_v58 = vmul.f32 %v9372_v39, %v9364_v33 }
  0xfa   : > { %v9395_v6 = vmul.f32 %v9370_v11, %v9366_v16 }
  0xfb   : > { %12383 = vst [vmem:[#allocation117_spill] sm:$0xff] %v9391_v58  ;;  %v851_v26 = vpack.c.bf16 %v828_v0, %v827_v5  ;;  %v9399_v18 = vpop.permute.xlu1 %780 }
  0xfc   : > { %12384 = vst [vmem:[#allocation118_spill] sm:$0xff] %v9395_v6  ;;  %12385 = vst [vmem:[#allocation119_spill] sm:$0xff] %v9399_v18  ;;  %v9401_v21 = vpop.permute.xlu0 %775  ;;  %v9407_v10 = vmul.f32 %v9385_v23, %v9399_v18  ;;  %v830_v0 = vmul.f32 %v2848_v45, %v9399_v18  ;;  %v3494_v45 = vld [vmem:[#allocation2 + $0x101] sm:$0xff] }
  0xfd   : > { %12386 = vst [vmem:[#allocation120_spill] sm:$0xff] %v9401_v21  ;;  %v9411_v39 = vmul.f32 %v9387_v19, %v9401_v21  ;;  %7616 = vmatprep.mubr.msk.bf16.mxu1 %vm540_vm0, %v851_v26  ;;  %v829_v5 = vmul.f32 %v2847_v57, %v9401_v21 }
  0xfe   : > { %12387 = vst [vmem:[#allocation121_spill] sm:$0xff] %v9407_v10 }
  0xff   : > { %12388 = vst [vmem:[#allocation122_spill] sm:$0xff] %v9411_v39  ;;  %v852_v11 = vpack.c.bf16 %v830_v0, %v829_v5  ;;  %v9422_v58 = vpop.permute.xlu1 %1508  ;;  %v1377_v0 = vld [vmem:[#allocation2 + $0xe9] sm:$0xff] }
 0x100   : > { %12391 = vst [vmem:[#allocation125_spill] sm:$0xff] %v9422_v58  ;;  %v9424_v6 = vpop.permute.xlu0 %1503  ;;  %v1566_v57 = vmul.f32 %v9422_v58, %v1374_v46 }
 0x101   : > { %v9416_v24 = vpop.f32.mrf.mxu0  ;;  %12392 = vst [vmem:[#allocation126_spill] sm:$0xff] %v9424_v6  ;;  %7617 = vmatmul.mubr.msk.bf16.gmra.mxu1 %vm540_vm0, %v852_v11  ;;  %v1565_v26 = vmul.f32 %v9424_v6, %v1373_v35 }
 0x102   : > { %12389 = vst [vmem:[#allocation123_spill] sm:$0xff] %v9416_v24  ;;  %v3493_v24 = vld [vmem:[#allocation2 + $0xf9] sm:$0xff] }
 0x103   : > { %v9418_v53 = vpop.f32.mrf.mxu0  ;;  %v1589_v5 = vpack.c.bf16 %v1566_v57, %v1565_v26  ;;  %v9433_v25 = vpop.permute.xlu1 %1518 }
 0x104   : > { %12390 = vst [vmem:[#allocation124_spill] sm:$0xff] %v9418_v53  ;;  %v1378_v53 = vld [vmem:[#allocation2 + $0xf1] sm:$0xff]  ;;  %12395 = vst [vmem:[#allocation129_spill] sm:$0xff] %v9433_v25  ;;  %v9435_v39 = vpop.permute.xlu0 %1513  ;;  %v9438_v10 = vmul.f32 %v3494_v45, %v9433_v25  ;;  %v1568_v46 = vmul.f32 %v3490_v27, %v9433_v25 }
 0x105   : > { %v9429_v2 = vpop.f32.mrf.mxu0  ;;  %12396 = vst [vmem:[#allocation130_spill] sm:$0xff] %v9435_v39  ;;  %v9441_v11 = vmul.f32 %v3493_v24, %v9435_v39  ;;  %7652 = vmatprep.mubr.msk.bf16.mxu0 %vm540_vm0, %v1589_v5  ;;  %v1567_v35 = vmul.f32 %v3489_v40, %v9435_v39  ;;  %v9449_v57 = vmul.f32 %v9435_v39, %v1377_v0 }
 0x106   : > { %12393 = vst [vmem:[#allocation127_spill] sm:$0xff] %v9429_v2  ;;  %12397 = vst [vmem:[#allocation131_spill] sm:$0xff] %v9438_v10  ;;  %v9456_v2 = vld [vmem:[#allocation2 + $0x107] sm:$0xff] }
 0x107   : > { %v9431_v7 = vpop.f32.mrf.mxu0  ;;  %12398 = vst [vmem:[#allocation132_spill] sm:$0xff] %v9441_v11  ;;  %12400 = vst [vmem:[#allocation134_spill] sm:$0xff] %v9449_v57  ;;  %v1590_v58 = vpack.c.bf16 %v1568_v46, %v1567_v35  ;;  %v9462_v5 = vpop.permute.xlu1 %790 }
 0x108   : > { %12394 = vst [vmem:[#allocation128_spill] sm:$0xff] %v9431_v7  ;;  %v9452_v7 = vmul.f32 %v9433_v25, %v1378_v53  ;;  %12403 = vst [vmem:[#allocation137_spill] sm:$0xff] %v9462_v5  ;;  %v9464_v27 = vpop.permute.xlu0 %785  ;;  %v832_v46 = vmul.f32 %v9462_v5, %v9366_v16  ;;  %v9481_v11 = vmul.f32 %v9458_v28, %v9462_v5 }
 0x109   : > { %v9446_v26 = vpop.f32.mrf.mxu0  ;;  %12404 = vst [vmem:[#allocation138_spill] sm:$0xff] %v9464_v27  ;;  %7653 = vmatmul.mubr.msk.bf16.gmra.mxu0 %vm540_vm0, %v1590_v58  ;;  %v831_v35 = vmul.f32 %v9464_v27, %v9364_v33  ;;  %v9477_v40 = vmul.f32 %v9456_v2, %v9464_v27 }
 0x10a   : > { %12399 = vst [vmem:[#allocation133_spill] sm:$0xff] %v9446_v26  ;;  %12401 = vst [vmem:[#allocation135_spill] sm:$0xff] %v9452_v7 }
 0x10b   : > { %v9454_v6 = vpop.f32.mrf.mxu0  ;;  %12406 = vst [vmem:[#allocation140_spill] sm:$0xff] %v9477_v40  ;;  %12407 = vst [vmem:[#allocation141_spill] sm:$0xff] %v9481_v11  ;;  %v853_v10 = vpack.c.bf16 %v832_v46, %v831_v35  ;;  %v9485_v58 = vpop.permute.xlu1 %800  ;;  %v12416_v40 = vpack.c.bf16 %v8968_v44, %v8965_v22  ;;  %v12420_v22 = vpack.c.bf16 %v8956_v37, %v8943_v20  ;;  %v2187_v20 = vld [vmem:[#allocation2 + $0x38] sm:$0xff]  ;;  %v2188_v37 = vld [vmem:[#allocation2 + $0x40] sm:$0xff] }
 0x10c   : > { %12402 = vst [vmem:[#allocation136_spill] sm:$0xff] %v9454_v6  ;;  %12409 = vst [vmem:[#allocation143_spill] sm:$0xff] %v9485_v58  ;;  %v9487_v57 = vpop.permute.xlu0 %795  ;;  %v834_v26 = vmul.f32 %v9385_v23, %v9485_v58  ;;  %v12421_v44 = vpack.c.bf16 %v9040_v41, %v9036_v30  ;;  %v9547_v41 = vpack.c.bf16 %v2188_v37, %v2187_v20  ;;  %v2195_v20 = vld [vmem:[#allocation2 + $0x78] sm:$0xff]  ;;  %v2196_v37 = vld [vmem:[#allocation2 + $0x80] sm:$0xff] }
 0x10d   : > { %v9473_v25 = vpop.f32.mrf.mxu0  ;;  %12410 = vst [vmem:[#allocation144_spill] sm:$0xff] %v9487_v57  ;;  %7620 = vmatprep.mubr.msk.bf16.mxu1 %vm540_vm0, %v853_v10 }
 0x10e   : > { %12405 = vst [vmem:[#allocation139_spill] sm:$0xff] %v9473_v25  ;;  %v833_v25 = vmul.f32 %v9387_v19, %v9487_v57 }
 0x10f   : > { %v9483_v39 = vpop.f32.mrf.mxu0  ;;  %v9500_v46 = vpop.permute.xlu1 %1528 }
 0x110   : > { %12408 = vst [vmem:[#allocation142_spill] sm:$0xff] %v9483_v39  ;;  %12413 = vst [vmem:[#allocation147_spill] sm:$0xff] %v9500_v46  ;;  %v9502_v39 = vpop.permute.xlu0 %1523  ;;  %v854_v3 = vpack.c.bf16 %v834_v26, %v833_v25  ;;  %v1570_v7 = vmul.f32 %v9500_v46, %v1378_v53  ;;  %v2184_v53 = vld [vmem:[#allocation2 + $0x20] sm:$0xff] }
 0x111   : > { %v9494_v6 = vpop.f32.mrf.mxu0  ;;  %12414 = vst [vmem:[#allocation148_spill] sm:$0xff] %v9502_v39  ;;  %v1569_v12 = vmul.f32 %v9502_v39, %v1377_v0  ;;  %v2183_v0 = vld [vmem:[#allocation2 + $0x18] sm:$0xff] }
 0x112   : > { %12411 = vst [vmem:[#allocation145_spill] sm:$0xff] %v9494_v6  ;;  %7621 = vmatmul.mubr.msk.bf16.gmra.mxu1 %vm540_vm0, %v854_v3  ;;  %v2219_v46 = vpack.c.bf16 %v2184_v53, %v2183_v0  ;;  %v2189_v0 = vld [vmem:[#allocation2 + $0x48] sm:$0xff]  ;;  %v2190_v53 = vld [vmem:[#allocation2 + $0x50] sm:$0xff] }
 0x113   : > { %v9498_v35 = vpop.f32.mrf.mxu0  ;;  %7664 = vmatprep.mubr.msk.bf16.mxu1 %vm540_vm0, %v12416_v40  ;;  %v1591_v11 = vpack.c.bf16 %v1570_v7, %v1569_v12  ;;  %v8206_v12 = vld [vmem:[%s11983_s5 + $0x50] sm:$0xff]  }
 0x114   : > { %12412 = vst [vmem:[#allocation146_spill] sm:$0xff] %v9498_v35  ;;  %v9513_v35 = vpop.permute.xlu1 %1538  ;;  %v9515_v6 = vpop.permute.xlu0 %1533 }
 0x115   : > { %v9506_v10 = vpop.f32.mrf.mxu0  ;;  %12417 = vst [vmem:[#allocation150_spill] sm:$0xff] %v9513_v35  ;;  %12418 = vst [vmem:[#allocation151_spill] sm:$0xff] %v9515_v6  ;;  %v1572_v25 = vmul.f32 %v3494_v45, %v9513_v35  ;;  %7656 = vmatprep.mubr.msk.bf16.mxu0 %vm540_vm0, %v1591_v11  ;;  %v1571_v3 = vmul.f32 %v3493_v24, %v9515_v6  ;;  %v2185_v24 = vld [vmem:[#allocation2 + $0x28] sm:$0xff]  ;;  %v2186_v45 = vld [vmem:[#allocation2 + $0x30] sm:$0xff] }
 0x116   : > { %12415 = vst [vmem:[#allocation149_spill] sm:$0xff] %v9506_v10  ;;  %v9541_v11 = vld [vmem:[%s11983_s5 + $0x78] sm:$0xff]  }
 0x117   : > { %v9519_v26 = vpop.f32.mrf.mxu0  ;;  %v1592_v10 = vpack.c.bf16 %v1572_v25, %v1571_v3  ;;  %v12423_v25 = vpack.c.bf16 %v9117_v34, %v9114_v49  ;;  %v2191_v3 = vld [vmem:[#allocation2 + $0x58] sm:$0xff] }
 0x118   : > { %12419 = vst [vmem:[#allocation152_spill] sm:$0xff] %v9519_v26  ;;  %v12461_v26 = vld [vmem:[#allocation80_spill] sm:$0xff] }
 0x119   : > { %v9525_v7 = vpop.f32.mrf.mxu0  ;;  %7657 = vmatmul.mubr.msk.bf16.gmra.mxu0 %vm540_vm0, %v1592_v10  ;;  %v9545_v10 = vpack.c.bf16 %v2186_v45, %v2185_v24  ;;  %v2193_v24 = vld [vmem:[#allocation2 + $0x68] sm:$0xff]  ;;  %v2194_v45 = vld [vmem:[#allocation2 + $0x70] sm:$0xff] }
 0x11a   : > { %7665 = vmatmul.mubr.msk.bf16.vlgmr.msra.gmra.mxu1 %vm540_vm0, %v12420_v22  ;;  %7700 = vmatprep.mubr.msk.bf16.mxu0 %vm540_vm0, %v2219_v46  ;;  %v12422_v46 = vpack.c.bf16 %v9063_v43, %v9060_v56  ;;  %v9571_v56 = vld [vmem:[%s11983_s5 + $0x88] sm:$0xff]   ;;  %v12424_v22 = vpack.c.bf16 %v9132_v32, %v9129_v9  ;;  %v9596_v32 = vpack.c.bf16 %v2194_v45, %v2193_v24  ;;  %v2202_v24 = vld [vmem:[#allocation2 + $0xb0] sm:$0xff]  ;;  %v2203_v45 = vld [vmem:[#allocation2 + $0xb8] sm:$0xff] }
 0x11b   : > { %7668 = vmatprep.mubr.msk.bf16.mxu1 %vm540_vm0, %v12421_v44  ;;  %7733 = vmatpush3.bf16.msra.mxu1 %v8999_v42  ;;  %v9543_v40 = vpop.f32.mrf.mxu0  ;;  %v8207_v42 = vld [vmem:[%s11983_s5 + $0x60] sm:$0xff]   ;;  %v12425_v44 = vpack.c.bf16 %v9183_v1, %v9180_v36  ;;  %v9598_v9 = vpack.c.bf16 %v2196_v37, %v2195_v20  ;;  %v12426_v36 = vpack.c.bf16 %v9198_v48, %v9195_v38 }
 0x11c   : > { %7734 = vmatprep.subr.bf16.mxu1 %v8206_v12  ;;  %v12427_v1 = vpack.c.bf16 %v9243_v14, %v9240_v52  ;;  %v12429_v52 = vpack.c.bf16 %v9264_v17, %v9261_v13  ;;  %v12430_v14 = vpack.c.bf16 %v9311_v62, %v9308_v50  ;;  %v2204_v20 = vld [vmem:[#allocation2 + $0xc0] sm:$0xff]  ;;  %v12431_v50 = vpack.c.bf16 %v9332_v31, %v9329_v63  ;;  %v2207_v63 = vld [vmem:[#allocation2 + $0xd8] sm:$0xff] }
 0x11d   : > { %v9553_v30 = vpop.f32.mrf.mxu0  ;;  %v9638_v13 = vpack.c.bf16 %v2204_v20, %v2203_v45  ;;  %v12432_v62 = vpack.c.bf16 %v9383_v47, %v9380_v4  ;;  %v1905_v31 = vmul.f32 %v9399_v18, %v9366_v16  ;;  %v1907_v47 = vmul.f32 %v9385_v23, %v9462_v5  ;;  %v2488_v16 = vld [vmem:[#allocation2 + $0x19] sm:$0xff]  ;;  %v2209_v23 = vld [vmem:[#allocation2 + $0xe8] sm:$0xff]  ;;  %v2210_v45 = vld [vmem:[#allocation2 + $0xf0] sm:$0xff] }
 0x11e   : > { %v1908_v20 = vmul.f32 %v9456_v2, %v9487_v57  ;;  %v2493_v2 = vld [vmem:[#allocation2 + $0x41] sm:$0xff]  ;;  %v8210_v5 = vld [vmem:[%s11983_s5 + $0x70] sm:$0xff]  }
 0x11f   : > { %7735 = vmatpush3.bf16.msra.mxu1 %v8206_v12  ;;  %v2192_v12 = vld [vmem:[#allocation2 + $0x60] sm:$0xff]  ;;  %v9573_v43 = vpop.f32.mrf.mxu0 }
 0x120   : > { %7804 = vmatprep.subr.bf16.mxu1 %v9541_v11  ;;  %v9577_v49 = vpack.c.bf16 %v2192_v12, %v2191_v3  ;;  %v2200_v3 = vld [vmem:[#allocation2 + $0xa0] sm:$0xff] }
 0x121   : > { %7701 = vmatmul.mubr.msk.bf16.vlgmr.msra.gmra.mxu0 %vm540_vm0, %v9545_v10  ;;  %v9580_v34 = vpop.f32.mrf.mxu0 }
 0x122   : > { %7669 = vmatmul.mubr.msk.bf16.gmra.mxu1 %vm540_vm0, %v12422_v46  ;;  %7769 = vmatpush3.bf16.msra.mxu0 %v9048_v59  ;;  %v9575_v59 = vpack.c.bf16 %v2190_v53, %v2189_v0  ;;  %v2198_v0 = vld [vmem:[#allocation2 + $0x90] sm:$0xff]  ;;  %v2199_v53 = vld [vmem:[#allocation2 + $0x98] sm:$0xff] }
 0x123   : > { %7672 = vmatprep.mubr.msk.bf16.mxu1 %vm540_vm0, %v12423_v25  ;;  %7704 = vmatprep.mubr.msk.bf16.mxu0 %vm540_vm0, %v9547_v41  ;;  %v2197_v25 = vld [vmem:[#allocation2 + $0x88] sm:$0xff]  ;;  %v9618_v38 = vpack.c.bf16 %v2200_v3, %v2199_v53  ;;  %v2208_v53 = vld [vmem:[#allocation2 + $0xe0] sm:$0xff]  ;;  %v1906_v3 = vmul.f32 %v9387_v19, %v9464_v27 }
 0x124   : > { %7770 = vmatprep.subr.bf16.mxu0 %v8207_v42  ;;  %v9616_v48 = vpack.c.bf16 %v2198_v0, %v2197_v25  ;;  %v2206_v25 = vld [vmem:[#allocation2 + $0xd0] sm:$0xff]  ;;  %v1904_v0 = vmul.f32 %v9401_v21, %v9364_v33  ;;  %v2489_v19 = vld [vmem:[#allocation2 + $0x21] sm:$0xff] }
 0x126   : > { %7771 = vmatpush3.bf16.msra.mxu0 %v8207_v42  ;;  %v9594_v42 = vpop.f32.mrf.mxu0 }
 0x127   : > { %7840 = vmatprep.subr.bf16.mxu0 %v9571_v56 }
 0x128   : > { %v9600_v46 = vpop.f32.mrf.mxu0 }
 0x129   : > { %7705 = vmatmul.mubr.msk.bf16.gmra.mxu0 %vm540_vm0, %v9575_v59 }
 0x12a   : > { %7673 = vmatmul.mubr.msk.bf16.gmra.mxu1 %vm540_vm0, %v12424_v22  ;;  %7708 = vmatprep.mubr.msk.bf16.mxu0 %vm540_vm0, %v9577_v49  ;;  %v9614_v12 = vpop.f32.mrf.mxu0 }
 0x12b   : > { %7676 = vmatprep.mubr.msk.bf16.mxu1 %vm540_vm0, %v12425_v44  ;;  %12428 = vst [vmem:[#allocation153_spill] sm:$0xff] %v9614_v12  ;;  %v2201_v44 = vld [vmem:[#allocation2 + $0xa8] sm:$0xff] }
 0x12c   : > { %v9620_v22 = vpop.f32.mrf.mxu0  ;;  %v9636_v17 = vpack.c.bf16 %v2202_v24, %v2201_v44  ;;  %v1927_v44 = vpack.c.bf16 %v1905_v31, %v1904_v0  ;;  %v1928_v24 = vpack.c.bf16 %v1907_v47, %v1906_v3  ;;  %v2521_v0 = vmul.f32 %v2489_v19, %v8974_v54  ;;  %v2214_v19 = vld [vmem:[#allocation2 + $0x110] sm:$0xff] }
 0x12e   : > { %v9634_v37 = vpop.f32.mrf.mxu0 }
 0x131   : > { %7709 = vmatmul.mubr.msk.bf16.gmra.mxu0 %vm540_vm0, %v9596_v32 }
 0x132   : > { %7677 = vmatmul.mubr.msk.bf16.gmra.mxu1 %vm540_vm0, %v12426_v36  ;;  %7712 = vmatprep.mubr.msk.bf16.mxu0 %vm540_vm0, %v9598_v9  ;;  %v9640_v36 = vpop.f32.mrf.mxu0 }
 0x133   : > { %7680 = vmatprep.mubr.msk.bf16.mxu1 %vm540_vm0, %v12427_v1  ;;  %v2205_v1 = vld [vmem:[#allocation2 + $0xc8] sm:$0xff] }
 0x134   : > { %v9662_v4 = vpop.f32.mrf.mxu0 }
 0x135   : > { %12433 = vst [vmem:[#allocation154_spill] sm:$0xff] %v9662_v4  ;;  %v2831_v4 = vld [vmem:[#allocation2 + $0x57] sm:$0xff] }
 0x136   : > { %v9668_v33 = vpop.f32.mrf.mxu0 }
 0x138   : > { %v9682_v31 = vpop.f32.mrf.mxu0 }
 0x139   : > { %7713 = vmatmul.mubr.msk.bf16.gmra.mxu0 %vm540_vm0, %v9616_v48  ;;  %12434 = vst [vmem:[#allocation155_spill] sm:$0xff] %v9682_v31 }
 0x13a   : > { %7681 = vmatmul.mubr.msk.bf16.gmra.mxu1 %vm540_vm0, %v12429_v52  ;;  %7716 = vmatprep.mubr.msk.bf16.mxu0 %vm540_vm0, %v9618_v38  ;;  %v9664_v52 = vpack.c.bf16 %v2206_v25, %v2205_v1  ;;  %v2212_v1 = vld [vmem:[#allocation2 + $0x100] sm:$0xff]  ;;  %v2520_v25 = vmul.f32 %v2488_v16, %v8976_v55  ;;  %v2213_v16 = vld [vmem:[#allocation2 + $0x108] sm:$0xff] }
 0x13b   : > { %7684 = vmatprep.mubr.msk.bf16.mxu1 %vm540_vm0, %v12430_v14  ;;  %v9666_v14 = vpack.c.bf16 %v2208_v53, %v2207_v63  ;;  %v9684_v63 = vpack.c.bf16 %v2210_v45, %v2209_v23  ;;  %v2825_v23 = vld [vmem:[#allocation2 + $0x27] sm:$0xff] }
 0x13c   : > { %v2556_v47 = vpack.c.bf16 %v2521_v0, %v2520_v25  ;;  %v2857_v25 = vmul.f32 %v2825_v23, %v8937_v61  ;;  %v12441_v23 = vld [vmem:[#allocation58_spill] sm:$0xff] }
 0x141   : > { %7717 = vmatmul.mubr.msk.bf16.gmra.mxu0 %vm540_vm0, %v9636_v17 }
 0x142   : > { %7685 = vmatmul.mubr.msk.bf16.gmra.mxu1 %vm540_vm0, %v12431_v50  ;;  %7720 = vmatprep.mubr.msk.bf16.mxu0 %vm540_vm0, %v9638_v13  ;;  %v1909_v50 = vmul.f32 %v9458_v28, %v9485_v58  ;;  %v2492_v28 = vld [vmem:[#allocation2 + $0x39] sm:$0xff] }
 0x143   : > { %7688 = vmatprep.mubr.msk.bf16.mxu1 %vm540_vm0, %v12432_v62  ;;  %v2211_v62 = vld [vmem:[#allocation2 + $0xf8] sm:$0xff]  ;;  %v2524_v45 = vmul.f32 %v2492_v28, %v9074_v8  ;;  %v12440_v28 = vpack.c.bf16 %v9003_v51, %v9012_v15 }
 0x144   : > { %v9686_v53 = vpack.c.bf16 %v2212_v1, %v2211_v62  ;;  %v1929_v3 = vpack.c.bf16 %v1909_v50, %v1908_v20  ;;  %v2525_v20 = vmul.f32 %v2493_v2, %v9072_v60  ;;  %v9701_v1 = vpack.c.bf16 %v2214_v19, %v2213_v16  ;;  %v2496_v2 = vld [vmem:[#allocation2 + $0x59] sm:$0xff]  ;;  %v2829_v16 = vld [vmem:[#allocation2 + $0x47] sm:$0xff]  ;;  %v2830_v19 = vld [vmem:[#allocation2 + $0x4f] sm:$0xff] }
 0x145   : > { %v12445_v60 = vld [vmem:[#allocation68_spill] sm:$0xff]  ;;  %v12446_v15 = vld [vmem:[#allocation67_spill] sm:$0xff] }
 0x146   : > { %12435 = vst [vmem:[#allocation156_spill] sm:$0xff] %v9686_v53  ;;  %12438 = vst [vmem:[#allocation159_spill] sm:$0xff] %v9701_v1  ;;  %v2558_v0 = vpack.c.bf16 %v2525_v20, %v2524_v45  ;;  %v12442_v45 = vld [vmem:[#allocation51_spill] sm:$0xff]  ;;  %v2528_v51 = vmul.f32 %v2496_v2, %v12445_v60 }
 0x147   : > { %v2526_v20 = vmul.f32 %v12442_v45, %v12441_v23  ;;  %v2832_v2 = vld [vmem:[#allocation2 + $0x5f] sm:$0xff] }
 0x148   : > { %v2500_v60 = vld [vmem:[#allocation2 + $0x79] sm:$0xff] }
 0x149   : > { %7721 = vmatmul.mubr.msk.bf16.gmra.mxu0 %vm540_vm0, %v9664_v52  ;;  %v12455_v23 = vld [vmem:[#allocation72_spill] sm:$0xff] }
 0x14a   : > { %7689 = vmatmul.mubr.msk.bf16.gmra.mxu1 %vm540_vm0, %v1927_v44  ;;  %7724 = vmatprep.mubr.msk.bf16.mxu0 %vm540_vm0, %v9666_v14  ;;  %v9688_v44 = vpop.f32.mrf.mxu0 }
 0x14b   : > { %7692 = vmatprep.mubr.msk.bf16.mxu1 %vm540_vm0, %v1928_v24  ;;  %12436 = vst [vmem:[#allocation157_spill] sm:$0xff] %v9688_v44  ;;  %v2826_v24 = vld [vmem:[#allocation2 + $0x2f] sm:$0xff]  ;;  %v2836_v44 = vld [vmem:[#allocation2 + $0x7f] sm:$0xff] }
 0x14c   : > { %v2858_v50 = vmul.f32 %v2826_v24, %v8951_v29  ;;  %v9699_v62 = vpop.f32.mrf.mxu0  ;;  %v2497_v24 = vld [vmem:[#allocation2 + $0x61] sm:$0xff]  ;;  %v2835_v29 = vld [vmem:[#allocation2 + $0x77] sm:$0xff] }
 0x14d   : > { %12437 = vst [vmem:[#allocation158_spill] sm:$0xff] %v9699_v62 }
 0x151   : > { %7725 = vmatmul.mubr.msk.bf16.gmra.mxu0 %vm540_vm0, %v9684_v63 }
 0x152   : > { %7693 = vmatmul.mubr.msk.bf16.gmra.mxu1 %vm540_vm0, %v1929_v3  ;;  %7728 = vmatprep.mubr.msk.bf16.mxu0 %vm540_vm0, %v9686_v53  ;;  %v2893_v3 = vpack.c.bf16 %v2858_v50, %v2857_v25  ;;  %v12443_v50 = vld [vmem:[#allocation57_spill] sm:$0xff]  ;;  %v12444_v25 = vld [vmem:[#allocation52_spill] sm:$0xff] }
 0x153   : > { %7736 = vmatprep.mubr.msk.bf16.mxu1 %vm540_vm0, %v2556_v47  ;;  %v9704_v47 = vpop.f32.mrf.mxu0  ;;  %v2527_v8 = vmul.f32 %v12444_v25, %v12443_v50 }
 0x154   : > { %12439 = vst [vmem:[#allocation160_spill] sm:$0xff] %v9704_v47  ;;  %v12465_v47 = vld [vmem:[#allocation123_spill] sm:$0xff] }
 0x155   : > { %v9724_v27 = vpop.f32.mrf.mxu0  ;;  %v2559_v62 = vpack.c.bf16 %v2527_v8, %v2526_v20  ;;  %v2834_v20 = vld [vmem:[#allocation2 + $0x6f] sm:$0xff] }
 0x156   : > { %12447 = vst [vmem:[#allocation51_spill] sm:$0xff] %v9724_v27  ;;  %v12463_v27 = vld [vmem:[#allocation62_spill] sm:$0xff] }
 0x157   : > { %v9731_v25 = vpop.f32.mrf.mxu0 }
 0x158   : > { %12450 = vst [vmem:[#allocation52_spill] sm:$0xff] %v9731_v25  ;;  %v12462_v25 = vld [vmem:[#allocation79_spill] sm:$0xff] }
 0x159   : > { %7729 = vmatmul.mubr.msk.bf16.gmra.mxu0 %vm540_vm0, %v9701_v1  ;;  %v12466_v1 = vld [vmem:[#allocation124_spill] sm:$0xff] }
 0x15a   : > { %7737 = vmatmul.mubr.msk.bf16.vlgmr.msra.gmra.mxu1 %vm540_vm0, %v12440_v28  ;;  %7772 = vmatprep.mubr.msk.bf16.mxu0 %vm540_vm0, %v2893_v3  ;;  %v2529_v28 = vmul.f32 %v2497_v24, %v12446_v15  ;;  %v12449_v3 = vld [vmem:[#allocation47_spill] sm:$0xff]  ;;  %v12451_v24 = vld [vmem:[#allocation40_spill] sm:$0xff]  ;;  %v12452_v15 = vld [vmem:[#allocation37_spill] sm:$0xff] }
 0x15b   : > { %7740 = vmatprep.mubr.msk.bf16.mxu1 %vm540_vm0, %v2558_v0  ;;  %7805 = vmatpush3.bf16.msra.mxu1 %v9541_v11  ;;  %v12448_v0 = vld [vmem:[#allocation48_spill] sm:$0xff]  ;;  %v2862_v21 = vmul.f32 %v2830_v19, %v12449_v3  ;;  %v12453_v50 = vpack.c.bf16 %v12451_v24, %v12452_v15  ;;  %v12457_v3 = vld [vmem:[#allocation71_spill] sm:$0xff]  ;;  %v12458_v15 = vld [vmem:[#allocation66_spill] sm:$0xff] }
 0x15c   : > { %7806 = vmatprep.subr.bf16.mxu1 %v8210_v5  ;;  %v2861_v18 = vmul.f32 %v2829_v16, %v12448_v0  ;;  %v8211_v11 = vld [vmem:[%s11983_s5 + $0x80] sm:$0xff]   ;;  %v2560_v45 = vpack.c.bf16 %v2529_v28, %v2528_v51  ;;  %v7594_v16 = vpop.f32.mrf.mxu1  ;;  %v12454_v51 = vld [vmem:[#allocation50_spill] sm:$0xff]  ;;  %v2531_v24 = vmul.f32 %v12458_v15, %v12457_v3 }
 0x15d   : > { %v2501_v19 = vld [vmem:[#allocation2 + $0x81] sm:$0xff]  ;;  %v2863_v28 = vmul.f32 %v2831_v4, %v12454_v51 }
 0x15e   : > { %v2895_v8 = vpack.c.bf16 %v2862_v21, %v2861_v18  ;;  %v1222_v21 = vpop.f32.mrf.mxu1  ;;  %v9747_v18 = vpop.f32.mrf.mxu0  ;;  %v12464_v51 = vld [vmem:[#allocation61_spill] sm:$0xff] }
 0x15f   : > { %7807 = vmatpush3.bf16.msra.mxu1 %v8210_v5  ;;  %v2833_v5 = vld [vmem:[#allocation2 + $0x67] sm:$0xff]  ;;  %12460 = vst [vmem:[#allocation40_spill] sm:$0xff] %v9747_v18  ;;  %v2504_v18 = vld [vmem:[#allocation2 + $0x99] sm:$0xff] }
 0x160   : > { %v2865_v4 = vmul.f32 %v2833_v5, %v12463_v27  ;;  %v7595_v15 = vpop.f32.mrf.mxu1  ;;  %v12479_v27 = vld [vmem:[#allocation85_spill] sm:$0xff] }
 0x161   : > { %7773 = vmatmul.mubr.msk.bf16.vlgmr.msra.gmra.mxu0 %vm540_vm0, %v12453_v50  ;;  %v12459_v50 = vld [vmem:[#allocation49_spill] sm:$0xff]  ;;  %v7630_v3 = vpop.f32.mrf.mxu0 }
 0x162   : > { %7741 = vmatmul.mubr.msk.bf16.gmra.mxu1 %vm540_vm0, %v2559_v62  ;;  %7841 = vmatpush3.bf16.msra.mxu0 %v9571_v56  ;;  %v12456_v62 = vld [vmem:[#allocation65_spill] sm:$0xff]  ;;  %v2864_v12 = vmul.f32 %v2832_v2, %v12459_v50  ;;  %v2532_v56 = vmul.f32 %v2500_v60, %v12461_v26  ;;  %v1223_v60 = vadd.f32 %v1222_v21, %v12466_v1 }
 0x163   : > { %7744 = vmatprep.mubr.msk.bf16.mxu1 %vm540_vm0, %v2560_v45  ;;  %7776 = vmatprep.mubr.msk.bf16.mxu0 %vm540_vm0, %v2895_v8  ;;  %v2530_v0 = vmul.f32 %v12456_v62, %v12455_v23  ;;  %v2533_v45 = vmul.f32 %v2501_v19, %v12462_v25  ;;  %v2866_v8 = vmul.f32 %v2834_v20, %v12464_v51  ;;  %v2837_v19 = vld [vmem:[#allocation2 + $0x87] sm:$0xff] }
 0x164   : > { %7842 = vmatprep.subr.bf16.mxu0 %v8211_v11  ;;  %v1231_v62 = vadd.f32 %v7594_v16, %v12465_v47  ;;  %v2896_v61 = vpack.c.bf16 %v2864_v12, %v2863_v28  ;;  %v2838_v47 = vld [vmem:[#allocation2 + $0x8f] sm:$0xff]  ;;  %v1687_v12 = vpop.f32.mrf.mxu0  ;;  %v12470_v20 = vld [vmem:[#allocation64_spill] sm:$0xff] }
 0x165   : > { %v2561_v23 = vpack.c.bf16 %v2531_v24, %v2530_v0  ;;  %v2562_v2 = vpack.c.bf16 %v2533_v45, %v2532_v56  ;;  %v2897_v50 = vpack.c.bf16 %v2866_v8, %v2865_v4  ;;  %v12468_v0 = vld [vmem:[#allocation127_spill] sm:$0xff]  ;;  %v9762_v5 = vadd.f32 %v1687_v12, %v1223_v60  ;;  %v12474_v45 = vld [vmem:[#allocation76_spill] sm:$0xff]  ;;  %v12488_v51 = vld [vmem:[#allocation133_spill] sm:$0xff] }
 0x166   : > { %7843 = vmatpush3.bf16.msra.mxu0 %v8211_v11  ;;  %v9755_v53 = vadd.f32 %v7630_v3, %v1231_v62  ;;  %v2505_v11 = vld [vmem:[#allocation2 + $0xa1] sm:$0xff]  ;;  %v1234_v16 = vadd.f32 %v7595_v15, %v12468_v0  ;;  %v2867_v1 = vmul.f32 %v2835_v29, %v12470_v20  ;;  %v12471_v3 = vld [vmem:[#allocation63_spill] sm:$0xff]  ;;  %v7631_v24 = vpop.f32.mrf.mxu0  ;;  %v2869_v4 = vmul.f32 %v2837_v19, %v12474_v45 }
 0x167   : > { %12469 = vst [vmem:[#allocation65_spill] sm:$0xff] %v9762_v5  ;;  %v2868_v28 = vmul.f32 %v2836_v44, %v12471_v3  ;;  %v12475_v8 = vld [vmem:[#allocation75_spill] sm:$0xff]  ;;  %v2841_v44 = vld [vmem:[#allocation2 + $0xa7] sm:$0xff]  ;;  %v12478_v3 = vld [vmem:[#allocation86_spill] sm:$0xff] }
 0x168   : > { %12467 = vst [vmem:[#allocation37_spill] sm:$0xff] %v9755_v53  ;;  %v2870_v62 = vmul.f32 %v2838_v47, %v12475_v8  ;;  %v2839_v29 = vld [vmem:[#allocation2 + $0x97] sm:$0xff]  ;;  %v2840_v20 = vld [vmem:[#allocation2 + $0x9f] sm:$0xff]  ;;  %v2842_v47 = vld [vmem:[#allocation2 + $0xaf] sm:$0xff]  ;;  %v9787_v8 = vpop.f32.mrf.mxu0 }
 0x169   : > { %7777 = vmatmul.mubr.msk.bf16.gmra.mxu0 %vm540_vm0, %v2896_v61  ;;  %v12473_v61 = vld [vmem:[#allocation93_spill] sm:$0xff]  ;;  %v2898_v15 = vpack.c.bf16 %v2868_v28, %v2867_v1  ;;  %v12486_v45 = vld [vmem:[#allocation87_spill] sm:$0xff]  ;;  %12487 = vst [vmem:[#allocation124_spill] sm:$0xff] %v9787_v8 }
 0x16a   : > { %7745 = vmatmul.mubr.msk.bf16.gmra.mxu1 %vm540_vm0, %v2561_v23  ;;  %7780 = vmatprep.mubr.msk.bf16.mxu0 %vm540_vm0, %v2897_v50  ;;  %v12472_v23 = vld [vmem:[#allocation94_spill] sm:$0xff]  ;;  %v2537_v56 = vmul.f32 %v2505_v11, %v12473_v61  ;;  %v9772_v50 = vpop.f32.mrf.mxu1  ;;  %v2899_v0 = vpack.c.bf16 %v2870_v62, %v2869_v4  ;;  %v2508_v11 = vld [vmem:[#allocation2 + $0xb9] sm:$0xff]  ;;  %v2509_v19 = vld [vmem:[#allocation2 + $0xc1] sm:$0xff] }
 0x16b   : > { %7748 = vmatprep.mubr.msk.bf16.mxu1 %vm540_vm0, %v2562_v2  ;;  %v2536_v21 = vmul.f32 %v2504_v18, %v12472_v23  ;;  %v9770_v2 = vadd.f32 %v7631_v24, %v1234_v16  ;;  %12477 = vst [vmem:[#allocation123_spill] sm:$0xff] %v9772_v50  ;;  %v12480_v18 = vpack.c.bf16 %v12478_v3, %v12479_v27  ;;  %v12481_v16 = vld [vmem:[#allocation78_spill] sm:$0xff]  ;;  %v12482_v28 = vld [vmem:[#allocation77_spill] sm:$0xff]  ;;  %v12484_v62 = vld [vmem:[#allocation107_spill] sm:$0xff] }
 0x16c   : > { %v7598_v60 = vpop.f32.mrf.mxu1  ;;  %v2871_v1 = vmul.f32 %v2839_v29, %v12481_v16  ;;  %v2872_v24 = vmul.f32 %v2840_v20, %v12482_v28  ;;  %v2541_v27 = vmul.f32 %v2509_v19, %v12484_v62  ;;  %v12485_v3 = vld [vmem:[#allocation88_spill] sm:$0xff]  ;;  %v12491_v19 = vld [vmem:[#allocation99_spill] sm:$0xff] }
 0x16d   : > { %12476 = vst [vmem:[#allocation66_spill] sm:$0xff] %v9770_v2  ;;  %v2564_v12 = vpack.c.bf16 %v2537_v56, %v2536_v21  ;;  %v12483_v56 = vld [vmem:[#allocation108_spill] sm:$0xff]  ;;  %v1247_v50 = vadd.f32 %v7598_v60, %v12488_v51  ;;  %v2846_v51 = vld [vmem:[#allocation2 + $0xcf] sm:$0xff] }
 0x16e   : > { %v1238_v21 = vpop.f32.mrf.mxu1  ;;  %v2540_v4 = vmul.f32 %v2508_v11, %v12483_v56  ;;  %v2845_v16 = vld [vmem:[#allocation2 + $0xc7] sm:$0xff] }
 0x16f   : > { %v12489_v20 = vld [vmem:[#allocation136_spill] sm:$0xff] }
 0x170   : > { %v7599_v2 = vpop.f32.mrf.mxu1  ;;  %v2566_v5 = vpack.c.bf16 %v2541_v27, %v2540_v4  ;;  %v1239_v28 = vadd.f32 %v1238_v21, %v12489_v20  ;;  %v12490_v11 = vld [vmem:[#allocation100_spill] sm:$0xff]  ;;  %v12494_v4 = vld [vmem:[#allocation126_spill] sm:$0xff] }
 0x171   : > { %7781 = vmatmul.mubr.msk.bf16.gmra.mxu0 %vm540_vm0, %v2898_v15  ;;  %v2874_v15 = vmul.f32 %v2842_v47, %v12486_v45  ;;  %v12492_v31 = vpack.c.bf16 %v12490_v11, %v12491_v19  ;;  %v2513_v47 = vld [vmem:[#allocation2 + $0xe1] sm:$0xff]  ;;  %v12499_v45 = vld [vmem:[#allocation114_spill] sm:$0xff] }
 0x172   : > { %7749 = vmatmul.mubr.msk.bf16.gmra.mxu1 %vm540_vm0, %v12480_v18  ;;  %7784 = vmatprep.mubr.msk.bf16.mxu0 %vm540_vm0, %v2899_v0  ;;  %v2873_v18 = vmul.f32 %v2841_v44, %v12485_v3  ;;  %v7634_v0 = vpop.f32.mrf.mxu0  ;;  %v2512_v44 = vld [vmem:[#allocation2 + $0xd9] sm:$0xff]  ;;  %v9809_v19 = vpop.f32.mrf.mxu1 }
 0x173   : > { %7752 = vmatprep.mubr.msk.bf16.mxu1 %vm540_vm0, %v2564_v12  ;;  %v2900_v12 = vpack.c.bf16 %v2872_v24, %v2871_v1  ;;  %v9791_v53 = vadd.f32 %v7634_v0, %v1247_v50  ;;  %v12493_v1 = vld [vmem:[#allocation139_spill] sm:$0xff]  ;;  %v2544_v27 = vmul.f32 %v2512_v44, %v12494_v4  ;;  %12498 = vst [vmem:[#allocation127_spill] sm:$0xff] %v9809_v19  ;;  %v12503_v44 = vld [vmem:[#allocation92_spill] sm:$0xff] }
 0x174   : > { %v2901_v29 = vpack.c.bf16 %v2874_v15, %v2873_v18  ;;  %v1703_v60 = vpop.f32.mrf.mxu0  ;;  %v1250_v24 = vadd.f32 %v7599_v2, %v12493_v1  ;;  %v12495_v18 = vld [vmem:[#allocation125_spill] sm:$0xff] }
 0x175   : > { %v9801_v21 = vadd.f32 %v1703_v60, %v1239_v28  ;;  %v2545_v15 = vmul.f32 %v2513_v47, %v12495_v18  ;;  %v12500_v2 = vld [vmem:[#allocation113_spill] sm:$0xff]  ;;  %v12502_v60 = vld [vmem:[#allocation91_spill] sm:$0xff] }
 0x176   : > { %v7635_v50 = vpop.f32.mrf.mxu0  ;;  %v12501_v28 = vpack.c.bf16 %v12499_v45, %v12500_v2  ;;  %v12504_v1 = vpack.c.bf16 %v12502_v60, %v12503_v44  ;;  %v2517_v47 = vld [vmem:[#allocation2 + $0x101] sm:$0xff]  ;;  %v2518_v2 = vld [vmem:[#allocation2 + $0x109] sm:$0xff] }
 0x177   : > { %v9807_v11 = vadd.f32 %v7635_v50, %v1250_v24  ;;  %v12505_v50 = vld [vmem:[#allocation147_spill] sm:$0xff]  ;;  %v12507_v45 = vld [vmem:[#allocation145_spill] sm:$0xff] }
 0x179   : > { %7785 = vmatmul.mubr.msk.bf16.gmra.mxu0 %vm540_vm0, %v2900_v12  ;;  %v12497_v12 = vld [vmem:[#allocation101_spill] sm:$0xff] }
 0x17a   : > { %7753 = vmatmul.mubr.msk.bf16.gmra.mxu1 %vm540_vm0, %v12492_v31  ;;  %7788 = vmatprep.mubr.msk.bf16.mxu0 %vm540_vm0, %v2901_v29  ;;  %v12496_v31 = vld [vmem:[#allocation102_spill] sm:$0xff]  ;;  %v2878_v20 = vmul.f32 %v2846_v51, %v12497_v12  ;;  %v2568_v29 = vpack.c.bf16 %v2545_v15, %v2544_v27  ;;  %v2549_v27 = vmul.f32 %v2517_v47, %v12505_v50  ;;  %v9823_v15 = vpop.f32.mrf.mxu0 }
 0x17b   : > { %7756 = vmatprep.mubr.msk.bf16.mxu1 %vm540_vm0, %v2566_v5  ;;  %v2877_v0 = vmul.f32 %v2845_v16, %v12496_v31  ;;  %v2516_v16 = vld [vmem:[#allocation2 + $0xf9] sm:$0xff]  ;;  %12506 = vst [vmem:[#allocation86_spill] sm:$0xff] %v9823_v15  ;;  %v12513_v47 = vld [vmem:[#allocation106_spill] sm:$0xff] }
 0x17c   : > { %v2548_v24 = vmul.f32 %v2516_v16, %v9502_v39  ;;  %v12512_v16 = vld [vmem:[#allocation105_spill] sm:$0xff] }
 0x17d   : > { %v2903_v3 = vpack.c.bf16 %v2878_v20, %v2877_v0  ;;  %v2519_v20 = vld [vmem:[#allocation2 + $0x111] sm:$0xff]  ;;  %v12514_v19 = vpack.c.bf16 %v12512_v16, %v12513_v47 }
 0x17e   : > { %v2570_v44 = vpack.c.bf16 %v2549_v27, %v2548_v24  ;;  %v2551_v24 = vmul.f32 %v2519_v20, %v9513_v35  ;;  %v2550_v27 = vmul.f32 %v2518_v2, %v9515_v6  ;;  %v2855_v16 = vld [vmem:[#allocation2 + $0x117] sm:$0xff]  ;;  %v3467_v2 = vld [vmem:[#allocation2 + $0x29] sm:$0xff] }
 0x180   : > { %v7602_v5 = vpop.f32.mrf.mxu1 }
 0x181   : > { %7789 = vmatmul.mubr.msk.bf16.gmra.mxu0 %vm540_vm0, %v12504_v1  ;;  %v1263_v0 = vadd.f32 %v7602_v5, %v12507_v45  ;;  %v12508_v1 = vld [vmem:[#allocation146_spill] sm:$0xff]  ;;  %v12516_v45 = vld [vmem:[#allocation117_spill] sm:$0xff] }
 0x182   : > { %7757 = vmatmul.mubr.msk.bf16.gmra.mxu1 %vm540_vm0, %v12501_v28  ;;  %7792 = vmatprep.mubr.msk.bf16.mxu0 %vm540_vm0, %v2903_v3  ;;  %v1254_v51 = vpop.f32.mrf.mxu1  ;;  %v12510_v3 = vld [vmem:[#allocation134_spill] sm:$0xff] }
 0x183   : > { %7760 = vmatprep.mubr.msk.bf16.mxu1 %vm540_vm0, %v2568_v29  ;;  %v1255_v31 = vadd.f32 %v1254_v51, %v12508_v1  ;;  %v12509_v29 = vld [vmem:[#allocation135_spill] sm:$0xff]  ;;  %v12515_v5 = vld [vmem:[#allocation118_spill] sm:$0xff] }
 0x184   : > { %v7603_v28 = vpop.f32.mrf.mxu1  ;;  %v12511_v8 = vpack.c.bf16 %v12509_v29, %v12510_v3  ;;  %v12517_v15 = vpack.c.bf16 %v12515_v5, %v12516_v45  ;;  %v2856_v3 = vld [vmem:[#allocation2 + $0x11f] sm:$0xff]  ;;  %v12521_v5 = vld [vmem:[#allocation122_spill] sm:$0xff] }
 0x185   : > { %v12524_v45 = vld [vmem:[#allocation140_spill] sm:$0xff] }
 0x189   : > { %v7638_v60 = vpop.f32.mrf.mxu0  ;;  %7793 = vmatmul.mubr.msk.bf16.gmra.mxu0 %vm540_vm0, %v12514_v19  ;;  %v9849_v19 = vpop.f32.mrf.mxu1 }
 0x18a   : > { %v9827_v12 = vadd.f32 %v7638_v60, %v1263_v0  ;;  %7761 = vmatmul.mubr.msk.bf16.gmra.mxu1 %vm540_vm0, %v12511_v8  ;;  %7796 = vmatprep.mubr.msk.bf16.mxu0 %vm540_vm0, %v12517_v15  ;;  %v12518_v0 = vld [vmem:[#allocation149_spill] sm:$0xff]  ;;  %12519 = vst [vmem:[#allocation85_spill] sm:$0xff] %v9849_v19 }
 0x18b   : > { %7764 = vmatprep.mubr.msk.bf16.mxu1 %vm540_vm0, %v2570_v44  ;;  %v1719_v51 = vpop.f32.mrf.mxu0  ;;  %v1266_v60 = vadd.f32 %v7603_v28, %v12518_v0  ;;  %v2571_v44 = vpack.c.bf16 %v2551_v24, %v2550_v27  ;;  %v12520_v15 = vld [vmem:[#allocation121_spill] sm:$0xff]  ;;  %v3468_v28 = vld [vmem:[#allocation2 + $0x31] sm:$0xff]  ;;  %v2888_v24 = vmul.f32 %v2856_v3, %v9485_v58  ;;  %v2887_v27 = vmul.f32 %v2855_v16, %v9487_v57 }
 0x18c   : > { %v9845_v8 = vadd.f32 %v1719_v51, %v1255_v31  ;;  %v12522_v20 = vpack.c.bf16 %v12520_v15, %v12521_v5  ;;  %v12523_v31 = vld [vmem:[#allocation141_spill] sm:$0xff] }
 0x18d   : > { %v7639_v1 = vpop.f32.mrf.mxu0  ;;  %v12525_v51 = vpack.c.bf16 %v12523_v31, %v12524_v45 }
 0x18e   : > { %v9847_v29 = vadd.f32 %v7639_v1, %v1266_v60  ;;  %v3499_v60 = vmul.f32 %v3467_v2, %v8976_v55  ;;  %v3500_v1 = vmul.f32 %v3468_v28, %v8974_v54 }
 0x190   : > { %v3535_v45 = vpack.c.bf16 %v3500_v1, %v3499_v60 }
 0x191   : > { %v7606_v47 = vpop.f32.mrf.mxu1  ;;  %7797 = vmatmul.mubr.msk.bf16.gmra.mxu0 %vm540_vm0, %v12522_v20  ;;  %v2908_v20 = vpack.c.bf16 %v2888_v24, %v2887_v27  ;;  %v12526_v24 = vld [vmem:[#allocation45_spill] sm:$0xff]  ;;  %v12527_v27 = vld [vmem:[#allocation46_spill] sm:$0xff] }
 0x192   : > { %7765 = vmatmul.mubr.msk.bf16.gmra.mxu1 %vm540_vm0, %v2571_v44  ;;  %7800 = vmatprep.mubr.msk.bf16.mxu0 %vm540_vm0, %v12525_v51  ;;  %v9866_v44 = vpop.f32.mrf.mxu0  ;;  %v1279_v5 = vadd.f32 %v7606_v47, %v9525_v7  ;;  %v12528_v60 = vpack.c.bf16 %v12526_v24, %v12527_v27 }
 0x193   : > { %v1270_v0 = vpop.f32.mrf.mxu1  ;;  %7808 = vmatprep.mubr.msk.bf16.mxu1 %vm540_vm0, %v9545_v10 }
 0x194   : > { %v1271_v51 = vadd.f32 %v1270_v0, %v9543_v40 }
 0x195   : > { %v7607_v15 = vpop.f32.mrf.mxu1 }
 0x196   : > { %v1282_v7 = vadd.f32 %v7607_v15, %v9553_v30  ;;  %v12529_v30 = vld [vmem:[#allocation56_spill] sm:$0xff] }
 0x197   : > { %v1273_v10 = vpop.f32.mrf.mxu1 }
 0x198   : > { %v1274_v40 = vadd.f32 %v1273_v10, %v9573_v43 }
 0x199   : > { %v7642_v31 = vpop.f32.mrf.mxu0  ;;  %7801 = vmatmul.mubr.msk.bf16.gmra.mxu0 %vm540_vm0, %v2908_v20 }
 0x19a   : > { %v9870_v19 = vadd.f32 %v7642_v31, %v1279_v5  ;;  %7809 = vmatmul.mubr.msk.bf16.vlgmr.msra.gmra.mxu1 %vm540_vm0, %v9547_v41  ;;  %7844 = vmatprep.mubr.msk.bf16.mxu0 %vm540_vm0, %v3535_v45  ;;  %v12532_v45 = vld [vmem:[#allocation59_spill] sm:$0xff] }
 0x19b   : > { %v1735_v3 = vpop.f32.mrf.mxu0  ;;  %7812 = vmatprep.mubr.msk.bf16.mxu1 %vm540_vm0, %v9575_v59  ;;  %v12530_v59 = vld [vmem:[#allocation55_spill] sm:$0xff] }
 0x19c   : > { %v9879_v16 = vadd.f32 %v1735_v3, %v1271_v51  ;;  %v12531_v1 = vpack.c.bf16 %v12529_v30, %v12530_v59  ;;  %v12533_v51 = vld [vmem:[#allocation60_spill] sm:$0xff]  ;;  %v3479_v3 = vld [vmem:[#allocation2 + $0x89] sm:$0xff] }
 0x19d   : > { %v7643_v47 = vpop.f32.mrf.mxu0  ;;  %v12534_v10 = vpack.c.bf16 %v12532_v45, %v12533_v51 }
 0x19e   : > { %v9882_v2 = vadd.f32 %v7643_v47, %v1282_v7  ;;  %v3480_v7 = vld [vmem:[#allocation2 + $0x91] sm:$0xff]  ;;  %v12536_v47 = vld [vmem:[#allocation69_spill] sm:$0xff] }
 0x19f   : > { %v1738_v28 = vpop.f32.mrf.mxu0  ;;  %v3512_v24 = vmul.f32 %v3480_v7, %v12462_v25 }
 0x1a0   : > { %v9884_v0 = vadd.f32 %v1738_v28, %v1274_v40 }
 0x1a1   : > { %v7610_v41 = vpop.f32.mrf.mxu1  ;;  %7845 = vmatmul.mubr.msk.bf16.vlgmr.msra.gmra.mxu0 %vm540_vm0, %v12528_v60 }
 0x1a2   : > { %7813 = vmatmul.mubr.msk.bf16.gmra.mxu1 %vm540_vm0, %v9577_v49  ;;  %7848 = vmatprep.mubr.msk.bf16.mxu0 %vm540_vm0, %v12531_v1  ;;  %v1295_v15 = vadd.f32 %v7610_v41, %v9580_v34  ;;  %v3511_v41 = vmul.f32 %v3479_v3, %v12461_v26  ;;  %v12538_v1 = vld [vmem:[#allocation73_spill] sm:$0xff] }
 0x1a3   : > { %7816 = vmatprep.mubr.msk.bf16.mxu1 %vm540_vm0, %v9596_v32  ;;  %v1286_v43 = vpop.f32.mrf.mxu1  ;;  %v12535_v32 = vld [vmem:[#allocation70_spill] sm:$0xff] }
 0x1a4   : > { %v1287_v49 = vadd.f32 %v1286_v43, %v9594_v42  ;;  %v12537_v40 = vpack.c.bf16 %v12535_v32, %v12536_v47  ;;  %v3541_v59 = vpack.c.bf16 %v3512_v24, %v3511_v41  ;;  %v12542_v47 = vld [vmem:[#allocation84_spill] sm:$0xff] }
 0x1a5   : > { %v7611_v5 = vpop.f32.mrf.mxu1 }
 0x1a6   : > { %v1298_v42 = vadd.f32 %v7611_v5, %v9600_v46  ;;  %v3483_v46 = vld [vmem:[#allocation2 + $0xa9] sm:$0xff] }
 0x1a7   : > { %v9921_v60 = vpop.f32.mrf.mxu1 }
 0x1a9   : > { %v7646_v20 = vpop.f32.mrf.mxu0  ;;  %7849 = vmatmul.mubr.msk.bf16.gmra.mxu0 %vm540_vm0, %v12534_v10 }
 0x1aa   : > { %v9900_v31 = vadd.f32 %v7646_v20, %v1295_v15  ;;  %7817 = vmatmul.mubr.msk.bf16.gmra.mxu1 %vm540_vm0, %v9598_v9  ;;  %7852 = vmatprep.mubr.msk.bf16.mxu0 %vm540_vm0, %v12537_v40  ;;  %v3484_v15 = vld [vmem:[#allocation2 + $0xb1] sm:$0xff]  ;;  %v3515_v20 = vmul.f32 %v3483_v46, %v12472_v23 }
 0x1ab   : > { %v1751_v34 = vpop.f32.mrf.mxu0  ;;  %7820 = vmatprep.mubr.msk.bf16.mxu1 %vm540_vm0, %v9616_v48  ;;  %v12539_v48 = vld [vmem:[#allocation74_spill] sm:$0xff] }
 0x1ac   : > { %v9915_v28 = vadd.f32 %v1751_v34, %v1287_v49  ;;  %v12540_v43 = vpack.c.bf16 %v12538_v1, %v12539_v48  ;;  %v3516_v49 = vmul.f32 %v3484_v15, %v12473_v61  ;;  %v3487_v34 = vld [vmem:[#allocation2 + $0xc9] sm:$0xff] }
 0x1ad   : > { %v7647_v9 = vpop.f32.mrf.mxu0  ;;  %v3519_v24 = vmul.f32 %v3487_v34, %v12483_v56  ;;  %v3491_v15 = vld [vmem:[#allocation2 + $0xe9] sm:$0xff]  ;;  %v12548_v34 = vld [vmem:[#allocation156_spill] sm:$0xff] }
 0x1ae   : > { %v9919_v27 = vadd.f32 %v7647_v9, %v1298_v42  ;;  %v3543_v3 = vpack.c.bf16 %v3516_v49, %v3515_v20  ;;  %v3488_v42 = vld [vmem:[#allocation2 + $0xd1] sm:$0xff]  ;;  %v3523_v49 = vmul.f32 %v3491_v15, %v12494_v4 }
 0x1af   : > { %v9934_v45 = vpop.f32.mrf.mxu0 }
 0x1b1   : > { %v7614_v30 = vpop.f32.mrf.mxu1  ;;  %7853 = vmatmul.mubr.msk.bf16.gmra.mxu0 %vm540_vm0, %v12540_v43  ;;  %v12544_v43 = vld [vmem:[#allocation97_spill] sm:$0xff] }
 0x1b2   : > { %7821 = vmatmul.mubr.msk.bf16.gmra.mxu1 %vm540_vm0, %v9618_v38  ;;  %7856 = vmatprep.mubr.msk.bf16.mxu0 %vm540_vm0, %v3541_v59  ;;  %v1311_v38 = vadd.f32 %v7614_v30, %v9620_v22  ;;  %v3520_v30 = vmul.f32 %v3488_v42, %v12484_v62  ;;  %v12550_v42 = vld [vmem:[#allocation112_spill] sm:$0xff] }
 0x1b3   : > { %7824 = vmatprep.mubr.msk.bf16.mxu1 %vm540_vm0, %v9636_v17  ;;  %v1302_v5 = vpop.f32.mrf.mxu1  ;;  %v12541_v17 = vld [vmem:[#allocation83_spill] sm:$0xff] }
 0x1b4   : > { %v1303_v7 = vadd.f32 %v1302_v5, %v9634_v37  ;;  %v12543_v40 = vpack.c.bf16 %v12541_v17, %v12542_v47  ;;  %v8212_v37 = vld [vmem:[%s11986_s8 + $0x8] sm:$0xff]   ;;  %v3545_v48 = vpack.c.bf16 %v3520_v30, %v3519_v24  ;;  %v3492_v5 = vld [vmem:[#allocation2 + $0xf1] sm:$0xff]  ;;  %v3193_v30 = vld [vmem:[#allocation2 + $0x120] sm:$0xff] }
 0x1b5   : > { %v7615_v51 = vpop.f32.mrf.mxu1  ;;  %7876 = vmatprep.subr.bf16.mxu1 %v8212_v37  ;;  %v12547_v17 = vld [vmem:[#allocation155_spill] sm:$0xff] }
 0x1b6   : > { %v1314_v9 = vadd.f32 %v7615_v51, %v9640_v36  ;;  %7877 = vmatpush3.bf16.msra.mxu1 %v8212_v37  ;;  %v12545_v36 = vld [vmem:[#allocation98_spill] sm:$0xff]  ;;  %v3192_v24 = vld [vmem:[#allocation2 + $0x118] sm:$0xff] }
 0x1b7   : > { %v9959_v1 = vpop.f32.mrf.mxu1  ;;  %v12546_v46 = vpack.c.bf16 %v12544_v43, %v12545_v36  ;;  %v3495_v37 = vld [vmem:[#allocation2 + $0x109] sm:$0xff] }
 0x1b9   : > { %v7650_v10 = vpop.f32.mrf.mxu0  ;;  %7857 = vmatmul.mubr.msk.bf16.gmra.mxu0 %vm540_vm0, %v12543_v40 }
 0x1ba   : > { %v9938_v32 = vadd.f32 %v7650_v10, %v1311_v38  ;;  %7825 = vmatmul.mubr.msk.bf16.gmra.mxu1 %vm540_vm0, %v9638_v13  ;;  %7860 = vmatprep.mubr.msk.bf16.mxu0 %vm540_vm0, %v3543_v3  ;;  %v3524_v38 = vmul.f32 %v3492_v5, %v12495_v18 }
 0x1bb   : > { %v1767_v22 = vpop.f32.mrf.mxu0  ;;  %7828 = vmatprep.mubr.msk.bf16.mxu1 %vm540_vm0, %v9664_v52 }
 0x1bc   : > { %v9953_v13 = vadd.f32 %v1767_v22, %v1303_v7  ;;  %v3547_v7 = vpack.c.bf16 %v3524_v38, %v3523_v49  ;;  %v3498_v38 = vld [vmem:[#allocation2 + $0x121] sm:$0xff] }
 0x1bd   : > { %v7651_v41 = vpop.f32.mrf.mxu0 }
 0x1be   : > { %v9957_v59 = vadd.f32 %v7651_v41, %v1314_v9  ;;  %v3496_v9 = vld [vmem:[#allocation2 + $0x111] sm:$0xff] }
 0x1bf   : > { %v9972_v51 = vpop.f32.mrf.mxu0  ;;  %v12552_v41 = vld [vmem:[#allocation159_spill] sm:$0xff]  ;;  %v3528_v15 = vmul.f32 %v3496_v9, %v12505_v50 }
 0x1c0   : > { %v12557_v9 = vld [vmem:[#allocation39_spill] sm:$0xff] }
 0x1c1   : > { %v7618_v52 = vpop.f32.mrf.mxu1  ;;  %7861 = vmatmul.mubr.msk.bf16.gmra.mxu0 %vm540_vm0, %v12546_v46  ;;  %v3527_v46 = vmul.f32 %v3495_v37, %v9502_v39  ;;  %v3985_v37 = vld [vmem:[#allocation3 + $0x7] sm:$0xff] }
 0x1c2   : > { %7829 = vmatmul.mubr.msk.bf16.gmra.mxu1 %vm540_vm0, %v9666_v14  ;;  %7864 = vmatprep.mubr.msk.bf16.mxu0 %vm540_vm0, %v3545_v48  ;;  %v1327_v14 = vadd.f32 %v7618_v52, %v9668_v33  ;;  %v12553_v52 = vld [vmem:[#allocation157_spill] sm:$0xff] }
 0x1c3   : > { %7832 = vmatprep.mubr.msk.bf16.mxu1 %vm540_vm0, %v9684_v63  ;;  %v1318_v20 = vpop.f32.mrf.mxu1  ;;  %v12549_v63 = vld [vmem:[#allocation111_spill] sm:$0xff] }
 0x1c4   : > { %v1319_v47 = vadd.f32 %v1318_v20, %v12547_v17  ;;  %v12551_v22 = vpack.c.bf16 %v12549_v63, %v12550_v42  ;;  %v3213_v20 = vpack.c.bf16 %v3193_v30, %v3192_v24  ;;  %v12554_v17 = vld [vmem:[#allocation131_spill] sm:$0xff]  ;;  %v3530_v63 = vmul.f32 %v3498_v38, %v9513_v35  ;;  %v12558_v24 = vld [vmem:[#allocation36_spill] sm:$0xff] }
 0x1c5   : > { %v7619_v10 = vpop.f32.mrf.mxu1  ;;  %v4017_v30 = vmul.f32 %v3985_v37, %v12558_v24  ;;  %v12560_v38 = vld [vmem:[#allocation51_spill] sm:$0xff]  ;;  %v12562_v37 = vld [vmem:[#allocation52_spill] sm:$0xff] }
 0x1c6   : > { %v1330_v48 = vadd.f32 %v7619_v10, %v12553_v52  ;;  %v12555_v10 = vld [vmem:[#allocation132_spill] sm:$0xff] }
 0x1c7   : > { %v9994_v49 = vpop.f32.mrf.mxu1 }
 0x1c9   : > { %v7654_v3 = vpop.f32.mrf.mxu0  ;;  %7865 = vmatmul.mubr.msk.bf16.gmra.mxu0 %vm540_vm0, %v12551_v22 }
 0x1ca   : > { %v9976_v40 = vadd.f32 %v7654_v3, %v1327_v14  ;;  %7833 = vmatmul.mubr.msk.bf16.gmra.mxu1 %vm540_vm0, %v12548_v34  ;;  %7868 = vmatprep.mubr.msk.bf16.mxu0 %vm540_vm0, %v3547_v7  ;;  %v3497_v14 = vld [vmem:[#allocation2 + $0x119] sm:$0xff]  ;;  %v3549_v3 = vpack.c.bf16 %v3528_v15, %v3527_v46 }
 0x1cb   : > { %v1783_v33 = vpop.f32.mrf.mxu0  ;;  %7836 = vmatprep.mubr.msk.bf16.mxu1 %vm540_vm0, %v12552_v41  ;;  %v3986_v34 = vld [vmem:[#allocation3 + $0xf] sm:$0xff]  ;;  %v3529_v42 = vmul.f32 %v3497_v14, %v9515_v6 }
 0x1cc   : > { %v9988_v43 = vadd.f32 %v1783_v33, %v1319_v47  ;;  %v12556_v47 = vpack.c.bf16 %v12554_v17, %v12555_v10  ;;  %v4018_v33 = vmul.f32 %v3986_v34, %v12557_v9  ;;  %v12559_v46 = vld [vmem:[#allocation160_spill] sm:$0xff] }
 0x1cd   : > { %v7655_v36 = vpop.f32.mrf.mxu0  ;;  %v3550_v52 = vpack.c.bf16 %v3530_v63, %v3529_v42 }
 0x1ce   : > { %v9992_v5 = vadd.f32 %v7655_v36, %v1330_v48 }
 0x1cf   : > { %v10006_v48 = vpop.f32.mrf.mxu0 }
 0x1d1   : > { %7869 = vmatmul.mubr.msk.bf16.gmra.mxu0 %vm540_vm0, %v12556_v47  ;;  %v12561_v47 = vld [vmem:[#allocation37_spill] sm:$0xff] }
 0x1d2   : > { %v7622_v7 = vpop.f32.mrf.mxu1  ;;  %7837 = vmatmul.mubr.msk.bf16.gmra.mxu1 %vm540_vm0, %v3213_v20  ;;  %7872 = vmatprep.mubr.msk.bf16.mxu0 %vm540_vm0, %v3549_v3  ;;  %v4051_v20 = vpack.c.bf16 %v4018_v33, %v4017_v30 }
 0x1d3   : > { %v1343_v15 = vadd.f32 %v7622_v7, %v12559_v46  ;;  %v12563_v7 = vld [vmem:[#allocation65_spill] sm:$0xff] }
 0x1d4   : > { %v1334_v22 = vpop.f32.mrf.mxu1 }
 0x1d5   : > { %v1335_v14 = vadd.f32 %v1334_v22, %v12560_v38 }
 0x1d6   : > { %v7623_v41 = vpop.f32.mrf.mxu1 }
 0x1d7   : > { %v1346_v35 = vadd.f32 %v7623_v41, %v12562_v37 }
 0x1d8   : > { %v10008_v36 = vpop.f32.mrf.mxu1 }
 0x1d9   : > { %v7658_v3 = vpop.f32.mrf.mxu0  ;;  %7873 = vmatmul.mubr.msk.bf16.gmra.mxu0 %vm540_vm0, %v3550_v52  ;;  %v12564_v52 = vld [vmem:[#allocation66_spill] sm:$0xff] }
 0x1da   : > { %v7666_v17 = vpop.f32.mrf.mxu1  ;;  %v10013_v10 = vadd.f32 %v7658_v3, %v1343_v15  ;;  %7912 = vmatprep.mubr.msk.bf16.mxu0 %vm3914_vm1, %v4051_v20 }
 0x1db   : > { %v2153_v34 = vadd.f32 %v7666_v17, %v12561_v47  ;;  %v1799_v63 = vpop.f32.mrf.mxu0 }
 0x1dc   : > { %v2024_v42 = vpop.f32.mrf.mxu1  ;;  %v10018_v6 = vadd.f32 %v1799_v63, %v1335_v14 }
 0x1dd   : > { %v2151_v33 = vadd.f32 %v2024_v42, %v12563_v7  ;;  %v7659_v30 = vpop.f32.mrf.mxu0 }
 0x1de   : > { %v7667_v46 = vpop.f32.mrf.mxu1  ;;  %v10021_v4 = vadd.f32 %v7659_v30, %v1346_v35 }
 0x1df   : > { %v2154_v22 = vadd.f32 %v7667_v46, %v12564_v52  ;;  %v10024_v15 = vpop.f32.mrf.mxu0 }
 0x1e0   : > { %v10026_v3 = vpop.f32.mrf.mxu1 }
 0x1e1   : > { %v7702_v20 = vpop.f32.mrf.mxu0 }
 0x1e2   : > { %v7670_v17 = vpop.f32.mrf.mxu1  ;;  %v10029_v47 = vadd.f32 %v7702_v20, %v2153_v34 }
 0x1e3   : > { %v2157_v38 = vadd.f32 %v7670_v17, %v9791_v53  ;;  %v2329_v14 = vpop.f32.mrf.mxu0 }
 0x1e4   : > { %v2040_v41 = vpop.f32.mrf.mxu1  ;;  %v10032_v42 = vadd.f32 %v2329_v14, %v2151_v33 }
 0x1e5   : > { %v2155_v63 = vadd.f32 %v2040_v41, %v9801_v21  ;;  %v7703_v37 = vpop.f32.mrf.mxu0 }
 0x1e6   : > { %v7671_v35 = vpop.f32.mrf.mxu1  ;;  %v10035_v30 = vadd.f32 %v7703_v37, %v2154_v22 }
 0x1e7   : > { %v2158_v7 = vadd.f32 %v7671_v35, %v9807_v11  ;;  %v10039_v52 = vpop.f32.mrf.mxu0 }
 0x1e8   : > { %v10037_v46 = vpop.f32.mrf.mxu1 }
 0x1e9   : > { %v7706_v53 = vpop.f32.mrf.mxu0 }
 0x1ea   : > { %v7674_v50 = vpop.f32.mrf.mxu1  ;;  %v10042_v17 = vadd.f32 %v7706_v53, %v2157_v38 }
 0x1eb   : > { %v2161_v34 = vadd.f32 %v7674_v50, %v9827_v12  ;;  %v2345_v21 = vpop.f32.mrf.mxu0 }
 0x1ec   : > { %v2056_v20 = vpop.f32.mrf.mxu1  ;;  %v10045_v41 = vadd.f32 %v2345_v21, %v2155_v63 }
 0x1ed   : > { %v2159_v33 = vadd.f32 %v2056_v20, %v9845_v8  ;;  %v7707_v11 = vpop.f32.mrf.mxu0 }
 0x1ee   : > { %v7675_v14 = vpop.f32.mrf.mxu1  ;;  %v10048_v35 = vadd.f32 %v7707_v11, %v2158_v7 }
 0x1ef   : > { %v2162_v22 = vadd.f32 %v7675_v14, %v9847_v29  ;;  %v10052_v39 = vpop.f32.mrf.mxu0 }
 0x1f0   : > { %v10050_v37 = vpop.f32.mrf.mxu1 }
 0x1f1   : > { %v7710_v12 = vpop.f32.mrf.mxu0 }
 0x1f2   : > { %v7678_v18 = vpop.f32.mrf.mxu1  ;;  %v10055_v38 = vadd.f32 %v7710_v12, %v2161_v34  ;;  %v4068_v34 = vld [vmem:[#allocation3 + $0x10] sm:$0xff] }
 0x1f3   : > { %v2165_v50 = vadd.f32 %v7678_v18, %v9870_v19  ;;  %v2361_v8 = vpop.f32.mrf.mxu0  ;;  %v8213_v18 = vld [vmem:[%s11986_s8] sm:$0xff]   ;;  %v4067_v19 = vld [vmem:[#allocation3 + $0x8] sm:$0xff] }
 0x1f4   : > { %v2072_v53 = vpop.f32.mrf.mxu1  ;;  %v10058_v20 = vadd.f32 %v2361_v8, %v2159_v33  ;;  %v4101_v12 = vpack.c.bf16 %v4068_v34, %v4067_v19  ;;  %7910 = vmatprep.subr.bf16.mxu0 %v8213_v18 }
 0x1f5   : > { %v2163_v63 = vadd.f32 %v2072_v53, %v9879_v16  ;;  %v7711_v29 = vpop.f32.mrf.mxu0  ;;  %7911 = vmatpush3.bf16.msra.mxu0 %v8213_v18 }
 0x1f6   : > { %12565 = vst [vmem:[#allocation133_spill] sm:$0xff] %v10058_v20  ;;  %v7679_v21 = vpop.f32.mrf.mxu1  ;;  %v10061_v14 = vadd.f32 %v7711_v29, %v2162_v22  ;;  %7878 = vmatprep.mubr.msk.bf16.mxu1 %vm3914_vm1, %v4101_v12 }
 0x1f7   : > { %v2166_v7 = vadd.f32 %v7679_v21, %v9882_v2  ;;  %v10065_v56 = vpop.f32.mrf.mxu0 }
 0x1f8   : > { %12566 = vst [vmem:[#allocation136_spill] sm:$0xff] %v10061_v14  ;;  %v10063_v11 = vpop.f32.mrf.mxu1  ;;  %v12633_v14 = vld [vmem:[#allocation124_spill] sm:$0xff] }
 0x1f9   : > { %v7714_v33 = vpop.f32.mrf.mxu0 }
 0x1fa   : > { %v7682_v16 = vpop.f32.mrf.mxu1  ;;  %v10071_v8 = vadd.f32 %v7714_v33, %v2165_v50 }
 0x1fb   : > { %v2169_v53 = vadd.f32 %v7682_v16, %v9900_v31  ;;  %v2377_v22 = vpop.f32.mrf.mxu0 }
 0x1fc   : > { %12567 = vst [vmem:[#allocation100_spill] sm:$0xff] %v10071_v8  ;;  %v2088_v2 = vpop.f32.mrf.mxu1  ;;  %v10075_v29 = vadd.f32 %v2377_v22, %v2163_v63 }
 0x1fd   : > { %v2167_v21 = vadd.f32 %v2088_v2, %v9915_v28  ;;  %v7715_v23 = vpop.f32.mrf.mxu0  ;;  %v10090_v28 = vld [vmem:[%s11986_s8 + $0x10] sm:$0xff]  }
 0x1fe   : > { %12568 = vst [vmem:[#allocation99_spill] sm:$0xff] %v10075_v29  ;;  %v7683_v62 = vpop.f32.mrf.mxu1  ;;  %v10078_v34 = vadd.f32 %v7715_v23, %v2166_v7  ;;  %12571 = vst [vmem:[#allocation113_spill] sm:$0xff] %v10090_v28  ;;  %7944 = vmatprep.subr.bf16.mxu1 %v10090_v28 }
 0x1ff   : > { %v2170_v19 = vadd.f32 %v7683_v62, %v9919_v27  ;;  %v10082_v31 = vpop.f32.mrf.mxu0 }
 0x200   : > { %12569 = vst [vmem:[#allocation139_spill] sm:$0xff] %v10078_v34  ;;  %v10080_v61 = vpop.f32.mrf.mxu1  ;;  %v10192_v34 = vld [vmem:[%s11986_s8 + $0x18] sm:$0xff]  }
 0x201   : > { %v7718_v18 = vpop.f32.mrf.mxu0  ;;  %12596 = vst [vmem:[#allocation74_spill] sm:$0xff] %v10192_v34  ;;  %7978 = vmatprep.subr.bf16.mxu0 %v10192_v34 }
 0x202   : > { %v7686_v50 = vpop.f32.mrf.mxu1  ;;  %v10085_v16 = vadd.f32 %v7718_v18, %v2169_v53 }
 0x203   : > { %v2173_v12 = vadd.f32 %v7686_v50, %v9938_v32  ;;  %v2393_v33 = vpop.f32.mrf.mxu0 }
 0x204   : > { %12570 = vst [vmem:[#allocation114_spill] sm:$0xff] %v10085_v16  ;;  %v2104_v63 = vpop.f32.mrf.mxu1  ;;  %v10093_v62 = vadd.f32 %v2393_v33, %v2167_v21 }
 0x205   : > { %v2171_v23 = vadd.f32 %v2104_v63, %v9953_v13  ;;  %v7719_v7 = vpop.f32.mrf.mxu0 }
 0x206   : > { %12572 = vst [vmem:[#allocation91_spill] sm:$0xff] %v10093_v62  ;;  %v7687_v27 = vpop.f32.mrf.mxu1  ;;  %v10097_v32 = vadd.f32 %v7719_v7, %v2170_v19 }
 0x207   : > { %v2174_v2 = vadd.f32 %v7687_v27, %v9957_v59  ;;  %v10101_v22 = vpop.f32.mrf.mxu0 }
 0x208   : > { %12573 = vst [vmem:[#allocation92_spill] sm:$0xff] %v10097_v32  ;;  %v10099_v53 = vpop.f32.mrf.mxu1 }
 0x209   : > { %v7722_v18 = vpop.f32.mrf.mxu0 }
 0x20a   : > { %v7690_v50 = vpop.f32.mrf.mxu1  ;;  %v10104_v25 = vadd.f32 %v7722_v18, %v2173_v12 }
 0x20b   : > { %v2177_v26 = vadd.f32 %v7690_v50, %v9976_v40  ;;  %v2409_v21 = vpop.f32.mrf.mxu0 }
 0x20c   : > { %12574 = vst [vmem:[#allocation145_spill] sm:$0xff] %v10104_v25  ;;  %v2120_v13 = vpop.f32.mrf.mxu1  ;;  %v10107_v33 = vadd.f32 %v2409_v21, %v2171_v23 }
 0x20d   : > { %v2175_v63 = vadd.f32 %v2120_v13, %v9988_v43  ;;  %v7723_v59 = vpop.f32.mrf.mxu0 }
 0x20e   : > { %12575 = vst [vmem:[#allocation146_spill] sm:$0xff] %v10107_v33  ;;  %v7691_v24 = vpop.f32.mrf.mxu1  ;;  %v10110_v27 = vadd.f32 %v7723_v59, %v2174_v2 }
 0x20f   : > { %v2178_v19 = vadd.f32 %v7691_v24, %v9992_v5  ;;  %v10114_v9 = vpop.f32.mrf.mxu0 }
 0x210   : > { %12576 = vst [vmem:[#allocation135_spill] sm:$0xff] %v10110_v27  ;;  %v10112_v7 = vpop.f32.mrf.mxu1 }
 0x211   : > { %v7726_v40 = vpop.f32.mrf.mxu0 }
 0x212   : > { %v7694_v58 = vpop.f32.mrf.mxu1  ;;  %v10117_v50 = vadd.f32 %v7726_v40, %v2177_v26 }
 0x213   : > { %v2181_v12 = vadd.f32 %v7694_v58, %v10013_v10  ;;  %v2425_v43 = vpop.f32.mrf.mxu0 }
 0x214   : > { %12577 = vst [vmem:[#allocation134_spill] sm:$0xff] %v10117_v50  ;;  %v2136_v18 = vpop.f32.mrf.mxu1  ;;  %v10120_v13 = vadd.f32 %v2425_v43, %v2175_v63 }
 0x215   : > { %v2179_v23 = vadd.f32 %v2136_v18, %v10018_v6  ;;  %v7727_v5 = vpop.f32.mrf.mxu0 }
 0x216   : > { %12578 = vst [vmem:[#allocation105_spill] sm:$0xff] %v10120_v13  ;;  %v7695_v21 = vpop.f32.mrf.mxu1  ;;  %v10123_v2 = vadd.f32 %v7727_v5, %v2178_v19 }
 0x217   : > { %v2182_v24 = vadd.f32 %v7695_v21, %v10021_v4  ;;  %v10127_v57 = vpop.f32.mrf.mxu0 }
 0x218   : > { %12579 = vst [vmem:[#allocation106_spill] sm:$0xff] %v10123_v2  ;;  %v10125_v59 = vpop.f32.mrf.mxu1 }
 0x219   : > { %v7730_v55 = vpop.f32.mrf.mxu0 }
 0x21a   : > { %v10129_v58 = vpop.f32.mrf.mxu1  ;;  %v10131_v26 = vadd.f32 %v7730_v55, %v2181_v12 }
 0x21b   : > { %v2441_v10 = vpop.f32.mrf.mxu0 }
 0x21c   : > { %12580 = vst [vmem:[#allocation118_spill] sm:$0xff] %v10131_v26  ;;  %v10133_v40 = vpop.f32.mrf.mxu1  ;;  %v10135_v6 = vadd.f32 %v2441_v10, %v2179_v23 }
 0x21d   : > { %v7731_v63 = vpop.f32.mrf.mxu0 }
 0x21e   : > { %12581 = vst [vmem:[#allocation117_spill] sm:$0xff] %v10135_v6  ;;  %v10137_v18 = vpop.f32.mrf.mxu1  ;;  %v10139_v4 = vadd.f32 %v7731_v63, %v2182_v24 }
 0x21f   : > { %v10141_v19 = vpop.f32.mrf.mxu0 }
 0x220   : > { %12582 = vst [vmem:[#allocation149_spill] sm:$0xff] %v10139_v4  ;;  %v10143_v43 = vpop.f32.mrf.mxu1 }
 0x221   : > { %v10147_v5 = vpop.f32.mrf.mxu0 }
 0x222   : > { %v10145_v21 = vpop.f32.mrf.mxu1 }
 0x223   : > { %v10151_v12 = vpop.f32.mrf.mxu0 }
 0x224   : > { %v10149_v55 = vpop.f32.mrf.mxu1 }
 0x225   : > { %v10155_v23 = vpop.f32.mrf.mxu0 }
 0x226   : > { %v10153_v54 = vpop.f32.mrf.mxu1 }
 0x227   : > { %v10159_v24 = vpop.f32.mrf.mxu0 }
 0x228   : > { %v10157_v10 = vpop.f32.mrf.mxu1 }
 0x229   : > { %v10163_v4 = vpop.f32.mrf.mxu0 }
 0x22a   : > { %v10161_v63 = vpop.f32.mrf.mxu1  ;;  %12583 = vst [vmem:[#allocation121_spill] sm:$0xff] %v10163_v4  ;;  %v12638_v4 = vld [vmem:[#allocation153_spill] sm:$0xff] }
 0x22b   : > { %v10167_v26 = vpop.f32.mrf.mxu0 }
 0x22c   : > { %v10165_v6 = vpop.f32.mrf.mxu1  ;;  %12585 = vst [vmem:[#allocation141_spill] sm:$0xff] %v10167_v26  ;;  %v12634_v26 = vld [vmem:[#allocation152_spill] sm:$0xff] }
 0x22d   : > { %12584 = vst [vmem:[#allocation122_spill] sm:$0xff] %v10165_v6  ;;  %v10171_v2 = vpop.f32.mrf.mxu0 }
 0x22e   : > { %v10169_v28 = vpop.f32.mrf.mxu1  ;;  %12587 = vst [vmem:[#allocation45_spill] sm:$0xff] %v10171_v2 }
 0x22f   : > { %12586 = vst [vmem:[#allocation140_spill] sm:$0xff] %v10169_v28  ;;  %v10175_v50 = vpop.f32.mrf.mxu0  ;;  %v12632_v28 = vld [vmem:[#allocation127_spill] sm:$0xff] }
 0x230   : > { %v10173_v13 = vpop.f32.mrf.mxu1  ;;  %12589 = vst [vmem:[#allocation56_spill] sm:$0xff] %v10175_v50 }
 0x231   : > { %12588 = vst [vmem:[#allocation46_spill] sm:$0xff] %v10173_v13  ;;  %v10179_v33 = vpop.f32.mrf.mxu0 }
 0x232   : > { %v10177_v27 = vpop.f32.mrf.mxu1  ;;  %12591 = vst [vmem:[#allocation59_spill] sm:$0xff] %v10179_v33 }
 0x233   : > { %12590 = vst [vmem:[#allocation55_spill] sm:$0xff] %v10177_v27  ;;  %v10183_v32 = vpop.f32.mrf.mxu0 }
 0x234   : > { %v10181_v25 = vpop.f32.mrf.mxu1  ;;  %12593 = vst [vmem:[#allocation70_spill] sm:$0xff] %v10183_v32 }
 0x235   : > { %12592 = vst [vmem:[#allocation60_spill] sm:$0xff] %v10181_v25  ;;  %v10187_v16 = vpop.f32.mrf.mxu0 }
 0x236   : > { %v10185_v62 = vpop.f32.mrf.mxu1  ;;  %12595 = vst [vmem:[#allocation73_spill] sm:$0xff] %v10187_v16 }
 0x237   : > { %12594 = vst [vmem:[#allocation69_spill] sm:$0xff] %v10185_v62  ;;  %v10196_v8 = vpop.f32.mrf.mxu0 }
 0x238   : > { %v10194_v29 = vpop.f32.mrf.mxu1  ;;  %12598 = vst [vmem:[#allocation84_spill] sm:$0xff] %v10196_v8 }
 0x239   : > { %12597 = vst [vmem:[#allocation83_spill] sm:$0xff] %v10194_v29  ;;  %v10201_v25 = vpop.f32.mrf.mxu0 }
 0x23a   : > { %v10199_v33 = vpop.f32.mrf.mxu1  ;;  %12600 = vst [vmem:[#allocation98_spill] sm:$0xff] %v10201_v25 }
 0x23b   : > { %12599 = vst [vmem:[#allocation97_spill] sm:$0xff] %v10199_v33  ;;  %v10205_v62 = vpop.f32.mrf.mxu0 }
 0x23c   : > { %v10203_v32 = vpop.f32.mrf.mxu1  ;;  %12602 = vst [vmem:[#allocation156_spill] sm:$0xff] %v10205_v62 }
 0x23d   : > { %12601 = vst [vmem:[#allocation155_spill] sm:$0xff] %v10203_v32  ;;  %v10209_v27 = vpop.f32.mrf.mxu0 }
 0x23e   : > { %v10207_v16 = vpop.f32.mrf.mxu1  ;;  %12604 = vst [vmem:[#allocation112_spill] sm:$0xff] %v10209_v27 }
 0x23f   : > { %12603 = vst [vmem:[#allocation111_spill] sm:$0xff] %v10207_v16  ;;  %v10213_v13 = vpop.f32.mrf.mxu0 }
 0x240   : > { %v10211_v50 = vpop.f32.mrf.mxu1  ;;  %12606 = vst [vmem:[#allocation157_spill] sm:$0xff] %v10213_v13 }
 0x241   : > { %12605 = vst [vmem:[#allocation159_spill] sm:$0xff] %v10211_v50  ;;  %v10217_v8 = vpop.f32.mrf.mxu0 }
 0x242   : > { %v10215_v29 = vpop.f32.mrf.mxu1  ;;  %12608 = vst [vmem:[#allocation132_spill] sm:$0xff] %v10217_v8 }
 0x243   : > { %12607 = vst [vmem:[#allocation131_spill] sm:$0xff] %v10215_v29  ;;  %v10221_v33 = vpop.f32.mrf.mxu0 }
 0x244   : > { %v10219_v34 = vpop.f32.mrf.mxu1  ;;  %12610 = vst [vmem:[#allocation51_spill] sm:$0xff] %v10221_v33 }
 0x245   : > { %12609 = vst [vmem:[#allocation160_spill] sm:$0xff] %v10219_v34  ;;  %v10225_v32 = vpop.f32.mrf.mxu0 }
 0x246   : > { %v10223_v25 = vpop.f32.mrf.mxu1  ;;  %12612 = vst [vmem:[#allocation52_spill] sm:$0xff] %v10225_v32 }
 0x247   : > { %12611 = vst [vmem:[#allocation37_spill] sm:$0xff] %v10223_v25  ;;  %v10229_v16 = vpop.f32.mrf.mxu0 }
 0x248   : > { %v10227_v62 = vpop.f32.mrf.mxu1  ;;  %12614 = vst [vmem:[#allocation66_spill] sm:$0xff] %v10229_v16 }
 0x249   : > { %12613 = vst [vmem:[#allocation65_spill] sm:$0xff] %v10227_v62  ;;  %v10233_v50 = vpop.f32.mrf.mxu0 }
 0x24a   : > { %v10231_v27 = vpop.f32.mrf.mxu1  ;;  %12616 = vst [vmem:[#allocation162_spill] sm:$0xff] %v10233_v50  ;;  %v12627_v50 = vld [vmem:[#allocation128_spill] sm:$0xff] }
 0x24b   : > { %12615 = vst [vmem:[#allocation161_spill] sm:$0xff] %v10231_v27  ;;  %v10237_v29 = vpop.f32.mrf.mxu0 }
 0x24c   : > { %v10235_v13 = vpop.f32.mrf.mxu1  ;;  %12618 = vst [vmem:[#allocation164_spill] sm:$0xff] %v10237_v29 }
 0x24d   : > { %12617 = vst [vmem:[#allocation163_spill] sm:$0xff] %v10235_v13  ;;  %v10241_v34 = vpop.f32.mrf.mxu0  ;;  %v12628_v13 = vld [vmem:[#allocation123_spill] sm:$0xff] }
 0x24e   : > { %v10239_v8 = vpop.f32.mrf.mxu1  ;;  %12620 = vst [vmem:[#allocation166_spill] sm:$0xff] %v10241_v34  ;;  %v1226_v2 = vadd.f32 %v12628_v13, %v12627_v50  ;;  %v12631_v34 = vld [vmem:[#allocation142_spill] sm:$0xff]  ;;  %v1290_v50 = vadd.f32 %v9921_v60, %v12638_v4 }
 0x24f   : > { %12619 = vst [vmem:[#allocation165_spill] sm:$0xff] %v10239_v8  ;;  %v10245_v25 = vpop.f32.mrf.mxu0  ;;  %v12639_v13 = vld [vmem:[#allocation154_spill] sm:$0xff] }
 0x250   : > { %v10243_v33 = vpop.f32.mrf.mxu1  ;;  %12622 = vst [vmem:[#allocation168_spill] sm:$0xff] %v10245_v25  ;;  %v1815_v25 = vadd.f32 %v12633_v14, %v1226_v2 }
 0x251   : > { %12621 = vst [vmem:[#allocation167_spill] sm:$0xff] %v10243_v33  ;;  %v10249_v62 = vpop.f32.mrf.mxu0  ;;  %v1242_v33 = vadd.f32 %v12632_v28, %v12631_v34  ;;  %v12641_v28 = vld [vmem:[#allocation40_spill] sm:$0xff] }
 0x252   : > { %v10247_v32 = vpop.f32.mrf.mxu1  ;;  %12624 = vst [vmem:[#allocation170_spill] sm:$0xff] %v10249_v62  ;;  %v2152_v2 = vadd.f32 %v10026_v3, %v1815_v25  ;;  %v2164_v25 = vadd.f32 %v10063_v11, %v9884_v0 }
 0x253   : > { %12623 = vst [vmem:[#allocation169_spill] sm:$0xff] %v10247_v32  ;;  %v10253_v27 = vpop.f32.mrf.mxu0  ;;  %v12635_v32 = vld [vmem:[#allocation85_spill] sm:$0xff] }
 0x254   : > { %v10251_v16 = vpop.f32.mrf.mxu1  ;;  %12626 = vst [vmem:[#allocation172_spill] sm:$0xff] %v10253_v27  ;;  %v1258_v6 = vadd.f32 %v12635_v32, %v12634_v26  ;;  %v12637_v27 = vld [vmem:[#allocation86_spill] sm:$0xff]  ;;  %v1338_v32 = vadd.f32 %v10008_v36, %v12641_v28 }
 0x255   : > { %12625 = vst [vmem:[#allocation171_spill] sm:$0xff] %v10251_v16  ;;  %v10259_v8 = vpop.f32.mrf.mxu0  ;;  %v1819_v20 = vadd.f32 %v12637_v27, %v1242_v33  ;;  %v1831_v33 = vadd.f32 %v9934_v45, %v1290_v50  ;;  %v12649_v28 = vld [vmem:[#allocation46_spill] sm:$0xff] }
 0x256   : > { %v10257_v29 = vpop.f32.mrf.mxu1  ;;  %12630 = vst [vmem:[#allocation123_spill] sm:$0xff] %v10259_v8  ;;  %v1306_v8 = vadd.f32 %v9959_v1, %v12639_v13  ;;  %v1823_v14 = vadd.f32 %v9866_v44, %v1258_v6  ;;  %v2457_v44 = vadd.f32 %v10039_v52, %v2152_v2  ;;  %v2469_v52 = vadd.f32 %v10082_v31, %v2164_v25  ;;  %v12648_v13 = vld [vmem:[#allocation45_spill] sm:$0xff]  ;;  %v12653_v25 = vld [vmem:[#allocation59_spill] sm:$0xff] }
 0x257   : > { %12629 = vst [vmem:[#allocation128_spill] sm:$0xff] %v10257_v29  ;;  %v10268_v16 = vpop.f32.mrf.mxu0  ;;  %v12640_v29 = vld [vmem:[#allocation158_spill] sm:$0xff]  ;;  %v2156_v1 = vadd.f32 %v10037_v46, %v1819_v20  ;;  %v2795_v46 = vadd.f32 %v10129_v58, %v10029_v47  ;;  %v2793_v47 = vadd.f32 %v10133_v40, %v10032_v42  ;;  %v2796_v31 = vadd.f32 %v10137_v18, %v10035_v30 }
 0x258   : > { %v10266_v62 = vpop.f32.mrf.mxu1  ;;  %12636 = vst [vmem:[#allocation142_spill] sm:$0xff] %v10268_v16  ;;  %v1322_v34 = vadd.f32 %v9994_v49, %v12640_v29  ;;  %v1835_v60 = vadd.f32 %v9972_v51, %v1306_v8  ;;  %v1843_v49 = vadd.f32 %v10024_v15, %v1338_v32  ;;  %v2160_v29 = vadd.f32 %v10050_v37, %v1823_v14  ;;  %v10352_v14 = vld [vmem:[%s11985_s7] ss:$0 sm:$0xff] }
 0x259   : > { %v10281_v26 = vpop.f32.mrf.mxu0  ;;  %v2461_v45 = vadd.f32 %v10052_v39, %v2156_v1  ;;  %v2168_v51 = vadd.f32 %v10080_v61, %v1831_v33  ;;  %v2797_v42 = vadd.f32 %v10149_v55, %v10045_v41  ;;  %v2800_v30 = vadd.f32 %v10153_v54, %v10048_v35  ;;  %v12643_v35 = vld [vmem:[#allocation133_spill] sm:$0xff] }
 0x25a   : > { %v7810_v16 = vpop.f32.mrf.mxu1  ;;  %v1839_v27 = vadd.f32 %v10006_v48, %v1322_v34  ;;  %v2172_v48 = vadd.f32 %v10099_v53, %v1835_v60  ;;  %v2465_v15 = vadd.f32 %v10065_v56, %v2160_v29  ;;  %v2180_v0 = vadd.f32 %v10125_v59, %v1843_v49  ;;  %v12651_v49 = vld [vmem:[#allocation100_spill] sm:$0xff] }
 0x25b   : > { %v10292_v36 = vpop.f32.mrf.mxu0  ;;  %v10306_v39 = vadd.f32 %v10101_v22, %v2168_v51  ;;  %v3132_v56 = vadd.f32 %v10147_v5, %v2795_v46  ;;  %v2794_v22 = vadd.f32 %v10143_v43, %v2457_v44  ;;  %v2799_v59 = vadd.f32 %v10145_v21, %v10042_v17  ;;  %v10338_v17 = vld [vmem:[%s11984_s6] ss:$0 sm:$0xff]  ;;  %v12644_v5 = vld [vmem:[#allocation122_spill] sm:$0xff]  ;;  %v12652_v44 = vld [vmem:[#allocation55_spill] sm:$0xff] }
 0x25c   : > { %v3308_v3 = vpop.f32.mrf.mxu1  ;;  %v2176_v37 = vadd.f32 %v10112_v7, %v1839_v27  ;;  %v10309_v61 = vadd.f32 %v10114_v9, %v2172_v48  ;;  %v10320_v53 = vadd.f32 %v10141_v19, %v2180_v0  ;;  %v3133_v40 = vadd.f32 %v10155_v23, %v2796_v31  ;;  %v12650_v27 = vld [vmem:[#allocation56_spill] sm:$0xff]  ;;  %v12656_v0 = vld [vmem:[#allocation70_spill] sm:$0xff]  ;;  %v12657_v31 = vld [vmem:[#allocation139_spill] sm:$0xff] }
 0x25d   : > { %v10303_v20 = vpop.f32.mrf.mxu0  ;;  %v3437_v58 = vadd.f32 %v7810_v16, %v3132_v56  ;;  %v2798_v6 = vadd.f32 %v10157_v10, %v2461_v45  ;;  %v3131_v18 = vadd.f32 %v10159_v24, %v2794_v22  ;;  %v2803_v41 = vadd.f32 %v10161_v63, %v10055_v38  ;;  %v12642_v16 = vld [vmem:[#allocation121_spill] sm:$0xff]  ;;  %v12646_v10 = vld [vmem:[#allocation136_spill] sm:$0xff]  ;;  %v12654_v45 = vld [vmem:[#allocation99_spill] sm:$0xff] }
 0x25e   : > { %v7811_v11 = vpop.f32.mrf.mxu1  ;;  %v10315_v8 = vadd.f32 %v10127_v57, %v2176_v37  ;;  %v3130_v57 = vadd.f32 %v10151_v12, %v2793_v47  ;;  %v3136_v43 = vadd.f32 %v12642_v16, %v2799_v59  ;;  %v2801_v55 = vadd.f32 %v12644_v5, %v12643_v35  ;;  %v12645_v12 = vld [vmem:[#allocation141_spill] sm:$0xff]  ;;  %v12647_v24 = vld [vmem:[#allocation140_spill] sm:$0xff] }
 0x25f   : > { %v10323_v7 = vpop.f32.mrf.mxu0  ;;  %v3134_v23 = vadd.f32 %v12645_v12, %v2797_v42  ;;  %v2804_v50 = vadd.f32 %v12647_v24, %v12646_v10  ;;  %v3137_v34 = vadd.f32 %v12648_v13, %v2800_v30  ;;  %v2802_v32 = vadd.f32 %v12649_v28, %v2465_v15  ;;  %v12655_v51 = vld [vmem:[#allocation60_spill] sm:$0xff]  ;;  %v12658_v22 = vld [vmem:[#allocation69_spill] sm:$0xff]  ;;  %v12664_v24 = vld [vmem:[#allocation98_spill] sm:$0xff] }
 0x260   : > { %v3311_v9 = vpop.f32.mrf.mxu1  ;;  %v3435_v21 = vadd.f32 %v3308_v3, %v3130_v57  ;;  %v3438_v2 = vadd.f32 %v7811_v11, %v3133_v40  ;;  %v3135_v1 = vadd.f32 %v12650_v27, %v2798_v6  ;;  %v2807_v29 = vadd.f32 %v12652_v44, %v12651_v49  ;;  %v12659_v42 = vld [vmem:[#allocation73_spill] sm:$0xff]  ;;  %v12661_v35 = vld [vmem:[#allocation84_spill] sm:$0xff]  ;;  %v12665_v28 = vld [vmem:[#allocation91_spill] sm:$0xff] }
 0x261   : > { %v7846_v19 = vpop.f32.mrf.mxu0  ;;  %v3140_v3 = vadd.f32 %v12653_v25, %v2803_v41  ;;  %v2805_v48 = vadd.f32 %v12655_v51, %v12654_v45  ;;  %v10363_v47 = vadd.f32 %v12656_v0, %v2801_v55  ;;  %v2808_v59 = vadd.f32 %v12658_v22, %v12657_v31  ;;  %v12662_v55 = vld [vmem:[#allocation114_spill] sm:$0xff]  ;;  %v12663_v12 = vld [vmem:[#allocation97_spill] sm:$0xff]  ;;  %v12668_v27 = vld [vmem:[#allocation92_spill] sm:$0xff] }
 0x262   : > { %v7814_v4 = vpop.f32.mrf.mxu1  ;;  %v3774_v54 = vadd.f32 %v7846_v19, %v3437_v58  ;;  %v10370_v57 = vadd.f32 %v12659_v42, %v2804_v50  ;;  %v12660_v58 = vld [vmem:[#allocation83_spill] sm:$0xff]  ;;  %v3436_v40 = vadd.f32 %v3311_v9, %v3131_v18  ;;  %v10376_v5 = vadd.f32 %v12661_v35, %v2802_v32  ;;  %v12670_v0 = vld [vmem:[#allocation112_spill] sm:$0xff] }
 0x263   : > { %v3645_v63 = vpop.f32.mrf.mxu0  ;;  %v2806_v30 = vadd.f32 %v12660_v58, %v2469_v52  ;;  %v3441_v41 = vadd.f32 %v7814_v4, %v3136_v43  ;;  %v2811_v10 = vadd.f32 %v12663_v12, %v12662_v55  ;;  %v10381_v50 = vadd.f32 %v12664_v24, %v2807_v29  ;;  %v12669_v49 = vld [vmem:[#allocation111_spill] sm:$0xff] }
 0x264   : > { %v3324_v38 = vpop.f32.mrf.mxu1  ;;  %v3813_v33 = vmul.f32 %v10338_v17, %v3774_v54  ;;  %v3772_v60 = vadd.f32 %v3645_v63, %v3435_v21  ;;  %v2812_v44 = vadd.f32 %v12669_v49, %v12668_v27 }
 0x265   : > { %v7847_v37 = vpop.f32.mrf.mxu0  ;;  %v3439_v18 = vadd.f32 %v3324_v38, %v3134_v23 }
 0x266   : > { %v7815_v46 = vpop.f32.mrf.mxu1  ;;  %v3852_v15 = vadd.f32 %v10352_v14, %v3813_v33  ;;  %v3811_v11 = vmul.f32 %v10338_v17, %v3772_v60  ;;  %v3775_v56 = vadd.f32 %v7847_v37, %v3438_v2  ;;  %v12666_v2 = vld [vmem:[#allocation155_spill] sm:$0xff]  ;;  %v12667_v33 = vld [vmem:[#allocation156_spill] sm:$0xff] }
 0x267   : > { %v3648_v19 = vpop.f32.mrf.mxu0  ;;  %v2809_v32 = vadd.f32 %v12666_v2, %v12665_v28  ;;  %v10388_v60 = vadd.f32 %v12667_v33, %v2805_v48  ;;  %v3442_v23 = vadd.f32 %v7815_v46, %v3137_v34  ;;  %v12671_v48 = vld [vmem:[#allocation159_spill] sm:$0xff]  ;;  %v12680_v2 = vld [vmem:[#allocation37_spill] sm:$0xff]  ;;  %v12681_v33 = vld [vmem:[#allocation52_spill] sm:$0xff] }
 0x268   : > { %v3327_v6 = vpop.f32.mrf.mxu1  ;;  %v3884_v16 = vmax.f32 %v3852_v15, 0.0  ;;  %v3850_v21 = vadd.f32 %v10352_v14, %v3811_v11  ;;  %v3814_v54 = vmul.f32 %v10338_v17, %v3775_v56  ;;  %v3773_v13 = vadd.f32 %v3648_v19, %v3436_v40  ;;  %v12672_v56 = vld [vmem:[#allocation157_spill] sm:$0xff]  ;;  %v12674_v19 = vld [vmem:[#allocation131_spill] sm:$0xff] }
 0x269   : > { %v7850_v9 = vpop.f32.mrf.mxu0  ;;  %v10396_v15 = vadd.f32 %v12670_v0, %v2808_v59  ;;  %v2810_v11 = vadd.f32 %v12671_v48, %v10306_v39  ;;  %v10401_v31 = vadd.f32 %v12672_v56, %v2806_v30  ;;  %v12673_v40 = vld [vmem:[#allocation145_spill] sm:$0xff]  ;;  %v12676_v39 = vld [vmem:[#allocation146_spill] sm:$0xff]  ;;  %v12677_v30 = vld [vmem:[#allocation160_spill] sm:$0xff]  ;;  %v3440_v35 = vadd.f32 %v3327_v6, %v3135_v1 }
 0x26a   : > { %v7818_v52 = vpop.f32.mrf.mxu1  ;;  %3955 = vst.msk [vmem:[#allocation3 + $0x28] sm:$0xff] %vm3914_vm1, %v3884_v16  ;;  %v3882_v4 = vmax.f32 %v3850_v21, 0.0  ;;  %v3853_v43 = vadd.f32 %v10352_v14, %v3814_v54  ;;  %v3778_v63 = vadd.f32 %v7850_v9, %v3441_v41  ;;  %v3812_v29 = vmul.f32 %v10338_v17, %v3773_v13  ;;  %v12675_v16 = vld [vmem:[#allocation132_spill] sm:$0xff]  ;;  %v12679_v28 = vld [vmem:[#allocation135_spill] sm:$0xff] }
 0x26b   : > { %v3661_v45 = vpop.f32.mrf.mxu0  ;;  %v2815_v34 = vadd.f32 %v12674_v19, %v12673_v40  ;;  %v10410_v21 = vadd.f32 %v12675_v16, %v2811_v10  ;;  %v2813_v54 = vadd.f32 %v12677_v30, %v12676_v39  ;;  %v3445_v13 = vadd.f32 %v7818_v52, %v3140_v3  ;;  %v12689_v16 = vld [vmem:[#allocation164_spill] sm:$0xff] }
 0x26c   : > { %v3340_v25 = vpop.f32.mrf.mxu1  ;;  %3953 = vst.msk [vmem:[#allocation3 + $0x18] sm:$0xff] %vm3914_vm1, %v3882_v4  ;;  %v3885_v38 = vmax.f32 %v3853_v43, 0.0  ;;  %v3817_v51 = vmul.f32 %v10338_v17, %v3778_v63  ;;  %v3776_v37 = vadd.f32 %v3661_v45, %v3439_v18  ;;  %v3851_v22 = vadd.f32 %v10352_v14, %v3812_v29  ;;  %v12678_v43 = vld [vmem:[#allocation51_spill] sm:$0xff]  ;;  %v12682_v45 = vld [vmem:[#allocation65_spill] sm:$0xff] }
 0x26d   : > { %v7851_v58 = vpop.f32.mrf.mxu0  ;;  %v10417_v63 = vadd.f32 %v12678_v43, %v2809_v32  ;;  %v10421_v10 = vadd.f32 %v12680_v2, %v12679_v28  ;;  %v10424_v27 = vadd.f32 %v12681_v33, %v2812_v44  ;;  %v3443_v52 = vadd.f32 %v3340_v25, %v10363_v47  ;;  %v12690_v33 = vld [vmem:[#allocation35_spill] sm:$0xff] }
 0x26e   : > { %v7819_v42 = vpop.f32.mrf.mxu1  ;;  %3956 = vst.msk [vmem:[#allocation3 + $0x30] sm:$0xff] %vm3914_vm1, %v3885_v38  ;;  %v3856_v46 = vadd.f32 %v10352_v14, %v3817_v51  ;;  %v3815_v59 = vmul.f32 %v10338_v17, %v3776_v37  ;;  %v3779_v41 = vadd.f32 %v7851_v58, %v3442_v23  ;;  %v3883_v55 = vmax.f32 %v3851_v22, 0.0  ;;  %v12683_v38 = vld [vmem:[#allocation66_spill] sm:$0xff]  ;;  %v12685_v37 = vld [vmem:[#allocation161_spill] sm:$0xff] }
 0x26f   : > { %v3664_v24 = vpop.f32.mrf.mxu0  ;;  %v10432_v23 = vadd.f32 %v12682_v45, %v10309_v61  ;;  %v10435_v44 = vadd.f32 %v12683_v38, %v2810_v11  ;;  %v12684_v51 = vld [vmem:[#allocation134_spill] sm:$0xff]  ;;  %v3446_v47 = vadd.f32 %v7819_v42, %v10370_v57  ;;  %v10455_v39 = vadd.f32 %v12689_v16, %v2813_v54 }
 0x270   : > { %v3343_v12 = vpop.f32.mrf.mxu1  ;;  %v3888_v9 = vmax.f32 %v3856_v46, 0.0  ;;  %v3854_v18 = vadd.f32 %v10352_v14, %v3815_v59  ;;  %v3818_v4 = vmul.f32 %v10338_v17, %v3779_v41  ;;  %3954 = vst.msk [vmem:[#allocation3 + $0x20] sm:$0xff] %vm3914_vm1, %v3883_v55  ;;  %v3777_v1 = vadd.f32 %v3664_v24, %v3440_v35  ;;  %v12686_v11 = vld [vmem:[#allocation162_spill] sm:$0xff]  ;;  %v12687_v46 = vld [vmem:[#allocation105_spill] sm:$0xff]  ;;  %v12688_v59 = vld [vmem:[#allocation163_spill] sm:$0xff] }
 0x271   : > { %v7854_v3 = vpop.f32.mrf.mxu0  ;;  %v10439_v0 = vadd.f32 %v12685_v37, %v12684_v51  ;;  %v10448_v19 = vadd.f32 %v12686_v11, %v2815_v34  ;;  %v10452_v41 = vadd.f32 %v12688_v59, %v12687_v46  ;;  %v3444_v55 = vadd.f32 %v3343_v12, %v10376_v5  ;;  %v4071_v51 = vld [vmem:[#allocation3 + $0x28] sm:$0xff]  ;;  %v12693_v37 = vld [vmem:[#allocation38_spill] sm:$0xff]  ;;  %v12697_v59 = vld [vmem:[#allocation165_spill] sm:$0xff] }
 0x272   : > { %v7822_v6 = vpop.f32.mrf.mxu1  ;;  %3959 = vst.msk [vmem:[#allocation3 + $0x48] sm:$0xff] %vm3914_vm1, %v3888_v9  ;;  %v3886_v49 = vmax.f32 %v3854_v18, 0.0  ;;  %v3857_v32 = vadd.f32 %v10352_v14, %v3818_v4  ;;  %v3782_v29 = vadd.f32 %v7854_v3, %v3445_v13  ;;  %v3816_v48 = vmul.f32 %v10338_v17, %v3777_v1  ;;  %v12696_v46 = vld [vmem:[#allocation106_spill] sm:$0xff] }
 0x273   : > { %v3677_v22 = vpop.f32.mrf.mxu0  ;;  %v10445_v40 = vld [vmem:[#allocation3 + $0x17] sm:$0xff]  ;;  %v3449_v18 = vadd.f32 %v7822_v6, %v10381_v50  ;;  %v12691_v50 = vld [vmem:[#allocation47_spill] sm:$0xff]  ;;  %v10494_v16 = vadd.f32 %v12697_v59, %v12696_v46  ;;  %v12701_v59 = vld [vmem:[#allocation50_spill] sm:$0xff] }
 0x274   : > { %v3356_v56 = vpop.f32.mrf.mxu1  ;;  %3957 = vst.msk [vmem:[#allocation3 + $0x38] sm:$0xff] %vm3914_vm1, %v3886_v49  ;;  %v3889_v25 = vmax.f32 %v3857_v32, 0.0  ;;  %v3821_v58 = vmul.f32 %v10338_v17, %v3782_v29  ;;  %v3780_v61 = vadd.f32 %v3677_v22, %v3443_v52  ;;  %v3855_v30 = vadd.f32 %v10352_v14, %v3816_v48  ;;  %v4069_v28 = vld [vmem:[#allocation3 + $0x18] sm:$0xff] }
 0x275   : > { %v7855_v57 = vpop.f32.mrf.mxu0  ;;  %v10458_v42 = vld [vmem:[#allocation3 + $0x2f] sm:$0xff]  ;;  %v3447_v54 = vadd.f32 %v3356_v56, %v10388_v60  ;;  %v4019_v1 = vmul.f32 %v10445_v40, %v12690_v33 }
 0x276   : > { %v7823_v35 = vpop.f32.mrf.mxu1  ;;  %3960 = vst.msk [vmem:[#allocation3 + $0x50] sm:$0xff] %vm3914_vm1, %v3889_v25  ;;  %v3860_v34 = vadd.f32 %v10352_v14, %v3821_v58  ;;  %v3819_v24 = vmul.f32 %v10338_v17, %v3780_v61  ;;  %v3783_v13 = vadd.f32 %v7855_v57, %v3446_v47  ;;  %v3887_v9 = vmax.f32 %v3855_v30, 0.0  ;;  %v4072_v2 = vld [vmem:[#allocation3 + $0x30] sm:$0xff] }
 0x277   : > { %v3680_v43 = vpop.f32.mrf.mxu0  ;;  %v4070_v52 = vld [vmem:[#allocation3 + $0x20] sm:$0xff]  ;;  %v4022_v60 = vmul.f32 %v10458_v42, %v12691_v50  ;;  %v12694_v56 = vld [vmem:[#allocation48_spill] sm:$0xff]  ;;  %v10490_v11 = vpack.c.bf16 %v4072_v2, %v4071_v51 }
 0x278   : > { %v3359_v4 = vpop.f32.mrf.mxu1  ;;  %v3892_v3 = vmax.f32 %v3860_v34, 0.0  ;;  %v3858_v5 = vadd.f32 %v10352_v14, %v3819_v24  ;;  %v3822_v12 = vmul.f32 %v10338_v17, %v3783_v13  ;;  %v10470_v49 = vld [vmem:[#allocation3 + $0x1f] sm:$0xff]  ;;  %v10472_v32 = vld [vmem:[#allocation3 + $0x27] sm:$0xff]  ;;  %3958 = vst.msk [vmem:[#allocation3 + $0x40] sm:$0xff] %vm3914_vm1, %v3887_v9  ;;  %v3781_v6 = vadd.f32 %v3680_v43, %v3444_v55  ;;  %v10486_v47 = vld [vmem:[%s11986_s8 + $0x20] sm:$0xff]  }
 0x279   : > { %v7858_v45 = vpop.f32.mrf.mxu0  ;;  %v10477_v38 = vpack.c.bf16 %v4070_v52, %v4069_v28  ;;  %v4020_v48 = vmul.f32 %v10470_v49, %v12693_v37  ;;  %v4021_v22 = vmul.f32 %v10472_v32, %v12694_v56  ;;  %12695 = vst [vmem:[#allocation124_spill] sm:$0xff] %v10490_v11  ;;  %v3450_v13 = vadd.f32 %v7823_v35, %v10396_v15  ;;  %v12698_v43 = vld [vmem:[#allocation113_spill] sm:$0xff]  ;;  %v12700_v15 = vld [vmem:[#allocation167_spill] sm:$0xff] }
 0x27a   : > { %v7826_v29 = vpop.f32.mrf.mxu1  ;;  %3963 = vst.msk [vmem:[#allocation3 + $0x68] sm:$0xff] %vm3914_vm1, %v3892_v3  ;;  %v3890_v25 = vmax.f32 %v3858_v5, 0.0  ;;  %v3861_v58 = vadd.f32 %v10352_v14, %v3822_v12  ;;  %v3786_v61 = vadd.f32 %v7858_v45, %v3449_v18  ;;  %v3820_v30 = vmul.f32 %v10338_v17, %v3781_v6  ;;  %v12699_v3 = vld [vmem:[#allocation166_spill] sm:$0xff] }
 0x27b   : > { %12692 = vst [vmem:[#allocation127_spill] sm:$0xff] %v10477_v38  ;;  %7879 = vmatmul.mubr.msk.bf16.vlgmr.msra.gmra.mxu1 %vm3914_vm1, %v10477_v38  ;;  %v3693_v55 = vpop.f32.mrf.mxu0  ;;  %v4052_v34 = vpack.c.bf16 %v4020_v48, %v4019_v1  ;;  %v4053_v24 = vpack.c.bf16 %v4022_v60, %v4021_v22  ;;  %v10505_v2 = vld [vmem:[#allocation3 + $0x37] sm:$0xff]  ;;  %v10514_v5 = vadd.f32 %v12699_v3, %v10421_v10 }
 0x27c   : > { %v3372_v57 = vpop.f32.mrf.mxu1  ;;  %3961 = vst.msk [vmem:[#allocation3 + $0x58] sm:$0xff] %vm3914_vm1, %v3890_v25  ;;  %v3893_v9 = vmax.f32 %v3861_v58, 0.0  ;;  %v3825_v18 = vmul.f32 %v10338_v17, %v3786_v61  ;;  %7945 = vmatpush3.bf16.msra.mxu1 %v12698_v43  ;;  %v3784_v28 = vadd.f32 %v3693_v55, %v3447_v54  ;;  %7882 = vmatprep.mubr.msk.bf16.mxu1 %vm3914_vm1, %v10490_v11  ;;  %v10510_v1 = vld [vmem:[%s11986_s8 + $0x28] sm:$0xff]  }
 0x27d   : > { %v10518_v35 = vadd.f32 %v12700_v15, %v10315_v8  ;;  %v3859_v54 = vadd.f32 %v10352_v14, %v3820_v30  ;;  %7913 = vmatmul.mubr.msk.bf16.vlgmr.msra.gmra.mxu0 %vm3914_vm1, %v4052_v34  ;;  %v7859_v52 = vpop.f32.mrf.mxu0  ;;  %v10522_v60 = vld [vmem:[#allocation3 + $0x4f] sm:$0xff]  ;;  %8012 = vmatprep.subr.bf16.mxu1 %v10486_v47  ;;  %v3448_v6 = vadd.f32 %v3359_v4, %v10401_v31  ;;  %v4073_v61 = vld [vmem:[#allocation3 + $0x38] sm:$0xff]  ;;  %v12702_v31 = vld [vmem:[#allocation74_spill] sm:$0xff] }
 0x27e   : > { %v7827_v12 = vpop.f32.mrf.mxu1  ;;  %3964 = vst.msk [vmem:[#allocation3 + $0x70] sm:$0xff] %vm3914_vm1, %v3893_v9  ;;  %v3864_v10 = vadd.f32 %v10352_v14, %v3825_v18  ;;  %v3823_v45 = vmul.f32 %v10338_v17, %v3784_v28  ;;  %v3787_v8 = vadd.f32 %v7859_v52, %v3450_v13  ;;  %7916 = vmatprep.mubr.msk.bf16.mxu0 %vm3914_vm1, %v4053_v24  ;;  %v4076_v46 = vld [vmem:[#allocation3 + $0x50] sm:$0xff]  ;;  %v4075_v28 = vld [vmem:[#allocation3 + $0x48] sm:$0xff]  ;;  %v12705_v3 = vld [vmem:[#allocation49_spill] sm:$0xff] }
 0x27f   : > { %v3891_v51 = vmax.f32 %v3859_v54, 0.0  ;;  %v3453_v48 = vadd.f32 %v7826_v29, %v10410_v21  ;;  %v3451_v22 = vadd.f32 %v3372_v57, %v10417_v63  ;;  %v3696_v58 = vpop.f32.mrf.mxu0  ;;  %v4023_v30 = vmul.f32 %v10505_v2, %v12701_v59  ;;  %7979 = vmatpush3.bf16.msra.mxu0 %v12702_v31  ;;  %v4074_v24 = vld [vmem:[#allocation3 + $0x40] sm:$0xff]  ;;  %v12703_v63 = vld [vmem:[#allocation61_spill] sm:$0xff] }
 0x280   : > { %v3375_v25 = vpop.f32.mrf.mxu1  ;;  %v3896_v4 = vmax.f32 %v3864_v10, 0.0  ;;  %v3862_v55 = vadd.f32 %v10352_v14, %v3823_v45  ;;  %v3826_v34 = vmul.f32 %v10338_v17, %v3787_v8  ;;  %v10537_v13 = vld [vmem:[#allocation3 + $0x3f] sm:$0xff]  ;;  %v10539_v21 = vld [vmem:[#allocation3 + $0x47] sm:$0xff]  ;;  %v4026_v29 = vmul.f32 %v10522_v60, %v12703_v63  ;;  %8046 = vmatprep.subr.bf16.mxu0 %v10510_v1 }
 0x281   : > { %3962 = vst.msk [vmem:[#allocation3 + $0x60] sm:$0xff] %vm3914_vm1, %v3891_v51  ;;  %v3785_v57 = vadd.f32 %v3696_v58, %v3448_v6  ;;  %v7862_v18 = vpop.f32.mrf.mxu0  ;;  %v10545_v43 = vpack.c.bf16 %v4074_v24, %v4073_v61  ;;  %v4024_v15 = vmul.f32 %v10537_v13, %v12705_v3  ;;  %v12706_v54 = vld [vmem:[#allocation62_spill] sm:$0xff]  ;;  %v10553_v31 = vpack.c.bf16 %v4076_v46, %v4075_v28  ;;  %v12708_v6 = vld [vmem:[#allocation168_spill] sm:$0xff]  ;;  %v12713_v28 = vld [vmem:[#allocation117_spill] sm:$0xff] }
 0x282   : > { %v7830_v9 = vpop.f32.mrf.mxu1  ;;  %v4025_v52 = vmul.f32 %v10539_v21, %v12706_v54  ;;  %3967 = vst.msk [vmem:[#allocation3 + $0x88] sm:$0xff] %vm3914_vm1, %v3896_v4  ;;  %v3894_v10 = vmax.f32 %v3862_v55, 0.0  ;;  %v3865_v45 = vadd.f32 %v10352_v14, %v3826_v34  ;;  %v3790_v8 = vadd.f32 %v7862_v18, %v3453_v48  ;;  %v12710_v34 = vld [vmem:[#allocation118_spill] sm:$0xff] }
 0x283   : > { %12704 = vst [vmem:[#allocation152_spill] sm:$0xff] %v10545_v43  ;;  %12707 = vst [vmem:[#allocation85_spill] sm:$0xff] %v10553_v31  ;;  %v10557_v51 = vadd.f32 %v12708_v6, %v10432_v23  ;;  %v3824_v58 = vmul.f32 %v10338_v17, %v3785_v57  ;;  %7883 = vmatmul.mubr.msk.bf16.gmra.mxu1 %vm3914_vm1, %v10545_v43  ;;  %v3709_v24 = vpop.f32.mrf.mxu0  ;;  %v4054_v11 = vpack.c.bf16 %v4024_v15, %v4023_v30  ;;  %v10567_v23 = vld [vmem:[#allocation3 + $0x57] sm:$0xff]  ;;  %v12712_v30 = vld [vmem:[#allocation170_spill] sm:$0xff] }
 0x284   : > { %v3388_v61 = vpop.f32.mrf.mxu1  ;;  %v4055_v38 = vpack.c.bf16 %v4026_v29, %v4025_v52  ;;  %3965 = vst.msk [vmem:[#allocation3 + $0x78] sm:$0xff] %vm3914_vm1, %v3894_v10  ;;  %v3454_v4 = vadd.f32 %v7827_v12, %v10424_v27  ;;  %v3897_v48 = vmax.f32 %v3865_v45, 0.0  ;;  %v3829_v46 = vmul.f32 %v10338_v17, %v3790_v8  ;;  %7886 = vmatprep.mubr.msk.bf16.mxu1 %vm3914_vm1, %v10553_v31  ;;  %v12711_v57 = vld [vmem:[#allocation169_spill] sm:$0xff]  ;;  %v12714_v15 = vld [vmem:[#allocation171_spill] sm:$0xff] }
 0x285   : > { %v3788_v55 = vadd.f32 %v3709_v24, %v3451_v22  ;;  %12709 = vst [vmem:[#allocation86_spill] sm:$0xff] %v10567_v23  ;;  %v10571_v18 = vadd.f32 %v12711_v57, %v12710_v34  ;;  %v10575_v29 = vadd.f32 %v12712_v30, %v10439_v0  ;;  %v10579_v27 = vadd.f32 %v12714_v15, %v12713_v28  ;;  %v7863_v52 = vpop.f32.mrf.mxu0  ;;  %v10583_v10 = vld [vmem:[#allocation3 + $0x6f] sm:$0xff]  ;;  %v4077_v30 = vld [vmem:[#allocation3 + $0x58] sm:$0xff] }
 0x286   : > { %v3863_v12 = vadd.f32 %v10352_v14, %v3824_v58  ;;  %7917 = vmatmul.mubr.msk.bf16.gmra.mxu0 %vm3914_vm1, %v4054_v11  ;;  %v7831_v22 = vpop.f32.mrf.mxu1  ;;  %12715 = vst [vmem:[#allocation153_spill] sm:$0xff] %v10583_v10  ;;  %3968 = vst.msk [vmem:[#allocation3 + $0x90] sm:$0xff] %vm3914_vm1, %v3897_v48  ;;  %v3452_v45 = vadd.f32 %v3375_v25, %v10435_v44  ;;  %v3868_v8 = vadd.f32 %v10352_v14, %v3829_v46  ;;  %v4080_v28 = vld [vmem:[#allocation3 + $0x70] sm:$0xff]  ;;  %v12719_v31 = vld [vmem:[#allocation63_spill] sm:$0xff] }
 0x287   : > { %v3827_v0 = vmul.f32 %v10338_v17, %v3788_v55  ;;  %v3791_v6 = vadd.f32 %v7863_v52, %v3454_v4  ;;  %7920 = vmatprep.mubr.msk.bf16.mxu0 %vm3914_vm1, %v4055_v38  ;;  %v3457_v58 = vadd.f32 %v7830_v9, %v10448_v19  ;;  %v3455_v11 = vadd.f32 %v3388_v61, %v10455_v39  ;;  %v3712_v57 = vpop.f32.mrf.mxu0  ;;  %v12716_v15 = vld [vmem:[#allocation64_spill] sm:$0xff]  ;;  %v12717_v19 = vld [vmem:[#allocation75_spill] sm:$0xff] }
 0x288   : > { %v3895_v24 = vmax.f32 %v3863_v12, 0.0  ;;  %v3391_v34 = vpop.f32.mrf.mxu1  ;;  %v4027_v48 = vmul.f32 %v10567_v23, %v12716_v15  ;;  %v3900_v44 = vmax.f32 %v3868_v8, 0.0  ;;  %v4078_v4 = vld [vmem:[#allocation3 + $0x60] sm:$0xff]  ;;  %v4030_v39 = vmul.f32 %v10583_v10, %v12717_v19  ;;  %v4079_v8 = vld [vmem:[#allocation3 + $0x68] sm:$0xff] }
 0x289   : > { %v3866_v25 = vadd.f32 %v10352_v14, %v3827_v0  ;;  %v3830_v46 = vmul.f32 %v10338_v17, %v3791_v6  ;;  %v10596_v55 = vld [vmem:[#allocation3 + $0x5f] sm:$0xff]  ;;  %v10598_v38 = vld [vmem:[#allocation3 + $0x67] sm:$0xff]  ;;  %v3789_v9 = vadd.f32 %v3712_v57, %v3452_v45  ;;  %v7866_v12 = vpop.f32.mrf.mxu0  ;;  %v10603_v52 = vpack.c.bf16 %v4078_v4, %v4077_v30  ;;  %v12720_v6 = vld [vmem:[#allocation76_spill] sm:$0xff] }
 0x28a   : > { %3966 = vst.msk [vmem:[#allocation3 + $0x80] sm:$0xff] %vm3914_vm1, %v3895_v24  ;;  %v7834_v61 = vpop.f32.mrf.mxu1  ;;  %v4028_v0 = vmul.f32 %v10596_v55, %v12719_v31  ;;  %v4029_v43 = vmul.f32 %v10598_v38, %v12720_v6  ;;  %3971 = vst.msk [vmem:[#allocation3 + $0xa8] sm:$0xff] %vm3914_vm1, %v3900_v44  ;;  %v3794_v10 = vadd.f32 %v7866_v12, %v3457_v58  ;;  %v12722_v45 = vld [vmem:[#allocation172_spill] sm:$0xff] }
 0x28b   : > { %12718 = vst [vmem:[#allocation154_spill] sm:$0xff] %v10603_v52  ;;  %v3898_v15 = vmax.f32 %v3866_v25, 0.0  ;;  %v3869_v23 = vadd.f32 %v10352_v14, %v3830_v46  ;;  %v10611_v19 = vpack.c.bf16 %v4080_v28, %v4079_v8  ;;  %v3154_v24 = vadd.f32 %v12722_v45, %v10452_v41  ;;  %7887 = vmatmul.mubr.msk.bf16.gmra.mxu1 %vm3914_vm1, %v10603_v52  ;;  %v3725_v4 = vpop.f32.mrf.mxu0  ;;  %v10623_v41 = vld [vmem:[#allocation3 + $0x77] sm:$0xff]  ;;  %v12725_v8 = vld [vmem:[#allocation123_spill] sm:$0xff] }
 0x28c   : > { %v3828_v57 = vmul.f32 %v10338_v17, %v3789_v9  ;;  %v3404_v30 = vpop.f32.mrf.mxu1  ;;  %v4056_v31 = vpack.c.bf16 %v4028_v0, %v4027_v48  ;;  %v4057_v6 = vpack.c.bf16 %v4030_v39, %v4029_v43  ;;  %v3458_v44 = vadd.f32 %v7831_v22, %v10514_v5  ;;  %v12723_v46 = vld [vmem:[#allocation149_spill] sm:$0xff]  ;;  %v12724_v9 = vld [vmem:[#allocation128_spill] sm:$0xff] }
 0x28d   : > { %12721 = vst [vmem:[#allocation158_spill] sm:$0xff] %v10611_v19  ;;  %3969 = vst.msk [vmem:[#allocation3 + $0x98] sm:$0xff] %vm3914_vm1, %v3898_v15  ;;  %v3901_v25 = vmax.f32 %v3869_v23, 0.0  ;;  %v3833_v58 = vmul.f32 %v10338_v17, %v3794_v10  ;;  %v3792_v28 = vadd.f32 %v3725_v4, %v3455_v11  ;;  %7890 = vmatprep.mubr.msk.bf16.mxu1 %vm3914_vm1, %v10611_v19  ;;  %v7867_v22 = vpop.f32.mrf.mxu0  ;;  %v10635_v10 = vld [vmem:[#allocation3 + $0x8f] sm:$0xff] }
 0x28e   : > { %v2824_v12 = vadd.f32 %v12724_v9, %v12723_v46  ;;  %v3157_v48 = vadd.f32 %v12725_v8, %v10494_v16  ;;  %v10631_v43 = vadd.f32 %v10266_v62, %v10320_v53  ;;  %v3867_v5 = vadd.f32 %v10352_v14, %v3828_v57  ;;  %7921 = vmatmul.mubr.msk.bf16.gmra.mxu0 %vm3914_vm1, %v4056_v31  ;;  %v7835_v23 = vpop.f32.mrf.mxu1  ;;  %v4081_v57 = vld [vmem:[#allocation3 + $0x78] sm:$0xff]  ;;  %v4084_v4 = vld [vmem:[#allocation3 + $0x90] sm:$0xff]  ;;  %v12727_v46 = vld [vmem:[#allocation78_spill] sm:$0xff] }
 0x28f   : > { %12726 = vst [vmem:[#allocation40_spill] sm:$0xff] %v10635_v10  ;;  %3972 = vst.msk [vmem:[#allocation3 + $0xb0] sm:$0xff] %vm3914_vm1, %v3901_v25  ;;  %v3456_v11 = vadd.f32 %v3391_v34, %v10557_v51  ;;  %v3872_v15 = vadd.f32 %v10352_v14, %v3833_v58  ;;  %v3831_v16 = vmul.f32 %v10338_v17, %v3792_v28  ;;  %7924 = vmatprep.mubr.msk.bf16.mxu0 %vm3914_vm1, %v4057_v6  ;;  %v3728_v45 = vpop.f32.mrf.mxu0  ;;  %v12728_v28 = vld [vmem:[#allocation87_spill] sm:$0xff] }
 0x290   : > { %v3795_v39 = vadd.f32 %v7867_v22, %v3458_v44  ;;  %v3899_v62 = vmax.f32 %v3867_v5, 0.0  ;;  %v3461_v53 = vadd.f32 %v7834_v61, %v10575_v29  ;;  %v3459_v0 = vadd.f32 %v3404_v30, %v3154_v24  ;;  %v3407_v31 = vpop.f32.mrf.mxu1  ;;  %v4083_v5 = vld [vmem:[#allocation3 + $0x88] sm:$0xff]  ;;  %v12730_v22 = vld [vmem:[#allocation77_spill] sm:$0xff] }
 0x291   : > { %v4031_v25 = vmul.f32 %v10623_v41, %v12727_v46  ;;  %v3904_v9 = vmax.f32 %v3872_v15, 0.0  ;;  %v3870_v51 = vadd.f32 %v10352_v14, %v3831_v16  ;;  %v4082_v58 = vld [vmem:[#allocation3 + $0x80] sm:$0xff]  ;;  %v4034_v29 = vmul.f32 %v10635_v10, %v12728_v28  ;;  %v7870_v30 = vpop.f32.mrf.mxu0  ;;  %v12731_v16 = vld [vmem:[#allocation88_spill] sm:$0xff] }
 0x292   : > { %v3834_v34 = vmul.f32 %v10338_v17, %v3795_v39  ;;  %v10647_v44 = vld [vmem:[#allocation3 + $0x7f] sm:$0xff]  ;;  %v10649_v6 = vld [vmem:[#allocation3 + $0x87] sm:$0xff]  ;;  %3970 = vst.msk [vmem:[#allocation3 + $0xa0] sm:$0xff] %vm3914_vm1, %v3899_v62  ;;  %v3793_v61 = vadd.f32 %v3728_v45, %v3456_v11  ;;  %v7838_v24 = vpop.f32.mrf.mxu1  ;;  %v10654_v8 = vpack.c.bf16 %v4082_v58, %v4081_v57  ;;  %v3798_v10 = vadd.f32 %v7870_v30, %v3461_v53 }
 0x293   : > { %v4032_v15 = vmul.f32 %v10647_v44, %v12730_v22  ;;  %v4033_v39 = vmul.f32 %v10649_v6, %v12731_v16  ;;  %3975 = vst.msk [vmem:[#allocation3 + $0xc8] sm:$0xff] %vm3914_vm1, %v3904_v9  ;;  %v3902_v19 = vmax.f32 %v3870_v51, 0.0  ;;  %v10662_v28 = vpack.c.bf16 %v4084_v4, %v4083_v5  ;;  %v12733_v11 = vld [vmem:[#allocation142_spill] sm:$0xff]  ;;  %v3741_v58 = vpop.f32.mrf.mxu0 }
 0x294   : > { %12729 = vst [vmem:[#allocation121_spill] sm:$0xff] %v10654_v8  ;;  %v3873_v52 = vadd.f32 %v10352_v14, %v3834_v34  ;;  %v3155_v62 = vadd.f32 %v12733_v11, %v10518_v35  ;;  %v3832_v45 = vmul.f32 %v10338_v17, %v3793_v61  ;;  %7891 = vmatmul.mubr.msk.bf16.gmra.mxu1 %vm3914_vm1, %v10654_v8  ;;  %v3420_v57 = vpop.f32.mrf.mxu1  ;;  %v10673_v35 = vld [vmem:[#allocation3 + $0x97] sm:$0xff]  ;;  %v12734_v5 = vld [vmem:[#allocation90_spill] sm:$0xff] }
 0x295   : > { %12732 = vst [vmem:[#allocation133_spill] sm:$0xff] %v10662_v28  ;;  %v4058_v22 = vpack.c.bf16 %v4032_v15, %v4031_v25  ;;  %v4059_v16 = vpack.c.bf16 %v4034_v29, %v4033_v39  ;;  %3973 = vst.msk [vmem:[#allocation3 + $0xb8] sm:$0xff] %vm3914_vm1, %v3902_v19  ;;  %v3462_v9 = vadd.f32 %v7835_v23, %v3157_v48  ;;  %7894 = vmatprep.mubr.msk.bf16.mxu1 %vm3914_vm1, %v10662_v28  ;;  %v4085_v29 = vld [vmem:[#allocation3 + $0x98] sm:$0xff]  ;;  %v12757_v8 = vld [vmem:[#allocation42_spill] sm:$0xff] }
 0x296   : > { %v3905_v51 = vmax.f32 %v3873_v52, 0.0  ;;  %v3837_v53 = vmul.f32 %v10338_v17, %v3798_v10  ;;  %v3796_v4 = vadd.f32 %v3741_v58, %v3459_v0  ;;  %v3160_v34 = vadd.f32 %v10281_v26, %v10571_v18  ;;  %v7871_v52 = vpop.f32.mrf.mxu0  ;;  %v10682_v48 = vld [vmem:[#allocation3 + $0xaf] sm:$0xff] }
 0x297   : > { %v3158_v61 = vadd.f32 %v10292_v36, %v10579_v27  ;;  %v3161_v25 = vadd.f32 %v10303_v20, %v2824_v12  ;;  %v3871_v19 = vadd.f32 %v10352_v14, %v3832_v45  ;;  %7925 = vmatmul.mubr.msk.bf16.gmra.mxu0 %vm3914_vm1, %v4058_v22  ;;  %v3460_v23 = vadd.f32 %v3407_v31, %v3155_v62  ;;  %v7839_v27 = vpop.f32.mrf.mxu1  ;;  %v4088_v30 = vld [vmem:[#allocation3 + $0xb0] sm:$0xff] }
 0x298   : > { %3976 = vst.msk [vmem:[#allocation3 + $0xd0] sm:$0xff] %vm3914_vm1, %v3905_v51  ;;  %v3876_v10 = vadd.f32 %v10352_v14, %v3837_v53  ;;  %v3835_v0 = vmul.f32 %v10338_v17, %v3796_v4  ;;  %v3799_v26 = vadd.f32 %v7871_v52, %v3462_v9  ;;  %7928 = vmatprep.mubr.msk.bf16.mxu0 %vm3914_vm1, %v4059_v16  ;;  %v3744_v12 = vpop.f32.mrf.mxu0  ;;  %v12735_v16 = vld [vmem:[#allocation101_spill] sm:$0xff]  ;;  %v4087_v51 = vld [vmem:[#allocation3 + $0xa8] sm:$0xff] }
 0x299   : > { %v3903_v36 = vmax.f32 %v3871_v19, 0.0  ;;  %v3465_v18 = vadd.f32 %v7838_v24, %v3160_v34  ;;  %v3463_v20 = vadd.f32 %v3420_v57, %v3158_v61  ;;  %v4035_v22 = vmul.f32 %v10673_v35, %v12734_v5  ;;  %v4086_v11 = vld [vmem:[#allocation3 + $0xa0] sm:$0xff]  ;;  %v12737_v53 = vld [vmem:[#allocation89_spill] sm:$0xff] }
 0x29a   : > { %v3908_v15 = vmax.f32 %v3876_v10, 0.0  ;;  %v3874_v31 = vadd.f32 %v10352_v14, %v3835_v0  ;;  %v3838_v39 = vmul.f32 %v10338_v17, %v3799_v26  ;;  %v10692_v62 = vld [vmem:[#allocation3 + $0x9f] sm:$0xff]  ;;  %v10694_v45 = vld [vmem:[#allocation3 + $0xa7] sm:$0xff]  ;;  %v4038_v24 = vmul.f32 %v10682_v48, %v12735_v16  ;;  %v7874_v58 = vpop.f32.mrf.mxu0  ;;  %v3423_v26 = vpop.f32.mrf.mxu1 }
 0x29b   : > { %3974 = vst.msk [vmem:[#allocation3 + $0xc0] sm:$0xff] %vm3914_vm1, %v3903_v36  ;;  %v3797_v57 = vadd.f32 %v3744_v12, %v3460_v23  ;;  %v10699_v9 = vpack.c.bf16 %v4086_v11, %v4085_v29  ;;  %v4036_v4 = vmul.f32 %v10692_v62, %v12737_v53  ;;  %v12738_v34 = vld [vmem:[#allocation102_spill] sm:$0xff]  ;;  %v3802_v10 = vadd.f32 %v7874_v58, %v3465_v18 }
 0x29c   : > { %v4037_v61 = vmul.f32 %v10694_v45, %v12738_v34  ;;  %3979 = vst.msk [vmem:[#allocation3 + $0xe8] sm:$0xff] %vm3914_vm1, %v3908_v15  ;;  %v3906_v19 = vmax.f32 %v3874_v31, 0.0  ;;  %v3877_v52 = vadd.f32 %v10352_v14, %v3838_v39  ;;  %v10707_v0 = vpack.c.bf16 %v4088_v30, %v4087_v51  ;;  %v3757_v12 = vpop.f32.mrf.mxu0  ;;  %v4089_v51 = vld [vmem:[#allocation3 + $0xb8] sm:$0xff] }
 0x29d   : > { %12736 = vst [vmem:[#allocation122_spill] sm:$0xff] %v10699_v9  ;;  %v3159_v23 = vadd.f32 %v10323_v7, %v10631_v43  ;;  %v3836_v36 = vmul.f32 %v10338_v17, %v3797_v57  ;;  %7895 = vmatmul.mubr.msk.bf16.gmra.mxu1 %vm3914_vm1, %v10699_v9  ;;  %v4060_v29 = vpack.c.bf16 %v4036_v4, %v4035_v22  ;;  %v10718_v7 = vld [vmem:[#allocation3 + $0xb7] sm:$0xff] }
 0x29e   : > { %12739 = vst [vmem:[#allocation141_spill] sm:$0xff] %v10707_v0  ;;  %v4061_v11 = vpack.c.bf16 %v4038_v24, %v4037_v61  ;;  %3977 = vst.msk [vmem:[#allocation3 + $0xd8] sm:$0xff] %vm3914_vm1, %v3906_v19  ;;  %v3466_v15 = vadd.f32 %v7839_v27, %v3161_v25  ;;  %v3909_v31 = vmax.f32 %v3877_v52, 0.0  ;;  %v3841_v18 = vmul.f32 %v10338_v17, %v3802_v10  ;;  %v7875_v39 = vpop.f32.mrf.mxu0  ;;  %v12740_v61 = vld [vmem:[#allocation104_spill] sm:$0xff]  ;;  %v12756_v9 = vld [vmem:[#allocation41_spill] sm:$0xff] }
 0x29f   : > { %v3800_v30 = vadd.f32 %v3757_v12, %v3463_v20  ;;  %7898 = vmatprep.mubr.msk.bf16.mxu1 %vm3914_vm1, %v10707_v0  ;;  %v3875_v43 = vadd.f32 %v10352_v14, %v3836_v36  ;;  %7929 = vmatmul.mubr.msk.bf16.gmra.mxu0 %vm3914_vm1, %v4060_v29  ;;  %v3464_v22 = vadd.f32 %v3423_v26, %v3159_v23  ;;  %v10726_v20 = vld [vmem:[#allocation3 + $0xcf] sm:$0xff] }
 0x2a0   : > { %3980 = vst.msk [vmem:[#allocation3 + $0xf0] sm:$0xff] %vm3914_vm1, %v3909_v31  ;;  %v3880_v24 = vadd.f32 %v10352_v14, %v3841_v18  ;;  %v3803_v27 = vadd.f32 %v7875_v39, %v3466_v15  ;;  %7932 = vmatprep.mubr.msk.bf16.mxu0 %vm3914_vm1, %v4061_v11  ;;  %v3760_v58 = vpop.f32.mrf.mxu0  ;;  %v4092_v4 = vld [vmem:[#allocation3 + $0xd0] sm:$0xff]  ;;  %v4039_v19 = vmul.f32 %v10718_v7, %v12740_v61  ;;  %v4091_v15 = vld [vmem:[#allocation3 + $0xc8] sm:$0xff] }
 0x2a1   : > { %v3839_v25 = vmul.f32 %v10338_v17, %v3800_v30  ;;  %v3907_v57 = vmax.f32 %v3875_v43, 0.0  ;;  %v3801_v26 = vadd.f32 %v3760_v58, %v3464_v22  ;;  %v12742_v31 = vld [vmem:[#allocation103_spill] sm:$0xff]  ;;  %v12743_v30 = vld [vmem:[#allocation116_spill] sm:$0xff] }
 0x2a2   : > { %v3912_v52 = vmax.f32 %v3880_v24, 0.0  ;;  %v3842_v23 = vmul.f32 %v10338_v17, %v3803_v27  ;;  %v4090_v36 = vld [vmem:[#allocation3 + $0xc0] sm:$0xff]  ;;  %v12744_v39 = vld [vmem:[#allocation115_spill] sm:$0xff] }
 0x2a3   : > { %v3878_v10 = vadd.f32 %v10352_v14, %v3839_v25  ;;  %v10732_v12 = vld [vmem:[#allocation3 + $0xbf] sm:$0xff]  ;;  %v10734_v29 = vld [vmem:[#allocation3 + $0xc7] sm:$0xff]  ;;  %3978 = vst.msk [vmem:[#allocation3 + $0xe0] sm:$0xff] %vm3914_vm1, %v3907_v57  ;;  %v10737_v11 = vpack.c.bf16 %v4090_v36, %v4089_v51  ;;  %v4042_v24 = vmul.f32 %v10726_v20, %v12744_v39  ;;  %v3840_v27 = vmul.f32 %v10338_v17, %v3801_v26  ;;  %v12748_v26 = vld [vmem:[#allocation120_spill] sm:$0xff] }
 0x2a4   : > { %v4040_v18 = vmul.f32 %v10732_v12, %v12742_v31  ;;  %v4041_v43 = vmul.f32 %v10734_v29, %v12743_v30  ;;  %3983 = vst.msk [vmem:[#allocation3 + $0x108] sm:$0xff] %vm3914_vm1, %v3912_v52  ;;  %v3881_v25 = vadd.f32 %v10352_v14, %v3842_v23  ;;  %v10748_v57 = vpack.c.bf16 %v4092_v4, %v4091_v15  ;;  %v12796_v30 = vld [vmem:[#allocation130_spill] sm:$0xff] }
 0x2a5   : > { %12741 = vst [vmem:[#allocation136_spill] sm:$0xff] %v10737_v11  ;;  %v3910_v22 = vmax.f32 %v3878_v10, 0.0  ;;  %7899 = vmatmul.mubr.msk.bf16.gmra.mxu1 %vm3914_vm1, %v10737_v11  ;;  %v3879_v0 = vadd.f32 %v10352_v14, %v3840_v27  ;;  %v10757_v52 = vld [vmem:[#allocation3 + $0xd7] sm:$0xff] }
 0x2a6   : > { %12745 = vst [vmem:[#allocation140_spill] sm:$0xff] %v10748_v57  ;;  %v4062_v58 = vpack.c.bf16 %v4040_v18, %v4039_v19  ;;  %v4063_v51 = vpack.c.bf16 %v4042_v24, %v4041_v43  ;;  %v3913_v36 = vmax.f32 %v3881_v25, 0.0  ;;  %7902 = vmatprep.mubr.msk.bf16.mxu1 %vm3914_vm1, %v10748_v57  ;;  %12746 = vst [vmem:[#allocation45_spill] sm:$0xff] %v10757_v52  ;;  %v4093_v19 = vld [vmem:[#allocation3 + $0xd8] sm:$0xff]  ;;  %v4095_v24 = vld [vmem:[#allocation3 + $0xe8] sm:$0xff] }
 0x2a7   : > { %3981 = vst.msk [vmem:[#allocation3 + $0xf8] sm:$0xff] %vm3914_vm1, %v3910_v22  ;;  %v3911_v17 = vmax.f32 %v3879_v0, 0.0  ;;  %v10761_v4 = vld [vmem:[#allocation3 + $0xef] sm:$0xff]  ;;  %v4043_v15 = vmul.f32 %v10757_v52, %v12748_v26  ;;  %v12752_v25 = vld [vmem:[#allocation138_spill] sm:$0xff]  ;;  %v4915_v52 = vmul.f32 %v10522_v60, %v12705_v3 }
 0x2a8   : > { %7933 = vmatmul.mubr.msk.bf16.gmra.mxu0 %vm3914_vm1, %v4062_v58  ;;  %3984 = vst.msk [vmem:[#allocation3 + $0x110] sm:$0xff] %vm3914_vm1, %v3913_v36  ;;  %12747 = vst [vmem:[#allocation46_spill] sm:$0xff] %v10761_v4  ;;  %v4096_v10 = vld [vmem:[#allocation3 + $0xf0] sm:$0xff]  ;;  %v12751_v0 = vld [vmem:[#allocation119_spill] sm:$0xff] }
 0x2a9   : > { %7936 = vmatprep.mubr.msk.bf16.mxu0 %vm3914_vm1, %v4063_v51  ;;  %3982 = vst.msk [vmem:[#allocation3 + $0x100] sm:$0xff] %vm3914_vm1, %v3911_v17  ;;  %v12753_v58 = vld [vmem:[#allocation137_spill] sm:$0xff]  ;;  %v10778_v36 = vpack.c.bf16 %v4096_v10, %v4095_v24  ;;  %v12804_v3 = vld [vmem:[#allocation63_spill] sm:$0xff] }
 0x2aa   : > { %v4094_v23 = vld [vmem:[#allocation3 + $0xe0] sm:$0xff]  ;;  %v4046_v51 = vmul.f32 %v10761_v4, %v12753_v58  ;;  %v4548_v11 = vld [vmem:[#allocation3 + $0x11] sm:$0xff] }
 0x2ab   : > { %v10764_v14 = vld [vmem:[#allocation3 + $0xdf] sm:$0xff]  ;;  %v10768_v18 = vld [vmem:[#allocation3 + $0xe7] sm:$0xff]  ;;  %v10770_v43 = vpack.c.bf16 %v4094_v23, %v4093_v19  ;;  %12754 = vst [vmem:[#allocation55_spill] sm:$0xff] %v10778_v36  ;;  %v4580_v28 = vmul.f32 %v4548_v11, %v12756_v9  ;;  %v12763_v11 = vld [vmem:[#allocation36_spill] sm:$0xff] }
 0x2ac   : > { %12749 = vst [vmem:[#allocation56_spill] sm:$0xff] %v10768_v18  ;;  %v4044_v22 = vmul.f32 %v10764_v14, %v12751_v0  ;;  %v4045_v27 = vmul.f32 %v10768_v18, %v12752_v25  ;;  %v4547_v19 = vld [vmem:[#allocation3 + $0x9] sm:$0xff]  ;;  %v4908_v9 = vmul.f32 %v10445_v40, %v12763_v11  ;;  %v10802_v26 = vld [vmem:[#allocation3 + $0x19] sm:$0xff] }
 0x2ad   : > { %12750 = vst [vmem:[#allocation100_spill] sm:$0xff] %v10770_v43  ;;  %7903 = vmatmul.mubr.msk.bf16.gmra.mxu1 %vm3914_vm1, %v10770_v43  ;;  %v4579_v4 = vmul.f32 %v4547_v19, %v12757_v8  ;;  %12764 = vst [vmem:[#allocation70_spill] sm:$0xff] %v10802_v26  ;;  %v10804_v19 = vld [vmem:[#allocation3 + $0x21] sm:$0xff]  ;;  %v12787_v8 = vld [vmem:[#allocation81_spill] sm:$0xff] }
 0x2ae   : > { %v4064_v17 = vpack.c.bf16 %v4044_v22, %v4043_v15  ;;  %v4065_v57 = vpack.c.bf16 %v4046_v51, %v4045_v27  ;;  %7906 = vmatprep.mubr.msk.bf16.mxu1 %vm3914_vm1, %v10778_v36  ;;  %v10785_v23 = vld [vmem:[#allocation3 + $0xf7] sm:$0xff]  ;;  %v12761_v51 = vld [vmem:[#allocation143_spill] sm:$0xff]  ;;  %12765 = vst [vmem:[#allocation139_spill] sm:$0xff] %v10804_v19 }
 0x2af   : > { %12755 = vst [vmem:[#allocation59_spill] sm:$0xff] %v10785_v23  ;;  %v4097_v10 = vld [vmem:[#allocation3 + $0xf8] sm:$0xff]  ;;  %v12760_v22 = vld [vmem:[#allocation144_spill] sm:$0xff]  ;;  %v12762_v36 = vld [vmem:[#allocation39_spill] sm:$0xff] }
 0x2b0   : > { %7937 = vmatmul.mubr.msk.bf16.gmra.mxu0 %vm3914_vm1, %v4064_v17  ;;  %v4098_v24 = vld [vmem:[#allocation3 + $0x100] sm:$0xff]  ;;  %v4047_v27 = vmul.f32 %v10785_v23, %v12760_v22  ;;  %v4909_v0 = vmul.f32 %v10470_v49, %v12762_v36  ;;  %v12766_v49 = vld [vmem:[#allocation44_spill] sm:$0xff]  ;;  %v12784_v23 = vld [vmem:[#allocation67_spill] sm:$0xff] }
 0x2b1   : > { %7940 = vmatprep.mubr.msk.bf16.mxu0 %vm3914_vm1, %v4065_v57  ;;  %v10790_v43 = vld [vmem:[#allocation3 + $0xff] sm:$0xff]  ;;  %v10792_v15 = vpack.c.bf16 %v4098_v24, %v4097_v10  ;;  %v4613_v57 = vpack.c.bf16 %v4580_v28, %v4579_v4  ;;  %v4552_v10 = vld [vmem:[#allocation3 + $0x31] sm:$0xff]  ;;  %v4581_v28 = vmul.f32 %v10802_v26, %v12766_v49  ;;  %v12767_v4 = vld [vmem:[#allocation43_spill] sm:$0xff] }
 0x2b2   : > { %12758 = vst [vmem:[#allocation99_spill] sm:$0xff] %v10790_v43  ;;  %v4048_v17 = vmul.f32 %v10790_v43, %v12761_v51  ;;  %v4942_v24 = vpack.c.bf16 %v4909_v0, %v4908_v9  ;;  %v4551_v51 = vld [vmem:[#allocation3 + $0x29] sm:$0xff]  ;;  %v4582_v40 = vmul.f32 %v10804_v19, %v12767_v4  ;;  %v12769_v36 = vld [vmem:[#allocation54_spill] sm:$0xff]  ;;  %v4556_v9 = vld [vmem:[#allocation3 + $0x51] sm:$0xff] }
 0x2b3   : > { %12759 = vst [vmem:[#allocation60_spill] sm:$0xff] %v10792_v15  ;;  %v4583_v11 = vmul.f32 %v4551_v51, %v12769_v36  ;;  %v10821_v0 = vld [vmem:[#allocation3 + $0x69] sm:$0xff]  ;;  %v10823_v26 = vld [vmem:[#allocation3 + $0x71] sm:$0xff]  ;;  %v10826_v19 = vmul.f32 %v4551_v51, %v12766_v49  ;;  %v10842_v51 = vld [vmem:[#allocation3 + $0x41] sm:$0xff] }
 0x2b4   : > { %v4066_v18 = vpack.c.bf16 %v4048_v17, %v4047_v27  ;;  %v12768_v27 = vld [vmem:[#allocation53_spill] sm:$0xff]  ;;  %12774 = vst [vmem:[#allocation114_spill] sm:$0xff] %v10842_v51  ;;  %v10884_v43 = vld [vmem:[#allocation3 + $0xc9] sm:$0xff] }
 0x2b5   : > { %7907 = vmatmul.mubr.msk.bf16.gmra.mxu1 %vm3914_vm1, %v10792_v15  ;;  %v4584_v17 = vmul.f32 %v4552_v10, %v12768_v27  ;;  %v4910_v15 = vmul.f32 %v10472_v32, %v12690_v33  ;;  %12770 = vst [vmem:[#allocation69_spill] sm:$0xff] %v10826_v19  ;;  %v10829_v27 = vmul.f32 %v4552_v10, %v12767_v4  ;;  %v10833_v33 = vld [vmem:[#allocation3 + $0x39] sm:$0xff]  ;;  %v10853_v4 = vld [vmem:[#allocation3 + $0x89] sm:$0xff]  ;;  %v10855_v49 = vld [vmem:[#allocation3 + $0x91] sm:$0xff] }
 0x2b6   : > { %7946 = vmatprep.mubr.msk.bf16.mxu1 %vm3914_vm1, %v4613_v57  ;;  %v4555_v57 = vld [vmem:[#allocation3 + $0x49] sm:$0xff]  ;;  %v4911_v32 = vmul.f32 %v10458_v42, %v12693_v37  ;;  %12772 = vst [vmem:[#allocation83_spill] sm:$0xff] %v10833_v33 }
 0x2b7   : > { %12771 = vst [vmem:[#allocation73_spill] sm:$0xff] %v10829_v27  ;;  %v4615_v36 = vpack.c.bf16 %v4584_v17, %v4583_v11  ;;  %v12779_v37 = vld [vmem:[#allocation72_spill] sm:$0xff]  ;;  %v10868_v19 = vld [vmem:[%s11986_s8 + $0x38] sm:$0xff]  }
 0x2b8   : > { %7941 = vmatmul.mubr.msk.bf16.gmra.mxu0 %vm3914_vm1, %v4066_v18  ;;  %v4913_v18 = vmul.f32 %v10537_v13, %v12691_v50  ;;  %v10838_v13 = vld [vmem:[%s11986_s8 + $0x30] sm:$0xff]   ;;  %v4912_v50 = vmul.f32 %v10505_v2, %v12694_v56  ;;  %v4943_v17 = vpack.c.bf16 %v4911_v32, %v4910_v15  ;;  %v10859_v2 = vmul.f32 %v10821_v0, %v12779_v37  ;;  %v12781_v56 = vld [vmem:[#allocation71_spill] sm:$0xff]  ;;  %v10876_v27 = vld [vmem:[#allocation3 + $0xb1] sm:$0xff] }
 0x2b9   : > { %7980 = vmatprep.mubr.msk.bf16.mxu0 %vm3914_vm1, %v4942_v24  ;;  %v4614_v24 = vpack.c.bf16 %v4582_v40, %v4581_v28  ;;  %12773 = vst [vmem:[#allocation84_spill] sm:$0xff] %v10838_v13  ;;  %v12775_v28 = vld [vmem:[#allocation58_spill] sm:$0xff]  ;;  %v12777_v40 = vld [vmem:[#allocation57_spill] sm:$0xff]  ;;  %v10863_v10 = vmul.f32 %v10823_v26, %v12781_v56  ;;  %12783 = vst [vmem:[#allocation156_spill] sm:$0xff] %v10868_v19 }
 0x2ba   : > { %v10847_v11 = vmul.f32 %v4555_v57, %v12775_v28  ;;  %v10850_v42 = vmul.f32 %v4556_v9, %v12777_v40  ;;  %12780 = vst [vmem:[#allocation91_spill] sm:$0xff] %v10859_v2  ;;  %v4944_v15 = vpack.c.bf16 %v4913_v18, %v4912_v50  ;;  %v10874_v32 = vld [vmem:[#allocation3 + $0xa9] sm:$0xff]  ;;  %v4586_v22 = vmul.f32 %v10842_v51, %v12777_v40  ;;  %v10886_v50 = vld [vmem:[#allocation3 + $0xd1] sm:$0xff]  ;;  %v12785_v18 = vld [vmem:[#allocation82_spill] sm:$0xff] }
 0x2bb   : > { %12782 = vst [vmem:[#allocation155_spill] sm:$0xff] %v10863_v10  ;;  %v12789_v40 = vld [vmem:[#allocation68_spill] sm:$0xff]  ;;  %v12791_v2 = vld [vmem:[#allocation95_spill] sm:$0xff] }
 0x2bc   : > { %12776 = vst [vmem:[#allocation97_spill] sm:$0xff] %v10847_v11  ;;  %12778 = vst [vmem:[#allocation98_spill] sm:$0xff] %v10850_v42  ;;  %v4914_v11 = vmul.f32 %v10539_v21, %v12701_v59  ;;  %v10904_v42 = vld [vmem:[#allocation3 + $0xe9] sm:$0xff]  ;;  %v10914_v10 = vmul.f32 %v10876_v27, %v12791_v2  ;;  %v12792_v59 = vld [vmem:[#allocation110_spill] sm:$0xff] }
 0x2bd   : > { %7947 = vmatmul.mubr.msk.bf16.vlgmr.msra.gmra.mxu1 %vm3914_vm1, %v4614_v24  ;;  %v4585_v24 = vmul.f32 %v10833_v33, %v12775_v28  ;;  %v4587_v28 = vmul.f32 %v4555_v57, %v12789_v40  ;;  %v4917_v57 = vmul.f32 %v10596_v55, %v12703_v63  ;;  %v12794_v40 = vld [vmem:[#allocation109_spill] sm:$0xff]  ;;  %v12795_v55 = vld [vmem:[#allocation86_spill] sm:$0xff] }
 0x2be   : > { %8013 = vmatpush3.bf16.msra.mxu1 %v10486_v47  ;;  %7950 = vmatprep.mubr.msk.bf16.mxu1 %vm3914_vm1, %v4615_v36  ;;  %v4588_v47 = vmul.f32 %v4556_v9, %v12784_v23  ;;  %v10899_v9 = vmul.f32 %v10855_v49, %v12787_v8  ;;  %v10906_v36 = vld [vmem:[#allocation3 + $0xf1] sm:$0xff]  ;;  %v10923_v23 = vmul.f32 %v10884_v43, %v12792_v59  ;;  %v10935_v21 = vld [vmem:[#allocation3 + $0x59] sm:$0xff] }
 0x2bf   : > { %8080 = vmatprep.subr.bf16.mxu1 %v10838_v13  ;;  %v10927_v13 = vmul.f32 %v10886_v50, %v12794_v40  ;;  %v4616_v51 = vpack.c.bf16 %v4586_v22, %v4585_v24  ;;  %v4916_v63 = vmul.f32 %v12795_v55, %v12706_v54  ;;  %v10943_v22 = vmul.f32 %v10904_v42, %v12796_v30  ;;  %v12800_v54 = vld [vmem:[#allocation79_spill] sm:$0xff] }
 0x2c0   : > { %7981 = vmatmul.mubr.msk.bf16.vlgmr.msra.gmra.mxu0 %vm3914_vm1, %v4943_v17  ;;  %v10895_v17 = vmul.f32 %v10853_v4, %v12785_v18  ;;  %12788 = vst [vmem:[#allocation111_spill] sm:$0xff] %v10899_v9  ;;  %12793 = vst [vmem:[#allocation112_spill] sm:$0xff] %v10923_v23  ;;  %v4617_v33 = vpack.c.bf16 %v4588_v47, %v4587_v28  ;;  %v12798_v28 = vld [vmem:[#allocation129_spill] sm:$0xff]  ;;  %v4945_v24 = vpack.c.bf16 %v4915_v52, %v4914_v11  ;;  %v12801_v52 = vld [vmem:[#allocation64_spill] sm:$0xff] }
 0x2c1   : > { %7984 = vmatprep.mubr.msk.bf16.mxu0 %vm3914_vm1, %v4944_v15  ;;  %8047 = vmatpush3.bf16.msra.mxu0 %v10510_v1  ;;  %v12790_v15 = vld [vmem:[#allocation96_spill] sm:$0xff]  ;;  %12797 = vst [vmem:[#allocation159_spill] sm:$0xff] %v10943_v22  ;;  %v10947_v60 = vmul.f32 %v10906_v36, %v12798_v28  ;;  %v4946_v47 = vpack.c.bf16 %v4917_v57, %v4916_v63  ;;  %v12803_v57 = vld [vmem:[#allocation75_spill] sm:$0xff]  ;;  %v10971_v23 = vld [vmem:[#allocation3 + $0x79] sm:$0xff] }
 0x2c2   : > { %12786 = vst [vmem:[#allocation92_spill] sm:$0xff] %v10895_v17  ;;  %v10910_v1 = vmul.f32 %v10874_v32, %v12790_v15  ;;  %8114 = vmatprep.subr.bf16.mxu0 %v10868_v19  ;;  %v10937_v17 = vld [vmem:[#allocation3 + $0x61] sm:$0xff]  ;;  %v4589_v9 = vmul.f32 %v10935_v21, %v12779_v37  ;;  %v12802_v63 = vld [vmem:[#allocation80_spill] sm:$0xff]  ;;  %v12805_v37 = vld [vmem:[#allocation153_spill] sm:$0xff] }
 0x2c3   : > { %12799 = vst [vmem:[#allocation157_spill] sm:$0xff] %v10947_v60  ;;  %v4590_v19 = vmul.f32 %v10937_v17, %v12781_v56  ;;  %v4591_v11 = vmul.f32 %v10821_v0, %v12802_v63  ;;  %v4919_v22 = vmul.f32 %v12805_v37, %v12804_v3  ;;  %v12806_v56 = vld [vmem:[#allocation76_spill] sm:$0xff] }
 0x2c5   : > { %7951 = vmatmul.mubr.msk.bf16.gmra.mxu1 %vm3914_vm1, %v4616_v51  ;;  %v4592_v51 = vmul.f32 %v10823_v26, %v12800_v54  ;;  %v4618_v55 = vpack.c.bf16 %v4590_v19, %v4589_v9  ;;  %v10973_v26 = vld [vmem:[#allocation3 + $0x81] sm:$0xff]  ;;  %v4922_v9 = vmul.f32 %v10649_v6, %v12727_v46 }
 0x2c6   : > { %7954 = vmatprep.mubr.msk.bf16.mxu1 %vm3914_vm1, %v4617_v33  ;;  %v4918_v33 = vmul.f32 %v10598_v38, %v12801_v52  ;;  %v4594_v37 = vmul.f32 %v10973_v26, %v12787_v8  ;;  %v11001_v6 = vld [vmem:[#allocation3 + $0xa1] sm:$0xff] }
 0x2c7   : > { %v4619_v60 = vpack.c.bf16 %v4592_v51, %v4591_v11 }
 0x2c8   : > { %7985 = vmatmul.mubr.msk.bf16.gmra.mxu0 %vm3914_vm1, %v4945_v24  ;;  %v4921_v24 = vmul.f32 %v10647_v44, %v12803_v57  ;;  %v4947_v38 = vpack.c.bf16 %v4919_v22, %v4918_v33  ;;  %v4593_v44 = vmul.f32 %v10971_v23, %v12785_v18  ;;  %v10987_v22 = vld [vmem:[#allocation3 + $0x107] sm:$0xff]  ;;  %v12812_v18 = vld [vmem:[#allocation88_spill] sm:$0xff]  ;;  %v10999_v57 = vld [vmem:[#allocation3 + $0x99] sm:$0xff] }
 0x2c9   : > { %7988 = vmatprep.mubr.msk.bf16.mxu0 %vm3914_vm1, %v4946_v47  ;;  %v4920_v47 = vmul.f32 %v10623_v41, %v12806_v56  ;;  %v12807_v41 = vld [vmem:[#allocation93_spill] sm:$0xff]  ;;  %v12809_v33 = vld [vmem:[#allocation87_spill] sm:$0xff]  ;;  %v11005_v46 = vmul.f32 %v10987_v22, %v12752_v25 }
 0x2ca   : > { %v4596_v19 = vmul.f32 %v10855_v49, %v12807_v41  ;;  %v4925_v11 = vmul.f32 %v10692_v62, %v12809_v33  ;;  %v4924_v49 = vmul.f32 %v10673_v35, %v12812_v18  ;;  %v11033_v35 = vld [vmem:[#allocation3 + $0xb9] sm:$0xff] }
 0x2cb   : > { %v4948_v0 = vpack.c.bf16 %v4921_v24, %v4920_v47  ;;  %v4620_v24 = vpack.c.bf16 %v4594_v37, %v4593_v44  ;;  %v12810_v47 = vld [vmem:[#allocation77_spill] sm:$0xff]  ;;  %12813 = vst [vmem:[#allocation145_spill] sm:$0xff] %v11005_v46  ;;  %v4597_v37 = vmul.f32 %v10999_v57, %v12790_v15 }
 0x2cc   : > { %v4950_v44 = vpack.c.bf16 %v4925_v11, %v4924_v49  ;;  %v4927_v49 = vmul.f32 %v10682_v48, %v12737_v53  ;;  %v4601_v48 = vmul.f32 %v11033_v35, %v12792_v59  ;;  %v12823_v59 = vld [vmem:[#allocation116_spill] sm:$0xff]  ;;  %v12824_v15 = vld [vmem:[#allocation45_spill] sm:$0xff] }
 0x2cd   : > { %7955 = vmatmul.mubr.msk.bf16.gmra.mxu1 %vm3914_vm1, %v4618_v55  ;;  %v12808_v55 = vld [vmem:[#allocation94_spill] sm:$0xff]  ;;  %v4932_v46 = vmul.f32 %v12824_v15, %v12823_v59 }
 0x2ce   : > { %7958 = vmatprep.mubr.msk.bf16.mxu1 %vm3914_vm1, %v4619_v60  ;;  %v10989_v60 = vld [vmem:[#allocation3 + $0x10f] sm:$0xff]  ;;  %v4595_v51 = vmul.f32 %v10853_v4, %v12808_v55 }
 0x2cf   : > { %v11009_v4 = vmul.f32 %v10989_v60, %v12753_v58 }
 0x2d0   : > { %7989 = vmatmul.mubr.msk.bf16.gmra.mxu0 %vm3914_vm1, %v4947_v38  ;;  %v12811_v38 = vld [vmem:[#allocation40_spill] sm:$0xff]  ;;  %v4621_v8 = vpack.c.bf16 %v4596_v19, %v4595_v51  ;;  %v4598_v19 = vmul.f32 %v11001_v6, %v12791_v2  ;;  %v12815_v51 = vld [vmem:[#allocation107_spill] sm:$0xff] }
 0x2d1   : > { %7992 = vmatprep.mubr.msk.bf16.mxu0 %vm3914_vm1, %v4948_v0  ;;  %v4923_v0 = vmul.f32 %v12811_v38, %v12810_v47  ;;  %12814 = vst [vmem:[#allocation131_spill] sm:$0xff] %v11009_v4  ;;  %v4929_v38 = vmul.f32 %v10732_v12, %v12735_v16  ;;  %v11038_v2 = vld [vmem:[#allocation3 + $0x109] sm:$0xff]  ;;  %v11071_v4 = vld [vmem:[#allocation3 + $0xd9] sm:$0xff] }
 0x2d3   : > { %v4949_v62 = vpack.c.bf16 %v4923_v0, %v4922_v9  ;;  %v12816_v9 = vld [vmem:[#allocation108_spill] sm:$0xff]  ;;  %v4622_v0 = vpack.c.bf16 %v4598_v19, %v4597_v37  ;;  %v12817_v37 = vld [vmem:[#allocation125_spill] sm:$0xff] }
 0x2d4   : > { %v4599_v11 = vmul.f32 %v10874_v32, %v12816_v9  ;;  %v11040_v32 = vld [vmem:[#allocation3 + $0x111] sm:$0xff]  ;;  %v4604_v19 = vmul.f32 %v10886_v50, %v12817_v37 }
 0x2d5   : > { %7959 = vmatmul.mubr.msk.bf16.gmra.mxu1 %vm3914_vm1, %v4620_v24  ;;  %v4600_v24 = vmul.f32 %v10876_v27, %v12815_v51  ;;  %v11035_v27 = vld [vmem:[#allocation3 + $0xc1] sm:$0xff] }
 0x2d6   : > { %7962 = vmatprep.mubr.msk.bf16.mxu1 %vm3914_vm1, %v4621_v8  ;;  %v4926_v8 = vmul.f32 %v10694_v45, %v12734_v5 }
 0x2d8   : > { %7993 = vmatmul.mubr.msk.bf16.gmra.mxu0 %vm3914_vm1, %v4949_v62  ;;  %v4623_v62 = vpack.c.bf16 %v4600_v24, %v4599_v11  ;;  %v4951_v45 = vpack.c.bf16 %v4927_v49, %v4926_v8  ;;  %v12818_v24 = vld [vmem:[#allocation148_spill] sm:$0xff]  ;;  %v12820_v11 = vld [vmem:[#allocation147_spill] sm:$0xff]  ;;  %v12822_v49 = vld [vmem:[#allocation126_spill] sm:$0xff] }
 0x2d9   : > { %7996 = vmatprep.mubr.msk.bf16.mxu0 %vm3914_vm1, %v4950_v44  ;;  %v4928_v44 = vmul.f32 %v10718_v7, %v12738_v34  ;;  %v4602_v7 = vmul.f32 %v11035_v27, %v12794_v40  ;;  %v11053_v8 = vmul.f32 %v11038_v2, %v12818_v24  ;;  %v4608_v15 = vmul.f32 %v10906_v36, %v12820_v11  ;;  %v11097_v36 = vld [vmem:[#allocation3 + $0x101] sm:$0xff] }
 0x2db   : > { %v4952_v12 = vpack.c.bf16 %v4929_v38, %v4928_v44  ;;  %12819 = vst [vmem:[#allocation132_spill] sm:$0xff] %v11053_v8  ;;  %v11057_v38 = vmul.f32 %v11040_v32, %v12820_v11  ;;  %v4933_v44 = vmul.f32 %v10764_v14, %v12744_v39  ;;  %v12830_v8 = vld [vmem:[#allocation59_spill] sm:$0xff] }
 0x2dd   : > { %7963 = vmatmul.mubr.msk.bf16.gmra.mxu1 %vm3914_vm1, %v4622_v0  ;;  %12821 = vst [vmem:[#allocation146_spill] sm:$0xff] %v11057_v38  ;;  %v4930_v0 = vmul.f32 %v10734_v29, %v12740_v61  ;;  %v11073_v29 = vld [vmem:[#allocation3 + $0xe1] sm:$0xff]  ;;  %v4954_v14 = vpack.c.bf16 %v4933_v44, %v4932_v46  ;;  %v11095_v38 = vld [vmem:[#allocation3 + $0xf9] sm:$0xff] }
 0x2de   : > { %7966 = vmatprep.mubr.msk.bf16.mxu1 %vm3914_vm1, %v4623_v62  ;;  %v4603_v62 = vmul.f32 %v10884_v43, %v12822_v49  ;;  %v12827_v46 = vld [vmem:[#allocation99_spill] sm:$0xff] }
 0x2e0   : > { %7997 = vmatmul.mubr.msk.bf16.gmra.mxu0 %vm3914_vm1, %v4951_v45  ;;  %v4624_v45 = vpack.c.bf16 %v4602_v7, %v4601_v48  ;;  %v4625_v40 = vpack.c.bf16 %v4604_v19, %v4603_v62  ;;  %v4605_v48 = vmul.f32 %v11071_v4, %v12796_v30  ;;  %v12825_v7 = vld [vmem:[#allocation120_spill] sm:$0xff] }
 0x2e1   : > { %8000 = vmatprep.mubr.msk.bf16.mxu0 %vm3914_vm1, %v4952_v12  ;;  %v4931_v12 = vmul.f32 %v10726_v20, %v12742_v31  ;;  %v4606_v20 = vmul.f32 %v11073_v29, %v12798_v28  ;;  %v12826_v19 = vld [vmem:[#allocation56_spill] sm:$0xff]  ;;  %v12839_v28 = vld [vmem:[#allocation127_spill] sm:$0xff] }
 0x2e2   : > { %v4934_v62 = vmul.f32 %v12826_v19, %v12825_v7 }
 0x2e3   : > { %v4953_v43 = vpack.c.bf16 %v4931_v12, %v4930_v0  ;;  %v4937_v0 = vmul.f32 %v12827_v46, %v12753_v58  ;;  %v4626_v44 = vpack.c.bf16 %v4606_v20, %v4605_v48  ;;  %v12829_v12 = vld [vmem:[#allocation46_spill] sm:$0xff]  ;;  %v12831_v58 = vld [vmem:[#allocation151_spill] sm:$0xff] }
 0x2e4   : > { %v4609_v48 = vmul.f32 %v11095_v38, %v12831_v58  ;;  %v12832_v20 = vld [vmem:[#allocation150_spill] sm:$0xff] }
 0x2e5   : > { %7967 = vmatmul.mubr.msk.bf16.gmra.mxu1 %vm3914_vm1, %v4624_v45  ;;  %v12828_v45 = vld [vmem:[#allocation119_spill] sm:$0xff]  ;;  %v12835_v46 = vld [vmem:[#allocation70_spill] sm:$0xff] }
 0x2e6   : > { %7970 = vmatprep.mubr.msk.bf16.mxu1 %vm3914_vm1, %v4625_v40  ;;  %v4607_v40 = vmul.f32 %v10904_v42, %v12818_v24 }
 0x2e8   : > { %8001 = vmatmul.mubr.msk.bf16.gmra.mxu0 %vm3914_vm1, %v4953_v43  ;;  %v4935_v43 = vmul.f32 %v12829_v12, %v12828_v45  ;;  %v4627_v50 = vpack.c.bf16 %v4608_v15, %v4607_v40  ;;  %v4610_v15 = vmul.f32 %v11097_v36, %v12832_v20  ;;  %v12834_v40 = vld [vmem:[#allocation42_spill] sm:$0xff]  ;;  %v12837_v12 = vld [vmem:[#allocation139_spill] sm:$0xff] }
 0x2e9   : > { %8004 = vmatprep.mubr.msk.bf16.mxu0 %vm3914_vm1, %v4954_v14  ;;  %v4936_v14 = vmul.f32 %v12830_v8, %v12752_v25  ;;  %v12833_v25 = vld [vmem:[#allocation144_spill] sm:$0xff] }
 0x2ea   : > { %v4955_v19 = vpack.c.bf16 %v4935_v43, %v4934_v62  ;;  %v4938_v8 = vmul.f32 %v10987_v22, %v12833_v25  ;;  %v12836_v62 = vld [vmem:[#allocation41_spill] sm:$0xff]  ;;  %v12838_v43 = vld [vmem:[#allocation143_spill] sm:$0xff]  ;;  %v12840_v22 = vld [vmem:[#allocation54_spill] sm:$0xff] }
 0x2eb   : > { %v4956_v42 = vpack.c.bf16 %v4937_v0, %v4936_v14  ;;  %v4628_v0 = vpack.c.bf16 %v4610_v15, %v4609_v48  ;;  %v4939_v14 = vmul.f32 %v10989_v60, %v12838_v43  ;;  %v11127_v60 = vld [vmem:[%s11986_s8 + $0x40] sm:$0xff]  }
 0x2ec   : > { %v12844_v15 = vld [vmem:[#allocation124_spill] sm:$0xff] }
 0x2ed   : > { %7971 = vmatmul.mubr.msk.bf16.gmra.mxu1 %vm3914_vm1, %v4626_v44  ;;  %v5534_v44 = vmul.f32 %v12835_v46, %v12834_v40  ;;  %v12841_v46 = vld [vmem:[#allocation83_spill] sm:$0xff]  ;;  %v12842_v40 = vld [vmem:[#allocation53_spill] sm:$0xff] }
 0x2ee   : > { %7974 = vmatprep.mubr.msk.bf16.mxu1 %vm3914_vm1, %v4627_v50  ;;  %v5535_v50 = vmul.f32 %v12837_v12, %v12836_v62  ;;  %v5538_v30 = vmul.f32 %v12841_v46, %v12840_v22  ;;  %v12843_v12 = vld [vmem:[#allocation114_spill] sm:$0xff] }
 0x2ef   : > { %v5539_v48 = vmul.f32 %v12843_v12, %v12842_v40  ;;  %v12852_v12 = vld [vmem:[#allocation67_spill] sm:$0xff] }
 0x2f0   : > { %8005 = vmatmul.mubr.msk.bf16.gmra.mxu0 %vm3914_vm1, %v4955_v19  ;;  %v4957_v19 = vpack.c.bf16 %v4939_v14, %v4938_v8  ;;  %v12846_v8 = vld [vmem:[#allocation152_spill] sm:$0xff] }
 0x2f1   : > { %8008 = vmatprep.mubr.msk.bf16.mxu0 %vm3914_vm1, %v4956_v42  ;;  %v5568_v42 = vpack.c.bf16 %v5535_v50, %v5534_v44  ;;  %v5570_v44 = vpack.c.bf16 %v5539_v48, %v5538_v30  ;;  %v12847_v50 = vld [vmem:[#allocation73_spill] sm:$0xff]  ;;  %v12854_v30 = vld [vmem:[#allocation154_spill] sm:$0xff] }
 0x2f5   : > { %7975 = vmatmul.mubr.msk.bf16.gmra.mxu1 %vm3914_vm1, %v4628_v0  ;;  %v12848_v0 = vld [vmem:[#allocation69_spill] sm:$0xff] }
 0x2f6   : > { %8014 = vmatprep.mubr.msk.bf16.mxu1 %vm3914_vm1, %v12839_v28  ;;  %v12845_v28 = vld [vmem:[#allocation84_spill] sm:$0xff]  ;;  %v12849_v14 = vpack.c.bf16 %v12847_v50, %v12848_v0  ;;  %v12856_v50 = vld [vmem:[#allocation97_spill] sm:$0xff] }
 0x2f8   : > { %8009 = vmatmul.mubr.msk.bf16.gmra.mxu0 %vm3914_vm1, %v4957_v19  ;;  %v12850_v19 = vld [vmem:[#allocation156_spill] sm:$0xff] }
 0x2f9   : > { %8048 = vmatprep.mubr.msk.bf16.mxu0 %vm3914_vm1, %v5568_v42  ;;  %v12851_v42 = vld [vmem:[#allocation68_spill] sm:$0xff] }
 0x2fa   : > { %v5542_v46 = vmul.f32 %v10935_v21, %v12851_v42  ;;  %v5546_v21 = vmul.f32 %v10971_v23, %v12802_v63  ;;  %v5550_v23 = vmul.f32 %v10999_v57, %v12808_v55  ;;  %v5554_v57 = vmul.f32 %v11033_v35, %v12816_v9 }
 0x2fb   : > { %v5558_v35 = vmul.f32 %v11071_v4, %v12822_v49  ;;  %v5563_v4 = vmul.f32 %v11097_v36, %v12820_v11  ;;  %v5564_v11 = vmul.f32 %v11038_v2, %v12831_v58  ;;  %v5565_v36 = vmul.f32 %v11040_v32, %v12832_v20  ;;  %v12882_v32 = vld [vmem:[#allocation38_spill] sm:$0xff] }
 0x2fd   : > { %8015 = vmatmul.mubr.msk.bf16.vlgmr.msra.gmra.mxu1 %vm3914_vm1, %v12844_v15  ;;  %v5543_v15 = vmul.f32 %v10937_v17, %v12852_v12  ;;  %v5547_v17 = vmul.f32 %v10973_v26, %v12800_v54  ;;  %v5551_v26 = vmul.f32 %v11001_v6, %v12807_v41  ;;  %v5555_v6 = vmul.f32 %v11035_v27, %v12815_v51 }
 0x2fe   : > { %8081 = vmatpush3.bf16.msra.mxu1 %v12845_v28  ;;  %8018 = vmatprep.mubr.msk.bf16.mxu1 %vm3914_vm1, %v12846_v8  ;;  %v12853_v28 = vld [vmem:[#allocation85_spill] sm:$0xff]  ;;  %v12855_v8 = vld [vmem:[#allocation98_spill] sm:$0xff]  ;;  %v5559_v27 = vmul.f32 %v11073_v29, %v12817_v37  ;;  %v12875_v29 = vld [vmem:[#allocation55_spill] sm:$0xff] }
 0x2ff   : > { %8148 = vmatprep.subr.bf16.mxu1 %v11127_v60  ;;  %v5572_v48 = vpack.c.bf16 %v5543_v15, %v5542_v46  ;;  %v12857_v0 = vpack.c.bf16 %v12855_v8, %v12856_v50  ;;  %v12860_v46 = vld [vmem:[#allocation155_spill] sm:$0xff]  ;;  %v5576_v8 = vpack.c.bf16 %v5551_v26, %v5550_v23  ;;  %v12873_v23 = vld [vmem:[#allocation112_spill] sm:$0xff] }
 0x300   : > { %8049 = vmatmul.mubr.msk.bf16.vlgmr.msra.gmra.mxu0 %vm3914_vm1, %v12849_v14  ;;  %v12859_v14 = vld [vmem:[#allocation121_spill] sm:$0xff]  ;;  %v12861_v15 = vld [vmem:[#allocation91_spill] sm:$0xff] }
 0x301   : > { %8052 = vmatprep.mubr.msk.bf16.mxu0 %vm3914_vm1, %v5570_v44  ;;  %8115 = vmatpush3.bf16.msra.mxu0 %v12850_v19  ;;  %v12858_v44 = vld [vmem:[#allocation158_spill] sm:$0xff]  ;;  %v5574_v19 = vpack.c.bf16 %v5547_v17, %v5546_v21  ;;  %v12865_v50 = vld [vmem:[#allocation111_spill] sm:$0xff]  ;;  %v12868_v17 = vld [vmem:[#allocation141_spill] sm:$0xff] }
 0x302   : > { %v5831_v26 = vld [vmem:[#allocation3 + $0x27] sm:$0xff] }
 0x305   : > { %8019 = vmatmul.mubr.msk.bf16.gmra.mxu1 %vm3914_vm1, %v12853_v28  ;;  %v12862_v28 = vpack.c.bf16 %v12860_v46, %v12861_v15  ;;  %v12871_v46 = vld [vmem:[#allocation140_spill] sm:$0xff] }
 0x306   : > { %8022 = vmatprep.mubr.msk.bf16.mxu1 %vm3914_vm1, %v12854_v30  ;;  %v12863_v30 = vld [vmem:[#allocation133_spill] sm:$0xff]  ;;  %v12872_v15 = vld [vmem:[#allocation100_spill] sm:$0xff] }
 0x308   : > { %8053 = vmatmul.mubr.msk.bf16.gmra.mxu0 %vm3914_vm1, %v12857_v0  ;;  %v12866_v0 = vld [vmem:[#allocation92_spill] sm:$0xff] }
 0x309   : > { %8056 = vmatprep.mubr.msk.bf16.mxu0 %vm3914_vm1, %v5572_v48  ;;  %v12864_v48 = vld [vmem:[#allocation122_spill] sm:$0xff]  ;;  %v12867_v21 = vpack.c.bf16 %v12865_v50, %v12866_v0  ;;  %v5832_v0 = vld [vmem:[#allocation3 + $0x2f] sm:$0xff] }
 0x30d   : > { %8023 = vmatmul.mubr.msk.bf16.gmra.mxu1 %vm3914_vm1, %v12858_v44  ;;  %v12869_v44 = vld [vmem:[#allocation136_spill] sm:$0xff] }
 0x30e   : > { %8026 = vmatprep.mubr.msk.bf16.mxu1 %vm3914_vm1, %v12859_v14  ;;  %v5578_v14 = vpack.c.bf16 %v5555_v6, %v5554_v57  ;;  %v5235_v57 = vld [vmem:[#allocation3 + $0x108] sm:$0xff] }
 0x30f   : > { %v12881_v6 = vld [vmem:[#allocation39_spill] sm:$0xff] }
 0x310   : > { %8057 = vmatmul.mubr.msk.bf16.gmra.mxu0 %vm3914_vm1, %v12862_v28  ;;  %v5580_v28 = vpack.c.bf16 %v5559_v27, %v5558_v35  ;;  %v5834_v35 = vld [vmem:[#allocation3 + $0x3f] sm:$0xff]  ;;  %v5583_v27 = vpack.c.bf16 %v5565_v36, %v5564_v11  ;;  %v6164_v36 = vld [vmem:[#allocation3 + $0x48] sm:$0xff] }
 0x311   : > { %8060 = vmatprep.mubr.msk.bf16.mxu0 %vm3914_vm1, %v5574_v19  ;;  %v12870_v19 = vpack.c.bf16 %v10914_v10, %v10910_v1  ;;  %v12874_v10 = vpack.c.bf16 %v10927_v13, %v12873_v23  ;;  %v5562_v1 = vmul.f32 %v11095_v38, %v12818_v24  ;;  %v12878_v13 = vld [vmem:[#allocation159_spill] sm:$0xff]  ;;  %v5236_v24 = vld [vmem:[#allocation3 + $0x110] sm:$0xff]  ;;  %v5866_v23 = vmul.f32 %v5834_v35, %v12882_v32  ;;  %v12886_v35 = vld [vmem:[#allocation49_spill] sm:$0xff] }
 0x312   : > { %v12880_v38 = vld [vmem:[#allocation36_spill] sm:$0xff] }
 0x315   : > { %8027 = vmatmul.mubr.msk.bf16.gmra.mxu1 %vm3914_vm1, %v12863_v30  ;;  %v12876_v30 = vld [vmem:[#allocation60_spill] sm:$0xff] }
 0x316   : > { %8030 = vmatprep.mubr.msk.bf16.mxu1 %vm3914_vm1, %v12864_v48  ;;  %v5582_v48 = vpack.c.bf16 %v5563_v4, %v5562_v1  ;;  %v12883_v1 = vld [vmem:[#allocation48_spill] sm:$0xff] }
 0x318   : > { %8061 = vmatmul.mubr.msk.bf16.gmra.mxu0 %vm3914_vm1, %v12867_v21  ;;  %v5863_v21 = vmul.f32 %v5831_v26, %v12880_v38  ;;  %v5838_v38 = vld [vmem:[#allocation3 + $0x5f] sm:$0xff] }
 0x319   : > { %8064 = vmatprep.mubr.msk.bf16.mxu0 %vm3914_vm1, %v5576_v8  ;;  %v12877_v8 = vld [vmem:[#allocation157_spill] sm:$0xff] }
 0x31a   : > { %v12879_v50 = vpack.c.bf16 %v12877_v8, %v12878_v13  ;;  %v6163_v8 = vld [vmem:[#allocation3 + $0x40] sm:$0xff] }
 0x31d   : > { %8031 = vmatmul.mubr.msk.bf16.gmra.mxu1 %vm3914_vm1, %v12868_v17  ;;  %v5864_v17 = vmul.f32 %v5832_v0, %v12881_v6 }
 0x31e   : > { %8034 = vmatprep.mubr.msk.bf16.mxu1 %vm3914_vm1, %v12869_v44  ;;  %v11225_v44 = vpack.c.bf16 %v5236_v24, %v5235_v57  ;;  %v6162_v24 = vld [vmem:[#allocation3 + $0x38] sm:$0xff]  ;;  %v5839_v57 = vld [vmem:[#allocation3 + $0x67] sm:$0xff] }
 0x31f   : > { %v6195_v11 = vpack.c.bf16 %v6163_v8, %v6162_v24  ;;  %v6166_v24 = vld [vmem:[#allocation3 + $0x58] sm:$0xff] }
 0x320   : > { %8065 = vmatmul.mubr.msk.bf16.gmra.mxu0 %vm3914_vm1, %v12870_v19  ;;  %v5897_v19 = vpack.c.bf16 %v5864_v17, %v5863_v21  ;;  %v5837_v17 = vld [vmem:[#allocation3 + $0x57] sm:$0xff] }
 0x321   : > { %8068 = vmatprep.mubr.msk.bf16.mxu0 %vm3914_vm1, %v5578_v14  ;;  %v6161_v14 = vld [vmem:[#allocation3 + $0x30] sm:$0xff] }
 0x325   : > { %8035 = vmatmul.mubr.msk.bf16.gmra.mxu1 %vm3914_vm1, %v12871_v46  ;;  %v6160_v46 = vld [vmem:[#allocation3 + $0x28] sm:$0xff] }
 0x326   : > { %8038 = vmatprep.mubr.msk.bf16.mxu1 %vm3914_vm1, %v12872_v15  ;;  %v5835_v15 = vld [vmem:[#allocation3 + $0x47] sm:$0xff]  ;;  %v6194_v2 = vpack.c.bf16 %v6161_v14, %v6160_v46  ;;  %v5840_v46 = vld [vmem:[#allocation3 + $0x6f] sm:$0xff] }
 0x327   : > { %v5867_v4 = vmul.f32 %v5835_v15, %v12883_v1 }
 0x328   : > { %8069 = vmatmul.mubr.msk.bf16.gmra.mxu0 %vm3914_vm1, %v12874_v10  ;;  %v5836_v10 = vld [vmem:[#allocation3 + $0x4f] sm:$0xff] }
 0x329   : > { %8072 = vmatprep.mubr.msk.bf16.mxu0 %vm3914_vm1, %v5580_v28  ;;  %v5833_v28 = vld [vmem:[#allocation3 + $0x37] sm:$0xff] }
 0x32d   : > { %8039 = vmatmul.mubr.msk.bf16.gmra.mxu1 %vm3914_vm1, %v12875_v29  ;;  %v12884_v29 = vld [vmem:[#allocation35_spill] sm:$0xff] }
 0x32e   : > { %8042 = vmatprep.mubr.msk.bf16.mxu1 %vm3914_vm1, %v12876_v30  ;;  %v5865_v26 = vmul.f32 %v5833_v28, %v12884_v29  ;;  %v12885_v30 = vld [vmem:[#allocation47_spill] sm:$0xff] }
 0x330   : > { %8073 = vmatmul.mubr.msk.bf16.gmra.mxu0 %vm3914_vm1, %v12879_v50  ;;  %v5898_v13 = vpack.c.bf16 %v5866_v23, %v5865_v26  ;;  %v6165_v50 = vld [vmem:[#allocation3 + $0x50] sm:$0xff]  ;;  %v6167_v26 = vld [vmem:[#allocation3 + $0x60] sm:$0xff] }
 0x331   : > { %8076 = vmatprep.mubr.msk.bf16.mxu0 %vm3914_vm1, %v5582_v48  ;;  %v5868_v48 = vmul.f32 %v5836_v10, %v12885_v30  ;;  %v6196_v6 = vpack.c.bf16 %v6165_v50, %v6164_v36  ;;  %v6197_v36 = vpack.c.bf16 %v6167_v26, %v6166_v24 }
 0x333   : > { %v5899_v0 = vpack.c.bf16 %v5868_v48, %v5867_v4  ;;  %v12889_v4 = vld [vmem:[#allocation61_spill] sm:$0xff] }
 0x334   : > { %v5872_v29 = vmul.f32 %v5840_v46, %v12889_v4 }
 0x335   : > { %8043 = vmatmul.mubr.msk.bf16.gmra.mxu1 %vm3914_vm1, %v11225_v44 }
 0x336   : > { %8082 = vmatprep.mubr.msk.bf16.mxu1 %vm3914_vm1, %v5897_v19 }
 0x338   : > { %8077 = vmatmul.mubr.msk.bf16.gmra.mxu0 %vm3914_vm1, %v5583_v27  ;;  %v5870_v27 = vmul.f32 %v5838_v38, %v12886_v35  ;;  %v5842_v38 = vld [vmem:[#allocation3 + $0x7f] sm:$0xff] }
 0x339   : > { %8116 = vmatprep.mubr.msk.bf16.mxu0 %vm3914_vm1, %v6194_v2  ;;  %v12887_v2 = vld [vmem:[#allocation62_spill] sm:$0xff]  ;;  %v5874_v46 = vmul.f32 %v5842_v38, %v12804_v3  ;;  %v6173_v3 = vld [vmem:[#allocation3 + $0x90] sm:$0xff]  ;;  %v6170_v38 = vld [vmem:[#allocation3 + $0x78] sm:$0xff] }
 0x33a   : > { %v5871_v28 = vmul.f32 %v5839_v57, %v12887_v2  ;;  %v6168_v57 = vld [vmem:[#allocation3 + $0x68] sm:$0xff] }
 0x33b   : > { %v7880_v21 = vpop.f32.mrf.mxu1  ;;  %v5844_v2 = vld [vmem:[#allocation3 + $0x8f] sm:$0xff] }
 0x33d   : > { %8083 = vmatmul.mubr.msk.bf16.vlgmr.msra.gmra.mxu1 %vm3914_vm1, %v5898_v13  ;;  %v4205_v14 = vpop.f32.mrf.mxu1  ;;  %v7914_v19 = vpop.f32.mrf.mxu0  ;;  %v6169_v13 = vld [vmem:[#allocation3 + $0x70] sm:$0xff] }
 0x33e   : > { %8149 = vmatpush3.bf16.msra.mxu1 %v11127_v60  ;;  %8086 = vmatprep.mubr.msk.bf16.mxu1 %vm3914_vm1, %v5899_v0  ;;  %v11241_v15 = vadd.f32 %v7914_v19, %v7880_v21  ;;  %v12888_v60 = vld [vmem:[#allocation50_spill] sm:$0xff]  ;;  %v5901_v0 = vpack.c.bf16 %v5872_v29, %v5871_v28  ;;  %v5841_v19 = vld [vmem:[#allocation3 + $0x77] sm:$0xff]  ;;  %v12890_v29 = vld [vmem:[#allocation75_spill] sm:$0xff] }
 0x33f   : > { %v7881_v32 = vpop.f32.mrf.mxu1  ;;  %v4420_v23 = vpop.f32.mrf.mxu0  ;;  %v5869_v10 = vmul.f32 %v5837_v17, %v12888_v60  ;;  %v5876_v26 = vmul.f32 %v5844_v2, %v12890_v29  ;;  %v5848_v2 = vld [vmem:[#allocation3 + $0xaf] sm:$0xff]  ;;  %v12891_v29 = vld [vmem:[#allocation78_spill] sm:$0xff] }
 0x340   : > { %8117 = vmatmul.mubr.msk.bf16.vlgmr.msra.gmra.mxu0 %vm3914_vm1, %v6195_v11  ;;  %v11246_v1 = vadd.f32 %v4420_v23, %v4205_v14  ;;  %v6198_v14 = vpack.c.bf16 %v6169_v13, %v6168_v57  ;;  %v5847_v57 = vld [vmem:[#allocation3 + $0xa7] sm:$0xff] }
 0x341   : > { %8120 = vmatprep.mubr.msk.bf16.mxu0 %vm3914_vm1, %v6196_v6  ;;  %v4208_v30 = vpop.f32.mrf.mxu1  ;;  %v7915_v48 = vpop.f32.mrf.mxu0  ;;  %v5900_v8 = vpack.c.bf16 %v5870_v27, %v5869_v10  ;;  %v5843_v6 = vld [vmem:[#allocation3 + $0x87] sm:$0xff]  ;;  %v5873_v10 = vmul.f32 %v5841_v19, %v12801_v52  ;;  %v5845_v19 = vld [vmem:[#allocation3 + $0x97] sm:$0xff] }
 0x342   : > { %v11249_v50 = vadd.f32 %v7915_v48, %v7881_v32  ;;  %v5875_v32 = vmul.f32 %v5843_v6, %v12806_v56  ;;  %v6172_v52 = vld [vmem:[#allocation3 + $0x88] sm:$0xff] }
 0x343   : > { %v7884_v21 = vpop.f32.mrf.mxu1  ;;  %v4423_v11 = vpop.f32.mrf.mxu0  ;;  %v5902_v13 = vpack.c.bf16 %v5874_v46, %v5873_v10 }
 0x344   : > { %v11252_v17 = vadd.f32 %v4423_v11, %v4208_v30  ;;  %v6171_v30 = vld [vmem:[#allocation3 + $0x80] sm:$0xff]  ;;  %v5903_v24 = vpack.c.bf16 %v5876_v26, %v5875_v32  ;;  %v5877_v26 = vmul.f32 %v5845_v19, %v12891_v29 }
 0x345   : > { %8087 = vmatmul.mubr.msk.bf16.gmra.mxu1 %vm3914_vm1, %v5900_v8  ;;  %v4221_v35 = vpop.f32.mrf.mxu1 }
 0x346   : > { %8090 = vmatprep.mubr.msk.bf16.mxu1 %vm3914_vm1, %v5901_v0  ;;  %v7918_v27 = vpop.f32.mrf.mxu0 }
 0x347   : > { %v11257_v28 = vadd.f32 %v7918_v27, %v7884_v21  ;;  %v7885_v23 = vpop.f32.mrf.mxu1  ;;  %v5846_v21 = vld [vmem:[#allocation3 + $0x9f] sm:$0xff] }
 0x348   : > { %8121 = vmatmul.mubr.msk.bf16.gmra.mxu0 %vm3914_vm1, %v6197_v36  ;;  %v4436_v60 = vpop.f32.mrf.mxu0  ;;  %v6199_v36 = vpack.c.bf16 %v6171_v30, %v6170_v38  ;;  %v5878_v46 = vmul.f32 %v5846_v21, %v12810_v47  ;;  %v6177_v47 = vld [vmem:[#allocation3 + $0xb0] sm:$0xff] }
 0x349   : > { %8124 = vmatprep.mubr.msk.bf16.mxu0 %vm3914_vm1, %v6198_v14  ;;  %v11262_v4 = vadd.f32 %v4436_v60, %v4221_v35  ;;  %v4224_v48 = vpop.f32.mrf.mxu1  ;;  %v6200_v14 = vpack.c.bf16 %v6173_v3, %v6172_v52 }
 0x34a   : > { %v7919_v8 = vpop.f32.mrf.mxu0 }
 0x34b   : > { %v11265_v0 = vadd.f32 %v7919_v8, %v7885_v23  ;;  %v7888_v11 = vpop.f32.mrf.mxu1  ;;  %v5879_v23 = vmul.f32 %v5847_v57, %v12812_v18  ;;  %v6175_v8 = vld [vmem:[#allocation3 + $0xa0] sm:$0xff]  ;;  %v6176_v57 = vld [vmem:[#allocation3 + $0xa8] sm:$0xff] }
 0x34c   : > { %v4439_v56 = vpop.f32.mrf.mxu0 }
 0x34d   : > { %8091 = vmatmul.mubr.msk.bf16.gmra.mxu1 %vm3914_vm1, %v5902_v13  ;;  %v11268_v6 = vadd.f32 %v4439_v56, %v4224_v48  ;;  %v4237_v35 = vpop.f32.mrf.mxu1  ;;  %v5880_v48 = vmul.f32 %v5848_v2, %v12809_v33  ;;  %v5850_v56 = vld [vmem:[#allocation3 + $0xbf] sm:$0xff]  ;;  %v6202_v33 = vpack.c.bf16 %v6177_v47, %v6176_v57 }
 0x34e   : > { %8094 = vmatprep.mubr.msk.bf16.mxu1 %vm3914_vm1, %v5903_v24  ;;  %v7922_v27 = vpop.f32.mrf.mxu0  ;;  %v5904_v24 = vpack.c.bf16 %v5878_v46, %v5877_v26  ;;  %v5882_v2 = vmul.f32 %v5850_v56, %v12737_v53  ;;  %v6181_v53 = vld [vmem:[#allocation3 + $0xd0] sm:$0xff] }
 0x34f   : > { %v11273_v32 = vadd.f32 %v7922_v27, %v7888_v11  ;;  %v7889_v60 = vpop.f32.mrf.mxu1  ;;  %v5905_v21 = vpack.c.bf16 %v5880_v48, %v5879_v23  ;;  %v6174_v11 = vld [vmem:[#allocation3 + $0x98] sm:$0xff]  ;;  %v5852_v23 = vld [vmem:[#allocation3 + $0xcf] sm:$0xff] }
 0x350   : > { %8125 = vmatmul.mubr.msk.bf16.gmra.mxu0 %vm3914_vm1, %v6199_v36  ;;  %v4452_v10 = vpop.f32.mrf.mxu0  ;;  %v6201_v52 = vpack.c.bf16 %v6175_v8, %v6174_v11 }
 0x351   : > { %8128 = vmatprep.mubr.msk.bf16.mxu0 %vm3914_vm1, %v6200_v14  ;;  %v11278_v30 = vadd.f32 %v4452_v10, %v4237_v35  ;;  %v4240_v13 = vpop.f32.mrf.mxu1  ;;  %v5851_v14 = vld [vmem:[#allocation3 + $0xc7] sm:$0xff]  ;;  %v5849_v35 = vld [vmem:[#allocation3 + $0xb7] sm:$0xff] }
 0x352   : > { %v7923_v3 = vpop.f32.mrf.mxu0  ;;  %v5883_v10 = vmul.f32 %v5851_v14, %v12738_v34  ;;  %v5881_v48 = vmul.f32 %v5849_v35, %v12734_v5  ;;  %v6180_v5 = vld [vmem:[#allocation3 + $0xc8] sm:$0xff]  ;;  %v5853_v35 = vld [vmem:[#allocation3 + $0xd7] sm:$0xff] }
 0x353   : > { %v11281_v38 = vadd.f32 %v7923_v3, %v7889_v60  ;;  %v6179_v3 = vld [vmem:[#allocation3 + $0xc0] sm:$0xff] }
 0x354   : > { %v7892_v36 = vpop.f32.mrf.mxu1  ;;  %v4455_v18 = vpop.f32.mrf.mxu0  ;;  %v5855_v14 = vld [vmem:[#allocation3 + $0xe7] sm:$0xff] }
 0x355   : > { %8095 = vmatmul.mubr.msk.bf16.gmra.mxu1 %vm3914_vm1, %v5904_v24  ;;  %v11284_v19 = vadd.f32 %v4455_v18, %v4240_v13  ;;  %v5884_v13 = vmul.f32 %v5852_v23, %v12735_v16  ;;  %v5854_v18 = vld [vmem:[#allocation3 + $0xdf] sm:$0xff]  ;;  %v6204_v16 = vpack.c.bf16 %v6181_v53, %v6180_v5  ;;  %v5856_v23 = vld [vmem:[#allocation3 + $0xef] sm:$0xff] }
 0x356   : > { %8098 = vmatprep.mubr.msk.bf16.mxu1 %vm3914_vm1, %v5905_v21  ;;  %v4253_v27 = vpop.f32.mrf.mxu1  ;;  %v5906_v21 = vpack.c.bf16 %v5882_v2, %v5881_v48  ;;  %v5886_v2 = vmul.f32 %v5854_v18, %v12742_v31  ;;  %v6185_v31 = vld [vmem:[#allocation3 + $0xf0] sm:$0xff] }
 0x357   : > { %v7926_v46 = vpop.f32.mrf.mxu0  ;;  %v5907_v56 = vpack.c.bf16 %v5884_v13, %v5883_v10  ;;  %v5885_v13 = vmul.f32 %v5853_v35, %v12740_v61  ;;  %v6184_v61 = vld [vmem:[#allocation3 + $0xe8] sm:$0xff] }
 0x358   : > { %8129 = vmatmul.mubr.msk.bf16.gmra.mxu0 %vm3914_vm1, %v6201_v52  ;;  %v11289_v60 = vadd.f32 %v7926_v46, %v7892_v36  ;;  %v7893_v29 = vpop.f32.mrf.mxu1  ;;  %v6178_v36 = vld [vmem:[#allocation3 + $0xb8] sm:$0xff] }
 0x359   : > { %8132 = vmatprep.mubr.msk.bf16.mxu0 %vm3914_vm1, %v6202_v33  ;;  %v4468_v26 = vpop.f32.mrf.mxu0  ;;  %v6203_v57 = vpack.c.bf16 %v6179_v3, %v6178_v36 }
 0x35a   : > { %v11294_v8 = vadd.f32 %v4468_v26, %v4253_v27  ;;  %v4256_v24 = vpop.f32.mrf.mxu1 }
 0x35b   : > { %v7927_v47 = vpop.f32.mrf.mxu0 }
 0x35c   : > { %v11297_v11 = vadd.f32 %v7927_v47, %v7893_v29  ;;  %v5887_v29 = vmul.f32 %v5855_v14, %v12823_v59  ;;  %v6183_v47 = vld [vmem:[#allocation3 + $0xe0] sm:$0xff] }
 0x35d   : > { %v7896_v52 = vpop.f32.mrf.mxu1  ;;  %v4471_v34 = vpop.f32.mrf.mxu0  ;;  %8099 = vmatmul.mubr.msk.bf16.gmra.mxu1 %vm3914_vm1, %v5906_v21 }
 0x35e   : > { %v11300_v33 = vadd.f32 %v4471_v34, %v4256_v24  ;;  %8102 = vmatprep.mubr.msk.bf16.mxu1 %vm3914_vm1, %v5907_v56  ;;  %v5888_v24 = vmul.f32 %v5856_v23, %v12744_v39  ;;  %v5908_v56 = vpack.c.bf16 %v5886_v2, %v5885_v13  ;;  %v5858_v34 = vld [vmem:[#allocation3 + $0xff] sm:$0xff]  ;;  %v6206_v39 = vpack.c.bf16 %v6185_v31, %v6184_v61  ;;  %v5861_v31 = vld [vmem:[#allocation3 + $0x117] sm:$0xff] }
 0x35f   : > { %v4269_v27 = vpop.f32.mrf.mxu1  ;;  %v7930_v46 = vpop.f32.mrf.mxu0  ;;  %v6187_v13 = vld [vmem:[#allocation3 + $0x100] sm:$0xff] }
 0x360   : > { %8133 = vmatmul.mubr.msk.bf16.gmra.mxu0 %vm3914_vm1, %v6203_v57  ;;  %v11305_v10 = vadd.f32 %v7930_v46, %v7896_v52  ;;  %v5909_v18 = vpack.c.bf16 %v5888_v24, %v5887_v29  ;;  %v6182_v52 = vld [vmem:[#allocation3 + $0xd8] sm:$0xff]  ;;  %v5890_v46 = vmul.f32 %v5858_v34, %v12828_v45 }
 0x361   : > { %8136 = vmatprep.mubr.msk.bf16.mxu0 %vm3914_vm1, %v6204_v16  ;;  %v7897_v26 = vpop.f32.mrf.mxu1  ;;  %v4484_v48 = vpop.f32.mrf.mxu0  ;;  %v6205_v5 = vpack.c.bf16 %v6183_v47, %v6182_v52  ;;  %v5857_v16 = vld [vmem:[#allocation3 + $0xf7] sm:$0xff] }
 0x362   : > { %v11310_v3 = vadd.f32 %v4484_v48, %v4269_v27  ;;  %v6458_v34 = vld [vmem:[#allocation3 + $0x31] sm:$0xff] }
 0x363   : > { %v4272_v21 = vpop.f32.mrf.mxu1  ;;  %v7931_v53 = vpop.f32.mrf.mxu0 }
 0x364   : > { %v11313_v36 = vadd.f32 %v7931_v53, %v7897_v26  ;;  %v5889_v26 = vmul.f32 %v5857_v16, %v12825_v7  ;;  %v12892_v7 = vld [vmem:[#allocation131_spill] sm:$0xff] }
 0x365   : > { %v7900_v57 = vpop.f32.mrf.mxu1  ;;  %v4487_v59 = vpop.f32.mrf.mxu0  ;;  %8103 = vmatmul.mubr.msk.bf16.gmra.mxu1 %vm3914_vm1, %v5908_v56  ;;  %v6186_v56 = vld [vmem:[#allocation3 + $0xf8] sm:$0xff] }
 0x366   : > { %v11316_v14 = vadd.f32 %v4487_v59, %v4272_v21  ;;  %8106 = vmatprep.mubr.msk.bf16.mxu1 %vm3914_vm1, %v5909_v18  ;;  %v5910_v21 = vpack.c.bf16 %v5890_v46, %v5889_v26  ;;  %v6207_v52 = vpack.c.bf16 %v6187_v13, %v6186_v56  ;;  %v6191_v26 = vld [vmem:[#allocation3 + $0x120] sm:$0xff] }
 0x367   : > { %v4285_v35 = vpop.f32.mrf.mxu1  ;;  %v12895_v56 = vld [vmem:[#allocation42_spill] sm:$0xff] }
 0x368   : > { %v7934_v27 = vpop.f32.mrf.mxu0  ;;  %8137 = vmatmul.mubr.msk.bf16.gmra.mxu0 %vm3914_vm1, %v6205_v5  ;;  %v12893_v5 = vld [vmem:[#allocation145_spill] sm:$0xff] }
 0x369   : > { %v11321_v2 = vadd.f32 %v7934_v27, %v7900_v57  ;;  %8140 = vmatprep.mubr.msk.bf16.mxu0 %vm3914_vm1, %v6206_v39  ;;  %v7901_v23 = vpop.f32.mrf.mxu1  ;;  %v5862_v57 = vld [vmem:[#allocation3 + $0x11f] sm:$0xff]  ;;  %v12894_v61 = vpack.c.bf16 %v12892_v7, %v12893_v5  ;;  %v6457_v27 = vld [vmem:[#allocation3 + $0x29] sm:$0xff] }
 0x36a   : > { %v4500_v29 = vpop.f32.mrf.mxu0  ;;  %v5894_v13 = vmul.f32 %v5862_v57, %v12838_v43  ;;  %v6462_v43 = vld [vmem:[#allocation3 + $0x51] sm:$0xff] }
 0x36b   : > { %v11325_v48 = vadd.f32 %v4500_v29, %v4285_v35  ;;  %v4288_v24 = vpop.f32.mrf.mxu1  ;;  %v5893_v35 = vmul.f32 %v5861_v31, %v12833_v25  ;;  %v6190_v29 = vld [vmem:[#allocation3 + $0x118] sm:$0xff] }
 0x36c   : > { %v7935_v47 = vpop.f32.mrf.mxu0 }
 0x36d   : > { %v11327_v53 = vadd.f32 %v7935_v47, %v7901_v23  ;;  %v7904_v18 = vpop.f32.mrf.mxu1  ;;  %8107 = vmatmul.mubr.msk.bf16.gmra.mxu1 %vm3914_vm1, %v5910_v21  ;;  %v6490_v23 = vmul.f32 %v6458_v34, %v12836_v62  ;;  %v5912_v31 = vpack.c.bf16 %v5894_v13, %v5893_v35  ;;  %v12896_v35 = vld [vmem:[#allocation44_spill] sm:$0xff] }
 0x36e   : > { %v4503_v45 = vpop.f32.mrf.mxu0  ;;  %8110 = vmatprep.mubr.msk.bf16.mxu1 %vm3914_vm1, %v12894_v61  ;;  %v6460_v61 = vld [vmem:[#allocation3 + $0x41] sm:$0xff] }
 0x36f   : > { %v11330_v59 = vadd.f32 %v4503_v45, %v4288_v24  ;;  %v4301_v39 = vpop.f32.mrf.mxu1  ;;  %v6489_v45 = vmul.f32 %v6457_v27, %v12895_v56 }
 0x370   : > { %v7938_v16 = vpop.f32.mrf.mxu0  ;;  %8141 = vmatmul.mubr.msk.bf16.gmra.mxu0 %vm3914_vm1, %v6207_v52 }
 0x371   : > { %v11338_v46 = vadd.f32 %v7938_v16, %v7904_v18  ;;  %8144 = vmatprep.mubr.msk.bf16.mxu0 %vm3914_vm1, %v11225_v44  ;;  %v7905_v24 = vpop.f32.mrf.mxu1  ;;  %v6209_v18 = vpack.c.bf16 %v6191_v26, %v6190_v29  ;;  %v6523_v5 = vpack.c.bf16 %v6490_v23, %v6489_v45  ;;  %v6459_v44 = vld [vmem:[#allocation3 + $0x39] sm:$0xff]  ;;  %v12897_v29 = vld [vmem:[#allocation43_spill] sm:$0xff] }
 0x372   : > { %v4516_v47 = vpop.f32.mrf.mxu0  ;;  %v6491_v27 = vmul.f32 %v6459_v44, %v12896_v35  ;;  %v6492_v26 = vmul.f32 %v6460_v61, %v12897_v29  ;;  %v6461_v23 = vld [vmem:[#allocation3 + $0x49] sm:$0xff]  ;;  %v6463_v44 = vld [vmem:[#allocation3 + $0x59] sm:$0xff]  ;;  %v6464_v35 = vld [vmem:[#allocation3 + $0x61] sm:$0xff] }
 0x373   : > { %v11344_v21 = vadd.f32 %v4516_v47, %v4301_v39  ;;  %v4304_v52 = vpop.f32.mrf.mxu1 }
 0x374   : > { %v7939_v25 = vpop.f32.mrf.mxu0 }
 0x375   : > { %v11347_v7 = vadd.f32 %v7939_v25, %v7905_v24  ;;  %v7908_v62 = vpop.f32.mrf.mxu1  ;;  %8111 = vmatmul.mubr.msk.bf16.gmra.mxu1 %vm3914_vm1, %v5912_v31  ;;  %v6494_v24 = vmul.f32 %v6462_v43, %v12842_v40 }
 0x376   : > { %v4519_v34 = vpop.f32.mrf.mxu0  ;;  %8150 = vmatprep.mubr.msk.bf16.mxu1 %vm3914_vm1, %v6523_v5  ;;  %v6524_v5 = vpack.c.bf16 %v6492_v26, %v6491_v27  ;;  %v12899_v26 = vld [vmem:[#allocation57_spill] sm:$0xff] }
 0x377   : > { %v11350_v57 = vadd.f32 %v4519_v34, %v4304_v52  ;;  %v4317_v39 = vpop.f32.mrf.mxu1  ;;  %v6493_v52 = vmul.f32 %v6461_v23, %v12840_v22  ;;  %v6496_v23 = vmul.f32 %v6464_v35, %v12899_v26 }
 0x378   : > { %v7942_v16 = vpop.f32.mrf.mxu0  ;;  %8145 = vmatmul.mubr.msk.bf16.gmra.mxu0 %vm3914_vm1, %v6209_v18 }
 0x379   : > { %v11356_v13 = vadd.f32 %v7942_v16, %v7908_v62  ;;  %v7909_v47 = vpop.f32.mrf.mxu1  ;;  %v6525_v18 = vpack.c.bf16 %v6494_v24, %v6493_v52  ;;  %v6466_v62 = vld [vmem:[#allocation3 + $0x71] sm:$0xff]  ;;  %v12898_v16 = vld [vmem:[#allocation58_spill] sm:$0xff]  ;;  %v6465_v24 = vld [vmem:[#allocation3 + $0x69] sm:$0xff] }
 0x37a   : > { %v4532_v56 = vpop.f32.mrf.mxu0  ;;  %v6495_v27 = vmul.f32 %v6463_v44, %v12898_v16  ;;  %v6498_v52 = vmul.f32 %v6466_v62, %v12852_v12  ;;  %v6470_v62 = vld [vmem:[#allocation3 + $0x91] sm:$0xff] }
 0x37b   : > { %v11359_v45 = vadd.f32 %v4532_v56, %v4317_v39  ;;  %v4320_v25 = vpop.f32.mrf.mxu1 }
 0x37c   : > { %v7943_v31 = vpop.f32.mrf.mxu0  ;;  %v6526_v44 = vpack.c.bf16 %v6496_v23, %v6495_v27  ;;  %v12900_v23 = vld [vmem:[#allocation72_spill] sm:$0xff] }
 0x37d   : > { %v11362_v34 = vadd.f32 %v7943_v31, %v7909_v47  ;;  %v7948_v29 = vpop.f32.mrf.mxu1  ;;  %8151 = vmatmul.mubr.msk.bf16.vlgmr.msra.gmra.mxu1 %vm3914_vm1, %v6524_v5 }
 0x37e   : > { %v4535_v61 = vpop.f32.mrf.mxu0  ;;  %v4846_v43 = vadd.f32 %v7948_v29, %v11241_v15  ;;  %8154 = vmatprep.mubr.msk.bf16.mxu1 %vm3914_vm1, %v6525_v18  ;;  %v6497_v18 = vmul.f32 %v6465_v24, %v12851_v42  ;;  %v12901_v24 = vld [vmem:[#allocation71_spill] sm:$0xff] }
 0x37f   : > { %v11365_v40 = vadd.f32 %v4535_v61, %v4320_v25  ;;  %v4717_v22 = vpop.f32.mrf.mxu1 }
 0x380   : > { %v7982_v39 = vpop.f32.mrf.mxu0  ;;  %v4844_v47 = vadd.f32 %v4717_v22, %v11246_v1  ;;  %v6527_v1 = vpack.c.bf16 %v6498_v52, %v6497_v18  ;;  %v6468_v22 = vld [vmem:[#allocation3 + $0x81] sm:$0xff]  ;;  %v6469_v52 = vld [vmem:[#allocation3 + $0x89] sm:$0xff] }
 0x381   : > { %v11372_v56 = vadd.f32 %v7982_v39, %v4846_v43  ;;  %v7949_v31 = vpop.f32.mrf.mxu1  ;;  %v6467_v43 = vld [vmem:[#allocation3 + $0x79] sm:$0xff] }
 0x382   : > { %v5046_v25 = vpop.f32.mrf.mxu0  ;;  %v4847_v5 = vadd.f32 %v7949_v31, %v11249_v50 }
 0x383   : > { %v11376_v15 = vadd.f32 %v5046_v25, %v4844_v47  ;;  %v4720_v61 = vpop.f32.mrf.mxu1  ;;  %v6500_v47 = vmul.f32 %v6468_v22, %v12901_v24  ;;  %v12903_v24 = vld [vmem:[#allocation81_spill] sm:$0xff] }
 0x384   : > { %v7983_v29 = vpop.f32.mrf.mxu0  ;;  %v4845_v35 = vadd.f32 %v4720_v61, %v11252_v17  ;;  %v6499_v17 = vmul.f32 %v6467_v43, %v12900_v23 }
 0x385   : > { %v11380_v16 = vadd.f32 %v7983_v29, %v4847_v5  ;;  %v7952_v39 = vpop.f32.mrf.mxu1  ;;  %8155 = vmatmul.mubr.msk.bf16.gmra.mxu1 %vm3914_vm1, %v6526_v44  ;;  %v6502_v5 = vmul.f32 %v6470_v62, %v12800_v54  ;;  %v6501_v44 = vmul.f32 %v6469_v52, %v12802_v63  ;;  %v6474_v62 = vld [vmem:[#allocation3 + $0xb1] sm:$0xff]  ;;  %v6473_v52 = vld [vmem:[#allocation3 + $0xa9] sm:$0xff] }
 0x386   : > { %v5049_v12 = vpop.f32.mrf.mxu0  ;;  %v4850_v50 = vadd.f32 %v7952_v39, %v11257_v28  ;;  %8158 = vmatprep.mubr.msk.bf16.mxu1 %vm3914_vm1, %v6527_v1  ;;  %v6528_v43 = vpack.c.bf16 %v6500_v47, %v6499_v17  ;;  %v12902_v17 = vld [vmem:[#allocation82_spill] sm:$0xff] }
 0x387   : > { %v11384_v26 = vadd.f32 %v5049_v12, %v4845_v35  ;;  %v4733_v42 = vpop.f32.mrf.mxu1  ;;  %v6471_v12 = vld [vmem:[#allocation3 + $0x99] sm:$0xff] }
 0x388   : > { %v7986_v27 = vpop.f32.mrf.mxu0  ;;  %v4848_v31 = vadd.f32 %v4733_v42, %v11262_v4  ;;  %v6529_v4 = vpack.c.bf16 %v6502_v5, %v6501_v44 }
 0x389   : > { %v11390_v25 = vadd.f32 %v7986_v27, %v4850_v50  ;;  %v7953_v18 = vpop.f32.mrf.mxu1  ;;  %v6472_v50 = vld [vmem:[#allocation3 + $0xa1] sm:$0xff] }
 0x38a   : > { %v5062_v61 = vpop.f32.mrf.mxu0  ;;  %v4851_v28 = vadd.f32 %v7953_v18, %v11265_v0  ;;  %v6504_v47 = vmul.f32 %v6472_v50, %v12903_v24  ;;  %v6506_v18 = vmul.f32 %v6474_v62, %v12807_v41  ;;  %v6475_v50 = vld [vmem:[#allocation3 + $0xb9] sm:$0xff]  ;;  %v6478_v62 = vld [vmem:[#allocation3 + $0xd1] sm:$0xff]  ;;  %v6477_v24 = vld [vmem:[#allocation3 + $0xc9] sm:$0xff] }
 0x38b   : > { %v11394_v29 = vadd.f32 %v5062_v61, %v4848_v31  ;;  %v4736_v35 = vpop.f32.mrf.mxu1 }
 0x38c   : > { %v7987_v1 = vpop.f32.mrf.mxu0  ;;  %v4849_v22 = vadd.f32 %v4736_v35, %v11268_v6  ;;  %v6503_v6 = vmul.f32 %v6471_v12, %v12902_v17  ;;  %v6505_v35 = vmul.f32 %v6473_v52, %v12808_v55  ;;  %v12905_v17 = vld [vmem:[#allocation95_spill] sm:$0xff] }
 0x38d   : > { %v11398_v39 = vadd.f32 %v7987_v1, %v4851_v28  ;;  %v7956_v42 = vpop.f32.mrf.mxu1  ;;  %8159 = vmatmul.mubr.msk.bf16.gmra.mxu1 %vm3914_vm1, %v6528_v43 }
 0x38e   : > { %v5065_v54 = vpop.f32.mrf.mxu0  ;;  %v4854_v0 = vadd.f32 %v7956_v42, %v11273_v32  ;;  %8162 = vmatprep.mubr.msk.bf16.mxu1 %vm3914_vm1, %v6529_v4  ;;  %v6476_v42 = vld [vmem:[#allocation3 + $0xc1] sm:$0xff] }
 0x38f   : > { %v11402_v27 = vadd.f32 %v5065_v54, %v4849_v22  ;;  %v4749_v63 = vpop.f32.mrf.mxu1  ;;  %v6530_v22 = vpack.c.bf16 %v6504_v47, %v6503_v6  ;;  %v6508_v6 = vmul.f32 %v6476_v42, %v12905_v17 }
 0x390   : > { %v7990_v23 = vpop.f32.mrf.mxu0  ;;  %v4852_v31 = vadd.f32 %v4749_v63, %v11278_v30  ;;  %v6531_v30 = vpack.c.bf16 %v6506_v18, %v6505_v35 }
 0x391   : > { %v11408_v5 = vadd.f32 %v7990_v23, %v4854_v0  ;;  %v7957_v61 = vpop.f32.mrf.mxu1  ;;  %v12904_v23 = vld [vmem:[#allocation96_spill] sm:$0xff] }
 0x392   : > { %v5078_v28 = vpop.f32.mrf.mxu0  ;;  %v4855_v32 = vadd.f32 %v7957_v61, %v11281_v38 }
 0x393   : > { %v11412_v44 = vadd.f32 %v5078_v28, %v4852_v31  ;;  %v4752_v1 = vpop.f32.mrf.mxu1  ;;  %v6510_v31 = vmul.f32 %v6478_v62, %v12815_v51 }
 0x394   : > { %v7991_v43 = vpop.f32.mrf.mxu0  ;;  %v4853_v4 = vadd.f32 %v4752_v1, %v11284_v19  ;;  %v6507_v19 = vmul.f32 %v6475_v50, %v12904_v23  ;;  %v6480_v50 = vld [vmem:[#allocation3 + $0xe1] sm:$0xff]  ;;  %v6481_v23 = vld [vmem:[#allocation3 + $0xe9] sm:$0xff] }
 0x395   : > { %v11416_v12 = vadd.f32 %v7991_v43, %v4855_v32  ;;  %v7960_v54 = vpop.f32.mrf.mxu1  ;;  %8163 = vmatmul.mubr.msk.bf16.gmra.mxu1 %vm3914_vm1, %v6530_v22  ;;  %v6509_v32 = vmul.f32 %v6477_v24, %v12816_v9 }
 0x396   : > { %v5081_v41 = vpop.f32.mrf.mxu0  ;;  %v4858_v38 = vadd.f32 %v7960_v54, %v11289_v60  ;;  %8166 = vmatprep.mubr.msk.bf16.mxu1 %vm3914_vm1, %v6531_v30  ;;  %v6532_v43 = vpack.c.bf16 %v6508_v6, %v6507_v19  ;;  %v6479_v30 = vld [vmem:[#allocation3 + $0xd9] sm:$0xff]  ;;  %v6482_v54 = vld [vmem:[#allocation3 + $0xf1] sm:$0xff] }
 0x397   : > { %v11420_v0 = vadd.f32 %v5081_v41, %v4853_v4  ;;  %v4765_v55 = vpop.f32.mrf.mxu1  ;;  %v6514_v6 = vmul.f32 %v6482_v54, %v12817_v37 }
 0x398   : > { %v7994_v63 = vpop.f32.mrf.mxu0  ;;  %v4856_v47 = vadd.f32 %v4765_v55, %v11294_v8  ;;  %v6533_v8 = vpack.c.bf16 %v6510_v31, %v6509_v32  ;;  %v12907_v55 = vld [vmem:[#allocation109_spill] sm:$0xff] }
 0x399   : > { %v11426_v52 = vadd.f32 %v7994_v63, %v4858_v38  ;;  %v7961_v18 = vpop.f32.mrf.mxu1  ;;  %v12906_v38 = vld [vmem:[#allocation110_spill] sm:$0xff]  ;;  %v6512_v63 = vmul.f32 %v6480_v50, %v12907_v55 }
 0x39a   : > { %v5094_v61 = vpop.f32.mrf.mxu0  ;;  %v4859_v60 = vadd.f32 %v7961_v18, %v11297_v11  ;;  %v6513_v18 = vmul.f32 %v6481_v23, %v12822_v49 }
 0x39b   : > { %v11430_v28 = vadd.f32 %v5094_v61, %v4856_v47  ;;  %v4768_v35 = vpop.f32.mrf.mxu1 }
 0x39c   : > { %v7995_v1 = vpop.f32.mrf.mxu0  ;;  %v4857_v22 = vadd.f32 %v4768_v35, %v11300_v33  ;;  %v6511_v33 = vmul.f32 %v6479_v30, %v12906_v38 }
 0x39d   : > { %v11434_v4 = vadd.f32 %v7995_v1, %v4859_v60  ;;  %v7964_v42 = vpop.f32.mrf.mxu1  ;;  %8167 = vmatmul.mubr.msk.bf16.gmra.mxu1 %vm3914_vm1, %v6532_v43  ;;  %v6483_v43 = vld [vmem:[#allocation3 + $0xf9] sm:$0xff] }
 0x39e   : > { %v5097_v51 = vpop.f32.mrf.mxu0  ;;  %v4862_v11 = vadd.f32 %v7964_v42, %v11305_v10  ;;  %8170 = vmatprep.mubr.msk.bf16.mxu1 %vm3914_vm1, %v6533_v8  ;;  %v6534_v32 = vpack.c.bf16 %v6512_v63, %v6511_v33  ;;  %v12908_v42 = vld [vmem:[#allocation130_spill] sm:$0xff] }
 0x39f   : > { %v11438_v41 = vadd.f32 %v5097_v51, %v4857_v22  ;;  %v4781_v9 = vpop.f32.mrf.mxu1  ;;  %v6484_v22 = vld [vmem:[#allocation3 + $0x101] sm:$0xff]  ;;  %v6515_v51 = vmul.f32 %v6483_v43, %v12908_v42 }
 0x3a0   : > { %v7998_v62 = vpop.f32.mrf.mxu0  ;;  %v4860_v19 = vadd.f32 %v4781_v9, %v11310_v3  ;;  %v6535_v3 = vpack.c.bf16 %v6514_v6, %v6513_v18  ;;  %v6487_v6 = vld [vmem:[#allocation3 + $0x119] sm:$0xff] }
 0x3a1   : > { %v11444_v17 = vadd.f32 %v7998_v62, %v4862_v11  ;;  %v7965_v24 = vpop.f32.mrf.mxu1 }
 0x3a2   : > { %v5110_v47 = vpop.f32.mrf.mxu0  ;;  %v4863_v10 = vadd.f32 %v7965_v24, %v11313_v36 }
 0x3a3   : > { %v11448_v31 = vadd.f32 %v5110_v47, %v4860_v19  ;;  %v4784_v61 = vpop.f32.mrf.mxu1  ;;  %v6488_v19 = vld [vmem:[#allocation3 + $0x121] sm:$0xff] }
 0x3a4   : > { %v7999_v60 = vpop.f32.mrf.mxu0  ;;  %v4861_v35 = vadd.f32 %v4784_v61, %v11316_v14  ;;  %v12909_v14 = vld [vmem:[#allocation129_spill] sm:$0xff] }
 0x3a5   : > { %v11452_v1 = vadd.f32 %v7999_v60, %v4863_v10  ;;  %v7968_v8 = vpop.f32.mrf.mxu1  ;;  %8171 = vmatmul.mubr.msk.bf16.gmra.mxu1 %vm3914_vm1, %v6534_v32  ;;  %v6516_v54 = vmul.f32 %v6484_v22, %v12909_v14  ;;  %v12911_v60 = vld [vmem:[#allocation132_spill] sm:$0xff] }
 0x3a6   : > { %v5113_v37 = vpop.f32.mrf.mxu0  ;;  %v4866_v36 = vadd.f32 %v7968_v8, %v11321_v2  ;;  %8174 = vmatprep.mubr.msk.bf16.mxu1 %vm3914_vm1, %v6535_v3  ;;  %v6519_v3 = vmul.f32 %v6487_v6, %v12831_v58 }
 0x3a7   : > { %v11456_v30 = vadd.f32 %v5113_v37, %v4861_v35  ;;  %v4797_v49 = vpop.f32.mrf.mxu1  ;;  %v6536_v23 = vpack.c.bf16 %v6516_v54, %v6515_v51  ;;  %v6520_v35 = vmul.f32 %v6488_v19, %v12832_v20 }
 0x3a8   : > { %v8002_v50 = vpop.f32.mrf.mxu0  ;;  %v4864_v11 = vadd.f32 %v4797_v49, %v11325_v48 }
 0x3a9   : > { %v11462_v9 = vadd.f32 %v8002_v50, %v4866_v36  ;;  %v7969_v62 = vpop.f32.mrf.mxu1  ;;  %v6538_v50 = vpack.c.bf16 %v6520_v35, %v6519_v3 }
 0x3aa   : > { %v5126_v38 = vpop.f32.mrf.mxu0  ;;  %v4867_v33 = vadd.f32 %v7969_v62, %v11327_v53  ;;  %v12910_v53 = vld [vmem:[#allocation146_spill] sm:$0xff] }
 0x3ab   : > { %v11465_v55 = vadd.f32 %v5126_v38, %v4864_v11  ;;  %v4800_v2 = vpop.f32.mrf.mxu1  ;;  %v12912_v32 = vpack.c.bf16 %v12910_v53, %v12911_v60 }
 0x3ac   : > { %v8003_v63 = vpop.f32.mrf.mxu0  ;;  %v4865_v24 = vadd.f32 %v4800_v2, %v11330_v59 }
 0x3ad   : > { %v11468_v47 = vadd.f32 %v8003_v63, %v4867_v33  ;;  %v7972_v10 = vpop.f32.mrf.mxu1  ;;  %8175 = vmatmul.mubr.msk.bf16.gmra.mxu1 %vm3914_vm1, %v6536_v23 }
 0x3ae   : > { %v5129_v18 = vpop.f32.mrf.mxu0  ;;  %v4870_v48 = vadd.f32 %v7972_v10, %v11338_v46  ;;  %8178 = vmatprep.mubr.msk.bf16.mxu1 %vm3914_vm1, %v12912_v32 }
 0x3af   : > { %v11472_v61 = vadd.f32 %v5129_v18, %v4865_v24  ;;  %v4813_v59 = vpop.f32.mrf.mxu1 }
 0x3b0   : > { %v8006_v43 = vpop.f32.mrf.mxu0  ;;  %v4868_v22 = vadd.f32 %v4813_v59, %v11344_v21 }
 0x3b1   : > { %v11481_v8 = vadd.f32 %v8006_v43, %v4870_v48  ;;  %v7973_v37 = vpop.f32.mrf.mxu1 }
 0x3b2   : > { %v5142_v36 = vpop.f32.mrf.mxu0  ;;  %v4871_v46 = vadd.f32 %v7973_v37, %v11347_v7 }
 0x3b3   : > { %v11484_v49 = vadd.f32 %v5142_v36, %v4868_v22  ;;  %v4816_v42 = vpop.f32.mrf.mxu1 }
 0x3b4   : > { %v8007_v51 = vpop.f32.mrf.mxu0  ;;  %v4869_v14 = vadd.f32 %v4816_v42, %v11350_v57 }
 0x3b5   : > { %v11487_v20 = vadd.f32 %v8007_v51, %v4871_v46  ;;  %v7976_v58 = vpop.f32.mrf.mxu1  ;;  %8179 = vmatmul.mubr.msk.bf16.gmra.mxu1 %vm3914_vm1, %v6538_v50 }
 0x3b6   : > { %v5145_v54 = vpop.f32.mrf.mxu0  ;;  %v4874_v21 = vadd.f32 %v7976_v58, %v11356_v13 }
 0x3b7   : > { %v11491_v11 = vadd.f32 %v5145_v54, %v4869_v14  ;;  %v4829_v62 = vpop.f32.mrf.mxu1 }
 0x3b8   : > { %v8010_v38 = vpop.f32.mrf.mxu0  ;;  %v4872_v7 = vadd.f32 %v4829_v62, %v11359_v45 }
 0x3b9   : > { %v11494_v33 = vadd.f32 %v8010_v38, %v4874_v21  ;;  %v7977_v2 = vpop.f32.mrf.mxu1 }
 0x3ba   : > { %v5158_v63 = vpop.f32.mrf.mxu0  ;;  %v4875_v57 = vadd.f32 %v7977_v2, %v11362_v34 }
 0x3bb   : > { %v11497_v23 = vadd.f32 %v5158_v63, %v4872_v7  ;;  %v4832_v19 = vpop.f32.mrf.mxu1 }
 0x3bc   : > { %v8011_v6 = vpop.f32.mrf.mxu0  ;;  %v4873_v24 = vadd.f32 %v4832_v19, %v11365_v40 }
 0x3bd   : > { %v11500_v10 = vadd.f32 %v8011_v6, %v4875_v57  ;;  %v8016_v18 = vpop.f32.mrf.mxu1 }
 0x3be   : > { %v5161_v13 = vpop.f32.mrf.mxu0  ;;  %v11505_v45 = vadd.f32 %v8016_v18, %v11372_v56 }
 0x3bf   : > { %v11502_v48 = vadd.f32 %v5161_v13, %v4873_v24  ;;  %v5343_v53 = vpop.f32.mrf.mxu1 }
 0x3c0   : > { %v11507_v60 = vpop.f32.mrf.mxu0  ;;  %v11510_v34 = vadd.f32 %v5343_v53, %v11376_v15 }
 0x3c1   : > { %v8017_v32 = vpop.f32.mrf.mxu1 }
 0x3c2   : > { %v11512_v35 = vpop.f32.mrf.mxu0  ;;  %v11515_v40 = vadd.f32 %v8017_v32, %v11380_v16 }
 0x3c3   : > { %v5346_v3 = vpop.f32.mrf.mxu1 }
 0x3c4   : > { %v11517_v59 = vpop.f32.mrf.mxu0  ;;  %v11520_v43 = vadd.f32 %v5346_v3, %v11384_v26 }
 0x3c5   : > { %v8020_v56 = vpop.f32.mrf.mxu1 }
 0x3c6   : > { %v11522_v22 = vpop.f32.mrf.mxu0  ;;  %v11525_v37 = vadd.f32 %v8020_v56, %v11390_v25 }
 0x3c7   : > { %v5359_v15 = vpop.f32.mrf.mxu1 }
 0x3c8   : > { %v11527_v36 = vpop.f32.mrf.mxu0  ;;  %v11530_v46 = vadd.f32 %v5359_v15, %v11394_v29 }
 0x3c9   : > { %v8021_v16 = vpop.f32.mrf.mxu1 }
 0x3ca   : > { %v11532_v50 = vpop.f32.mrf.mxu0  ;;  %v11535_v42 = vadd.f32 %v8021_v16, %v11398_v39 }
 0x3cb   : > { %v5362_v26 = vpop.f32.mrf.mxu1 }
 0x3cc   : > { %v11537_v51 = vpop.f32.mrf.mxu0  ;;  %v11540_v14 = vadd.f32 %v5362_v26, %v11402_v27 }
 0x3cd   : > { %v8024_v25 = vpop.f32.mrf.mxu1 }
 0x3ce   : > { %v11542_v58 = vpop.f32.mrf.mxu0  ;;  %v11545_v54 = vadd.f32 %v8024_v25, %v11408_v5 }
 0x3cf   : > { %v5375_v29 = vpop.f32.mrf.mxu1 }
 0x3d0   : > { %v11547_v21 = vpop.f32.mrf.mxu0  ;;  %v11550_v62 = vadd.f32 %v5375_v29, %v11412_v44 }
 0x3d1   : > { %v8025_v39 = vpop.f32.mrf.mxu1 }
 0x3d2   : > { %v11552_v38 = vpop.f32.mrf.mxu0  ;;  %v11555_v7 = vadd.f32 %v8025_v39, %v11416_v12 }
 0x3d3   : > { %v5378_v27 = vpop.f32.mrf.mxu1 }
 0x3d4   : > { %v11557_v2 = vpop.f32.mrf.mxu0  ;;  %v11560_v63 = vadd.f32 %v5378_v27, %v11420_v0 }
 0x3d5   : > { %v8028_v5 = vpop.f32.mrf.mxu1 }
 0x3d6   : > { %v11562_v57 = vpop.f32.mrf.mxu0  ;;  %v11565_v19 = vadd.f32 %v8028_v5, %v11426_v52 }
 0x3d7   : > { %v5391_v44 = vpop.f32.mrf.mxu1 }
 0x3d8   : > { %v11567_v6 = vpop.f32.mrf.mxu0  ;;  %v11570_v24 = vadd.f32 %v5391_v44, %v11430_v28 }
 0x3d9   : > { %v8029_v12 = vpop.f32.mrf.mxu1 }
 0x3da   : > { %v11572_v13 = vpop.f32.mrf.mxu0  ;;  %v11575_v18 = vadd.f32 %v8029_v12, %v11434_v4 }
 0x3db   : > { %v5394_v0 = vpop.f32.mrf.mxu1 }
 0x3dc   : > { %v11577_v53 = vpop.f32.mrf.mxu0  ;;  %v11580_v32 = vadd.f32 %v5394_v0, %v11438_v41 }
 0x3dd   : > { %12913 = vst [vmem:[#allocation160_spill] sm:$0xff] %v11577_v53  ;;  %v8032_v52 = vpop.f32.mrf.mxu1 }
 0x3de   : > { %12914 = vst [vmem:[#allocation51_spill] sm:$0xff] %v11580_v32  ;;  %v11582_v3 = vpop.f32.mrf.mxu0  ;;  %v11585_v56 = vadd.f32 %v8032_v52, %v11444_v17 }
 0x3df   : > { %12915 = vst [vmem:[#allocation135_spill] sm:$0xff] %v11582_v3  ;;  %v5407_v28 = vpop.f32.mrf.mxu1 }
 0x3e0   : > { %12916 = vst [vmem:[#allocation37_spill] sm:$0xff] %v11585_v56  ;;  %v11587_v15 = vpop.f32.mrf.mxu0  ;;  %v11590_v16 = vadd.f32 %v5407_v28, %v11448_v31 }
 0x3e1   : > { %12917 = vst [vmem:[#allocation52_spill] sm:$0xff] %v11587_v15  ;;  %v8033_v4 = vpop.f32.mrf.mxu1 }
 0x3e2   : > { %12918 = vst [vmem:[#allocation65_spill] sm:$0xff] %v11590_v16  ;;  %v11592_v26 = vpop.f32.mrf.mxu0  ;;  %v11595_v25 = vadd.f32 %v8033_v4, %v11452_v1 }
 0x3e3   : > { %12919 = vst [vmem:[#allocation66_spill] sm:$0xff] %v11592_v26  ;;  %v5410_v41 = vpop.f32.mrf.mxu1 }
 0x3e4   : > { %12920 = vst [vmem:[#allocation134_spill] sm:$0xff] %v11595_v25  ;;  %v11597_v29 = vpop.f32.mrf.mxu0  ;;  %v11600_v39 = vadd.f32 %v5410_v41, %v11456_v30 }
 0x3e5   : > { %12921 = vst [vmem:[#allocation161_spill] sm:$0xff] %v11597_v29  ;;  %v8036_v17 = vpop.f32.mrf.mxu1 }
 0x3e6   : > { %12922 = vst [vmem:[#allocation162_spill] sm:$0xff] %v11600_v39  ;;  %v11602_v27 = vpop.f32.mrf.mxu0  ;;  %v11605_v5 = vadd.f32 %v8036_v17, %v11462_v9 }
 0x3e7   : > { %12923 = vst [vmem:[#allocation105_spill] sm:$0xff] %v11602_v27  ;;  %v5423_v31 = vpop.f32.mrf.mxu1 }
 0x3e8   : > { %12924 = vst [vmem:[#allocation163_spill] sm:$0xff] %v11605_v5  ;;  %v11607_v44 = vpop.f32.mrf.mxu0  ;;  %v11610_v12 = vadd.f32 %v5423_v31, %v11465_v55 }
 0x3e9   : > { %12925 = vst [vmem:[#allocation164_spill] sm:$0xff] %v11607_v44  ;;  %v8037_v1 = vpop.f32.mrf.mxu1 }
 0x3ea   : > { %12926 = vst [vmem:[#allocation106_spill] sm:$0xff] %v11610_v12  ;;  %v11612_v0 = vpop.f32.mrf.mxu0  ;;  %v11615_v52 = vadd.f32 %v8037_v1, %v11468_v47 }
 0x3eb   : > { %12927 = vst [vmem:[#allocation165_spill] sm:$0xff] %v11612_v0  ;;  %v5426_v30 = vpop.f32.mrf.mxu1 }
 0x3ec   : > { %12928 = vst [vmem:[#allocation113_spill] sm:$0xff] %v11615_v52  ;;  %v11617_v28 = vpop.f32.mrf.mxu0  ;;  %v11620_v4 = vadd.f32 %v5426_v30, %v11472_v61 }
 0x3ed   : > { %12929 = vst [vmem:[#allocation166_spill] sm:$0xff] %v11617_v28  ;;  %v8040_v9 = vpop.f32.mrf.mxu1 }
 0x3ee   : > { %12930 = vst [vmem:[#allocation167_spill] sm:$0xff] %v11620_v4  ;;  %v11622_v41 = vpop.f32.mrf.mxu0  ;;  %v11625_v17 = vadd.f32 %v8040_v9, %v11481_v8 }
 0x3ef   : > { %12931 = vst [vmem:[#allocation74_spill] sm:$0xff] %v11622_v41  ;;  %v5439_v55 = vpop.f32.mrf.mxu1 }
 0x3f0   : > { %12932 = vst [vmem:[#allocation168_spill] sm:$0xff] %v11625_v17  ;;  %v11627_v31 = vpop.f32.mrf.mxu0  ;;  %v11630_v0 = vadd.f32 %v5439_v55, %v11484_v49 }
 0x3f1   : > { %12933 = vst [vmem:[#allocation118_spill] sm:$0xff] %v11627_v31  ;;  %v8041_v47 = vpop.f32.mrf.mxu1 }
 0x3f2   : > { %12934 = vst [vmem:[#allocation169_spill] sm:$0xff] %v11630_v0  ;;  %v11632_v1 = vpop.f32.mrf.mxu0  ;;  %v11635_v28 = vadd.f32 %v8041_v47, %v11487_v20 }
 0x3f3   : > { %12935 = vst [vmem:[#allocation170_spill] sm:$0xff] %v11632_v1  ;;  %v5442_v61 = vpop.f32.mrf.mxu1 }
 0x3f4   : > { %12936 = vst [vmem:[#allocation117_spill] sm:$0xff] %v11635_v28  ;;  %v11637_v30 = vpop.f32.mrf.mxu0  ;;  %v11640_v41 = vadd.f32 %v5442_v61, %v11491_v11 }
 0x3f5   : > { %12937 = vst [vmem:[#allocation171_spill] sm:$0xff] %v11637_v30  ;;  %v8044_v8 = vpop.f32.mrf.mxu1 }
 0x3f6   : > { %12938 = vst [vmem:[#allocation172_spill] sm:$0xff] %v11640_v41  ;;  %v11642_v9 = vpop.f32.mrf.mxu0  ;;  %v11645_v31 = vadd.f32 %v8044_v8, %v11494_v33 }
 0x3f7   : > { %12939 = vst [vmem:[#allocation149_spill] sm:$0xff] %v11642_v9  ;;  %v5455_v49 = vpop.f32.mrf.mxu1 }
 0x3f8   : > { %12940 = vst [vmem:[#allocation128_spill] sm:$0xff] %v11645_v31  ;;  %v11647_v55 = vpop.f32.mrf.mxu0  ;;  %v11650_v1 = vadd.f32 %v5455_v49, %v11497_v23 }
 0x3f9   : > { %12941 = vst [vmem:[#allocation123_spill] sm:$0xff] %v11647_v55  ;;  %v8045_v20 = vpop.f32.mrf.mxu1 }
 0x3fa   : > { %12942 = vst [vmem:[#allocation142_spill] sm:$0xff] %v11650_v1  ;;  %v11652_v47 = vpop.f32.mrf.mxu0  ;;  %v11655_v30 = vadd.f32 %v8045_v20, %v11500_v10 }
 0x3fb   : > { %12943 = vst [vmem:[#allocation90_spill] sm:$0xff] %v11652_v47  ;;  %v5458_v11 = vpop.f32.mrf.mxu1 }
 0x3fc   : > { %12944 = vst [vmem:[#allocation101_spill] sm:$0xff] %v11655_v30  ;;  %v11657_v61 = vpop.f32.mrf.mxu0  ;;  %v11660_v9 = vadd.f32 %v5458_v11, %v11502_v48 }
 0x3fd   : > { %12945 = vst [vmem:[#allocation89_spill] sm:$0xff] %v11657_v61  ;;  %v8084_v8 = vpop.f32.mrf.mxu1 }
 0x3fe   : > { %12946 = vst [vmem:[#allocation102_spill] sm:$0xff] %v11660_v9  ;;  %v11662_v33 = vpop.f32.mrf.mxu0 }
 0x3ff   : > { %12947 = vst [vmem:[#allocation104_spill] sm:$0xff] %v11662_v33  ;;  %v6001_v31 = vpop.f32.mrf.mxu1 }
 0x400   : > { %v8118_v55 = vpop.f32.mrf.mxu0 }
 0x401   : > { %v8085_v41 = vpop.f32.mrf.mxu1 }
 0x402   : > { %v6298_v23 = vpop.f32.mrf.mxu0 }
 0x403   : > { %v6004_v49 = vpop.f32.mrf.mxu1 }
 0x404   : > { %v8119_v1 = vpop.f32.mrf.mxu0 }
 0x405   : > { %v8088_v28 = vpop.f32.mrf.mxu1 }
 0x406   : > { %v11664_v47 = vpop.f32.mrf.mxu0 }
 0x407   : > { %v11666_v10 = vpop.f32.mrf.mxu1 }
 0x408   : > { %v11670_v61 = vpop.f32.mrf.mxu0 }
 0x409   : > { %v11668_v20 = vpop.f32.mrf.mxu1 }
 0x40a   : > { %v11676_v33 = vpop.f32.mrf.mxu0 }
 0x40b   : > { %v11672_v48 = vpop.f32.mrf.mxu1 }
 0x40c   : > { %v11682_v0 = vpop.f32.mrf.mxu0 }
 0x40d   : > { %v11674_v11 = vpop.f32.mrf.mxu1 }
 0x40e   : > { %v11688_v52 = vpop.f32.mrf.mxu0 }
 0x40f   : > { %v11678_v9 = vpop.f32.mrf.mxu1 }
 0x410   : > { %v11694_v5 = vpop.f32.mrf.mxu0 }
 0x411   : > { %v11680_v30 = vpop.f32.mrf.mxu1 }
 0x412   : > { %v11700_v29 = vpop.f32.mrf.mxu0 }
 0x413   : > { %v11684_v17 = vpop.f32.mrf.mxu1 }
 0x414   : > { %v11706_v16 = vpop.f32.mrf.mxu0 }
 0x415   : > { %v11686_v4 = vpop.f32.mrf.mxu1 }
 0x416   : > { %v11712_v3 = vpop.f32.mrf.mxu0 }
 0x417   : > { %v11690_v12 = vpop.f32.mrf.mxu1  ;;  %12956 = vst [vmem:[#allocation63_spill] sm:$0xff] %v11712_v3 }
 0x418   : > { %12948 = vst [vmem:[#allocation103_spill] sm:$0xff] %v11690_v12 }
 0x419   : > { %v11692_v44 = vpop.f32.mrf.mxu1 }
 0x41a   : > { %12949 = vst [vmem:[#allocation115_spill] sm:$0xff] %v11692_v44 }
 0x41b   : > { %v11696_v27 = vpop.f32.mrf.mxu1 }
 0x41c   : > { %12950 = vst [vmem:[#allocation138_spill] sm:$0xff] %v11696_v27  ;;  %v11718_v27 = vpop.f32.mrf.mxu0 }
 0x41d   : > { %v11698_v39 = vpop.f32.mrf.mxu1 }
 0x41e   : > { %12951 = vst [vmem:[#allocation137_spill] sm:$0xff] %v11698_v39 }
 0x41f   : > { %v11702_v25 = vpop.f32.mrf.mxu1 }
 0x420   : > { %12952 = vst [vmem:[#allocation86_spill] sm:$0xff] %v11702_v25  ;;  %v11724_v25 = vpop.f32.mrf.mxu0 }
 0x421   : > { %v11704_v26 = vpop.f32.mrf.mxu1  ;;  %12961 = vst [vmem:[#allocation87_spill] sm:$0xff] %v11724_v25 }
 0x422   : > { %12953 = vst [vmem:[#allocation79_spill] sm:$0xff] %v11704_v26 }
 0x423   : > { %v11708_v15 = vpop.f32.mrf.mxu1 }
 0x424   : > { %12954 = vst [vmem:[#allocation64_spill] sm:$0xff] %v11708_v15  ;;  %v11730_v15 = vpop.f32.mrf.mxu0 }
 0x425   : > { %v11710_v56 = vpop.f32.mrf.mxu1  ;;  %12964 = vst [vmem:[#allocation88_spill] sm:$0xff] %v11730_v15 }
 0x426   : > { %12955 = vst [vmem:[#allocation80_spill] sm:$0xff] %v11710_v56 }
 0x427   : > { %v11714_v44 = vpop.f32.mrf.mxu1 }
 0x428   : > { %12957 = vst [vmem:[#allocation153_spill] sm:$0xff] %v11714_v44  ;;  %v11738_v44 = vpop.f32.mrf.mxu0 }
 0x429   : > { %v11716_v32 = vpop.f32.mrf.mxu1  ;;  %12967 = vst [vmem:[#allocation125_spill] sm:$0xff] %v11738_v44 }
 0x42a   : > { %12958 = vst [vmem:[#allocation76_spill] sm:$0xff] %v11716_v32  ;;  %v5801_v32 = vadd.f32 %v11507_v60, %v11505_v45  ;;  %v11748_v15 = vpop.f32.mrf.mxu0  ;;  %v5800_v45 = vadd.f32 %v11522_v22, %v11520_v43 }
 0x42b   : > { %v11720_v39 = vpop.f32.mrf.mxu1 }
 0x42c   : > { %12959 = vst [vmem:[#allocation93_spill] sm:$0xff] %v11720_v39 }
 0x42d   : > { %v11722_v12 = vpop.f32.mrf.mxu1 }
 0x42e   : > { %12960 = vst [vmem:[#allocation94_spill] sm:$0xff] %v11722_v12  ;;  %v5799_v12 = vadd.f32 %v11512_v35, %v11510_v34  ;;  %v5805_v34 = vadd.f32 %v11527_v36, %v11525_v37  ;;  %v8221_v37 = vld [vmem:[%s8490_s16 + $0x10] sm:$0xff] }
 0x42f   : > { %v11726_v26 = vpop.f32.mrf.mxu1 }
 0x430   : > { %12962 = vst [vmem:[#allocation77_spill] sm:$0xff] %v11726_v26  ;;  %v6130_v26 = vadd.f32 %v8084_v8, %v5801_v32  ;;  %v6129_v32 = vadd.f32 %v6004_v49, %v5800_v45  ;;  %v5809_v49 = vadd.f32 %v11547_v21, %v11545_v54  ;;  %v12972_v21 = vld [vmem:[#allocation9_spill] sm:$0xff] }
 0x431   : > { %v11728_v53 = vpop.f32.mrf.mxu1 }
 0x432   : > { %12963 = vst [vmem:[#allocation40_spill] sm:$0xff] %v11728_v53  ;;  %v5802_v53 = vadd.f32 %v11517_v59, %v11515_v40  ;;  %v6427_v60 = vadd.f32 %v8118_v55, %v6130_v26  ;;  %v5803_v40 = vadd.f32 %v11532_v50, %v11530_v46  ;;  %v11765_v59 = vpop.f32.mrf.mxu0  ;;  %v5806_v26 = vadd.f32 %v11537_v51, %v11535_v42  ;;  %v12969_v46 = vld [vmem:[#allocation4_spill] sm:$0xff]  ;;  %v12970_v51 = vld [vmem:[#allocation6_spill] sm:$0xff] }
 0x433   : > { %v11732_v56 = vpop.f32.mrf.mxu1  ;;  %v6138_v54 = vadd.f32 %v11674_v11, %v5809_v49 }
 0x434   : > { %12965 = vst [vmem:[#allocation107_spill] sm:$0xff] %v11732_v56  ;;  %v6128_v56 = vadd.f32 %v6001_v31, %v5799_v12  ;;  %v6426_v12 = vadd.f32 %v11664_v47, %v6129_v32  ;;  %v6135_v42 = vadd.f32 %v11668_v20, %v5806_v26 }
 0x435   : > { %v11734_v3 = vpop.f32.mrf.mxu1 }
 0x436   : > { %12966 = vst [vmem:[#allocation108_spill] sm:$0xff] %v11734_v3  ;;  %v6425_v35 = vadd.f32 %v6298_v23, %v6128_v56  ;;  %v6432_v32 = vadd.f32 %v11682_v0, %v6135_v42 }
 0x437   : > { %v11740_v39 = vpop.f32.mrf.mxu1 }
 0x438   : > { %12968 = vst [vmem:[#allocation148_spill] sm:$0xff] %v11740_v39  ;;  %v6131_v39 = vadd.f32 %v8085_v41, %v5802_v53  ;;  %v6134_v53 = vadd.f32 %v8088_v28, %v5805_v34  ;;  %v6132_v41 = vadd.f32 %v11666_v10, %v5803_v40  ;;  %v11777_v28 = vpop.f32.mrf.mxu0 }
 0x439   : > { %v11744_v25 = vpop.f32.mrf.mxu1 }
 0x43a   : > { %v6428_v22 = vadd.f32 %v8119_v1, %v6131_v39  ;;  %v5804_v39 = vadd.f32 %v11542_v58, %v11540_v14  ;;  %v6431_v55 = vadd.f32 %v11670_v61, %v6134_v53  ;;  %v6429_v45 = vadd.f32 %v11676_v33, %v6132_v41  ;;  %v12971_v58 = vld [vmem:[#allocation5_spill] sm:$0xff]  ;;  %v11793_v34 = vpop.f32.mrf.mxu0 }
 0x43b   : > { %v11750_v3 = vpop.f32.mrf.mxu1 }
 0x43c   : > { %v6133_v14 = vadd.f32 %v11672_v48, %v5804_v39  ;;  %v11809_v53 = vpop.f32.mrf.mxu0 }
 0x43d   : > { %v8152_v44 = vpop.f32.mrf.mxu1 }
 0x43e   : > { %v6756_v8 = vadd.f32 %v8152_v44, %v6427_v60  ;;  %v5807_v60 = vadd.f32 %v11552_v38, %v11550_v62  ;;  %v12973_v38 = vld [vmem:[#allocation7_spill] sm:$0xff]  ;;  %v11825_v41 = vpop.f32.mrf.mxu0 }
 0x43f   : > { %v6627_v43 = vpop.f32.mrf.mxu1 }
 0x440   : > { %v6788_v36 = vadd.f32 %v8221_v37, %v6756_v8  ;;  %v6754_v56 = vadd.f32 %v6627_v43, %v6425_v35  ;;  %v5810_v8 = vadd.f32 %v11557_v2, %v11555_v7  ;;  %v6430_v43 = vadd.f32 %v11688_v52, %v6133_v14  ;;  %v12974_v2 = vld [vmem:[#allocation10_spill] sm:$0xff] }
 0x441   : > { %v8153_v44 = vpop.f32.mrf.mxu1  ;;  %v6136_v62 = vadd.f32 %v11678_v9, %v5807_v60 }
 0x442   : > { %6820 = vst.msk [vmem:[%s11761_s19 + $0x10] sm:$0xff] %vm540_vm0, %v6788_v36  ;;  %v6786_v50 = vadd.f32 %v6754_v56, %v12969_v46  ;;  %v6757_v31 = vadd.f32 %v8153_v44, %v6428_v22  ;;  %v5808_v22 = vadd.f32 %v11562_v57, %v11560_v63  ;;  %v6435_v36 = vadd.f32 %v11694_v5, %v6138_v54  ;;  %v12975_v57 = vld [vmem:[#allocation8_spill] sm:$0xff] }
 0x443   : > { %v6630_v1 = vpop.f32.mrf.mxu1  ;;  %v6139_v7 = vadd.f32 %v11680_v30, %v5810_v8  ;;  %v5813_v56 = vadd.f32 %v11567_v6, %v11565_v19  ;;  %v6433_v44 = vadd.f32 %v11700_v29, %v6136_v62  ;;  %v12976_v6 = vld [vmem:[#allocation13_spill] sm:$0xff]  ;;  %v12988_v8 = vld [vmem:[#allocation138_spill] sm:$0xff] }
 0x444   : > { %6818 = vst.msk [vmem:[%s11761_s19] sm:$0xff] %vm540_vm0, %v6786_v50  ;;  %v6789_v47 = vadd.f32 %v6757_v31, %v12970_v51  ;;  %v6755_v23 = vadd.f32 %v6630_v1, %v6426_v12  ;;  %v6137_v63 = vadd.f32 %v11684_v17, %v5808_v22  ;;  %v5811_v12 = vadd.f32 %v11572_v13, %v11570_v24  ;;  %v12977_v31 = vld [vmem:[#allocation160_spill] sm:$0xff]  ;;  %v12979_v24 = vld [vmem:[#allocation103_spill] sm:$0xff] }
 0x445   : > { %v8156_v10 = vpop.f32.mrf.mxu1  ;;  %v6436_v50 = vadd.f32 %v11706_v16, %v6139_v7  ;;  %v6142_v19 = vadd.f32 %v11686_v4, %v5813_v56  ;;  %v5814_v39 = vadd.f32 %v12977_v31, %v11575_v18  ;;  %v12980_v16 = vld [vmem:[#allocation11_spill] sm:$0xff]  ;;  %v13001_v31 = vld [vmem:[#allocation105_spill] sm:$0xff] }
 0x446   : > { %6821 = vst.msk [vmem:[%s11761_s19 + $0x18] sm:$0xff] %vm540_vm0, %v6789_v47  ;;  %v6787_v61 = vadd.f32 %v6755_v23, %v12971_v58  ;;  %v6760_v20 = vadd.f32 %v8156_v10, %v6431_v55  ;;  %v12978_v55 = vld [vmem:[#allocation63_spill] sm:$0xff]  ;;  %v6140_v13 = vadd.f32 %v12979_v24, %v5811_v12  ;;  %v11841_v10 = vpop.f32.mrf.mxu0 }
 0x447   : > { %v6643_v35 = vpop.f32.mrf.mxu1  ;;  %v6434_v42 = vadd.f32 %v12978_v55, %v6137_v63  ;;  %v12981_v47 = vld [vmem:[#allocation51_spill] sm:$0xff]  ;;  %v6439_v14 = vadd.f32 %v11718_v27, %v6142_v19  ;;  %v12989_v27 = vld [vmem:[#allocation12_spill] sm:$0xff]  ;;  %v12996_v63 = vld [vmem:[#allocation161_spill] sm:$0xff] }
 0x448   : > { %6819 = vst.msk [vmem:[%s11761_s19 + $0x8] sm:$0xff] %vm540_vm0, %v6787_v61  ;;  %v6792_v33 = vadd.f32 %v6760_v20, %v12972_v21  ;;  %v6758_v48 = vadd.f32 %v6643_v35, %v6429_v45  ;;  %v12982_v23 = vld [vmem:[#allocation135_spill] sm:$0xff]  ;;  %v12984_v61 = vld [vmem:[#allocation14_spill] sm:$0xff]  ;;  %v12985_v35 = vld [vmem:[#allocation37_spill] sm:$0xff]  ;;  %v11857_v22 = vpop.f32.mrf.mxu0 }
 0x449   : > { %v8157_v40 = vpop.f32.mrf.mxu1  ;;  %v5812_v49 = vadd.f32 %v12982_v23, %v12981_v47  ;;  %v12983_v18 = vld [vmem:[#allocation115_spill] sm:$0xff]  ;;  %v13005_v23 = vld [vmem:[#allocation164_spill] sm:$0xff] }
 0x44a   : > { %6824 = vst.msk [vmem:[%s11761_s19 + $0x30] sm:$0xff] %vm540_vm0, %v6792_v33  ;;  %v6790_v0 = vadd.f32 %v6758_v48, %v12973_v38  ;;  %v6761_v11 = vadd.f32 %v8157_v40, %v6432_v32  ;;  %v6143_v58 = vadd.f32 %v12983_v18, %v5814_v39  ;;  %v12986_v32 = vld [vmem:[#allocation52_spill] sm:$0xff]  ;;  %v12987_v33 = vld [vmem:[#allocation87_spill] sm:$0xff]  ;;  %v12990_v38 = vld [vmem:[#allocation65_spill] sm:$0xff] }
 0x44b   : > { %v6646_v37 = vpop.f32.mrf.mxu1  ;;  %v5817_v54 = vadd.f32 %v12986_v32, %v12985_v35  ;;  %v6437_v48 = vadd.f32 %v12987_v33, %v6140_v13  ;;  %v6141_v40 = vadd.f32 %v12988_v8, %v5812_v49  ;;  %v12999_v19 = vld [vmem:[#allocation15_spill] sm:$0xff]  ;;  %v13006_v18 = vld [vmem:[#allocation64_spill] sm:$0xff]  ;;  %v13009_v35 = vld [vmem:[#allocation165_spill] sm:$0xff] }
 0x44c   : > { %6822 = vst.msk [vmem:[%s11761_s19 + $0x20] sm:$0xff] %vm540_vm0, %v6790_v0  ;;  %v6793_v52 = vadd.f32 %v6761_v11, %v12974_v2  ;;  %v6759_v9 = vadd.f32 %v6646_v37, %v6430_v43  ;;  %v12991_v0 = vld [vmem:[#allocation66_spill] sm:$0xff]  ;;  %v12993_v2 = vld [vmem:[#allocation137_spill] sm:$0xff]  ;;  %v13002_v24 = vld [vmem:[#allocation79_spill] sm:$0xff] }
 0x44d   : > { %v8160_v26 = vpop.f32.mrf.mxu1  ;;  %v5815_v11 = vadd.f32 %v12991_v0, %v12990_v38  ;;  %v13004_v47 = vld [vmem:[#allocation163_spill] sm:$0xff] }
 0x44e   : > { %6825 = vst.msk [vmem:[%s11761_s19 + $0x38] sm:$0xff] %vm540_vm0, %v6793_v52  ;;  %v6791_v5 = vadd.f32 %v6759_v9, %v12975_v57  ;;  %v6764_v30 = vadd.f32 %v8160_v26, %v6435_v36  ;;  %v12992_v36 = vld [vmem:[#allocation88_spill] sm:$0xff]  ;;  %v6146_v52 = vadd.f32 %v12993_v2, %v5817_v54  ;;  %v12994_v9 = vld [vmem:[#allocation17_spill] sm:$0xff]  ;;  %v5821_v49 = vadd.f32 %v13005_v23, %v13004_v47  ;;  %v13026_v47 = vld [vmem:[#allocation94_spill] sm:$0xff] }
 0x44f   : > { %v6659_v46 = vpop.f32.mrf.mxu1  ;;  %v6440_v7 = vadd.f32 %v12992_v36, %v6143_v58 }
 0x450   : > { %6823 = vst.msk [vmem:[%s11761_s19 + $0x28] sm:$0xff] %vm540_vm0, %v6791_v5  ;;  %v6796_v29 = vadd.f32 %v6764_v30, %v12976_v6  ;;  %v6762_v17 = vadd.f32 %v6659_v46, %v6433_v44  ;;  %v12995_v44 = vld [vmem:[#allocation134_spill] sm:$0xff]  ;;  %v12997_v30 = vld [vmem:[#allocation125_spill] sm:$0xff] }
 0x451   : > { %v8161_v1 = vpop.f32.mrf.mxu1  ;;  %v5818_v57 = vadd.f32 %v12996_v63, %v12995_v44  ;;  %v6438_v12 = vadd.f32 %v12997_v30, %v6141_v40  ;;  %v12998_v46 = vld [vmem:[#allocation86_spill] sm:$0xff] }
 0x452   : > { %6828 = vst.msk [vmem:[%s11761_s19 + $0x50] sm:$0xff] %vm540_vm0, %v6796_v29  ;;  %v6794_v51 = vadd.f32 %v6762_v17, %v12980_v16  ;;  %v6765_v4 = vadd.f32 %v8161_v1, %v6436_v50  ;;  %v6144_v50 = vadd.f32 %v12998_v46, %v5815_v11  ;;  %v13000_v17 = vld [vmem:[#allocation162_spill] sm:$0xff]  ;;  %v8142_v1 = vpop.f32.mrf.mxu0  ;;  %v13020_v46 = vld [vmem:[#allocation168_spill] sm:$0xff] }
 0x453   : > { %v6662_v45 = vpop.f32.mrf.mxu1  ;;  %v5816_v39 = vadd.f32 %v13001_v31, %v13000_v17  ;;  %v6147_v13 = vadd.f32 %v13002_v24, %v5818_v57  ;;  %v13003_v16 = vld [vmem:[#allocation18_spill] sm:$0xff]  ;;  %v13018_v57 = vld [vmem:[#allocation76_spill] sm:$0xff]  ;;  %v13022_v17 = vld [vmem:[#allocation93_spill] sm:$0xff] }
 0x454   : > { %6826 = vst.msk [vmem:[%s11761_s19 + $0x40] sm:$0xff] %vm540_vm0, %v6794_v51  ;;  %v6797_v20 = vadd.f32 %v6765_v4, %v12984_v61  ;;  %v6763_v60 = vadd.f32 %v6662_v45, %v6434_v42  ;;  %v6443_v42 = vadd.f32 %v11748_v15, %v6146_v52  ;;  %v13007_v15 = vld [vmem:[#allocation16_spill] sm:$0xff]  ;;  %v6394_v54 = vpop.f32.mrf.mxu0  ;;  %v13016_v52 = vld [vmem:[#allocation167_spill] sm:$0xff]  ;;  %v13025_v24 = vld [vmem:[#allocation170_spill] sm:$0xff] }
 0x455   : > { %v8164_v21 = vpop.f32.mrf.mxu1  ;;  %v6145_v58 = vadd.f32 %v13006_v18, %v5816_v39  ;;  %v6444_v33 = vadd.f32 %v11777_v28, %v6147_v13  ;;  %v13015_v28 = vld [vmem:[#allocation19_spill] sm:$0xff] }
 0x456   : > { %6829 = vst.msk [vmem:[%s11761_s19 + $0x58] sm:$0xff] %vm540_vm0, %v6797_v20  ;;  %v6795_v43 = vadd.f32 %v6763_v60, %v12989_v27  ;;  %v6768_v62 = vadd.f32 %v8164_v21, %v6439_v14  ;;  %v6441_v14 = vadd.f32 %v11765_v59, %v6144_v50  ;;  %v13008_v60 = vld [vmem:[#allocation106_spill] sm:$0xff]  ;;  %v13011_v59 = vld [vmem:[#allocation21_spill] sm:$0xff]  ;;  %v13029_v18 = vld [vmem:[#allocation171_spill] sm:$0xff] }
 0x457   : > { %v6675_v37 = vpop.f32.mrf.mxu1  ;;  %v5819_v32 = vadd.f32 %v13009_v35, %v13008_v60  ;;  %v6442_v11 = vadd.f32 %v11793_v34, %v6145_v58  ;;  %v13019_v34 = vld [vmem:[#allocation22_spill] sm:$0xff] }
 0x458   : > { %6827 = vst.msk [vmem:[%s11761_s19 + $0x48] sm:$0xff] %vm540_vm0, %v6795_v43  ;;  %v6800_v56 = vadd.f32 %v6768_v62, %v12994_v9  ;;  %v6766_v26 = vadd.f32 %v6675_v37, %v6437_v48  ;;  %v13010_v48 = vld [vmem:[#allocation80_spill] sm:$0xff]  ;;  %v13012_v43 = vld [vmem:[#allocation113_spill] sm:$0xff]  ;;  %v13013_v62 = vld [vmem:[#allocation166_spill] sm:$0xff] }
 0x459   : > { %v8165_v5 = vpop.f32.mrf.mxu1  ;;  %v6150_v8 = vadd.f32 %v13010_v48, %v5821_v49  ;;  %v5822_v38 = vadd.f32 %v13013_v62, %v13012_v43  ;;  %v13014_v37 = vld [vmem:[#allocation153_spill] sm:$0xff]  ;;  %v13017_v9 = vld [vmem:[#allocation74_spill] sm:$0xff] }
 0x45a   : > { %6832 = vst.msk [vmem:[%s11761_s19 + $0x70] sm:$0xff] %vm540_vm0, %v6800_v56  ;;  %v6798_v6 = vadd.f32 %v6766_v26, %v12999_v19  ;;  %v6769_v29 = vadd.f32 %v8165_v5, %v6440_v7  ;;  %v6148_v36 = vadd.f32 %v13014_v37, %v5819_v32  ;;  %v5820_v56 = vadd.f32 %v13017_v9, %v13016_v52  ;;  %v8143_v26 = vpop.f32.mrf.mxu0  ;;  %v13021_v50 = vld [vmem:[#allocation118_spill] sm:$0xff]  ;;  %v13039_v52 = vld [vmem:[#allocation24_spill] sm:$0xff] }
 0x45b   : > { %v6678_v55 = vpop.f32.mrf.mxu1  ;;  %v6447_v63 = vadd.f32 %v11809_v53, %v6150_v8  ;;  %v6151_v5 = vadd.f32 %v13018_v57, %v5822_v38  ;;  %v5825_v19 = vadd.f32 %v13021_v50, %v13020_v46  ;;  %v13023_v53 = vld [vmem:[#allocation20_spill] sm:$0xff] }
 0x45c   : > { %6830 = vst.msk [vmem:[%s11761_s19 + $0x60] sm:$0xff] %vm540_vm0, %v6798_v6  ;;  %v6801_v51 = vadd.f32 %v6769_v29, %v13003_v16  ;;  %v6767_v4 = vadd.f32 %v6678_v55, %v6438_v12  ;;  %v6445_v29 = vadd.f32 %v11825_v41, %v6148_v36  ;;  %v6149_v31 = vadd.f32 %v13022_v17, %v5820_v56  ;;  %v6397_v16 = vpop.f32.mrf.mxu0  ;;  %v13027_v41 = vld [vmem:[#allocation25_spill] sm:$0xff]  ;;  %v13040_v56 = vld [vmem:[#allocation142_spill] sm:$0xff] }
 0x45d   : > { %v8168_v45 = vpop.f32.mrf.mxu1  ;;  %v6154_v23 = vadd.f32 %v13026_v47, %v5825_v19  ;;  %v13044_v19 = vld [vmem:[#allocation101_spill] sm:$0xff] }
 0x45e   : > { %6833 = vst.msk [vmem:[%s11761_s19 + $0x78] sm:$0xff] %vm540_vm0, %v6801_v51  ;;  %v6799_v61 = vadd.f32 %v6767_v4, %v13007_v15  ;;  %v6772_v20 = vadd.f32 %v8168_v45, %v6443_v42  ;;  %v13024_v42 = vld [vmem:[#allocation169_spill] sm:$0xff]  ;;  %v6448_v4 = vadd.f32 %v11841_v10, %v6151_v5  ;;  %v13031_v10 = vld [vmem:[#allocation23_spill] sm:$0xff]  ;;  %v8146_v8 = vpop.f32.mrf.mxu0 }
 0x45f   : > { %v6691_v21 = vpop.f32.mrf.mxu1  ;;  %v5823_v13 = vadd.f32 %v13025_v24, %v13024_v42  ;;  %v13048_v24 = vld [vmem:[#allocation102_spill] sm:$0xff] }
 0x460   : > { %6831 = vst.msk [vmem:[%s11761_s19 + $0x68] sm:$0xff] %vm540_vm0, %v6799_v61  ;;  %v6804_v40 = vadd.f32 %v6772_v20, %v13011_v59  ;;  %v6770_v27 = vadd.f32 %v6691_v21, %v6441_v14  ;;  %v13028_v14 = vld [vmem:[#allocation117_spill] sm:$0xff]  ;;  %v6446_v61 = vadd.f32 %v11857_v22, %v6149_v31  ;;  %v13032_v21 = vld [vmem:[#allocation172_spill] sm:$0xff]  ;;  %v13035_v22 = vld [vmem:[#allocation26_spill] sm:$0xff]  ;;  %v6410_v57 = vpop.f32.mrf.mxu0 }
 0x461   : > { %v8169_v0 = vpop.f32.mrf.mxu1  ;;  %v5826_v58 = vadd.f32 %v13029_v18, %v13028_v14  ;;  %v13030_v20 = vld [vmem:[#allocation77_spill] sm:$0xff] }
 0x462   : > { %6836 = vst.msk [vmem:[%s11761_s19 + $0x90] sm:$0xff] %vm540_vm0, %v6804_v40  ;;  %v6802_v7 = vadd.f32 %v6770_v27, %v13015_v28  ;;  %v6773_v2 = vadd.f32 %v8169_v0, %v6444_v33  ;;  %v6152_v60 = vadd.f32 %v13030_v20, %v5823_v13  ;;  %v13033_v33 = vld [vmem:[#allocation149_spill] sm:$0xff]  ;;  %v6451_v40 = vadd.f32 %v8142_v1, %v6154_v23  ;;  %v13034_v27 = vld [vmem:[#allocation40_spill] sm:$0xff] }
 0x463   : > { %v6694_v44 = vpop.f32.mrf.mxu1  ;;  %v5824_v48 = vadd.f32 %v13033_v33, %v13032_v21  ;;  %v6155_v43 = vadd.f32 %v13034_v27, %v5826_v58  ;;  %v13036_v0 = vld [vmem:[#allocation128_spill] sm:$0xff]  ;;  %v13054_v27 = vld [vmem:[#allocation34_spill] sm:$0xff] }
 0x464   : > { %6834 = vst.msk [vmem:[%s11761_s19 + $0x80] sm:$0xff] %vm540_vm0, %v6802_v7  ;;  %v6805_v30 = vadd.f32 %v6773_v2, %v13019_v34  ;;  %v6771_v12 = vadd.f32 %v6694_v44, %v6442_v11  ;;  %v13037_v11 = vld [vmem:[#allocation123_spill] sm:$0xff]  ;;  %v6449_v28 = vadd.f32 %v6394_v54, %v6152_v60  ;;  %v13041_v44 = vld [vmem:[#allocation90_spill] sm:$0xff]  ;;  %v13043_v54 = vld [vmem:[#allocation29_spill] sm:$0xff] }
 0x465   : > { %v8172_v6 = vpop.f32.mrf.mxu1  ;;  %v5829_v37 = vadd.f32 %v13037_v11, %v13036_v0  ;;  %v13038_v7 = vld [vmem:[#allocation107_spill] sm:$0xff]  ;;  %v6452_v34 = vadd.f32 %v8143_v26, %v6155_v43  ;;  %v13049_v13 = vld [vmem:[#allocation104_spill] sm:$0xff] }
 0x466   : > { %6837 = vst.msk [vmem:[%s11761_s19 + $0x98] sm:$0xff] %vm540_vm0, %v6805_v30  ;;  %v6803_v39 = vadd.f32 %v6771_v12, %v13023_v53  ;;  %v6776_v55 = vadd.f32 %v8172_v6, %v6447_v63  ;;  %v6153_v2 = vadd.f32 %v13038_v7, %v5824_v48  ;;  %v5827_v63 = vadd.f32 %v13041_v44, %v13040_v56  ;;  %v13042_v30 = vld [vmem:[#allocation108_spill] sm:$0xff]  ;;  %v13045_v6 = vld [vmem:[#allocation89_spill] sm:$0xff] }
 0x467   : > { %v6707_v51 = vpop.f32.mrf.mxu1  ;;  %v6158_v12 = vadd.f32 %v13042_v30, %v5829_v37  ;;  %v13046_v53 = vld [vmem:[#allocation148_spill] sm:$0xff] }
 0x468   : > { %6835 = vst.msk [vmem:[%s11761_s19 + $0x88] sm:$0xff] %vm540_vm0, %v6803_v39  ;;  %v6808_v49 = vadd.f32 %v6776_v55, %v13027_v41  ;;  %v6774_v45 = vadd.f32 %v6707_v51, %v6445_v29  ;;  %v5830_v29 = vadd.f32 %v13045_v6, %v13044_v19  ;;  %v6450_v31 = vadd.f32 %v6397_v16, %v6153_v2  ;;  %v13047_v55 = vld [vmem:[#allocation27_spill] sm:$0xff]  ;;  %v13050_v16 = vld [vmem:[#allocation30_spill] sm:$0xff] }
 0x469   : > { %v8173_v15 = vpop.f32.mrf.mxu1  ;;  %v6156_v39 = vadd.f32 %v13046_v53, %v5827_v63  ;;  %v5828_v51 = vadd.f32 %v13049_v13, %v13048_v24  ;;  %v6455_v23 = vadd.f32 %v8146_v8, %v6158_v12 }
 0x46a   : > { %6840 = vst.msk [vmem:[%s11761_s19 + $0xb0] sm:$0xff] %vm540_vm0, %v6808_v49  ;;  %v6806_v35 = vadd.f32 %v6774_v45, %v13031_v10  ;;  %v6777_v32 = vadd.f32 %v8173_v15, %v6448_v4  ;;  %v8147_v4 = vpop.f32.mrf.mxu0  ;;  %v6159_v41 = vadd.f32 %v11744_v25, %v5830_v29  ;;  %v13051_v15 = vld [vmem:[#allocation28_spill] sm:$0xff] }
 0x46b   : > { %v6710_v59 = vpop.f32.mrf.mxu1  ;;  %v6453_v18 = vadd.f32 %v6410_v57, %v6156_v39  ;;  %v6157_v58 = vadd.f32 %v11750_v3, %v5828_v51  ;;  %v13053_v3 = vld [vmem:[#allocation31_spill] sm:$0xff] }
 0x46c   : > { %6838 = vst.msk [vmem:[%s11761_s19 + $0xa0] sm:$0xff] %vm540_vm0, %v6806_v35  ;;  %v6809_v62 = vadd.f32 %v6777_v32, %v13035_v22  ;;  %v6775_v38 = vadd.f32 %v6710_v59, %v6446_v61  ;;  %v6413_v60 = vpop.f32.mrf.mxu0  ;;  %v6456_v25 = vadd.f32 %v8147_v4, %v6159_v41  ;;  %v13052_v35 = vld [vmem:[#allocation33_spill] sm:$0xff] }
 0x46d   : > { %v8176_v36 = vpop.f32.mrf.mxu1  ;;  %v6454_v48 = vadd.f32 %v6413_v60, %v6157_v58 }
 0x46e   : > { %6841 = vst.msk [vmem:[%s11761_s19 + $0xb8] sm:$0xff] %vm540_vm0, %v6809_v62  ;;  %v6807_v1 = vadd.f32 %v6775_v38, %v13039_v52  ;;  %v6780_v9 = vadd.f32 %v8176_v36, %v6451_v40  ;;  %v13055_v62 = vld [vmem:[#allocation32_spill] sm:$0xff] }
 0x46f   : > { %v6723_v5 = vpop.f32.mrf.mxu1 }
 0x470   : > { %6839 = vst.msk [vmem:[%s11761_s19 + $0xa8] sm:$0xff] %vm540_vm0, %v6807_v1  ;;  %v6812_v46 = vadd.f32 %v6780_v9, %v13043_v54  ;;  %v6778_v50 = vadd.f32 %v6723_v5, %v6449_v28 }
 0x471   : > { %v8177_v17 = vpop.f32.mrf.mxu1 }
 0x472   : > { %6844 = vst.msk [vmem:[%s11761_s19 + $0xd0] sm:$0xff] %vm540_vm0, %v6812_v46  ;;  %v6810_v26 = vadd.f32 %v6778_v50, %v13047_v55  ;;  %v6781_v42 = vadd.f32 %v8177_v17, %v6452_v34 }
 0x473   : > { %v6726_v47 = vpop.f32.mrf.mxu1 }
 0x474   : > { %6842 = vst.msk [vmem:[%s11761_s19 + $0xc0] sm:$0xff] %vm540_vm0, %v6810_v26  ;;  %v6813_v49 = vadd.f32 %v6781_v42, %v13050_v16  ;;  %v6779_v45 = vadd.f32 %v6726_v47, %v6450_v31 }
 0x475   : > { %v8180_v14 = vpop.f32.mrf.mxu1 }
 0x476   : > { %6845 = vst.msk [vmem:[%s11761_s19 + $0xd8] sm:$0xff] %vm540_vm0, %v6813_v49  ;;  %v6811_v61 = vadd.f32 %v6779_v45, %v13051_v15  ;;  %v6784_v20 = vadd.f32 %v8180_v14, %v6455_v23 }
 0x477   : > { %v6739_v10 = vpop.f32.mrf.mxu1 }
 0x478   : > { %6843 = vst.msk [vmem:[%s11761_s19 + $0xc8] sm:$0xff] %vm540_vm0, %v6811_v61  ;;  %v6816_v32 = vadd.f32 %v6784_v20, %v13052_v35  ;;  %v6782_v21 = vadd.f32 %v6739_v10, %v6453_v18 }
 0x479   : > { %v8181_v33 = vpop.f32.mrf.mxu1 }
 0x47a   : > { %6848 = vst.msk [vmem:[%s11761_s19 + $0xf0] sm:$0xff] %vm540_vm0, %v6816_v32  ;;  %v6814_v8 = vadd.f32 %v6782_v21, %v13053_v3  ;;  %v6785_v59 = vadd.f32 %v8181_v33, %v6456_v25 }
 0x47b   : > { %v6742_v40 = vpop.f32.mrf.mxu1 }
 0x47c   : > { %6846 = vst.msk [vmem:[%s11761_s19 + $0xe0] sm:$0xff] %vm540_vm0, %v6814_v8  ;;  %v6817_v43 = vadd.f32 %v6785_v59, %v13054_v27  ;;  %v6783_v22 = vadd.f32 %v6742_v40, %v6454_v48 }
 0x47e   : > { %6849 = vst.msk [vmem:[%s11761_s19 + $0xf8] sm:$0xff] %vm540_vm0, %v6817_v43  ;;  %v6815_v38 = vadd.f32 %v6783_v22, %v13055_v62 }
 0x480   : > { %6847 = vst.msk [vmem:[%s11761_s19 + $0xe8] sm:$0xff] %vm540_vm0, %v6815_v38 }
 0x481 PF: > { %s19_s30 = sadd.s32 1, %s8228_s30  }
 0x482   : > { %p16_p4 = scmp.ge.s32.totalorder %s19_s30, 4  }
 0x484   :  { %18 = sbr.rel (!%p16_p4) target bundleno = 1 (0x1), region = 86 }

</bundles_post_ra>
